<compile_context>
chip_gen: v7x
topology: tpu7x:2x2x1
jax: 0.10.0
libtpu: 0.0.40
codegen_flags: <defaults>
</compile_context>

<pallas_src>
import functools

import jax
import jax.numpy as jnp
from jax.experimental import pallas as pl
from jax.experimental.pallas import tpu as pltpu


def _round_up(x, m):
    return ((x + m - 1) // m) * m


# ---------------------------------------------------------------------------
# Kernel 1: matmul with fused bias + LeakyReLU epilogue (layer 1).
# Whole (padded) K is reduced in one MXU call -> no K grid axis, no scratch.
# ---------------------------------------------------------------------------
def _conv_bias_lrelu_kernel(a_ref, b_ref, bias_ref, o_ref, *, alpha):
    acc = jnp.dot(a_ref[...], b_ref[...], preferred_element_type=jnp.float32)
    r = acc + bias_ref[...]                       # (tm, tn) + (1, tn)
    o_ref[...] = jnp.where(r > 0, r, alpha * r).astype(o_ref.dtype)


def pallas_conv_bias_lrelu(patches, wmat, bias, *, alpha=0.2,
                           out_dtype=jnp.bfloat16):
    """LeakyReLU(patches @ wmat + bias).  patches:(M,K), wmat:(K,N), bias:(N,)."""
    M, K = patches.shape
    _, N = wmat.shape
    tm = min(512, _round_up(M, 16))
    Mp = _round_up(M, tm)
    Kp = _round_up(K, 128)
    tn = N if N <= 128 else 128

    a_p = jnp.pad(patches, ((0, Mp - M), (0, Kp - K))).astype(jnp.bfloat16)
    b_p = jnp.pad(wmat, ((0, Kp - K), (0, 0))).astype(jnp.bfloat16)
    bias_p = bias.reshape(1, N).astype(jnp.float32)

    grid = (Mp // tm, N // tn)
    out = pl.pallas_call(
        functools.partial(_conv_bias_lrelu_kernel, alpha=alpha),
        out_shape=jax.ShapeDtypeStruct((Mp, N), out_dtype),
        grid_spec=pltpu.PrefetchScalarGridSpec(
            num_scalar_prefetch=0,
            grid=grid,
            in_specs=[
                pl.BlockSpec((tm, Kp), lambda i, j: (i, 0)),
                pl.BlockSpec((Kp, tn), lambda i, j: (0, j)),
                pl.BlockSpec((1, tn), lambda i, j: (0, j)),
            ],
            out_specs=pl.BlockSpec((tm, tn), lambda i, j: (i, j)),
        ),
        compiler_params=pltpu.CompilerParams(
            dimension_semantics=("parallel", "parallel")),
    )(a_p, b_p, bias_p)
    if Mp != M:
        out = out[:M]
    return out


# ---------------------------------------------------------------------------
# Kernel 2: matmul with fused BatchNorm (batch statistics) + LeakyReLU.
# All M rows are resident in one block, so per-channel mean / var come from
# the epilogue of the single matmul -- no extra HBM passes over y.  Zero-padded
# rows / K columns contribute 0 to both sums, so dividing by the true M is
# exact (biased, training-mode statistics, matching nn.BatchNorm2d.forward).
# ---------------------------------------------------------------------------
def _conv_bn_lrelu_kernel(a_ref, b_ref, gamma_ref, beta_ref, o_ref,
                          *, m_real, eps, alpha):
    y = jnp.dot(a_ref[...], b_ref[...], preferred_element_type=jnp.float32)
    inv_m = jnp.float32(1.0 / m_real)
    mean = jnp.sum(y, axis=0, keepdims=True) * inv_m
    var = jnp.sum(y * y, axis=0, keepdims=True) * inv_m - mean * mean
    scale = gamma_ref[...] * jax.lax.rsqrt(var + eps)
    shift = beta_ref[...] - mean * scale
    r = y * scale + shift
    o_ref[...] = jnp.where(r > 0, r, alpha * r).astype(o_ref.dtype)


def pallas_conv_bn_lrelu(patches, wmat, gamma, beta, *, eps=1e-5, alpha=0.2,
                         tn=128, out_dtype=jnp.bfloat16):
    """LeakyReLU(BN(patches @ wmat)).  patches:(M,K), wmat:(K,N)."""
    M, K = patches.shape
    _, N = wmat.shape
    Mp = _round_up(M, 16)                 # whole M resident (M <= 512 here)
    Kp = _round_up(K, 128)                # whole K in one MXU reduction
    tn = min(tn, N)
    assert N % tn == 0

    a_p = jnp.pad(patches, ((0, Mp - M), (0, Kp - K))).astype(jnp.bfloat16)
    b_p = jnp.pad(wmat, ((0, Kp - K), (0, 0))).astype(jnp.bfloat16)
    gamma_p = gamma.reshape(1, N).astype(jnp.float32)
    beta_p = beta.reshape(1, N).astype(jnp.float32)

    grid = (N // tn,)
    out = pl.pallas_call(
        functools.partial(_conv_bn_lrelu_kernel,
                          m_real=M, eps=eps, alpha=alpha),
        out_shape=jax.ShapeDtypeStruct((Mp, N), out_dtype),
        grid_spec=pltpu.PrefetchScalarGridSpec(
            num_scalar_prefetch=0,
            grid=grid,
            in_specs=[
                pl.BlockSpec((Mp, Kp), lambda j: (0, 0)),   # same block each j
                pl.BlockSpec((Kp, tn), lambda j: (0, j)),
                pl.BlockSpec((1, tn), lambda j: (0, j)),
                pl.BlockSpec((1, tn), lambda j: (0, j)),
            ],
            out_specs=pl.BlockSpec((Mp, tn), lambda j: (0, j)),
        ),
        compiler_params=pltpu.CompilerParams(
            dimension_semantics=("parallel",)),
    )(a_p, b_p, gamma_p, beta_p)
    if Mp != M:
        out = out[:M]
    return out


# ---------------------------------------------------------------------------
# Kernel 3: Cout == 1 conv + Sigmoid as a VPU reduction (row dot-product).
# ---------------------------------------------------------------------------
def _rowdot_sigmoid_kernel(a_ref, w_ref, o_ref):
    prod = a_ref[...].astype(jnp.float32) * w_ref[...].astype(jnp.float32)
    o_ref[...] = jax.nn.sigmoid(jnp.sum(prod, axis=1, keepdims=True))


def pallas_rowdot_sigmoid(patches, w_row):
    """sigmoid(patches @ w_row) for a single output channel."""
    M, K = patches.shape
    Mp = _round_up(M, 16)
    Kp = _round_up(K, 128)
    a_p = jnp.pad(patches, ((0, Mp - M), (0, Kp - K))).astype(jnp.bfloat16)
    w_p = jnp.pad(w_row.reshape(1, K), ((0, 0), (0, Kp - K))).astype(jnp.bfloat16)

    out = pl.pallas_call(
        _rowdot_sigmoid_kernel,
        out_shape=jax.ShapeDtypeStruct((Mp, 1), jnp.float32),
        grid_spec=pltpu.PrefetchScalarGridSpec(
            num_scalar_prefetch=0,
            grid=(1,),
            in_specs=[
                pl.BlockSpec((Mp, Kp), lambda i: (0, 0)),
                pl.BlockSpec((1, Kp), lambda i: (0, 0)),
            ],
            out_specs=pl.BlockSpec((Mp, 1), lambda i: (0, 0)),
        ),
        compiler_params=pltpu.CompilerParams(
            dimension_semantics=("arbitrary",)),
    )(a_p, w_p)
    return out[:M]


# ---------------------------------------------------------------------------
# Plain-JAX glue: NHWC im2col + weight flattening (pure gather/reshape layout
# ops, left to XLA).
# ---------------------------------------------------------------------------
def _im2col_nhwc(x, kh, kw, stride, pad):
    """x: (N, H, W, C) -> (N*Ho*Wo, kh*kw*C), column order (kh, kw, C)."""
    N, H, W, C = x.shape
    if pad:
        x = jnp.pad(x, ((0, 0), (pad, pad), (pad, pad), (0, 0)))
    Ho = (H + 2 * pad - kh) // stride + 1
    Wo = (W + 2 * pad - kw) // stride + 1
    if kh == 1 and kw == 1 and stride == 1:
        return x.reshape(N * Ho * Wo, C), Ho, Wo
    cols = []
    for i in range(kh):
        for j in range(kw):
            cols.append(x[:, i:i + stride * Ho:stride,
                             j:j + stride * Wo:stride, :])
    patches = jnp.stack(cols, axis=3)                 # (N, Ho, Wo, kh*kw, C)
    return patches.reshape(N * Ho * Wo, kh * kw * C), Ho, Wo


def _weight_matrix(w):
    """(Cout, Cin, kh, kw) -> (kh*kw*Cin, Cout), rows ordered (kh, kw, Cin)."""
    Cout, Cin, kh, kw = w.shape
    return jnp.transpose(w, (2, 3, 1, 0)).reshape(kh * kw * Cin, Cout)


# ---------------------------------------------------------------------------
# Discriminator forward (matches the PyTorch nn.Sequential semantics).
# ---------------------------------------------------------------------------
def discriminator_forward(x_nchw, params):
    # Single entry transpose; everything downstream stays channels-last.
    x = jnp.transpose(x_nchw, (0, 2, 3, 1))
    n = x.shape[0]

    # Layer 1: Conv2d(3, 64, 3, s=2, p=1) + bias + LeakyReLU(0.2), fused.
    p, ho, wo = _im2col_nhwc(x, 3, 3, 2, 1)
    y = pallas_conv_bias_lrelu(p, _weight_matrix(params["w1"]), params["b1"])
    x = y.reshape(n, ho, wo, -1)                      # bf16 activations

    # Layers 2-5: Conv2d(no bias) + BatchNorm2d(batch stats) + LeakyReLU(0.2),
    # one fused kernel per layer (BN stats in the matmul epilogue).
    bn_layers = [
        ("w2", "g2", "bt2", 3, 2, 1, 128),   # (w, gamma, beta, k, stride, pad, tn)
        ("w3", "g3", "bt3", 3, 2, 1, 128),   # tn=128 keeps >=2 parallel j-tiles
        ("w4", "g4", "bt4", 3, 2, 1, 256),   # tn=256 where N>=512 fills the MXU
        ("w5", "g5", "bt5", 1, 1, 0, 256),
    ]
    for wk, gk, bk, ksz, stride, pad, tn in bn_layers:
        p, ho, wo = _im2col_nhwc(x, ksz, ksz, stride, pad)
        y = pallas_conv_bn_lrelu(p, _weight_matrix(params[wk]),
                                 params[gk], params[bk], tn=tn)
        x = y.reshape(n, ho, wo, -1)

    # Layer 6: Conv2d(1024, 1, 4, valid, no bias) + Sigmoid -> VPU row-dot.
    p, ho, wo = _im2col_nhwc(x, 4, 4, 1, 0)
    w_row = _weight_matrix(params["w6"]).reshape(-1)      # (16384,)
    y = pallas_rowdot_sigmoid(p, w_row)
    return y.reshape(n, 1, ho, wo)                        # (N, 1, 1, 1)


# ---------------------------------------------------------------------------
# Deterministic parameter init (DCGAN-style N(0, 0.02) weights).
# ---------------------------------------------------------------------------
def init_params(key):
    shapes = {
        "w1": (64, 3, 3, 3),
        "w2": (128, 64, 3, 3),
        "w3": (256, 128, 3, 3),
        "w4": (512, 256, 3, 3),
        "w5": (1024, 512, 1, 1),
        "w6": (1, 1024, 4, 4),
    }
    params = {}
    keys = jax.random.split(key, len(shapes) + 1)
    for k, (name, shape) in zip(keys[:-1], shapes.items()):
        params[name] = 0.02 * jax.random.normal(k, shape, jnp.float32)
    params["b1"] = 0.02 * jax.random.normal(keys[-1], (64,), jnp.float32)
    for name, c in [("2", 128), ("3", 256), ("4", 512), ("5", 1024)]:
        params["g" + name] = jnp.ones((c,), jnp.float32)    # BN gamma
        params["bt" + name] = jnp.zeros((c,), jnp.float32)  # BN beta
    return params


if __name__ == "__main__":
    key = jax.random.PRNGKey(0)
    k_param, k_input = jax.random.split(key)
    params = init_params(k_param)

    # 64x64 input so the final 4x4 valid conv yields a 1x1 map (same
    # constraint as the PyTorch DCGAN discriminator).
    x = jax.random.normal(k_input, (2, 3, 64, 64), jnp.float32)

    fwd = jax.jit(discriminator_forward)
    out = fwd(x, params)
    out = jax.block_until_ready(out)

    assert out.shape == (2, 1, 1, 1), out.shape
    assert bool(jnp.all(jnp.isfinite(out)))
    assert bool(jnp.all((out >= 0.0) & (out <= 1.0)))
    print("KERNEL_OK")
</pallas_src>

<mosaic_0001>
module attributes {stable_mosaic.version = 11 : i64} {
  func.func @_conv_bias_lrelu_kernel(%arg0: i32, %arg1: i32, %arg2: memref<512x128xbf16, #tpu.memory_space<vmem>>, %arg3: memref<128x64xbf16, #tpu.memory_space<vmem>>, %arg4: memref<1x64xf32, #tpu.memory_space<vmem>>, %arg5: memref<512x64xbf16, #tpu.memory_space<vmem>>) attributes {dimension_semantics = [#tpu.dimension_semantics<parallel>, #tpu.dimension_semantics<parallel>], iteration_bounds = array<i64: 4, 1>, scalar_prefetch = 0 : i64, scratch_operands = 0 : i64, tpu.core_type = #tpu.core_type<tc>, window_params = [{transform_indices = @transform_0, window_bounds = array<i64: 512, 128>}, {transform_indices = @transform_1, window_bounds = array<i64: 128, 64>}, {transform_indices = @transform_2, window_bounds = array<i64: 1, 64>}, {transform_indices = @transform_3, window_bounds = array<i64: 512, 64>}]} {
    %c0 = arith.constant 0 : index
    %c0_0 = arith.constant 0 : index
    %0 = vector.load %arg2[%c0, %c0_0] : memref<512x128xbf16, #tpu.memory_space<vmem>>, vector<512x128xbf16>
    %c0_1 = arith.constant 0 : index
    %c0_2 = arith.constant 0 : index
    %1 = vector.load %arg3[%c0_1, %c0_2] : memref<128x64xbf16, #tpu.memory_space<vmem>>, vector<128x64xbf16>
    %cst = arith.constant dense<0.000000e+00> : vector<512x64xf32>
    %2 = tpu.matmul %0, %1, %cst {dimension_numbers = #tpu.dot_dimension_numbers<[1], [0], [0], [1], [0, 0, 1, 1], [], []>} : vector<512x128xbf16>, vector<128x64xbf16>, vector<512x64xf32> -> vector<512x64xf32>
    %c0_3 = arith.constant 0 : index
    %c0_4 = arith.constant 0 : index
    %3 = vector.load %arg4[%c0_3, %c0_4] : memref<1x64xf32, #tpu.memory_space<vmem>>, vector<1x64xf32>
    %4 = vector.broadcast %3 : vector<1x64xf32> to vector<512x64xf32>
    %5 = arith.addf %2, %4 : vector<512x64xf32>
    %cst_5 = arith.constant 0.000000e+00 : f32
    %6 = vector.broadcast %cst_5 : f32 to vector<512x64xf32>
    %7 = arith.cmpf ogt, %5, %6 : vector<512x64xf32>
    %cst_6 = arith.constant 2.000000e-01 : f32
    %8 = vector.broadcast %cst_6 : f32 to vector<512x64xf32>
    %9 = arith.mulf %8, %5 : vector<512x64xf32>
    %10 = arith.select %7, %5, %9 : vector<512x64xi1>, vector<512x64xf32>
    %11 = arith.truncf %10 : vector<512x64xf32> to vector<512x64xbf16>
    %c0_7 = arith.constant 0 : index
    %c0_8 = arith.constant 0 : index
    %12 = vector.load %arg5[%c0_7, %c0_8] : memref<512x64xbf16, #tpu.memory_space<vmem>>, vector<512x64xbf16>
    tpu.vector_store %arg5[%c0_7, %c0_8], %11 {strides = array<i32>} : memref<512x64xbf16, #tpu.memory_space<vmem>>, vector<512x64xbf16>,
    return
  }
  func.func @transform_0(%arg0: i32, %arg1: i32) -> (i32, i32) {
    %c0_i32 = arith.constant 0 : i32
    %c0_i32_0 = arith.constant 0 : i32
    return %arg0, %c0_i32 : i32, i32
  }
  func.func @transform_1(%arg0: i32, %arg1: i32) -> (i32, i32) {
    %c0_i32 = arith.constant 0 : i32
    %c0_i32_0 = arith.constant 0 : i32
    return %c0_i32, %arg1 : i32, i32
  }
  func.func @transform_2(%arg0: i32, %arg1: i32) -> (i32, i32) {
    %c0_i32 = arith.constant 0 : i32
    %c0_i32_0 = arith.constant 0 : i32
    return %c0_i32, %arg1 : i32, i32
  }
  func.func @transform_3(%arg0: i32, %arg1: i32) -> (i32, i32) {
    %c0_i32 = arith.constant 0 : i32
    return %arg0, %arg1 : i32, i32
  }
}

module attributes {stable_mosaic.version = 11 : i64} {
  func.func @_conv_bn_lrelu_kernel(%arg0: i32, %arg1: memref<512x640xbf16, #tpu.memory_space<vmem>>, %arg2: memref<640x128xbf16, #tpu.memory_space<vmem>>, %arg3: memref<1x128xf32, #tpu.memory_space<vmem>>, %arg4: memref<1x128xf32, #tpu.memory_space<vmem>>, %arg5: memref<512x128xbf16, #tpu.memory_space<vmem>>) attributes {dimension_semantics = [#tpu.dimension_semantics<parallel>], iteration_bounds = array<i64: 1>, scalar_prefetch = 0 : i64, scratch_operands = 0 : i64, tpu.core_type = #tpu.core_type<tc>, window_params = [{pipeline_mode = #tpu.pipeline_mode<synchronous>, transform_indices = @transform_0, window_bounds = array<i64: 512, 640>}, {transform_indices = @transform_1, window_bounds = array<i64: 640, 128>}, {transform_indices = @transform_2, window_bounds = array<i64: 1, 128>}, {transform_indices = @transform_3, window_bounds = array<i64: 1, 128>}, {transform_indices = @transform_4, window_bounds = array<i64: 512, 128>}]} {
    %c0 = arith.constant 0 : index
    %c0_0 = arith.constant 0 : index
    %0 = vector.load %arg1[%c0, %c0_0] : memref<512x640xbf16, #tpu.memory_space<vmem>>, vector<512x640xbf16>
    %c0_1 = arith.constant 0 : index
    %c0_2 = arith.constant 0 : index
    %1 = vector.load %arg2[%c0_1, %c0_2] : memref<640x128xbf16, #tpu.memory_space<vmem>>, vector<640x128xbf16>
    %cst = arith.constant dense<0.000000e+00> : vector<512x128xf32>
    %2 = tpu.matmul %0, %1, %cst {dimension_numbers = #tpu.dot_dimension_numbers<[1], [0], [0], [1], [0, 0, 1, 1], [], []>} : vector<512x640xbf16>, vector<640x128xbf16>, vector<512x128xf32> -> vector<512x128xf32>
    %cst_3 = arith.constant dense<0.000000e+00> : vector<128xf32>
    %3 = vector.multi_reduction <add>, %2, %cst_3 [0] : vector<512x128xf32> to vector<128xf32>
    %4 = vector.shape_cast %3 : vector<128xf32> to vector<1x128xf32>
    %cst_4 = arith.constant 0.001953125 : f32
    %5 = vector.broadcast %cst_4 : f32 to vector<1x128xf32>
    %6 = arith.mulf %4, %5 : vector<1x128xf32>
    %7 = arith.mulf %2, %2 : vector<512x128xf32>
    %cst_5 = arith.constant dense<0.000000e+00> : vector<128xf32>
    %8 = vector.multi_reduction <add>, %7, %cst_5 [0] : vector<512x128xf32> to vector<128xf32>
    %9 = vector.shape_cast %8 : vector<128xf32> to vector<1x128xf32>
    %cst_6 = arith.constant 0.001953125 : f32
    %10 = vector.broadcast %cst_6 : f32 to vector<1x128xf32>
    %11 = arith.mulf %9, %10 : vector<1x128xf32>
    %12 = arith.mulf %6, %6 : vector<1x128xf32>
    %13 = arith.subf %11, %12 : vector<1x128xf32>
    %c0_7 = arith.constant 0 : index
    %c0_8 = arith.constant 0 : index
    %14 = vector.load %arg3[%c0_7, %c0_8] : memref<1x128xf32, #tpu.memory_space<vmem>>, vector<1x128xf32>
    %cst_9 = arith.constant 9.99999974E-6 : f32
    %15 = vector.broadcast %cst_9 : f32 to vector<1x128xf32>
    %16 = arith.addf %13, %15 : vector<1x128xf32>
    %17 = math.rsqrt %16 : vector<1x128xf32>
    %18 = arith.mulf %14, %17 : vector<1x128xf32>
    %c0_10 = arith.constant 0 : index
    %c0_11 = arith.constant 0 : index
    %19 = vector.load %arg4[%c0_10, %c0_11] : memref<1x128xf32, #tpu.memory_space<vmem>>, vector<1x128xf32>
    %20 = arith.mulf %6, %18 : vector<1x128xf32>
    %21 = arith.subf %19, %20 : vector<1x128xf32>
    %22 = vector.broadcast %18 : vector<1x128xf32> to vector<512x128xf32>
    %23 = arith.mulf %2, %22 : vector<512x128xf32>
    %24 = vector.broadcast %21 : vector<1x128xf32> to vector<512x128xf32>
    %25 = arith.addf %23, %24 : vector<512x128xf32>
    %cst_12 = arith.constant 0.000000e+00 : f32
    %26 = vector.broadcast %cst_12 : f32 to vector<512x128xf32>
    %27 = arith.cmpf ogt, %25, %26 : vector<512x128xf32>
    %cst_13 = arith.constant 2.000000e-01 : f32
    %28 = vector.broadcast %cst_13 : f32 to vector<512x128xf32>
    %29 = arith.mulf %28, %25 : vector<512x128xf32>
    %30 = arith.select %27, %25, %29 : vector<512x128xi1>, vector<512x128xf32>
    %31 = arith.truncf %30 : vector<512x128xf32> to vector<512x128xbf16>
    %c0_14 = arith.constant 0 : index
    %c0_15 = arith.constant 0 : index
    %32 = vector.load %arg5[%c0_14, %c0_15] : memref<512x128xbf16, #tpu.memory_space<vmem>>, vector<512x128xbf16>
    tpu.vector_store %arg5[%c0_14, %c0_15], %31 {strides = array<i32>} : memref<512x128xbf16, #tpu.memory_space<vmem>>, vector<512x128xbf16>,
    return
  }
  func.func @transform_0(%arg0: i32) -> (i32, i32) {
    %c0_i32 = arith.constant 0 : i32
    %c0_i32_0 = arith.constant 0 : i32
    %c0_i32_1 = arith.constant 0 : i32
    return %c0_i32, %c0_i32_0 : i32, i32
  }
  func.func @transform_1(%arg0: i32) -> (i32, i32) {
    %c0_i32 = arith.constant 0 : i32
    %c0_i32_0 = arith.constant 0 : i32
    return %c0_i32, %arg0 : i32, i32
  }
  func.func @transform_2(%arg0: i32) -> (i32, i32) {
    %c0_i32 = arith.constant 0 : i32
    %c0_i32_0 = arith.constant 0 : i32
    return %c0_i32, %arg0 : i32, i32
  }
  func.func @transform_3(%arg0: i32) -> (i32, i32) {
    %c0_i32 = arith.constant 0 : i32
    %c0_i32_0 = arith.constant 0 : i32
    return %c0_i32, %arg0 : i32, i32
  }
  func.func @transform_4(%arg0: i32) -> (i32, i32) {
    %c0_i32 = arith.constant 0 : i32
    %c0_i32_0 = arith.constant 0 : i32
    return %c0_i32, %arg0 : i32, i32
  }
}

module attributes {stable_mosaic.version = 11 : i64} {
  func.func @_conv_bn_lrelu_kernel(%arg0: i32, %arg1: memref<128x1152xbf16, #tpu.memory_space<vmem>>, %arg2: memref<1152x128xbf16, #tpu.memory_space<vmem>>, %arg3: memref<1x128xf32, #tpu.memory_space<vmem>>, %arg4: memref<1x128xf32, #tpu.memory_space<vmem>>, %arg5: memref<128x128xbf16, #tpu.memory_space<vmem>>) attributes {dimension_semantics = [#tpu.dimension_semantics<parallel>], iteration_bounds = array<i64: 2>, scalar_prefetch = 0 : i64, scratch_operands = 0 : i64, tpu.core_type = #tpu.core_type<tc>, window_params = [{pipeline_mode = #tpu.pipeline_mode<synchronous>, transform_indices = @transform_0, window_bounds = array<i64: 128, 1152>}, {transform_indices = @transform_1, window_bounds = array<i64: 1152, 128>}, {transform_indices = @transform_2, window_bounds = array<i64: 1, 128>}, {transform_indices = @transform_3, window_bounds = array<i64: 1, 128>}, {transform_indices = @transform_4, window_bounds = array<i64: 128, 128>}]} {
    %c0 = arith.constant 0 : index
    %c0_0 = arith.constant 0 : index
    %0 = vector.load %arg1[%c0, %c0_0] : memref<128x1152xbf16, #tpu.memory_space<vmem>>, vector<128x1152xbf16>
    %c0_1 = arith.constant 0 : index
    %c0_2 = arith.constant 0 : index
    %1 = vector.load %arg2[%c0_1, %c0_2] : memref<1152x128xbf16, #tpu.memory_space<vmem>>, vector<1152x128xbf16>
    %cst = arith.constant dense<0.000000e+00> : vector<128x128xf32>
    %2 = tpu.matmul %0, %1, %cst {dimension_numbers = #tpu.dot_dimension_numbers<[1], [0], [0], [1], [0, 0, 1, 1], [], []>} : vector<128x1152xbf16>, vector<1152x128xbf16>, vector<128x128xf32> -> vector<128x128xf32>
    %cst_3 = arith.constant dense<0.000000e+00> : vector<128xf32>
    %3 = vector.multi_reduction <add>, %2, %cst_3 [0] : vector<128x128xf32> to vector<128xf32>
    %4 = vector.shape_cast %3 : vector<128xf32> to vector<1x128xf32>
    %cst_4 = arith.constant 7.812500e-03 : f32
    %5 = vector.broadcast %cst_4 : f32 to vector<1x128xf32>
    %6 = arith.mulf %4, %5 : vector<1x128xf32>
    %7 = arith.mulf %2, %2 : vector<128x128xf32>
    %cst_5 = arith.constant dense<0.000000e+00> : vector<128xf32>
    %8 = vector.multi_reduction <add>, %7, %cst_5 [0] : vector<128x128xf32> to vector<128xf32>
    %9 = vector.shape_cast %8 : vector<128xf32> to vector<1x128xf32>
    %cst_6 = arith.constant 7.812500e-03 : f32
    %10 = vector.broadcast %cst_6 : f32 to vector<1x128xf32>
    %11 = arith.mulf %9, %10 : vector<1x128xf32>
    %12 = arith.mulf %6, %6 : vector<1x128xf32>
    %13 = arith.subf %11, %12 : vector<1x128xf32>
    %c0_7 = arith.constant 0 : index
    %c0_8 = arith.constant 0 : index
    %14 = vector.load %arg3[%c0_7, %c0_8] : memref<1x128xf32, #tpu.memory_space<vmem>>, vector<1x128xf32>
    %cst_9 = arith.constant 9.99999974E-6 : f32
    %15 = vector.broadcast %cst_9 : f32 to vector<1x128xf32>
    %16 = arith.addf %13, %15 : vector<1x128xf32>
    %17 = math.rsqrt %16 : vector<1x128xf32>
    %18 = arith.mulf %14, %17 : vector<1x128xf32>
    %c0_10 = arith.constant 0 : index
    %c0_11 = arith.constant 0 : index
    %19 = vector.load %arg4[%c0_10, %c0_11] : memref<1x128xf32, #tpu.memory_space<vmem>>, vector<1x128xf32>
    %20 = arith.mulf %6, %18 : vector<1x128xf32>
    %21 = arith.subf %19, %20 : vector<1x128xf32>
    %22 = vector.broadcast %18 : vector<1x128xf32> to vector<128x128xf32>
    %23 = arith.mulf %2, %22 : vector<128x128xf32>
    %24 = vector.broadcast %21 : vector<1x128xf32> to vector<128x128xf32>
    %25 = arith.addf %23, %24 : vector<128x128xf32>
    %cst_12 = arith.constant 0.000000e+00 : f32
    %26 = vector.broadcast %cst_12 : f32 to vector<128x128xf32>
    %27 = arith.cmpf ogt, %25, %26 : vector<128x128xf32>
    %cst_13 = arith.constant 2.000000e-01 : f32
    %28 = vector.broadcast %cst_13 : f32 to vector<128x128xf32>
    %29 = arith.mulf %28, %25 : vector<128x128xf32>
    %30 = arith.select %27, %25, %29 : vector<128x128xi1>, vector<128x128xf32>
    %31 = arith.truncf %30 : vector<128x128xf32> to vector<128x128xbf16>
    %c0_14 = arith.constant 0 : index
    %c0_15 = arith.constant 0 : index
    %32 = vector.load %arg5[%c0_14, %c0_15] : memref<128x128xbf16, #tpu.memory_space<vmem>>, vector<128x128xbf16>
    tpu.vector_store %arg5[%c0_14, %c0_15], %31 {strides = array<i32>} : memref<128x128xbf16, #tpu.memory_space<vmem>>, vector<128x128xbf16>,
    return
  }
  func.func @transform_0(%arg0: i32) -> (i32, i32) {
    %c0_i32 = arith.constant 0 : i32
    %c0_i32_0 = arith.constant 0 : i32
    %c0_i32_1 = arith.constant 0 : i32
    return %c0_i32, %c0_i32_0 : i32, i32
  }
  func.func @transform_1(%arg0: i32) -> (i32, i32) {
    %c0_i32 = arith.constant 0 : i32
    %c0_i32_0 = arith.constant 0 : i32
    return %c0_i32, %arg0 : i32, i32
  }
  func.func @transform_2(%arg0: i32) -> (i32, i32) {
    %c0_i32 = arith.constant 0 : i32
    %c0_i32_0 = arith.constant 0 : i32
    return %c0_i32, %arg0 : i32, i32
  }
  func.func @transform_3(%arg0: i32) -> (i32, i32) {
    %c0_i32 = arith.constant 0 : i32
    %c0_i32_0 = arith.constant 0 : i32
    return %c0_i32, %arg0 : i32, i32
  }
  func.func @transform_4(%arg0: i32) -> (i32, i32) {
    %c0_i32 = arith.constant 0 : i32
    %c0_i32_0 = arith.constant 0 : i32
    return %c0_i32, %arg0 : i32, i32
  }
}

module attributes {stable_mosaic.version = 11 : i64} {
  func.func @_conv_bn_lrelu_kernel(%arg0: i32, %arg1: memref<32x2304xbf16, #tpu.memory_space<vmem>>, %arg2: memref<2304x256xbf16, #tpu.memory_space<vmem>>, %arg3: memref<1x256xf32, #tpu.memory_space<vmem>>, %arg4: memref<1x256xf32, #tpu.memory_space<vmem>>, %arg5: memref<32x256xbf16, #tpu.memory_space<vmem>>) attributes {dimension_semantics = [#tpu.dimension_semantics<parallel>], iteration_bounds = array<i64: 2>, scalar_prefetch = 0 : i64, scratch_operands = 0 : i64, tpu.core_type = #tpu.core_type<tc>, window_params = [{pipeline_mode = #tpu.pipeline_mode<synchronous>, transform_indices = @transform_0, window_bounds = array<i64: 32, 2304>}, {transform_indices = @transform_1, window_bounds = array<i64: 2304, 256>}, {transform_indices = @transform_2, window_bounds = array<i64: 1, 256>}, {transform_indices = @transform_3, window_bounds = array<i64: 1, 256>}, {transform_indices = @transform_4, window_bounds = array<i64: 32, 256>}]} {
    %c0 = arith.constant 0 : index
    %c0_0 = arith.constant 0 : index
    %0 = vector.load %arg1[%c0, %c0_0] : memref<32x2304xbf16, #tpu.memory_space<vmem>>, vector<32x2304xbf16>
    %c0_1 = arith.constant 0 : index
    %c0_2 = arith.constant 0 : index
    %1 = vector.load %arg2[%c0_1, %c0_2] : memref<2304x256xbf16, #tpu.memory_space<vmem>>, vector<2304x256xbf16>
    %cst = arith.constant dense<0.000000e+00> : vector<32x256xf32>
    %2 = tpu.matmul %0, %1, %cst {dimension_numbers = #tpu.dot_dimension_numbers<[1], [0], [0], [1], [0, 0, 1, 1], [], []>} : vector<32x2304xbf16>, vector<2304x256xbf16>, vector<32x256xf32> -> vector<32x256xf32>
    %cst_3 = arith.constant dense<0.000000e+00> : vector<256xf32>
    %3 = vector.multi_reduction <add>, %2, %cst_3 [0] : vector<32x256xf32> to vector<256xf32>
    %4 = vector.shape_cast %3 : vector<256xf32> to vector<1x256xf32>
    %cst_4 = arith.constant 3.125000e-02 : f32
    %5 = vector.broadcast %cst_4 : f32 to vector<1x256xf32>
    %6 = arith.mulf %4, %5 : vector<1x256xf32>
    %7 = arith.mulf %2, %2 : vector<32x256xf32>
    %cst_5 = arith.constant dense<0.000000e+00> : vector<256xf32>
    %8 = vector.multi_reduction <add>, %7, %cst_5 [0] : vector<32x256xf32> to vector<256xf32>
    %9 = vector.shape_cast %8 : vector<256xf32> to vector<1x256xf32>
    %cst_6 = arith.constant 3.125000e-02 : f32
    %10 = vector.broadcast %cst_6 : f32 to vector<1x256xf32>
    %11 = arith.mulf %9, %10 : vector<1x256xf32>
    %12 = arith.mulf %6, %6 : vector<1x256xf32>
    %13 = arith.subf %11, %12 : vector<1x256xf32>
    %c0_7 = arith.constant 0 : index
    %c0_8 = arith.constant 0 : index
    %14 = vector.load %arg3[%c0_7, %c0_8] : memref<1x256xf32, #tpu.memory_space<vmem>>, vector<1x256xf32>
    %cst_9 = arith.constant 9.99999974E-6 : f32
    %15 = vector.broadcast %cst_9 : f32 to vector<1x256xf32>
    %16 = arith.addf %13, %15 : vector<1x256xf32>
    %17 = math.rsqrt %16 : vector<1x256xf32>
    %18 = arith.mulf %14, %17 : vector<1x256xf32>
    %c0_10 = arith.constant 0 : index
    %c0_11 = arith.constant 0 : index
    %19 = vector.load %arg4[%c0_10, %c0_11] : memref<1x256xf32, #tpu.memory_space<vmem>>, vector<1x256xf32>
    %20 = arith.mulf %6, %18 : vector<1x256xf32>
    %21 = arith.subf %19, %20 : vector<1x256xf32>
    %22 = vector.broadcast %18 : vector<1x256xf32> to vector<32x256xf32>
    %23 = arith.mulf %2, %22 : vector<32x256xf32>
    %24 = vector.broadcast %21 : vector<1x256xf32> to vector<32x256xf32>
    %25 = arith.addf %23, %24 : vector<32x256xf32>
    %cst_12 = arith.constant 0.000000e+00 : f32
    %26 = vector.broadcast %cst_12 : f32 to vector<32x256xf32>
    %27 = arith.cmpf ogt, %25, %26 : vector<32x256xf32>
    %cst_13 = arith.constant 2.000000e-01 : f32
    %28 = vector.broadcast %cst_13 : f32 to vector<32x256xf32>
    %29 = arith.mulf %28, %25 : vector<32x256xf32>
    %30 = arith.select %27, %25, %29 : vector<32x256xi1>, vector<32x256xf32>
    %31 = arith.truncf %30 : vector<32x256xf32> to vector<32x256xbf16>
    %c0_14 = arith.constant 0 : index
    %c0_15 = arith.constant 0 : index
    %32 = vector.load %arg5[%c0_14, %c0_15] : memref<32x256xbf16, #tpu.memory_space<vmem>>, vector<32x256xbf16>
    tpu.vector_store %arg5[%c0_14, %c0_15], %31 {strides = array<i32>} : memref<32x256xbf16, #tpu.memory_space<vmem>>, vector<32x256xbf16>,
    return
  }
  func.func @transform_0(%arg0: i32) -> (i32, i32) {
    %c0_i32 = arith.constant 0 : i32
    %c0_i32_0 = arith.constant 0 : i32
    %c0_i32_1 = arith.constant 0 : i32
    return %c0_i32, %c0_i32_0 : i32, i32
  }
  func.func @transform_1(%arg0: i32) -> (i32, i32) {
    %c0_i32 = arith.constant 0 : i32
    %c0_i32_0 = arith.constant 0 : i32
    return %c0_i32, %arg0 : i32, i32
  }
  func.func @transform_2(%arg0: i32) -> (i32, i32) {
    %c0_i32 = arith.constant 0 : i32
    %c0_i32_0 = arith.constant 0 : i32
    return %c0_i32, %arg0 : i32, i32
  }
  func.func @transform_3(%arg0: i32) -> (i32, i32) {
    %c0_i32 = arith.constant 0 : i32
    %c0_i32_0 = arith.constant 0 : i32
    return %c0_i32, %arg0 : i32, i32
  }
  func.func @transform_4(%arg0: i32) -> (i32, i32) {
    %c0_i32 = arith.constant 0 : i32
    %c0_i32_0 = arith.constant 0 : i32
    return %c0_i32, %arg0 : i32, i32
  }
}

module attributes {stable_mosaic.version = 11 : i64} {
  func.func @_conv_bn_lrelu_kernel(%arg0: i32, %arg1: memref<32x512xbf16, #tpu.memory_space<vmem>>, %arg2: memref<512x256xbf16, #tpu.memory_space<vmem>>, %arg3: memref<1x256xf32, #tpu.memory_space<vmem>>, %arg4: memref<1x256xf32, #tpu.memory_space<vmem>>, %arg5: memref<32x256xbf16, #tpu.memory_space<vmem>>) attributes {dimension_semantics = [#tpu.dimension_semantics<parallel>], iteration_bounds = array<i64: 4>, scalar_prefetch = 0 : i64, scratch_operands = 0 : i64, tpu.core_type = #tpu.core_type<tc>, window_params = [{pipeline_mode = #tpu.pipeline_mode<synchronous>, transform_indices = @transform_0, window_bounds = array<i64: 32, 512>}, {transform_indices = @transform_1, window_bounds = array<i64: 512, 256>}, {transform_indices = @transform_2, window_bounds = array<i64: 1, 256>}, {transform_indices = @transform_3, window_bounds = array<i64: 1, 256>}, {transform_indices = @transform_4, window_bounds = array<i64: 32, 256>}]} {
    %c0 = arith.constant 0 : index
    %c0_0 = arith.constant 0 : index
    %0 = vector.load %arg1[%c0, %c0_0] : memref<32x512xbf16, #tpu.memory_space<vmem>>, vector<32x512xbf16>
    %c0_1 = arith.constant 0 : index
    %c0_2 = arith.constant 0 : index
    %1 = vector.load %arg2[%c0_1, %c0_2] : memref<512x256xbf16, #tpu.memory_space<vmem>>, vector<512x256xbf16>
    %cst = arith.constant dense<0.000000e+00> : vector<32x256xf32>
    %2 = tpu.matmul %0, %1, %cst {dimension_numbers = #tpu.dot_dimension_numbers<[1], [0], [0], [1], [0, 0, 1, 1], [], []>} : vector<32x512xbf16>, vector<512x256xbf16>, vector<32x256xf32> -> vector<32x256xf32>
    %cst_3 = arith.constant dense<0.000000e+00> : vector<256xf32>
    %3 = vector.multi_reduction <add>, %2, %cst_3 [0] : vector<32x256xf32> to vector<256xf32>
    %4 = vector.shape_cast %3 : vector<256xf32> to vector<1x256xf32>
    %cst_4 = arith.constant 3.125000e-02 : f32
    %5 = vector.broadcast %cst_4 : f32 to vector<1x256xf32>
    %6 = arith.mulf %4, %5 : vector<1x256xf32>
    %7 = arith.mulf %2, %2 : vector<32x256xf32>
    %cst_5 = arith.constant dense<0.000000e+00> : vector<256xf32>
    %8 = vector.multi_reduction <add>, %7, %cst_5 [0] : vector<32x256xf32> to vector<256xf32>
    %9 = vector.shape_cast %8 : vector<256xf32> to vector<1x256xf32>
    %cst_6 = arith.constant 3.125000e-02 : f32
    %10 = vector.broadcast %cst_6 : f32 to vector<1x256xf32>
    %11 = arith.mulf %9, %10 : vector<1x256xf32>
    %12 = arith.mulf %6, %6 : vector<1x256xf32>
    %13 = arith.subf %11, %12 : vector<1x256xf32>
    %c0_7 = arith.constant 0 : index
    %c0_8 = arith.constant 0 : index
    %14 = vector.load %arg3[%c0_7, %c0_8] : memref<1x256xf32, #tpu.memory_space<vmem>>, vector<1x256xf32>
    %cst_9 = arith.constant 9.99999974E-6 : f32
    %15 = vector.broadcast %cst_9 : f32 to vector<1x256xf32>
    %16 = arith.addf %13, %15 : vector<1x256xf32>
    %17 = math.rsqrt %16 : vector<1x256xf32>
    %18 = arith.mulf %14, %17 : vector<1x256xf32>
    %c0_10 = arith.constant 0 : index
    %c0_11 = arith.constant 0 : index
    %19 = vector.load %arg4[%c0_10, %c0_11] : memref<1x256xf32, #tpu.memory_space<vmem>>, vector<1x256xf32>
    %20 = arith.mulf %6, %18 : vector<1x256xf32>
    %21 = arith.subf %19, %20 : vector<1x256xf32>
    %22 = vector.broadcast %18 : vector<1x256xf32> to vector<32x256xf32>
    %23 = arith.mulf %2, %22 : vector<32x256xf32>
    %24 = vector.broadcast %21 : vector<1x256xf32> to vector<32x256xf32>
    %25 = arith.addf %23, %24 : vector<32x256xf32>
    %cst_12 = arith.constant 0.000000e+00 : f32
    %26 = vector.broadcast %cst_12 : f32 to vector<32x256xf32>
    %27 = arith.cmpf ogt, %25, %26 : vector<32x256xf32>
    %cst_13 = arith.constant 2.000000e-01 : f32
    %28 = vector.broadcast %cst_13 : f32 to vector<32x256xf32>
    %29 = arith.mulf %28, %25 : vector<32x256xf32>
    %30 = arith.select %27, %25, %29 : vector<32x256xi1>, vector<32x256xf32>
    %31 = arith.truncf %30 : vector<32x256xf32> to vector<32x256xbf16>
    %c0_14 = arith.constant 0 : index
    %c0_15 = arith.constant 0 : index
    %32 = vector.load %arg5[%c0_14, %c0_15] : memref<32x256xbf16, #tpu.memory_space<vmem>>, vector<32x256xbf16>
    tpu.vector_store %arg5[%c0_14, %c0_15], %31 {strides = array<i32>} : memref<32x256xbf16, #tpu.memory_space<vmem>>, vector<32x256xbf16>,
    return
  }
  func.func @transform_0(%arg0: i32) -> (i32, i32) {
    %c0_i32 = arith.constant 0 : i32
    %c0_i32_0 = arith.constant 0 : i32
    %c0_i32_1 = arith.constant 0 : i32
    return %c0_i32, %c0_i32_0 : i32, i32
  }
  func.func @transform_1(%arg0: i32) -> (i32, i32) {
    %c0_i32 = arith.constant 0 : i32
    %c0_i32_0 = arith.constant 0 : i32
    return %c0_i32, %arg0 : i32, i32
  }
  func.func @transform_2(%arg0: i32) -> (i32, i32) {
    %c0_i32 = arith.constant 0 : i32
    %c0_i32_0 = arith.constant 0 : i32
    return %c0_i32, %arg0 : i32, i32
  }
  func.func @transform_3(%arg0: i32) -> (i32, i32) {
    %c0_i32 = arith.constant 0 : i32
    %c0_i32_0 = arith.constant 0 : i32
    return %c0_i32, %arg0 : i32, i32
  }
  func.func @transform_4(%arg0: i32) -> (i32, i32) {
    %c0_i32 = arith.constant 0 : i32
    %c0_i32_0 = arith.constant 0 : i32
    return %c0_i32, %arg0 : i32, i32
  }
}

module attributes {stable_mosaic.version = 11 : i64} {
  func.func @_rowdot_sigmoid_kernel(%arg0: i32, %arg1: memref<16x16384xbf16, #tpu.memory_space<vmem>>, %arg2: memref<1x16384xbf16, #tpu.memory_space<vmem>>, %arg3: memref<16x1xf32, #tpu.memory_space<vmem>>) attributes {dimension_semantics = [#tpu.dimension_semantics<arbitrary>], iteration_bounds = array<i64: 1>, scalar_prefetch = 0 : i64, scratch_operands = 0 : i64, tpu.core_type = #tpu.core_type<tc>, window_params = [{pipeline_mode = #tpu.pipeline_mode<synchronous>, transform_indices = @transform_0, window_bounds = array<i64: 16, 16384>}, {pipeline_mode = #tpu.pipeline_mode<synchronous>, transform_indices = @transform_1, window_bounds = array<i64: 1, 16384>}, {pipeline_mode = #tpu.pipeline_mode<synchronous>, transform_indices = @transform_2, window_bounds = array<i64: 16, 1>}]} {
    %c0 = arith.constant 0 : index
    %c0_0 = arith.constant 0 : index
    %0 = vector.load %arg1[%c0, %c0_0] : memref<16x16384xbf16, #tpu.memory_space<vmem>>, vector<16x16384xbf16>
    %1 = arith.extf %0 : vector<16x16384xbf16> to vector<16x16384xf32>
    %c0_1 = arith.constant 0 : index
    %c0_2 = arith.constant 0 : index
    %2 = vector.load %arg2[%c0_1, %c0_2] : memref<1x16384xbf16, #tpu.memory_space<vmem>>, vector<1x16384xbf16>
    %3 = arith.extf %2 : vector<1x16384xbf16> to vector<1x16384xf32>
    %4 = vector.broadcast %3 : vector<1x16384xf32> to vector<16x16384xf32>
    %5 = arith.mulf %1, %4 : vector<16x16384xf32>
    %cst = arith.constant dense<0.000000e+00> : vector<16xf32>
    %6 = vector.multi_reduction <add>, %5, %cst [1] : vector<16x16384xf32> to vector<16xf32>
    %7 = vector.shape_cast %6 : vector<16xf32> to vector<16x1xf32>
    %8 = arith.negf %7 : vector<16x1xf32>
    %9 = math.exp %8 : vector<16x1xf32>
    %cst_3 = arith.constant 1.000000e+00 : f32
    %10 = vector.broadcast %cst_3 : f32 to vector<16x1xf32>
    %11 = arith.addf %10, %9 : vector<16x1xf32>
    %12 = arith.divf %10, %11 : vector<16x1xf32>
    %c0_4 = arith.constant 0 : index
    %c0_5 = arith.constant 0 : index
    %13 = vector.load %arg3[%c0_4, %c0_5] : memref<16x1xf32, #tpu.memory_space<vmem>>, vector<16x1xf32>
    tpu.vector_store %arg3[%c0_4, %c0_5], %12 {strides = array<i32>} : memref<16x1xf32, #tpu.memory_space<vmem>>, vector<16x1xf32>,
    return
  }
  func.func @transform_0(%arg0: i32) -> (i32, i32) {
    %c0_i32 = arith.constant 0 : i32
    %c0_i32_0 = arith.constant 0 : i32
    %c0_i32_1 = arith.constant 0 : i32
    return %c0_i32, %c0_i32_0 : i32, i32
  }
  func.func @transform_1(%arg0: i32) -> (i32, i32) {
    %c0_i32 = arith.constant 0 : i32
    %c0_i32_0 = arith.constant 0 : i32
    %c0_i32_1 = arith.constant 0 : i32
    return %c0_i32, %c0_i32_0 : i32, i32
  }
  func.func @transform_2(%arg0: i32) -> (i32, i32) {
    %c0_i32 = arith.constant 0 : i32
    %c0_i32_0 = arith.constant 0 : i32
    %c0_i32_1 = arith.constant 0 : i32
    return %c0_i32, %c0_i32_0 : i32, i32
  }
}

</mosaic_0001>

<bundles_post_ra>
// kernel: discriminator_forward.6
= control target key start
LH: loop header
LB: loop body
LE: loop exit
PB: predicated region body
PF: predicated region fallthrough
CT: control target
= control target key end

     0   :  { %s1883_s12 = smov 0   ;;  %s1885_s13 = smov 0   ;;  %s2259_s0 = inlined_call_operand.vmem [shape: bf16[2048,128], index: 0, kind: input, shape index: {}]   ;;  %s2260_s1 = inlined_call_operand.vmem [shape: bf16[128,64], index: 1, kind: input, shape index: {}]   ;;  %s2261_s2 = inlined_call_operand.vmem [shape: f32[1,64], index: 2, kind: input, shape index: {}]   ;;  %s2262_s3 = inlined_call_operand.vmem [shape: bf16[2048,64], index: 3, kind: output, shape index: {}]  }
   0x1   :  { %s1887_s14 = smov 0  }
   0x2 LB: > { %s25_s15 = sadd.s32 1, %s1857_s13  ;;  %p1463_p0 = scmp.ge.s32.totalorder %s1861_s14, 1  ;;  %s1861_s14 = sphi %s1887_s14, %s13_s14   ;;  %s1857_s13 = sphi %s1885_s13, %s2264_s13   ;;  %s1853_s12 = sphi %s1883_s12, %s2263_s12  }
   0x3   : > { %p27_p1 = scmp.ge.s32.totalorder %s25_s15, 4  ;;  %p169_p2 = scmp.lt.s32.totalorder %s1861_s14, 5 }
   0x5   : > { %s2266_s15 = smov (%p27_p1, %s25_s15), 0  ;;  %p170_p3 = pnand %p1463_p0, %p169_p2 }
   0x6   : > { %v1799_v0 = vld [vmem:[%s2260_s1] sm:$0xff] (!%p170_p3)   ;;  %s1464_s18 = sshll.u32 (!%p170_p3), %s1853_s12, 6  ;;  %v1800_v1 = vld [vmem:[%s2260_s1 + $0x8] sm:$0xff] (!%p170_p3)   ;;  %v1801_v2 = vld [vmem:[%s2260_s1 + $0x10] sm:$0xff] (!%p170_p3)   ;;  %vm1290_vm0 = vcmask (!%p170_p3), 519168  }
   0x7   : > { %173 = sbr.rel (%p170_p3) target bundleno = 336 (0x150), region = 32  ;;  %p204_p4 = scmp.lt.s32.totalorder (!%p170_p3), %s1464_s18, 255  ;;  %1679 = vmatprep.subr.bf16.mxu0 (!%p170_p3), %v1799_v0  ;;  %1759 = vmatprep.subr.bf16.mxu1 (!%p170_p3), %v1799_v0  ;;  %v1802_v3 = vld [vmem:[%s2260_s1 + $0x18] sm:$0xff] (!%p170_p3)   ;;  %v1803_v6 = vld [vmem:[%s2260_s1 + $0x20] sm:$0xff] (!%p170_p3)   ;;  %v1804_v7 = vld [vmem:[%s2260_s1 + $0x28] sm:$0xff] (!%p170_p3)  }
   0x8   : > { %1680 = vmatpush3.bf16.msra.mxu0 (!%p170_p3), %v1799_v0  ;;  %1767 = vmatpush3.bf16.msra.mxu1 (!%p170_p3), %v1799_v0  ;;  %v1805_v8 = vld [vmem:[%s2260_s1 + $0x30] sm:$0xff] (!%p170_p3)   ;;  %v1806_v9 = vld [vmem:[%s2260_s1 + $0x38] sm:$0xff] (!%p170_p3)   ;;  %v1970_v40 = vld [vmem:[%s2261_s2] ss:$0 sm:$0xff] (!%p170_p3) }
   0x9   : > { %1681 = vmatprep.subr.bf16.mxu0 (!%p170_p3), %v1800_v1  ;;  %1760 = vmatprep.subr.bf16.mxu1 (!%p170_p3), %v1800_v1 }
   0xc   : > { %1682 = vmatpush3.bf16.msra.mxu0 (!%p170_p3), %v1800_v1  ;;  %1768 = vmatpush3.bf16.msra.mxu1 (!%p170_p3), %v1800_v1 }
   0xd   : > { %1683 = vmatprep.subr.bf16.mxu0 (!%p170_p3), %v1801_v2  ;;  %1761 = vmatprep.subr.bf16.mxu1 (!%p170_p3), %v1801_v2 }
   0xe   : > { %s2268_s18 = smov (!%p204_p4, %s1464_s18), 255 }
   0xf   : > { %s1465_s23 = sshll.u32 %s2268_s18, 2 }
  0x10   : > { %s1918_s26 = scalar_lea.vmem %s2259_s0, %s1465_s23  ;;  %1684 = vmatpush3.bf16.msra.mxu0 %v1801_v2  ;;  %1769 = vmatpush3.bf16.msra.mxu1 %v1801_v2  ;;  %s1981_s17 = scalar_lea.vmem %s2262_s3, %s1465_s23 }
  0x11   : > { %v1807_v4 = vld [vmem:[%s1918_s26] sm:$0xff]   ;;  %1685 = vmatprep.subr.bf16.mxu0 %v1802_v3  ;;  %1762 = vmatprep.subr.bf16.mxu1 %v1802_v3  ;;  %v1809_v10 = vld [vmem:[%s1918_s26 + $0x8] sm:$0xff]   ;;  %v1811_v12 = vld [vmem:[%s1918_s26 + $0x10] sm:$0xff]  }
  0x12   : > { %v1808_v5 = vld [vmem:[%s1918_s26 + $0x80] sm:$0xff]   ;;  %1695 = vmatprep.mubr.bf16.mxu0 %v1807_v4  ;;  %v1810_v11 = vld [vmem:[%s1918_s26 + $0x88] sm:$0xff]   ;;  %v1812_v13 = vld [vmem:[%s1918_s26 + $0x90] sm:$0xff]  }
  0x13   : > { %1727 = vmatprep.mubr.bf16.mxu1 %v1808_v5  ;;  %v1813_v14 = vld [vmem:[%s1918_s26 + $0x18] sm:$0xff]   ;;  %v1815_v16 = vld [vmem:[%s1918_s26 + $0x20] sm:$0xff]   ;;  %v1817_v18 = vld [vmem:[%s1918_s26 + $0x28] sm:$0xff]  }
  0x14   : > { %1686 = vmatpush3.bf16.msra.mxu0 %v1802_v3  ;;  %1770 = vmatpush3.bf16.msra.mxu1 %v1802_v3  ;;  %v1814_v15 = vld [vmem:[%s1918_s26 + $0x98] sm:$0xff]   ;;  %v1816_v17 = vld [vmem:[%s1918_s26 + $0xa0] sm:$0xff]   ;;  %v1818_v19 = vld [vmem:[%s1918_s26 + $0xa8] sm:$0xff]  }
  0x15   : > { %1687 = vmatprep.subr.bf16.mxu0 %v1803_v6  ;;  %1763 = vmatprep.subr.bf16.mxu1 %v1803_v6  ;;  %v1819_v20 = vld [vmem:[%s1918_s26 + $0x30] sm:$0xff]   ;;  %v1821_v22 = vld [vmem:[%s1918_s26 + $0x38] sm:$0xff]   ;;  %v1823_v24 = vld [vmem:[%s1918_s26 + $0x40] sm:$0xff]  }
  0x16   : > { %v1820_v21 = vld [vmem:[%s1918_s26 + $0xb0] sm:$0xff]   ;;  %v1822_v23 = vld [vmem:[%s1918_s26 + $0xb8] sm:$0xff]   ;;  %v1824_v25 = vld [vmem:[%s1918_s26 + $0xc0] sm:$0xff]  }
  0x17   : > { %v1825_v26 = vld [vmem:[%s1918_s26 + $0x48] sm:$0xff]   ;;  %v1827_v28 = vld [vmem:[%s1918_s26 + $0x50] sm:$0xff]   ;;  %v1829_v30 = vld [vmem:[%s1918_s26 + $0x58] sm:$0xff]  }
  0x18   : > { %1688 = vmatpush3.bf16.msra.mxu0 %v1803_v6  ;;  %1771 = vmatpush3.bf16.msra.mxu1 %v1803_v6  ;;  %v1826_v27 = vld [vmem:[%s1918_s26 + $0xc8] sm:$0xff]   ;;  %v1828_v29 = vld [vmem:[%s1918_s26 + $0xd0] sm:$0xff]   ;;  %v1830_v31 = vld [vmem:[%s1918_s26 + $0xd8] sm:$0xff]  }
  0x19   : > { %1689 = vmatprep.subr.bf16.mxu0 %v1804_v7  ;;  %1764 = vmatprep.subr.bf16.mxu1 %v1804_v7  ;;  %v1831_v32 = vld [vmem:[%s1918_s26 + $0x60] sm:$0xff]   ;;  %v1833_v34 = vld [vmem:[%s1918_s26 + $0x68] sm:$0xff]   ;;  %v1835_v36 = vld [vmem:[%s1918_s26 + $0x70] sm:$0xff]  }
  0x1a   : > { %v1832_v33 = vld [vmem:[%s1918_s26 + $0xe0] sm:$0xff]   ;;  %v1834_v35 = vld [vmem:[%s1918_s26 + $0xe8] sm:$0xff]   ;;  %v1836_v37 = vld [vmem:[%s1918_s26 + $0xf0] sm:$0xff]  }
  0x1b   : > { %v1837_v38 = vld [vmem:[%s1918_s26 + $0x78] sm:$0xff]  }
  0x1c   : > { %1690 = vmatpush3.bf16.msra.mxu0 %v1804_v7  ;;  %1772 = vmatpush3.bf16.msra.mxu1 %v1804_v7  ;;  %v1838_v39 = vld [vmem:[%s1918_s26 + $0xf8] sm:$0xff]  }
  0x1d   : > { %1691 = vmatprep.subr.bf16.mxu0 %v1805_v8  ;;  %1765 = vmatprep.subr.bf16.mxu1 %v1805_v8 }
  0x20   : > { %1692 = vmatpush3.bf16.msra.mxu0 %v1805_v8  ;;  %1773 = vmatpush3.bf16.msra.mxu1 %v1805_v8 }
  0x21   : > { %1693 = vmatprep.subr.bf16.mxu0 %v1806_v9  ;;  %1766 = vmatprep.subr.bf16.mxu1 %v1806_v9 }
  0x24   : > { %1694 = vmatpush3.bf16.msra.mxu0 %v1806_v9  ;;  %1774 = vmatpush3.bf16.msra.mxu1 %v1806_v9 }
  0x27   : > { %1696 = vmatmul.mubr.bf16.vlgmr.msra.gmra.mrb[0].mxu0 %v1809_v10  ;;  %1728 = vmatmul.mubr.bf16.vlgmr.msra.gmra.mrb[0].mxu1 %v1810_v11 }
  0x28   : > { %1699 = vmatprep.mubr.bf16.mxu0 %v1811_v12  ;;  %1731 = vmatprep.mubr.bf16.mxu1 %v1812_v13 }
  0x2f   : > { %1700 = vmatmul.mubr.bf16.gmra.mrb[4].mxu0 %v1813_v14  ;;  %1732 = vmatmul.mubr.bf16.gmra.mrb[4].mxu1 %v1814_v15 }
  0x30   : > { %1703 = vmatprep.mubr.bf16.mxu0 %v1815_v16  ;;  %1735 = vmatprep.mubr.bf16.mxu1 %v1816_v17 }
  0x37   : > { %1704 = vmatmul.mubr.bf16.gmra.mrb[8].mxu0 %v1817_v18  ;;  %1736 = vmatmul.mubr.bf16.gmra.mrb[8].mxu1 %v1818_v19 }
  0x38   : > { %1707 = vmatprep.mubr.bf16.mxu0 %v1819_v20  ;;  %1739 = vmatprep.mubr.bf16.mxu1 %v1820_v21 }
  0x3f   : > { %1708 = vmatmul.mubr.bf16.gmra.mrb[12].mxu0 %v1821_v22  ;;  %1740 = vmatmul.mubr.bf16.gmra.mrb[12].mxu1 %v1822_v23 }
  0x40   : > { %1711 = vmatprep.mubr.bf16.mxu0 %v1823_v24  ;;  %1743 = vmatprep.mubr.bf16.mxu1 %v1824_v25 }
  0x47   : > { %1712 = vmatmul.mubr.bf16.gmra.mrb[16].mxu0 %v1825_v26  ;;  %1744 = vmatmul.mubr.bf16.gmra.mrb[16].mxu1 %v1826_v27 }
  0x48   : > { %1715 = vmatprep.mubr.bf16.mxu0 %v1827_v28  ;;  %1747 = vmatprep.mubr.bf16.mxu1 %v1828_v29 }
  0x4f   : > { %1716 = vmatmul.mubr.bf16.gmra.mrb[20].mxu0 %v1829_v30  ;;  %1748 = vmatmul.mubr.bf16.gmra.mrb[20].mxu1 %v1830_v31 }
  0x50   : > { %1719 = vmatprep.mubr.bf16.mxu0 %v1831_v32  ;;  %1751 = vmatprep.mubr.bf16.mxu1 %v1832_v33 }
  0x57   : > { %1720 = vmatmul.mubr.bf16.gmra.mrb[24].mxu0 %v1833_v34  ;;  %1752 = vmatmul.mubr.bf16.gmra.mrb[24].mxu1 %v1834_v35 }
  0x58   : > { %1723 = vmatprep.mubr.bf16.mxu0 %v1835_v36  ;;  %1755 = vmatprep.mubr.bf16.mxu1 %v1836_v37 }
  0x5f   : > { %1724 = vmatmul.mubr.bf16.gmra.mrb[28].mxu0 %v1837_v38  ;;  %1756 = vmatmul.mubr.bf16.gmra.mrb[28].mxu1 %v1838_v39 }
  0xfa   : > { %v1697_v41 = vpop.f32.mrb[0].mxu0  ;;  %v1729_v42 = vpop.f32.mrb[0].mxu1 }
  0xfb   : > { %v596_v43 = vadd.f32 %v1697_v41, %v1970_v40  ;;  %v724_v44 = vadd.f32 %v1729_v42, %v1970_v40  ;;  %v587_v45 = vpop.f32.mrb[1].mxu0  ;;  %v715_v46 = vpop.f32.mrb[1].mxu1 }
  0xfc   : > { %v588_v47 = vadd.f32 %v1970_v40, %v587_v45  ;;  %v716_v48 = vadd.f32 %v1970_v40, %v715_v46  ;;  %v1698_v49 = vpop.f32.mrb[2].mxu0  ;;  %v1730_v50 = vpop.f32.mrb[2].mxu1 }
  0xfd   : > { %vm844_vm1 = vcmp.gt.f32.partialorder %v596_v43, 0.0  ;;  %v908_v51 = vmul.f32 0.2, %v596_v43  ;;  %vm876_vm2 = vcmp.gt.f32.partialorder %v724_v44, 0.0  ;;  %v940_v52 = vmul.f32 0.2, %v724_v44 }
  0xfe   : > { %vm842_vm3 = vcmp.gt.f32.partialorder %v588_v47, 0.0  ;;  %v906_v53 = vmul.f32 0.2, %v588_v47  ;;  %vm874_vm4 = vcmp.gt.f32.partialorder %v716_v48, 0.0  ;;  %v938_v54 = vmul.f32 0.2, %v716_v48 }
  0xff   : > { %v972_v55 = vsel %vm844_vm1, %v596_v43, %v908_v51  ;;  %v1004_v56 = vsel %vm876_vm2, %v724_v44, %v940_v52  ;;  %v599_v57 = vadd.f32 %v1698_v49, %v1970_v40  ;;  %v727_v58 = vadd.f32 %v1730_v50, %v1970_v40  ;;  %v590_v59 = vpop.f32.mrb[3].mxu0  ;;  %v718_v60 = vpop.f32.mrb[3].mxu1 }
 0x100   : > { %v1577_v61 = vpack.c.bf16 %v972_v55, %v972_v55  ;;  %v1609_v62 = vpack.c.bf16 %v1004_v56, %v1004_v56  ;;  %v970_v63 = vsel %vm842_vm3, %v588_v47, %v906_v53  ;;  %v1002_v0 = vsel %vm874_vm4, %v716_v48, %v938_v54 }
 0x101   : > { %v1575_v1 = vpack.c.bf16 %v970_v63, %v970_v63  ;;  %v1607_v2 = vpack.c.bf16 %v1002_v0, %v1002_v0  ;;  %vm845_vm5 = vcmp.gt.f32.partialorder %v599_v57, 0.0  ;;  %v909_v3 = vmul.f32 0.2, %v599_v57 }
 0x102   : > { %1293 = vst.msk [vmem:[%s1981_s17 + $0x8] sm:$0xf] %vm1290_vm0, %v1577_v61  ;;  %1325 = vst.msk [vmem:[%s1981_s17 + $0x88] sm:$0xf] %vm1290_vm0, %v1609_v62  ;;  %vm877_vm6 = vcmp.gt.f32.partialorder %v727_v58, 0.0  ;;  %v591_v5 = vadd.f32 %v1970_v40, %v590_v59  ;;  %v719_v6 = vadd.f32 %v1970_v40, %v718_v60  ;;  %v1701_v7 = vpop.f32.mrb[4].mxu0 }
 0x103   : > { %v941_v4 = vmul.f32 0.2, %v727_v58  ;;  %v1733_v8 = vpop.f32.mrb[4].mxu1  ;;  %1291 = vst.msk [vmem:[%s1981_s17] sm:$0xf] %vm1290_vm0, %v1575_v1  ;;  %v973_v9 = vsel %vm845_vm5, %v599_v57, %v909_v3  ;;  %v612_v10 = vadd.f32 %v1701_v7, %v1970_v40  ;;  %v603_v12 = vpop.f32.mrb[5].mxu0 }
 0x104   : > { %1323 = vst.msk [vmem:[%s1981_s17 + $0x80] sm:$0xf] %vm1290_vm0, %v1607_v2  ;;  %v740_v11 = vadd.f32 %v1733_v8, %v1970_v40  ;;  %v731_v13 = vpop.f32.mrb[5].mxu1  ;;  %v1578_v14 = vpack.c.bf16 %v973_v9, %v973_v9  ;;  %vm843_vm7 = vcmp.gt.f32.partialorder %v591_v5, 0.0  ;;  %v907_v16 = vmul.f32 0.2, %v591_v5 }
 0x105   : > { %v1005_v15 = vsel %vm877_vm6, %v727_v58, %v941_v4  ;;  %v1702_v17 = vpop.f32.mrb[6].mxu0  ;;  %v1734_v18 = vpop.f32.mrb[6].mxu1  ;;  %vm875_vm8 = vcmp.gt.f32.partialorder %v719_v6, 0.0  ;;  %v939_v20 = vmul.f32 0.2, %v719_v6  ;;  %vm848_vm9 = vcmp.gt.f32.partialorder %v612_v10, 0.0 }
 0x106   : > { %v1610_v19 = vpack.c.bf16 %v1005_v15, %v1005_v15  ;;  %v606_v21 = vpop.f32.mrb[7].mxu0  ;;  %v734_v22 = vpop.f32.mrb[7].mxu1  ;;  %1294 = vst.msk [vmem:[%s1981_s17 + $0xc] sm:$0xf] %vm1290_vm0, %v1578_v14  ;;  %v971_v23 = vsel %vm843_vm7, %v591_v5, %v907_v16  ;;  %v912_v24 = vmul.f32 0.2, %v612_v10  ;;  %v604_v28 = vadd.f32 %v1970_v40, %v603_v12 }
 0x107   : > { %vm880_vm10 = vcmp.gt.f32.partialorder %v740_v11, 0.0  ;;  %v944_v25 = vmul.f32 0.2, %v740_v11  ;;  %v1576_v26 = vpack.c.bf16 %v971_v23, %v971_v23  ;;  %v1003_v27 = vsel %vm875_vm8, %v719_v6, %v939_v20 }
 0x108   : > { %1326 = vst.msk [vmem:[%s1981_s17 + $0x8c] sm:$0xf] %vm1290_vm0, %v1610_v19  ;;  %v732_v29 = vadd.f32 %v1970_v40, %v731_v13  ;;  %v1608_v30 = vpack.c.bf16 %v1003_v27, %v1003_v27  ;;  %v976_v31 = vsel %vm848_vm9, %v612_v10, %v912_v24  ;;  %v615_v33 = vadd.f32 %v1702_v17, %v1970_v40 }
 0x109   : > { %v1008_v32 = vsel %vm880_vm10, %v740_v11, %v944_v25  ;;  %1292 = vst.msk [vmem:[%s1981_s17 + $0x4] sm:$0xf] %vm1290_vm0, %v1576_v26  ;;  %v1581_v34 = vpack.c.bf16 %v976_v31, %v976_v31  ;;  %vm846_vm11 = vcmp.gt.f32.partialorder %v604_v28, 0.0  ;;  %v910_v36 = vmul.f32 0.2, %v604_v28 }
 0x10a   : > { %v1613_v35 = vpack.c.bf16 %v1008_v32, %v1008_v32  ;;  %1324 = vst.msk [vmem:[%s1981_s17 + $0x84] sm:$0xf] %vm1290_vm0, %v1608_v30  ;;  %vm878_vm12 = vcmp.gt.f32.partialorder %v732_v29, 0.0  ;;  %v942_v37 = vmul.f32 0.2, %v732_v29  ;;  %vm849_vm13 = vcmp.gt.f32.partialorder %v615_v33, 0.0 }
 0x10b   : > { %v913_v38 = vmul.f32 0.2, %v615_v33  ;;  %1297 = vst.msk [vmem:[%s1981_s17 + $0x18] sm:$0xf] %vm1290_vm0, %v1581_v34  ;;  %v974_v39 = vsel %vm846_vm11, %v604_v28, %v910_v36  ;;  %v743_v41 = vadd.f32 %v1734_v18, %v1970_v40  ;;  %v607_v42 = vadd.f32 %v1970_v40, %v606_v21  ;;  %v1705_v44 = vpop.f32.mrb[8].mxu0  ;;  %v1737_v45 = vpop.f32.mrb[8].mxu1 }
 0x10c   : > { %1329 = vst.msk [vmem:[%s1981_s17 + $0x98] sm:$0xf] %vm1290_vm0, %v1613_v35  ;;  %v735_v43 = vadd.f32 %v1970_v40, %v734_v22  ;;  %v1579_v46 = vpack.c.bf16 %v974_v39, %v974_v39  ;;  %v1006_v47 = vsel %vm878_vm12, %v732_v29, %v942_v37  ;;  %v628_v49 = vadd.f32 %v1705_v44, %v1970_v40  ;;  %v619_v50 = vpop.f32.mrb[9].mxu0  ;;  %v747_v51 = vpop.f32.mrb[9].mxu1 }
 0x10d   : > { %v977_v48 = vsel %vm849_vm13, %v615_v33, %v913_v38  ;;  %v1611_v52 = vpack.c.bf16 %v1006_v47, %v1006_v47  ;;  %vm881_vm14 = vcmp.gt.f32.partialorder %v743_v41, 0.0  ;;  %v945_v54 = vmul.f32 0.2, %v743_v41  ;;  %v1706_v55 = vpop.f32.mrb[10].mxu0  ;;  %v1738_v56 = vpop.f32.mrb[10].mxu1 }
 0x10e   : > { %v1582_v53 = vpack.c.bf16 %v977_v48, %v977_v48  ;;  %1295 = vst.msk [vmem:[%s1981_s17 + $0x10] sm:$0xf] %vm1290_vm0, %v1579_v46  ;;  %vm847_vm15 = vcmp.gt.f32.partialorder %v607_v42, 0.0  ;;  %v911_v57 = vmul.f32 0.2, %v607_v42  ;;  %vm879_vm1 = vcmp.gt.f32.partialorder %v735_v43, 0.0 }
 0x10f   : > { %v943_v58 = vmul.f32 0.2, %v735_v43  ;;  %1327 = vst.msk [vmem:[%s1981_s17 + $0x90] sm:$0xf] %vm1290_vm0, %v1611_v52  ;;  %v1009_v59 = vsel %vm881_vm14, %v743_v41, %v945_v54  ;;  %vm852_vm2 = vcmp.gt.f32.partialorder %v628_v49, 0.0  ;;  %v756_v61 = vadd.f32 %v1737_v45, %v1970_v40  ;;  %v622_v62 = vpop.f32.mrb[11].mxu0 }
 0x110   : > { %1298 = vst.msk [vmem:[%s1981_s17 + $0x1c] sm:$0xf] %vm1290_vm0, %v1582_v53  ;;  %v916_v60 = vmul.f32 0.2, %v628_v49  ;;  %v750_v63 = vpop.f32.mrb[11].mxu1  ;;  %v1614_v0 = vpack.c.bf16 %v1009_v59, %v1009_v59  ;;  %v975_v1 = vsel %vm847_vm15, %v607_v42, %v911_v57  ;;  %v620_v3 = vadd.f32 %v1970_v40, %v619_v50 }
 0x111   : > { %v1007_v2 = vsel %vm879_vm1, %v735_v43, %v943_v58  ;;  %v1580_v4 = vpack.c.bf16 %v975_v1, %v975_v1  ;;  %vm884_vm3 = vcmp.gt.f32.partialorder %v756_v61, 0.0  ;;  %v948_v8 = vmul.f32 0.2, %v756_v61 }
 0x112   : > { %v1612_v5 = vpack.c.bf16 %v1007_v2, %v1007_v2  ;;  %v980_v6 = vsel %vm852_vm2, %v628_v49, %v916_v60  ;;  %1330 = vst.msk [vmem:[%s1981_s17 + $0x9c] sm:$0xf] %vm1290_vm0, %v1614_v0  ;;  %vm850_vm4 = vcmp.gt.f32.partialorder %v620_v3, 0.0  ;;  %v914_v9 = vmul.f32 0.2, %v620_v3  ;;  %v1709_v10 = vpop.f32.mrb[12].mxu0 }
 0x113   : > { %v1585_v7 = vpack.c.bf16 %v980_v6, %v980_v6  ;;  %1296 = vst.msk [vmem:[%s1981_s17 + $0x14] sm:$0xf] %vm1290_vm0, %v1580_v4  ;;  %v748_v11 = vadd.f32 %v1970_v40, %v747_v51  ;;  %v631_v12 = vadd.f32 %v1706_v55, %v1970_v40  ;;  %v759_v13 = vadd.f32 %v1738_v56, %v1970_v40  ;;  %v1741_v15 = vpop.f32.mrb[12].mxu1  ;;  %v635_v16 = vpop.f32.mrb[13].mxu0 }
 0x114   : > { %1328 = vst.msk [vmem:[%s1981_s17 + $0x94] sm:$0xf] %vm1290_vm0, %v1612_v5  ;;  %v623_v14 = vadd.f32 %v1970_v40, %v622_v62  ;;  %v1012_v17 = vsel %vm884_vm3, %v756_v61, %v948_v8  ;;  %v978_v18 = vsel %vm850_vm4, %v620_v3, %v914_v9  ;;  %v751_v19 = vadd.f32 %v1970_v40, %v750_v63  ;;  %v763_v21 = vpop.f32.mrb[13].mxu1  ;;  %v1710_v22 = vpop.f32.mrb[14].mxu0 }
 0x115   : > { %1301 = vst.msk [vmem:[%s1981_s17 + $0x28] sm:$0xf] %vm1290_vm0, %v1585_v7  ;;  %v644_v20 = vadd.f32 %v1709_v10, %v1970_v40  ;;  %v1617_v23 = vpack.c.bf16 %v1012_v17, %v1012_v17  ;;  %v1583_v24 = vpack.c.bf16 %v978_v18, %v978_v18  ;;  %vm882_vm5 = vcmp.gt.f32.partialorder %v748_v11, 0.0  ;;  %v1742_v26 = vpop.f32.mrb[14].mxu1  ;;  %v638_v27 = vpop.f32.mrb[15].mxu0 }
 0x116   : > { %v946_v25 = vmul.f32 0.2, %v748_v11  ;;  %vm853_vm6 = vcmp.gt.f32.partialorder %v631_v12, 0.0  ;;  %v917_v28 = vmul.f32 0.2, %v631_v12  ;;  %vm885_vm7 = vcmp.gt.f32.partialorder %v759_v13, 0.0 }
 0x117   : > { %v949_v29 = vmul.f32 0.2, %v759_v13  ;;  %1333 = vst.msk [vmem:[%s1981_s17 + $0xa8] sm:$0xf] %vm1290_vm0, %v1617_v23  ;;  %1299 = vst.msk [vmem:[%s1981_s17 + $0x20] sm:$0xf] %vm1290_vm0, %v1583_v24  ;;  %v772_v44 = vadd.f32 %v1741_v15, %v1970_v40  ;;  %v636_v48 = vadd.f32 %v1970_v40, %v635_v16  ;;  %v764_v49 = vadd.f32 %v1970_v40, %v763_v21 }
 0x118   : > { %v1010_v30 = vsel %vm882_vm5, %v748_v11, %v946_v25  ;;  %vm851_vm8 = vcmp.gt.f32.partialorder %v623_v14, 0.0  ;;  %v915_v31 = vmul.f32 0.2, %v623_v14  ;;  %vm883_vm9 = vcmp.gt.f32.partialorder %v751_v19, 0.0  ;;  %v766_v32 = vpop.f32.mrb[15].mxu1 }
 0x119   : > { %v1615_v33 = vpack.c.bf16 %v1010_v30, %v1010_v30  ;;  %v981_v34 = vsel %vm853_vm6, %v631_v12, %v917_v28  ;;  %v1013_v35 = vsel %vm885_vm7, %v759_v13, %v949_v29  ;;  %v947_v36 = vmul.f32 0.2, %v751_v19 }
 0x11a   : > { %v1586_v37 = vpack.c.bf16 %v981_v34, %v981_v34  ;;  %v1618_v38 = vpack.c.bf16 %v1013_v35, %v1013_v35  ;;  %v979_v39 = vsel %vm851_vm8, %v623_v14, %v915_v31  ;;  %vm856_vm10 = vcmp.gt.f32.partialorder %v644_v20, 0.0  ;;  %v1713_v45 = vpop.f32.mrb[16].mxu0  ;;  %v1745_v46 = vpop.f32.mrb[16].mxu1 }
 0x11b   : > { %1331 = vst.msk [vmem:[%s1981_s17 + $0xa0] sm:$0xf] %vm1290_vm0, %v1615_v33  ;;  %v1584_v41 = vpack.c.bf16 %v979_v39, %v979_v39  ;;  %v1011_v42 = vsel %vm883_vm9, %v751_v19, %v947_v36  ;;  %v920_v43 = vmul.f32 0.2, %v644_v20  ;;  %v647_v50 = vadd.f32 %v1710_v22, %v1970_v40  ;;  %v651_v51 = vpop.f32.mrb[17].mxu0  ;;  %v779_v52 = vpop.f32.mrb[17].mxu1 }
 0x11c   : > { %1302 = vst.msk [vmem:[%s1981_s17 + $0x2c] sm:$0xf] %vm1290_vm0, %v1586_v37  ;;  %1334 = vst.msk [vmem:[%s1981_s17 + $0xac] sm:$0xf] %vm1290_vm0, %v1618_v38  ;;  %v1616_v47 = vpack.c.bf16 %v1011_v42, %v1011_v42  ;;  %vm888_vm11 = vcmp.gt.f32.partialorder %v772_v44, 0.0  ;;  %v775_v55 = vadd.f32 %v1742_v26, %v1970_v40  ;;  %v2057_v56 = vpop.f32.mrb[18].mxu0  ;;  %v639_v7 = vadd.f32 %v1970_v40, %v638_v27 }
 0x11d   : > { %1300 = vst.msk [vmem:[%s1981_s17 + $0x24] sm:$0xf] %vm1290_vm0, %v1584_v41  ;;  %v984_v53 = vsel %vm856_vm10, %v644_v20, %v920_v43  ;;  %v952_v54 = vmul.f32 0.2, %v772_v44  ;;  %v2059_v57 = vpop.f32.mrb[18].mxu1  ;;  %vm854_vm12 = vcmp.gt.f32.partialorder %v636_v48, 0.0  ;;  %v767_v11 = vadd.f32 %v1970_v40, %v766_v32 }
 0x11e   : > { %1332 = vst.msk [vmem:[%s1981_s17 + $0xa4] sm:$0xf] %vm1290_vm0, %v1616_v47  ;;  %v1589_v58 = vpack.c.bf16 %v984_v53, %v984_v53  ;;  %v918_v59 = vmul.f32 0.2, %v636_v48  ;;  %vm886_vm13 = vcmp.gt.f32.partialorder %v764_v49, 0.0  ;;  %v2063_v60 = vpop.f32.mrb[19].mxu0  ;;  %v660_v14 = vadd.f32 %v1713_v45, %v1970_v40 }
 0x11f   : > { %v2065_v61 = vpop.f32.mrb[19].mxu1  ;;  %v1016_v62 = vsel %vm888_vm11, %v772_v44, %v952_v54  ;;  %v950_v63 = vmul.f32 0.2, %v764_v49  ;;  %vm857_vm14 = vcmp.gt.f32.partialorder %v647_v50, 0.0  ;;  %v921_v0 = vmul.f32 0.2, %v647_v50 }
 0x120   : > { %1305 = vst.msk [vmem:[%s1981_s17 + $0x38] sm:$0xf] %vm1290_vm0, %v1589_v58  ;;  %v1621_v1 = vpack.c.bf16 %v1016_v62, %v1016_v62  ;;  %v982_v2 = vsel %vm854_vm12, %v636_v48, %v918_v59  ;;  %vm889_vm15 = vcmp.gt.f32.partialorder %v775_v55, 0.0  ;;  %v953_v3 = vmul.f32 0.2, %v775_v55 }
 0x121   : > { %v1587_v4 = vpack.c.bf16 %v982_v2, %v982_v2  ;;  %v1014_v5 = vsel %vm886_vm13, %v764_v49, %v950_v63  ;;  %v985_v6 = vsel %vm857_vm14, %v647_v50, %v921_v0  ;;  %vm855_vm1 = vcmp.gt.f32.partialorder %v639_v7, 0.0 }
 0x122   : > { %1337 = vst.msk [vmem:[%s1981_s17 + $0xb8] sm:$0xf] %vm1290_vm0, %v1621_v1  ;;  %v1619_v8 = vpack.c.bf16 %v1014_v5, %v1014_v5  ;;  %v1590_v9 = vpack.c.bf16 %v985_v6, %v985_v6  ;;  %v1017_v10 = vsel %vm889_vm15, %v775_v55, %v953_v3  ;;  %v919_v13 = vmul.f32 0.2, %v639_v7  ;;  %v1717_v15 = vpop.f32.mrb[20].mxu0  ;;  %v1749_v16 = vpop.f32.mrb[20].mxu1 }
 0x123   : > { %1303 = vst.msk [vmem:[%s1981_s17 + $0x30] sm:$0xf] %vm1290_vm0, %v1587_v4  ;;  %v1622_v12 = vpack.c.bf16 %v1017_v10, %v1017_v10  ;;  %vm887_vm2 = vcmp.gt.f32.partialorder %v767_v11, 0.0  ;;  %v951_v17 = vmul.f32 0.2, %v767_v11  ;;  %v788_v18 = vadd.f32 %v1745_v46, %v1970_v40  ;;  %v667_v20 = vpop.f32.mrb[21].mxu0 }
 0x124   : > { %1335 = vst.msk [vmem:[%s1981_s17 + $0xb0] sm:$0xf] %vm1290_vm0, %v1619_v8  ;;  %1306 = vst.msk [vmem:[%s1981_s17 + $0x3c] sm:$0xf] %vm1290_vm0, %v1590_v9  ;;  %v652_v19 = vadd.f32 %v1970_v40, %v651_v51  ;;  %v2082_v21 = vpop.f32.mrb[21].mxu1  ;;  %v983_v22 = vsel %vm855_vm1, %v639_v7, %v919_v13  ;;  %vm860_vm3 = vcmp.gt.f32.partialorder %v660_v14, 0.0  ;;  %v780_v24 = vadd.f32 %v1970_v40, %v779_v52 }
 0x125   : > { %1338 = vst.msk [vmem:[%s1981_s17 + $0xbc] sm:$0xf] %vm1290_vm0, %v1622_v12  ;;  %v924_v23 = vmul.f32 0.2, %v660_v14  ;;  %v2087_v25 = vpop.f32.mrb[22].mxu0  ;;  %v2089_v26 = vpop.f32.mrb[22].mxu1  ;;  %v1588_v27 = vpack.c.bf16 %v983_v22, %v983_v22  ;;  %v1015_v28 = vsel %vm887_vm2, %v767_v11, %v951_v17  ;;  %v663_v41 = vadd.f32 %v2057_v56, %v1970_v40 }
 0x126   : > { %vm892_vm4 = vcmp.gt.f32.partialorder %v788_v18, 0.0  ;;  %v956_v29 = vmul.f32 0.2, %v788_v18  ;;  %v2091_v30 = vpop.f32.mrb[23].mxu0  ;;  %v2093_v31 = vpop.f32.mrb[23].mxu1  ;;  %v1620_v32 = vpack.c.bf16 %v1015_v28, %v1015_v28  ;;  %vm858_vm5 = vcmp.gt.f32.partialorder %v652_v19, 0.0 }
 0x127   : > { %v988_v33 = vsel %vm860_vm3, %v660_v14, %v924_v23  ;;  %v922_v34 = vmul.f32 0.2, %v652_v19  ;;  %1304 = vst.msk [vmem:[%s1981_s17 + $0x34] sm:$0xf] %vm1290_vm0, %v1588_v27  ;;  %vm890_vm6 = vcmp.gt.f32.partialorder %v780_v24, 0.0  ;;  %v791_v42 = vadd.f32 %v2059_v57, %v1970_v40 }
 0x128   : > { %v1593_v35 = vpack.c.bf16 %v988_v33, %v988_v33  ;;  %v1020_v36 = vsel %vm892_vm4, %v788_v18, %v956_v29  ;;  %v954_v37 = vmul.f32 0.2, %v780_v24  ;;  %1336 = vst.msk [vmem:[%s1981_s17 + $0xb4] sm:$0xf] %vm1290_vm0, %v1620_v32  ;;  %v655_v45 = vadd.f32 %v1970_v40, %v2063_v60 }
 0x129   : > { %v1625_v38 = vpack.c.bf16 %v1020_v36, %v1020_v36  ;;  %v986_v39 = vsel %vm858_vm5, %v652_v19, %v922_v34  ;;  %v783_v46 = vadd.f32 %v1970_v40, %v2065_v61  ;;  %vm861_vm7 = vcmp.gt.f32.partialorder %v663_v41, 0.0 }
 0x12a   : > { %1309 = vst.msk [vmem:[%s1981_s17 + $0x48] sm:$0xf] %vm1290_vm0, %v1593_v35  ;;  %v1591_v43 = vpack.c.bf16 %v986_v39, %v986_v39  ;;  %v1018_v44 = vsel %vm890_vm6, %v780_v24, %v954_v37  ;;  %v925_v48 = vmul.f32 0.2, %v663_v41  ;;  %vm893_vm8 = vcmp.gt.f32.partialorder %v791_v42, 0.0  ;;  %v2111_v49 = vpop.f32.mrb[24].mxu0 }
 0x12b   : > { %1341 = vst.msk [vmem:[%s1981_s17 + $0xc8] sm:$0xf] %vm1290_vm0, %v1625_v38  ;;  %v1623_v47 = vpack.c.bf16 %v1018_v44, %v1018_v44  ;;  %v2113_v50 = vpop.f32.mrb[24].mxu1  ;;  %v957_v51 = vmul.f32 0.2, %v791_v42  ;;  %vm859_vm9 = vcmp.gt.f32.partialorder %v655_v45, 0.0  ;;  %v676_v55 = vadd.f32 %v1717_v15, %v1970_v40 }
 0x12c   : > { %1307 = vst.msk [vmem:[%s1981_s17 + $0x40] sm:$0xf] %vm1290_vm0, %v1591_v43  ;;  %v923_v52 = vmul.f32 0.2, %v655_v45  ;;  %vm891_vm10 = vcmp.gt.f32.partialorder %v783_v46, 0.0  ;;  %v989_v53 = vsel %vm861_vm7, %v663_v41, %v925_v48  ;;  %v804_v56 = vadd.f32 %v1749_v16, %v1970_v40  ;;  %v2121_v57 = vpop.f32.mrb[25].mxu0 }
 0x12d   : > { %1339 = vst.msk [vmem:[%s1981_s17 + $0xc0] sm:$0xf] %vm1290_vm0, %v1623_v47  ;;  %v955_v54 = vmul.f32 0.2, %v783_v46  ;;  %v2123_v58 = vpop.f32.mrb[25].mxu1  ;;  %v1594_v59 = vpack.c.bf16 %v989_v53, %v989_v53  ;;  %v1021_v60 = vsel %vm893_vm8, %v791_v42, %v957_v51  ;;  %v668_v62 = vadd.f32 %v1970_v40, %v667_v20  ;;  %v2127_v63 = vpop.f32.mrb[26].mxu0 }
 0x12e   : > { %v987_v61 = vsel %vm859_vm9, %v655_v45, %v923_v52  ;;  %v2129_v0 = vpop.f32.mrb[26].mxu1  ;;  %v1626_v1 = vpack.c.bf16 %v1021_v60, %v1021_v60  ;;  %vm864_vm11 = vcmp.gt.f32.partialorder %v676_v55, 0.0  ;;  %v2132_v4 = vpop.f32.mrb[27].mxu0  ;;  %v928_v7 = vmul.f32 0.2, %v676_v55 }
 0x12f   : > { %v1592_v2 = vpack.c.bf16 %v987_v61, %v987_v61  ;;  %v1019_v3 = vsel %vm891_vm10, %v783_v46, %v955_v54  ;;  %v2134_v5 = vpop.f32.mrb[27].mxu1  ;;  %1310 = vst.msk [vmem:[%s1981_s17 + $0x4c] sm:$0xf] %vm1290_vm0, %v1594_v59  ;;  %vm896_vm12 = vcmp.gt.f32.partialorder %v804_v56, 0.0  ;;  %v960_v8 = vmul.f32 0.2, %v804_v56 }
 0x130   : > { %v1624_v6 = vpack.c.bf16 %v1019_v3, %v1019_v3  ;;  %1342 = vst.msk [vmem:[%s1981_s17 + $0xcc] sm:$0xf] %vm1290_vm0, %v1626_v1  ;;  %vm862_vm13 = vcmp.gt.f32.partialorder %v668_v62, 0.0  ;;  %v926_v9 = vmul.f32 0.2, %v668_v62  ;;  %v796_v10 = vadd.f32 %v1970_v40, %v2082_v21 }
 0x131   : > { %1308 = vst.msk [vmem:[%s1981_s17 + $0x44] sm:$0xf] %vm1290_vm0, %v1592_v2  ;;  %v679_v11 = vadd.f32 %v2087_v25, %v1970_v40  ;;  %v992_v12 = vsel %vm864_vm11, %v676_v55, %v928_v7  ;;  %v1024_v13 = vsel %vm896_vm12, %v804_v56, %v960_v8  ;;  %v807_v14 = vadd.f32 %v2089_v26, %v1970_v40 }
 0x132   : > { %1340 = vst.msk [vmem:[%s1981_s17 + $0xc4] sm:$0xf] %vm1290_vm0, %v1624_v6  ;;  %v671_v15 = vadd.f32 %v1970_v40, %v2091_v30  ;;  %v1597_v16 = vpack.c.bf16 %v992_v12, %v992_v12  ;;  %v1629_v17 = vpack.c.bf16 %v1024_v13, %v1024_v13  ;;  %v990_v18 = vsel %vm862_vm13, %v668_v62, %v926_v9  ;;  %v2152_v19 = vpop.f32.mrb[28].mxu0  ;;  %v2154_v20 = vpop.f32.mrb[28].mxu1 }
 0x133   : > { %vm894_vm14 = vcmp.gt.f32.partialorder %v796_v10, 0.0  ;;  %v1595_v21 = vpack.c.bf16 %v990_v18, %v990_v18  ;;  %v958_v22 = vmul.f32 0.2, %v796_v10  ;;  %vm865_vm15 = vcmp.gt.f32.partialorder %v679_v11, 0.0  ;;  %v2156_v24 = vpop.f32.mrb[29].mxu0  ;;  %v2168_v32 = vpop.f32.mrb[29].mxu1 }
 0x134   : > { %v929_v23 = vmul.f32 0.2, %v679_v11  ;;  %1313 = vst.msk [vmem:[%s1981_s17 + $0x58] sm:$0xf] %vm1290_vm0, %v1597_v16  ;;  %1345 = vst.msk [vmem:[%s1981_s17 + $0xd8] sm:$0xf] %vm1290_vm0, %v1629_v17  ;;  %v799_v29 = vadd.f32 %v1970_v40, %v2093_v31  ;;  %v692_v30 = vadd.f32 %v2111_v49, %v1970_v40  ;;  %v820_v45 = vadd.f32 %v2113_v50, %v1970_v40 }
 0x135   : > { %vm897_vm1 = vcmp.gt.f32.partialorder %v807_v14, 0.0  ;;  %v961_v25 = vmul.f32 0.2, %v807_v14  ;;  %vm863_vm2 = vcmp.gt.f32.partialorder %v671_v15, 0.0  ;;  %v927_v26 = vmul.f32 0.2, %v671_v15 }
 0x136   : > { %1311 = vst.msk [vmem:[%s1981_s17 + $0x50] sm:$0xf] %vm1290_vm0, %v1595_v21  ;;  %v1022_v27 = vsel %vm894_vm14, %v796_v10, %v958_v22  ;;  %v993_v28 = vsel %vm865_vm15, %v679_v11, %v929_v23  ;;  %v2170_v33 = vpop.f32.mrb[30].mxu0  ;;  %v2172_v38 = vpop.f32.mrb[30].mxu1  ;;  %vm895_vm3 = vcmp.gt.f32.partialorder %v799_v29, 0.0  ;;  %vm868_vm4 = vcmp.gt.f32.partialorder %v692_v30, 0.0 }
 0x137   : > { %v1627_v34 = vpack.c.bf16 %v1022_v27, %v1022_v27  ;;  %v1598_v35 = vpack.c.bf16 %v993_v28, %v993_v28  ;;  %v1025_v36 = vsel %vm897_vm1, %v807_v14, %v961_v25  ;;  %v991_v37 = vsel %vm863_vm2, %v671_v15, %v927_v26  ;;  %v2174_v39 = vpop.f32.mrb[31].mxu0  ;;  %v2176_v43 = vpop.f32.mrb[31].mxu1 }
 0x138   : > { %v1630_v41 = vpack.c.bf16 %v1025_v36, %v1025_v36  ;;  %v1596_v31 = vpack.c.bf16 %v991_v37, %v991_v37  ;;  %v959_v42 = vmul.f32 0.2, %v799_v29  ;;  %v932_v44 = vmul.f32 0.2, %v692_v30 }
 0x139   : > { %1343 = vst.msk [vmem:[%s1981_s17 + $0xd0] sm:$0xf] %vm1290_vm0, %v1627_v34  ;;  %1314 = vst.msk [vmem:[%s1981_s17 + $0x5c] sm:$0xf] %vm1290_vm0, %v1598_v35  ;;  %v684_v46 = vadd.f32 %v1970_v40, %v2121_v57  ;;  %v812_v48 = vadd.f32 %v1970_v40, %v2123_v58  ;;  %v695_v49 = vadd.f32 %v2127_v63, %v1970_v40  ;;  %vm900_vm5 = vcmp.gt.f32.partialorder %v820_v45, 0.0 }
 0x13a   : > { %1346 = vst.msk [vmem:[%s1981_s17 + $0xdc] sm:$0xf] %vm1290_vm0, %v1630_v41  ;;  %1312 = vst.msk [vmem:[%s1981_s17 + $0x54] sm:$0xf] %vm1290_vm0, %v1596_v31  ;;  %v1023_v47 = vsel %vm895_vm3, %v799_v29, %v959_v42  ;;  %v823_v51 = vadd.f32 %v2129_v0, %v1970_v40  ;;  %v996_v52 = vsel %vm868_vm4, %v692_v30, %v932_v44  ;;  %v964_v53 = vmul.f32 0.2, %v820_v45 }
 0x13b   : > { %v1628_v50 = vpack.c.bf16 %v1023_v47, %v1023_v47  ;;  %v1601_v54 = vpack.c.bf16 %v996_v52, %v996_v52  ;;  %vm866_vm6 = vcmp.gt.f32.partialorder %v684_v46, 0.0  ;;  %v930_v55 = vmul.f32 0.2, %v684_v46 }
 0x13c   : > { %vm898_vm7 = vcmp.gt.f32.partialorder %v812_v48, 0.0  ;;  %v1028_v56 = vsel %vm900_vm5, %v820_v45, %v964_v53  ;;  %v962_v57 = vmul.f32 0.2, %v812_v48  ;;  %vm869_vm8 = vcmp.gt.f32.partialorder %v695_v49, 0.0 }
 0x13d   : > { %1344 = vst.msk [vmem:[%s1981_s17 + $0xd4] sm:$0xf] %vm1290_vm0, %v1628_v50  ;;  %v933_v58 = vmul.f32 0.2, %v695_v49  ;;  %1317 = vst.msk [vmem:[%s1981_s17 + $0x68] sm:$0xf] %vm1290_vm0, %v1601_v54  ;;  %v1633_v59 = vpack.c.bf16 %v1028_v56, %v1028_v56  ;;  %v994_v60 = vsel %vm866_vm6, %v684_v46, %v930_v55  ;;  %v687_v1 = vadd.f32 %v1970_v40, %v2132_v4 }
 0x13e   : > { %vm901_vm9 = vcmp.gt.f32.partialorder %v823_v51, 0.0  ;;  %v965_v61 = vmul.f32 0.2, %v823_v51  ;;  %v1599_v62 = vpack.c.bf16 %v994_v60, %v994_v60  ;;  %v1026_v63 = vsel %vm898_vm7, %v812_v48, %v962_v57 }
 0x13f   : > { %v997_v0 = vsel %vm869_vm8, %v695_v49, %v933_v58  ;;  %1349 = vst.msk [vmem:[%s1981_s17 + $0xe8] sm:$0xf] %vm1290_vm0, %v1633_v59  ;;  %v1631_v2 = vpack.c.bf16 %v1026_v63, %v1026_v63  ;;  %v815_v7 = vadd.f32 %v1970_v40, %v2134_v5  ;;  %vm867_vm10 = vcmp.gt.f32.partialorder %v687_v1, 0.0 }
 0x140   : > { %v1602_v3 = vpack.c.bf16 %v997_v0, %v997_v0  ;;  %v1029_v6 = vsel %vm901_vm9, %v823_v51, %v965_v61  ;;  %1315 = vst.msk [vmem:[%s1981_s17 + $0x60] sm:$0xf] %vm1290_vm0, %v1599_v62  ;;  %v931_v9 = vmul.f32 0.2, %v687_v1  ;;  %v708_v10 = vadd.f32 %v2152_v19, %v1970_v40 }
 0x141   : > { %v1634_v8 = vpack.c.bf16 %v1029_v6, %v1029_v6  ;;  %1347 = vst.msk [vmem:[%s1981_s17 + $0xe0] sm:$0xf] %vm1290_vm0, %v1631_v2  ;;  %vm899_vm11 = vcmp.gt.f32.partialorder %v815_v7, 0.0  ;;  %v963_v4 = vmul.f32 0.2, %v815_v7  ;;  %v836_v11 = vadd.f32 %v2154_v20, %v1970_v40 }
 0x142   : > { %1318 = vst.msk [vmem:[%s1981_s17 + $0x6c] sm:$0xf] %vm1290_vm0, %v1602_v3  ;;  %v700_v5 = vadd.f32 %v1970_v40, %v2156_v24  ;;  %v995_v12 = vsel %vm867_vm10, %v687_v1, %v931_v9  ;;  %vm872_vm12 = vcmp.gt.f32.partialorder %v708_v10, 0.0  ;;  %v936_v13 = vmul.f32 0.2, %v708_v10 }
 0x143   : > { %1350 = vst.msk [vmem:[%s1981_s17 + $0xec] sm:$0xf] %vm1290_vm0, %v1634_v8  ;;  %v828_v14 = vadd.f32 %v1970_v40, %v2168_v32  ;;  %v1600_v15 = vpack.c.bf16 %v995_v12, %v995_v12  ;;  %v1027_v16 = vsel %vm899_vm11, %v815_v7, %v963_v4  ;;  %vm904_vm13 = vcmp.gt.f32.partialorder %v836_v11, 0.0 }
 0x144   : > { %v968_v17 = vmul.f32 0.2, %v836_v11  ;;  %v1632_v18 = vpack.c.bf16 %v1027_v16, %v1027_v16  ;;  %v1000_v19 = vsel %vm872_vm12, %v708_v10, %v936_v13  ;;  %vm870_vm14 = vcmp.gt.f32.partialorder %v700_v5, 0.0 }
 0x145   : > { %v934_v20 = vmul.f32 0.2, %v700_v5  ;;  %1316 = vst.msk [vmem:[%s1981_s17 + $0x64] sm:$0xf] %vm1290_vm0, %v1600_v15  ;;  %v1605_v21 = vpack.c.bf16 %v1000_v19, %v1000_v19  ;;  %vm902_vm15 = vcmp.gt.f32.partialorder %v828_v14, 0.0  ;;  %v711_v26 = vadd.f32 %v2170_v33, %v1970_v40 }
 0x146   : > { %v1032_v22 = vsel %vm904_vm13, %v836_v11, %v968_v17  ;;  %v966_v23 = vmul.f32 0.2, %v828_v14  ;;  %1348 = vst.msk [vmem:[%s1981_s17 + $0xe4] sm:$0xf] %vm1290_vm0, %v1632_v18  ;;  %v839_v27 = vadd.f32 %v2172_v38, %v1970_v40  ;;  %v703_v30 = vadd.f32 %v1970_v40, %v2174_v39 }
 0x147   : > { %v1637_v24 = vpack.c.bf16 %v1032_v22, %v1032_v22  ;;  %v998_v25 = vsel %vm870_vm14, %v700_v5, %v934_v20  ;;  %1321 = vst.msk [vmem:[%s1981_s17 + $0x78] sm:$0xf] %vm1290_vm0, %v1605_v21  ;;  %v831_v32 = vadd.f32 %v1970_v40, %v2176_v43  ;;  %vm873_vm1 = vcmp.gt.f32.partialorder %v711_v26, 0.0 }
 0x148   : > { %v1603_v28 = vpack.c.bf16 %v998_v25, %v998_v25  ;;  %v1030_v29 = vsel %vm902_vm15, %v828_v14, %v966_v23  ;;  %v937_v35 = vmul.f32 0.2, %v711_v26  ;;  %vm905_vm2 = vcmp.gt.f32.partialorder %v839_v27, 0.0 }
 0x149   : > { %1353 = vst.msk [vmem:[%s1981_s17 + $0xf8] sm:$0xf] %vm1290_vm0, %v1637_v24  ;;  %v1635_v34 = vpack.c.bf16 %v1030_v29, %v1030_v29  ;;  %v969_v33 = vmul.f32 0.2, %v839_v27  ;;  %vm871_vm3 = vcmp.gt.f32.partialorder %v703_v30, 0.0  ;;  %vm903_vm4 = vcmp.gt.f32.partialorder %v831_v32, 0.0 }
 0x14a   : > { %1319 = vst.msk [vmem:[%s1981_s17 + $0x70] sm:$0xf] %vm1290_vm0, %v1603_v28  ;;  %v935_v36 = vmul.f32 0.2, %v703_v30  ;;  %v1001_v37 = vsel %vm873_vm1, %v711_v26, %v937_v35  ;;  %v967_v40 = vmul.f32 0.2, %v831_v32 }
 0x14b   : > { %1351 = vst.msk [vmem:[%s1981_s17 + $0xf0] sm:$0xf] %vm1290_vm0, %v1635_v34  ;;  %v1606_v38 = vpack.c.bf16 %v1001_v37, %v1001_v37  ;;  %v1033_v39 = vsel %vm905_vm2, %v839_v27, %v969_v33 }
 0x14c   : > { %v999_v41 = vsel %vm871_vm3, %v703_v30, %v935_v36  ;;  %v1638_v31 = vpack.c.bf16 %v1033_v39, %v1033_v39  ;;  %v1031_v43 = vsel %vm903_vm4, %v831_v32, %v967_v40 }
 0x14d   : > { %v1604_v42 = vpack.c.bf16 %v999_v41, %v999_v41  ;;  %1322 = vst.msk [vmem:[%s1981_s17 + $0x7c] sm:$0xf] %vm1290_vm0, %v1606_v38  ;;  %v1636_v44 = vpack.c.bf16 %v1031_v43, %v1031_v43 }
 0x14e   : > { %1354 = vst.msk [vmem:[%s1981_s17 + $0xfc] sm:$0xf] %vm1290_vm0, %v1638_v31 }
 0x14f   : > { %1320 = vst.msk [vmem:[%s1981_s17 + $0x74] sm:$0xf] %vm1290_vm0, %v1604_v42  ;;  %1352 = vst.msk [vmem:[%s1981_s17 + $0xf4] sm:$0xf] %vm1290_vm0, %v1636_v44 }
 0x150 PF: > { %s13_s14 = sadd.s32 1, %s1861_s14   ;;  %s2263_s12 = smov %s1857_s13 }
 0x151   : > { %p10_p5 = scmp.ge.s32.totalorder %s13_s14, 6   ;;  %s2264_s13 = smov %s2266_s15 }
 0x153   :  { %12 = sbr.rel (!%p10_p5) target bundleno = 2 (0x2), region = 68 }

// kernel: discriminator_forward.7
= control target key start
LH: loop header
LB: loop body
LE: loop exit
PB: predicated region body
PF: predicated region fallthrough
CT: control target
= control target key end

     0   :  { %v4116_v0 = vmov 0   ;;  %s6670_s1 = inlined_call_operand.vmem [shape: bf16[640,128], index: 1, kind: input, shape index: {}]   ;;  %s6671_s0 = inlined_call_operand.vmem [shape: bf16[512,640], index: 0, kind: input, shape index: {}]   ;;  %s6672_s2 = inlined_call_operand.vmem [shape: f32[1,128], index: 2, kind: input, shape index: {}]   ;;  %s6673_s3 = inlined_call_operand.vmem [shape: f32[1,128], index: 3, kind: input, shape index: {}]   ;;  %s6674_s4 = inlined_call_operand.vmem [shape: bf16[512,128], index: 4, kind: output, shape index: {}]  }
   0x1   :  { %1362 = vmatprep.subr.bf16.mxu0 %v4116_v0  ;;  %3737 = vmatprep.subr.bf16.mxu1 %v4116_v0  ;;  %v3850_v1 = vld [vmem:[%s6670_s1] sm:$0xff]   ;;  %v3851_v2 = vld [vmem:[%s6670_s1 + $0x8] sm:$0xff]   ;;  %v3852_v3 = vld [vmem:[%s6670_s1 + $0x10] sm:$0xff]  }
   0x2   :  { %1363 = vmatpush1.bf16.msra.mxu0 %v3850_v1  ;;  %3753 = vmatpush1.bf16.msra.mxu1 %v3850_v1  ;;  %v3853_v4 = vld [vmem:[%s6670_s1 + $0x18] sm:$0xff]   ;;  %v3854_v5 = vld [vmem:[%s6670_s1 + $0x20] sm:$0xff]   ;;  %v3855_v7 = vld [vmem:[%s6670_s1 + $0x28] sm:$0xff]  }
   0x3   :  { %1364 = vmatprep.subr.bf16.mxu0 %v4116_v0  ;;  %3738 = vmatprep.subr.bf16.mxu1 %v4116_v0  ;;  %v3868_v6 = vld [vmem:[%s6671_s0 + $0x4] ss:$20 sps:$4 sm:$0xff]   ;;  %v3856_v9 = vld [vmem:[%s6670_s1 + $0x30] sm:$0xff]   ;;  %v3859_v12 = vld [vmem:[%s6670_s1 + $0x48] sm:$0xff]  }
   0x4   :  { %v3871_v8 = vld [vmem:[%s6671_s0 + $0x144] ss:$20 sps:$4 sm:$0xff]   ;;  %1394 = vmatprep.mubr.bf16.mxu0 %v3868_v6  ;;  %v3860_v13 = vld [vmem:[%s6670_s1 + $0x50] sm:$0xff]   ;;  %v3863_v16 = vld [vmem:[%s6670_s1 + $0x68] sm:$0xff]  }
   0x5   :  { %1458 = vmatprep.mubr.bf16.mxu1 %v3871_v8  ;;  %v3857_v10 = vld [vmem:[%s6670_s1 + $0x38] sm:$0xff]   ;;  %v3858_v11 = vld [vmem:[%s6670_s1 + $0x40] sm:$0xff]   ;;  %v3864_v17 = vld [vmem:[%s6670_s1 + $0x70] sm:$0xff]  }
   0x6   :  { %1365 = vmatpush1.bf16.msra.mxu0 %v3851_v2  ;;  %3754 = vmatpush1.bf16.msra.mxu1 %v3851_v2  ;;  %v3861_v14 = vld [vmem:[%s6670_s1 + $0x58] sm:$0xff]   ;;  %v3862_v15 = vld [vmem:[%s6670_s1 + $0x60] sm:$0xff]   ;;  %v3897_v25 = vld [vmem:[%s6670_s1 + $0x108] sm:$0xff]  }
   0x7   :  { %1366 = vmatprep.subr.bf16.mxu0 %v4116_v0  ;;  %3739 = vmatprep.subr.bf16.mxu1 %v4116_v0  ;;  %v3865_v18 = vld [vmem:[%s6670_s1 + $0x78] sm:$0xff]   ;;  %v3872_v19 = vld [vmem:[%s6670_s1 + $0x100] sm:$0xff]   ;;  %v3874_v26 = vld [vmem:[%s6670_s1 + $0x88] sm:$0xff]  }
   0x8   :  { %v3866_v20 = vld [vmem:[%s6671_s0] ss:$20 sps:$4 sm:$0xff]   ;;  %v3879_v28 = vld [vmem:[%s6671_s0 + $0x28] ss:$20 sps:$4 sm:$0xff]   ;;  %v3887_v35 = vld [vmem:[%s6671_s0 + $0x50] ss:$20 sps:$4 sm:$0xff]  }
   0x9   :  { %v3869_v21 = vld [vmem:[%s6671_s0 + $0x140] ss:$20 sps:$4 sm:$0xff]   ;;  %v3880_v29 = vld [vmem:[%s6671_s0 + $0x168] ss:$20 sps:$4 sm:$0xff]   ;;  %v3888_v36 = vld [vmem:[%s6671_s0 + $0x190] ss:$20 sps:$4 sm:$0xff]  }
   0xa   :  { %1367 = vmatpush1.bf16.msra.mxu0 %v3852_v3  ;;  %3755 = vmatpush1.bf16.msra.mxu1 %v3852_v3  ;;  %v3873_v22 = vld [vmem:[%s6670_s1 + $0x80] sm:$0xff]   ;;  %v3922_v27 = vld [vmem:[%s6670_s1 + $0x110] sm:$0xff]   ;;  %v3945_v33 = vld [vmem:[%s6670_s1 + $0x118] sm:$0xff]  }
   0xb   :  { %1368 = vmatprep.subr.bf16.mxu0 %v4116_v0  ;;  %3740 = vmatprep.subr.bf16.mxu1 %v4116_v0  ;;  %v3875_v23 = vld [vmem:[%s6671_s0 + $0x2c] ss:$20 sps:$4 sm:$0xff]   ;;  %v3881_v30 = vld [vmem:[%s6670_s1 + $0x90] sm:$0xff]   ;;  %v3882_v34 = vld [vmem:[%s6670_s1 + $0x98] sm:$0xff]  }
   0xc   :  { %v3877_v24 = vld [vmem:[%s6671_s0 + $0x16c] ss:$20 sps:$4 sm:$0xff]   ;;  %v3883_v31 = vld [vmem:[%s6671_s0 + $0x54] ss:$20 sps:$4 sm:$0xff]   ;;  %v3891_v38 = vld [vmem:[%s6671_s0 + $0x7c] ss:$20 sps:$4 sm:$0xff]  }
   0xd   :  { %v3885_v32 = vld [vmem:[%s6671_s0 + $0x194] ss:$20 sps:$4 sm:$0xff]   ;;  %v3889_v37 = vld [vmem:[%s6670_s1 + $0xa0] sm:$0xff]   ;;  %v3893_v39 = vld [vmem:[%s6671_s0 + $0x1bc] ss:$20 sps:$4 sm:$0xff]  }
   0xe   :  { %1369 = vmatpush1.bf16.msra.mxu0 %v3853_v4  ;;  %3756 = vmatpush1.bf16.msra.mxu1 %v3853_v4  ;;  %v3964_v40 = vld [vmem:[%s6670_s1 + $0x120] sm:$0xff]   ;;  %v3890_v41 = vld [vmem:[%s6670_s1 + $0xa8] sm:$0xff]   ;;  %v3898_v45 = vld [vmem:[%s6670_s1 + $0xb0] sm:$0xff]  }
   0xf   :  { %1370 = vmatprep.subr.bf16.mxu0 %v4116_v0  ;;  %3741 = vmatprep.subr.bf16.mxu1 %v4116_v0  ;;  %v3983_v42 = vld [vmem:[%s6670_s1 + $0x128] sm:$0xff]   ;;  %v3900_v46 = vld [vmem:[%s6671_s0 + $0xa4] ss:$20 sps:$4 sm:$0xff]   ;;  %v4002_v48 = vld [vmem:[%s6670_s1 + $0x130] sm:$0xff]  }
  0x10   :  { %v3895_v43 = vld [vmem:[%s6671_s0 + $0x78] ss:$20 sps:$4 sm:$0xff]   ;;  %v3904_v50 = vld [vmem:[%s6671_s0 + $0xa0] ss:$20 sps:$4 sm:$0xff]   ;;  %v3912_v56 = vld [vmem:[%s6671_s0 + $0xc8] ss:$20 sps:$4 sm:$0xff]  }
  0x11   :  { %v3896_v44 = vld [vmem:[%s6671_s0 + $0x1b8] ss:$20 sps:$4 sm:$0xff]   ;;  %v3905_v51 = vld [vmem:[%s6671_s0 + $0x1e0] ss:$20 sps:$4 sm:$0xff]   ;;  %v3913_v57 = vld [vmem:[%s6671_s0 + $0x208] ss:$20 sps:$4 sm:$0xff]  }
  0x12   :  { %1371 = vmatpush1.bf16.msra.mxu0 %v3854_v5  ;;  %3757 = vmatpush1.bf16.msra.mxu1 %v3854_v5  ;;  %v3902_v47 = vld [vmem:[%s6671_s0 + $0x1e4] ss:$20 sps:$4 sm:$0xff]   ;;  %v3908_v53 = vld [vmem:[%s6671_s0 + $0xcc] ss:$20 sps:$4 sm:$0xff]   ;;  %v3914_v58 = vld [vmem:[%s6670_s1 + $0xd0] sm:$0xff]  }
  0x13   :  { %1372 = vmatprep.subr.bf16.mxu0 %v4116_v0  ;;  %3742 = vmatprep.subr.bf16.mxu1 %v4116_v0  ;;  %v3899_v49 = vld [vmem:[%s6670_s1 + $0xb8] sm:$0xff]   ;;  %v3906_v52 = vld [vmem:[%s6670_s1 + $0xc0] sm:$0xff]   ;;  %v3907_v55 = vld [vmem:[%s6670_s1 + $0xc8] sm:$0xff]  }
  0x14   :  { %v3910_v54 = vld [vmem:[%s6671_s0 + $0x20c] ss:$20 sps:$4 sm:$0xff]   ;;  %v3916_v59 = vld [vmem:[%s6671_s0 + $0xf4] ss:$20 sps:$4 sm:$0xff]   ;;  %v4021_v61 = vld [vmem:[%s6670_s1 + $0x138] sm:$0xff]  }
  0x15   :  { %v3918_v60 = vld [vmem:[%s6671_s0 + $0x234] ss:$20 sps:$4 sm:$0xff]   ;;  %v3915_v62 = vld [vmem:[%s6670_s1 + $0xd8] sm:$0xff]   ;;  %v3920_v63 = vld [vmem:[%s6671_s0 + $0xf0] ss:$20 sps:$4 sm:$0xff]  }
  0x16   :  { %1373 = vmatpush1.bf16.msra.mxu0 %v3855_v7  ;;  %3758 = vmatpush1.bf16.msra.mxu1 %v3855_v7  ;;  %v3921_v1 = vld [vmem:[%s6671_s0 + $0x230] ss:$20 sps:$4 sm:$0xff]   ;;  %v3924_v5 = vld [vmem:[%s6670_s1 + $0xe8] sm:$0xff]  }
  0x17   :  { %1374 = vmatprep.subr.bf16.mxu0 %v4116_v0  ;;  %3743 = vmatprep.subr.bf16.mxu1 %v4116_v0  ;;  %v3923_v2 = vld [vmem:[%s6670_s1 + $0xe0] sm:$0xff]   ;;  %v3925_v3 = vld [vmem:[%s6671_s0 + $0x11c] ss:$20 sps:$4 sm:$0xff]   ;;  %v3929_v6 = vld [vmem:[%s6671_s0 + $0x118] ss:$20 sps:$4 sm:$0xff]  }
  0x18   :  { %v3927_v4 = vld [vmem:[%s6671_s0 + $0x25c] ss:$20 sps:$4 sm:$0xff]   ;;  %v3930_v7 = vld [vmem:[%s6671_s0 + $0x258] ss:$20 sps:$4 sm:$0xff]  }
  0x19   :  { %v3931_v8 = vld [vmem:[%s6670_s1 + $0xf0] sm:$0xff]  }
  0x1a   :  { %1375 = vmatpush1.bf16.msra.mxu0 %v3856_v9  ;;  %3759 = vmatpush1.bf16.msra.mxu1 %v3856_v9  ;;  %v3933_v9 = vld [vmem:[%s6671_s0 + $0x284] ss:$20 sps:$4 sm:$0xff]  }
  0x1b   :  { %1376 = vmatprep.subr.bf16.mxu0 %v4116_v0  ;;  %3744 = vmatprep.subr.bf16.mxu1 %v4116_v0 }
  0x1e   :  { %1377 = vmatpush1.bf16.msra.mxu0 %v3857_v10  ;;  %3760 = vmatpush1.bf16.msra.mxu1 %v3857_v10  ;;  %v3937_v10 = vld [vmem:[%s6671_s0 + $0xc] ss:$20 sps:$4 sm:$0xff]  }
  0x1f   :  { %1378 = vmatprep.subr.bf16.mxu0 %v4116_v0  ;;  %3745 = vmatprep.subr.bf16.mxu1 %v4116_v0 }
  0x22   :  { %1379 = vmatpush1.bf16.msra.mxu0 %v3858_v11  ;;  %3761 = vmatpush1.bf16.msra.mxu1 %v3858_v11  ;;  %v3932_v11 = vld [vmem:[%s6670_s1 + $0xf8] sm:$0xff]  }
  0x23   :  { %1380 = vmatprep.subr.bf16.mxu0 %v4116_v0  ;;  %3746 = vmatprep.subr.bf16.mxu1 %v4116_v0 }
  0x26   :  { %1381 = vmatpush1.bf16.msra.mxu0 %v3859_v12  ;;  %3762 = vmatpush1.bf16.msra.mxu1 %v3859_v12  ;;  %v3935_v12 = vld [vmem:[%s6671_s0 + $0x8] ss:$20 sps:$4 sm:$0xff]  }
  0x27   :  { %1382 = vmatprep.subr.bf16.mxu0 %v4116_v0  ;;  %3747 = vmatprep.subr.bf16.mxu1 %v4116_v0 }
  0x2a   :  { %1383 = vmatpush1.bf16.msra.mxu0 %v3860_v13  ;;  %3763 = vmatpush1.bf16.msra.mxu1 %v3860_v13  ;;  %v3938_v13 = vld [vmem:[%s6671_s0 + $0x280] ss:$20 sps:$4 sm:$0xff]  }
  0x2b   :  { %1384 = vmatprep.subr.bf16.mxu0 %v4116_v0  ;;  %3748 = vmatprep.subr.bf16.mxu1 %v4116_v0 }
  0x2e   :  { %1385 = vmatpush1.bf16.msra.mxu0 %v3861_v14  ;;  %3764 = vmatpush1.bf16.msra.mxu1 %v3861_v14  ;;  %v3939_v14 = vld [vmem:[%s6671_s0 + $0x2ac] ss:$20 sps:$4 sm:$0xff]  }
  0x2f   :  { %1386 = vmatprep.subr.bf16.mxu0 %v4116_v0  ;;  %3749 = vmatprep.subr.bf16.mxu1 %v4116_v0 }
  0x32   :  { %1387 = vmatpush1.bf16.msra.mxu0 %v3862_v15  ;;  %3765 = vmatpush1.bf16.msra.mxu1 %v3862_v15  ;;  %v3941_v15 = vld [vmem:[%s6671_s0 + $0x34] ss:$20 sps:$4 sm:$0xff]  }
  0x33   :  { %1388 = vmatprep.subr.bf16.mxu0 %v4116_v0  ;;  %3750 = vmatprep.subr.bf16.mxu1 %v4116_v0 }
  0x36   :  { %1389 = vmatpush1.bf16.msra.mxu0 %v3863_v16  ;;  %3766 = vmatpush1.bf16.msra.mxu1 %v3863_v16  ;;  %v3944_v16 = vld [vmem:[%s6671_s0 + $0x30] ss:$20 sps:$4 sm:$0xff]  }
  0x37   :  { %1390 = vmatprep.subr.bf16.mxu0 %v4116_v0  ;;  %3751 = vmatprep.subr.bf16.mxu1 %v4116_v0 }
  0x3a   :  { %1391 = vmatpush1.bf16.msra.mxu0 %v3864_v17  ;;  %3767 = vmatpush1.bf16.msra.mxu1 %v3864_v17  ;;  %v3946_v17 = vld [vmem:[%s6671_s0 + $0x2d4] ss:$20 sps:$4 sm:$0xff]  }
  0x3b   :  { %1392 = vmatprep.subr.bf16.mxu0 %v4116_v0  ;;  %3752 = vmatprep.subr.bf16.mxu1 %v4116_v0 }
  0x3e   :  { %1393 = vmatpush1.bf16.msra.mxu0 %v3865_v18  ;;  %3768 = vmatpush1.bf16.msra.mxu1 %v3865_v18  ;;  %v3948_v18 = vld [vmem:[%s6671_s0 + $0x5c] ss:$20 sps:$4 sm:$0xff]  }
  0x3f   :  { %1651 = vmatprep.subr.bf16.mxu0 %v4116_v0  ;;  %3657 = vmatprep.subr.bf16.mxu1 %v3872_v19 }
  0x41   :  { %1395 = vmatmul.mubr.bf16.vlgmr.msra.gmra.mrb[0].mxu0 %v3866_v20  ;;  %1459 = vmatmul.mubr.bf16.vlgmr.msra.gmra.mrb[0].mxu1 %v3869_v21  ;;  %v3951_v20 = vld [vmem:[%s6671_s0 + $0x58] ss:$20 sps:$4 sm:$0xff]   ;;  %v3952_v21 = vld [vmem:[%s6671_s0 + $0x2fc] ss:$20 sps:$4 sm:$0xff]  }
  0x42   :  { %1652 = vmatpush1.bf16.msra.mxu0 %v3873_v22  ;;  %3658 = vmatpush3.bf16.msra.mxu1 %v3872_v19  ;;  %v3950_v19 = vld [vmem:[%s6671_s0 + $0x2d0] ss:$20 sps:$4 sm:$0xff]  }
  0x43   :  { %1653 = vmatprep.subr.bf16.mxu0 %v4116_v0  ;;  %1402 = vmatprep.mubr.bf16.mxu0 %v3875_v23  ;;  %v3954_v22 = vld [vmem:[%s6671_s0 + $0x84] ss:$20 sps:$4 sm:$0xff]  }
  0x44   :  { %1466 = vmatprep.mubr.bf16.mxu1 %v3877_v24  ;;  %3659 = vmatprep.subr.bf16.mxu1 %v3897_v25  ;;  %v3956_v23 = vld [vmem:[%s6671_s0 + $0x2f8] ss:$20 sps:$4 sm:$0xff]   ;;  %v3957_v24 = vld [vmem:[%s6671_s0 + $0x80] ss:$20 sps:$4 sm:$0xff]  }
  0x46   :  { %1654 = vmatpush1.bf16.msra.mxu0 %v3874_v26  ;;  %3660 = vmatpush3.bf16.msra.mxu1 %v3897_v25  ;;  %v3958_v25 = vld [vmem:[%s6671_s0 + $0x324] ss:$20 sps:$4 sm:$0xff]   ;;  %v3960_v26 = vld [vmem:[%s6671_s0 + $0xac] ss:$20 sps:$4 sm:$0xff]  }
  0x47   :  { %1655 = vmatprep.subr.bf16.mxu0 %v4116_v0  ;;  %3661 = vmatprep.subr.bf16.mxu1 %v3922_v27 }
  0x49   :  { %1403 = vmatmul.mubr.bf16.gmra.mrb[4].mxu0 %v3879_v28  ;;  %1467 = vmatmul.mubr.bf16.gmra.mrb[4].mxu1 %v3880_v29  ;;  %v3963_v28 = vld [vmem:[%s6671_s0 + $0xa8] ss:$20 sps:$4 sm:$0xff]   ;;  %v3965_v29 = vld [vmem:[%s6671_s0 + $0x34c] ss:$20 sps:$4 sm:$0xff]  }
  0x4a   :  { %1656 = vmatpush1.bf16.msra.mxu0 %v3881_v30  ;;  %1410 = vmatprep.mubr.bf16.mxu0 %v3883_v31  ;;  %v3967_v30 = vld [vmem:[%s6671_s0 + $0xd4] ss:$20 sps:$4 sm:$0xff]  }
  0x4b   :  { %1657 = vmatprep.subr.bf16.mxu0 %v4116_v0  ;;  %1474 = vmatprep.mubr.bf16.mxu1 %v3885_v32  ;;  %v3969_v31 = vld [vmem:[%s6671_s0 + $0x348] ss:$20 sps:$4 sm:$0xff]   ;;  %v3970_v32 = vld [vmem:[%s6671_s0 + $0xd0] ss:$20 sps:$4 sm:$0xff]  }
  0x4c   :  { %3662 = vmatpush3.bf16.msra.mxu1 %v3922_v27  ;;  %v3962_v27 = vld [vmem:[%s6671_s0 + $0x320] ss:$20 sps:$4 sm:$0xff]  }
  0x4d   :  { %3663 = vmatprep.subr.bf16.mxu1 %v3945_v33 }
  0x4e   :  { %1658 = vmatpush1.bf16.msra.mxu0 %v3882_v34  ;;  %v3973_v34 = vld [vmem:[%s6671_s0 + $0xfc] ss:$20 sps:$4 sm:$0xff]  }
  0x4f   :  { %1659 = vmatprep.subr.bf16.mxu0 %v4116_v0 }
  0x50   :  { %3664 = vmatpush3.bf16.msra.mxu1 %v3945_v33  ;;  %v3971_v33 = vld [vmem:[%s6671_s0 + $0x374] ss:$20 sps:$4 sm:$0xff]  }
  0x51   :  { %1411 = vmatmul.mubr.bf16.gmra.mrb[8].mxu0 %v3887_v35  ;;  %1475 = vmatmul.mubr.bf16.gmra.mrb[8].mxu1 %v3888_v36  ;;  %v3975_v35 = vld [vmem:[%s6671_s0 + $0x370] ss:$20 sps:$4 sm:$0xff]   ;;  %v3976_v36 = vld [vmem:[%s6671_s0 + $0xf8] ss:$20 sps:$4 sm:$0xff]  }
  0x52   :  { %1660 = vmatpush1.bf16.msra.mxu0 %v3889_v37  ;;  %1418 = vmatprep.mubr.bf16.mxu0 %v3891_v38  ;;  %v3977_v37 = vld [vmem:[%s6671_s0 + $0x39c] ss:$20 sps:$4 sm:$0xff]   ;;  %v3979_v38 = vld [vmem:[%s6671_s0 + $0x124] ss:$20 sps:$4 sm:$0xff]  }
  0x53   :  { %1661 = vmatprep.subr.bf16.mxu0 %v4116_v0  ;;  %1482 = vmatprep.mubr.bf16.mxu1 %v3893_v39  ;;  %v3981_v39 = vld [vmem:[%s6671_s0 + $0x398] ss:$20 sps:$4 sm:$0xff]  }
  0x54   :  { %3665 = vmatprep.subr.bf16.mxu1 %v3964_v40 }
  0x55   :  { %3666 = vmatpush3.bf16.msra.mxu1 %v3964_v40  ;;  %v3982_v40 = vld [vmem:[%s6671_s0 + $0x120] ss:$20 sps:$4 sm:$0xff]  }
  0x56   :  { %1662 = vmatpush1.bf16.msra.mxu0 %v3890_v41  ;;  %3667 = vmatprep.subr.bf16.mxu1 %v3983_v42  ;;  %v3984_v41 = vld [vmem:[%s6671_s0 + $0x3c4] ss:$20 sps:$4 sm:$0xff]  }
  0x57   :  { %1663 = vmatprep.subr.bf16.mxu0 %v4116_v0 }
  0x59   :  { %1419 = vmatmul.mubr.bf16.gmra.mrb[12].mxu0 %v3895_v43  ;;  %1483 = vmatmul.mubr.bf16.gmra.mrb[12].mxu1 %v3896_v44  ;;  %v3988_v43 = vld [vmem:[%s6671_s0 + $0x3c0] ss:$20 sps:$4 sm:$0xff]   ;;  %v3989_v44 = vld [vmem:[%s6671_s0 + $0x148] ss:$20 sps:$4 sm:$0xff]  }
  0x5a   :  { %1664 = vmatpush1.bf16.msra.mxu0 %v3898_v45  ;;  %1426 = vmatprep.mubr.bf16.mxu0 %v3900_v46  ;;  %v3990_v45 = vld [vmem:[%s6671_s0 + $0x3ec] ss:$20 sps:$4 sm:$0xff]   ;;  %v3992_v46 = vld [vmem:[%s6671_s0 + $0x174] ss:$20 sps:$4 sm:$0xff]  }
  0x5b   :  { %1665 = vmatprep.subr.bf16.mxu0 %v4116_v0  ;;  %1490 = vmatprep.mubr.bf16.mxu1 %v3902_v47  ;;  %v3994_v47 = vld [vmem:[%s6671_s0 + $0x3e8] ss:$20 sps:$4 sm:$0xff]  }
  0x5c   :  { %3668 = vmatpush3.bf16.msra.mxu1 %v3983_v42  ;;  %v3986_v42 = vld [vmem:[%s6671_s0 + $0x14c] ss:$20 sps:$4 sm:$0xff]  }
  0x5d   :  { %3669 = vmatprep.subr.bf16.mxu1 %v4002_v48 }
  0x5e   :  { %1666 = vmatpush1.bf16.msra.mxu0 %v3899_v49  ;;  %v3996_v49 = vld [vmem:[%s6671_s0 + $0x414] ss:$20 sps:$4 sm:$0xff]  }
  0x5f   :  { %1667 = vmatprep.subr.bf16.mxu0 %v4116_v0 }
  0x60   :  { %3670 = vmatpush3.bf16.msra.mxu1 %v4002_v48  ;;  %v3995_v48 = vld [vmem:[%s6671_s0 + $0x170] ss:$20 sps:$4 sm:$0xff]  }
  0x61   :  { %1427 = vmatmul.mubr.bf16.gmra.mrb[16].mxu0 %v3904_v50  ;;  %1491 = vmatmul.mubr.bf16.gmra.mrb[16].mxu1 %v3905_v51  ;;  %v3998_v50 = vld [vmem:[%s6671_s0 + $0x19c] ss:$20 sps:$4 sm:$0xff]  }
  0x62   :  { %1668 = vmatpush1.bf16.msra.mxu0 %v3906_v52  ;;  %1434 = vmatprep.mubr.bf16.mxu0 %v3908_v53  ;;  %v4000_v51 = vld [vmem:[%s6671_s0 + $0x410] ss:$20 sps:$4 sm:$0xff]   ;;  %v4001_v52 = vld [vmem:[%s6671_s0 + $0x198] ss:$20 sps:$4 sm:$0xff]  }
  0x63   :  { %1669 = vmatprep.subr.bf16.mxu0 %v4116_v0  ;;  %1498 = vmatprep.mubr.bf16.mxu1 %v3910_v54  ;;  %v4003_v53 = vld [vmem:[%s6671_s0 + $0x43c] ss:$20 sps:$4 sm:$0xff]   ;;  %v4005_v54 = vld [vmem:[%s6671_s0 + $0x1c4] ss:$20 sps:$4 sm:$0xff]  }
  0x64   :  { %3671 = vmatprep.subr.bf16.mxu1 %v4021_v61 }
  0x65   :  { %3672 = vmatpush3.bf16.msra.mxu1 %v4021_v61  ;;  %v4015_v61 = vld [vmem:[%s6671_s0 + $0x48c] ss:$20 sps:$4 sm:$0xff]  }
  0x66   :  { %1670 = vmatpush1.bf16.msra.mxu0 %v3907_v55  ;;  %v4007_v55 = vld [vmem:[%s6671_s0 + $0x438] ss:$20 sps:$4 sm:$0xff]  }
  0x67   :  { %1671 = vmatprep.subr.bf16.mxu0 %v4116_v0 }
  0x69   :  { %1435 = vmatmul.mubr.bf16.gmra.mrb[20].mxu0 %v3912_v56  ;;  %1499 = vmatmul.mubr.bf16.gmra.mrb[20].mxu1 %v3913_v57  ;;  %v4008_v56 = vld [vmem:[%s6671_s0 + $0x1c0] ss:$20 sps:$4 sm:$0xff]   ;;  %v4009_v57 = vld [vmem:[%s6671_s0 + $0x464] ss:$20 sps:$4 sm:$0xff]  }
  0x6a   :  { %1672 = vmatpush1.bf16.msra.mxu0 %v3914_v58  ;;  %1442 = vmatprep.mubr.bf16.mxu0 %v3916_v59  ;;  %v4011_v58 = vld [vmem:[%s6671_s0 + $0x1ec] ss:$20 sps:$4 sm:$0xff]  }
  0x6b   :  { %1673 = vmatprep.subr.bf16.mxu0 %v4116_v0  ;;  %1506 = vmatprep.mubr.bf16.mxu1 %v3918_v60  ;;  %v4013_v59 = vld [vmem:[%s6671_s0 + $0x460] ss:$20 sps:$4 sm:$0xff]   ;;  %v4014_v60 = vld [vmem:[%s6671_s0 + $0x1e8] ss:$20 sps:$4 sm:$0xff]  }
  0x6e   :  { %1674 = vmatpush1.bf16.msra.mxu0 %v3915_v62  ;;  %v4017_v62 = vld [vmem:[%s6671_s0 + $0x214] ss:$20 sps:$4 sm:$0xff]  }
  0x6f   :  { %1675 = vmatprep.subr.bf16.mxu0 %v4116_v0 }
  0x71   :  { %1443 = vmatmul.mubr.bf16.gmra.mrb[24].mxu0 %v3920_v63  ;;  %1507 = vmatmul.mubr.bf16.gmra.mrb[24].mxu1 %v3921_v1  ;;  %v4019_v63 = vld [vmem:[%s6671_s0 + $0x488] ss:$20 sps:$4 sm:$0xff]   ;;  %v4020_v1 = vld [vmem:[%s6671_s0 + $0x210] ss:$20 sps:$4 sm:$0xff]  }
  0x72   :  { %1676 = vmatpush1.bf16.msra.mxu0 %v3923_v2  ;;  %1450 = vmatprep.mubr.bf16.mxu0 %v3925_v3  ;;  %v4022_v2 = vld [vmem:[%s6671_s0 + $0x4b4] ss:$20 sps:$4 sm:$0xff]   ;;  %v4024_v3 = vld [vmem:[%s6671_s0 + $0x23c] ss:$20 sps:$4 sm:$0xff]  }
  0x73   :  { %1677 = vmatprep.subr.bf16.mxu0 %v4116_v0  ;;  %1514 = vmatprep.mubr.bf16.mxu1 %v3927_v4  ;;  %v4026_v4 = vld [vmem:[%s6671_s0 + $0x4b0] ss:$20 sps:$4 sm:$0xff]  }
  0x76   :  { %1678 = vmatpush1.bf16.msra.mxu0 %v3924_v5  ;;  %v4027_v5 = vld [vmem:[%s6671_s0 + $0x238] ss:$20 sps:$4 sm:$0xff]  }
  0x77   :  { %1679 = vmatprep.subr.bf16.mxu0 %v4116_v0 }
  0x79   :  { %1451 = vmatmul.mubr.bf16.gmra.mrb[28].mxu0 %v3929_v6  ;;  %1515 = vmatmul.mubr.bf16.gmra.mrb[28].mxu1 %v3930_v7  ;;  %v4028_v6 = vld [vmem:[%s6671_s0 + $0x4dc] ss:$20 sps:$4 sm:$0xff]   ;;  %v4030_v7 = vld [vmem:[%s6671_s0 + $0x264] ss:$20 sps:$4 sm:$0xff]  }
  0x7a   :  { %1680 = vmatpush1.bf16.msra.mxu0 %v3931_v8  ;;  %1522 = vmatprep.mubr.bf16.mxu1 %v3933_v9  ;;  %v4032_v8 = vld [vmem:[%s6671_s0 + $0x4d8] ss:$20 sps:$4 sm:$0xff]   ;;  %v4033_v9 = vld [vmem:[%s6671_s0 + $0x260] ss:$20 sps:$4 sm:$0xff]  }
  0x7b   :  { %1681 = vmatprep.subr.bf16.mxu0 %v4116_v0  ;;  %1683 = vmatprep.mubr.bf16.mxu0 %v3937_v10  ;;  %v3943_v0 = vld [vmem:[%s6671_s0 + $0x2a8] ss:$20 sps:$4 sm:$0xff]   ;;  %v4034_v10 = vld [vmem:[%s6671_s0 + $0x28c] ss:$20 sps:$4 sm:$0xff]  }
  0x7e   :  { %1682 = vmatpush1.bf16.msra.mxu0 %v3932_v11  ;;  %v4036_v11 = vld [vmem:[%s6671_s0 + $0x10] ss:$20 sps:$4 sm:$0xff]  }
  0x81   :  { %1523 = vmatmul.mubr.bf16.gmra.mrb[32].mxu1 %v3938_v13  ;;  %1684 = vmatmul.mubr.bf16.vlgmr.msra.gmra.mrb[0].mxu0 %v3935_v12  ;;  %v4037_v12 = vld [vmem:[%s6671_s0 + $0x288] ss:$20 sps:$4 sm:$0xff]   ;;  %v4038_v13 = vld [vmem:[%s6671_s0 + $0x38] ss:$20 sps:$4 sm:$0xff]  }
  0x82   :  { %1530 = vmatprep.mubr.bf16.mxu1 %v3939_v14  ;;  %1691 = vmatprep.mubr.bf16.mxu0 %v3941_v15  ;;  %v4039_v14 = vld [vmem:[%s6671_s0 + $0x2b4] ss:$20 sps:$4 sm:$0xff]  }
  0x83   :  { %v4041_v15 = vld [vmem:[%s6671_s0 + $0x60] ss:$20 sps:$4 sm:$0xff]  }
  0x89   :  { %1531 = vmatmul.mubr.bf16.gmra.mrb[36].mxu1 %v3943_v0  ;;  %1692 = vmatmul.mubr.bf16.gmra.mrb[4].mxu0 %v3944_v16  ;;  %v4042_v0 = vld [vmem:[%s6671_s0 + $0x2b0] ss:$20 sps:$4 sm:$0xff]   ;;  %v4043_v16 = vld [vmem:[%s6671_s0 + $0x88] ss:$20 sps:$4 sm:$0xff]  }
  0x8a   :  { %1538 = vmatprep.mubr.bf16.mxu1 %v3946_v17  ;;  %1699 = vmatprep.mubr.bf16.mxu0 %v3948_v18  ;;  %v4044_v17 = vld [vmem:[%s6671_s0 + $0x2dc] ss:$20 sps:$4 sm:$0xff]  }
  0x8b   :  { %v4046_v18 = vld [vmem:[%s6671_s0 + $0xb0] ss:$20 sps:$4 sm:$0xff]  }
  0x91   :  { %1539 = vmatmul.mubr.bf16.gmra.mrb[40].mxu1 %v3950_v19  ;;  %1700 = vmatmul.mubr.bf16.gmra.mrb[8].mxu0 %v3951_v20  ;;  %v4047_v19 = vld [vmem:[%s6671_s0 + $0x2d8] ss:$20 sps:$4 sm:$0xff]  }
  0x92   :  { %1546 = vmatprep.mubr.bf16.mxu1 %v3952_v21  ;;  %1707 = vmatprep.mubr.bf16.mxu0 %v3954_v22  ;;  %v4048_v20 = vld [vmem:[%s6671_s0 + $0xd8] ss:$20 sps:$4 sm:$0xff]   ;;  %v4051_v22 = vld [vmem:[%s6671_s0 + $0x100] ss:$20 sps:$4 sm:$0xff]  }
  0x93   :  { %v4049_v21 = vld [vmem:[%s6671_s0 + $0x304] ss:$20 sps:$4 sm:$0xff]  }
  0x99   :  { %1547 = vmatmul.mubr.bf16.gmra.mrb[44].mxu1 %v3956_v23  ;;  %1708 = vmatmul.mubr.bf16.gmra.mrb[12].mxu0 %v3957_v24 }
  0x9a   :  { %1554 = vmatprep.mubr.bf16.mxu1 %v3958_v25  ;;  %1715 = vmatprep.mubr.bf16.mxu0 %v3960_v26  ;;  %v4052_v25 = vld [vmem:[%s6671_s0 + $0x300] ss:$20 sps:$4 sm:$0xff]   ;;  %v4053_v26 = vld [vmem:[%s6671_s0 + $0x128] ss:$20 sps:$4 sm:$0xff]  }
  0xa1   :  { %1555 = vmatmul.mubr.bf16.gmra.mrb[48].mxu1 %v3962_v27  ;;  %1716 = vmatmul.mubr.bf16.gmra.mrb[16].mxu0 %v3963_v28  ;;  %v4054_v28 = vld [vmem:[%s6671_s0 + $0x32c] ss:$20 sps:$4 sm:$0xff]  }
  0xa2   :  { %1562 = vmatprep.mubr.bf16.mxu1 %v3965_v29  ;;  %1723 = vmatprep.mubr.bf16.mxu0 %v3967_v30  ;;  %v4056_v29 = vld [vmem:[%s6671_s0 + $0x150] ss:$20 sps:$4 sm:$0xff]  }
  0xa9   :  { %1563 = vmatmul.mubr.bf16.gmra.mrb[52].mxu1 %v3969_v31  ;;  %1724 = vmatmul.mubr.bf16.gmra.mrb[20].mxu0 %v3970_v32 }
  0xaa   :  { %1570 = vmatprep.mubr.bf16.mxu1 %v3971_v33  ;;  %1731 = vmatprep.mubr.bf16.mxu0 %v3973_v34  ;;  %v4057_v33 = vld [vmem:[%s6671_s0 + $0x328] ss:$20 sps:$4 sm:$0xff]   ;;  %v4058_v34 = vld [vmem:[%s6671_s0 + $0x178] ss:$20 sps:$4 sm:$0xff]  }
  0xb1   :  { %1571 = vmatmul.mubr.bf16.gmra.mrb[56].mxu1 %v3975_v35  ;;  %1732 = vmatmul.mubr.bf16.gmra.mrb[24].mxu0 %v3976_v36  ;;  %v4059_v36 = vld [vmem:[%s6671_s0 + $0x354] ss:$20 sps:$4 sm:$0xff]  }
  0xb2   :  { %1578 = vmatprep.mubr.bf16.mxu1 %v3977_v37  ;;  %1739 = vmatprep.mubr.bf16.mxu0 %v3979_v38  ;;  %v4061_v37 = vld [vmem:[%s6671_s0 + $0x1a0] ss:$20 sps:$4 sm:$0xff]  }
  0xb9   :  { %1579 = vmatmul.mubr.bf16.gmra.mrb[60].mxu1 %v3981_v39  ;;  %1740 = vmatmul.mubr.bf16.gmra.mrb[28].mxu0 %v3982_v40 }
  0xba   :  { %1586 = vmatprep.mubr.bf16.mxu1 %v3984_v41  ;;  %1747 = vmatprep.mubr.bf16.mxu0 %v3986_v42  ;;  %v4062_v41 = vld [vmem:[%s6671_s0 + $0x350] ss:$20 sps:$4 sm:$0xff]   ;;  %v4063_v42 = vld [vmem:[%s6671_s0 + $0x1c8] ss:$20 sps:$4 sm:$0xff]  }
  0xc1   :  { %1587 = vmatmul.mubr.bf16.gmra.mrb[64].mxu1 %v3988_v43  ;;  %1748 = vmatmul.mubr.bf16.gmra.mrb[32].mxu0 %v3989_v44  ;;  %v4064_v44 = vld [vmem:[%s6671_s0 + $0x37c] ss:$20 sps:$4 sm:$0xff]  }
  0xc2   :  { %1594 = vmatprep.mubr.bf16.mxu1 %v3990_v45  ;;  %1755 = vmatprep.mubr.bf16.mxu0 %v3992_v46  ;;  %v4066_v45 = vld [vmem:[%s6671_s0 + $0x1f0] ss:$20 sps:$4 sm:$0xff]  }
  0xc9   :  { %1595 = vmatmul.mubr.bf16.gmra.mrb[68].mxu1 %v3994_v47  ;;  %1756 = vmatmul.mubr.bf16.gmra.mrb[36].mxu0 %v3995_v48 }
  0xca   :  { %1602 = vmatprep.mubr.bf16.mxu1 %v3996_v49  ;;  %1763 = vmatprep.mubr.bf16.mxu0 %v3998_v50  ;;  %v4067_v49 = vld [vmem:[%s6671_s0 + $0x378] ss:$20 sps:$4 sm:$0xff]  }
  0xcb   :  { %v4068_v50 = vld [vmem:[%s6671_s0 + $0x218] ss:$20 sps:$4 sm:$0xff]  }
  0xd1   :  { %1603 = vmatmul.mubr.bf16.gmra.mrb[72].mxu1 %v4000_v51  ;;  %1764 = vmatmul.mubr.bf16.gmra.mrb[40].mxu0 %v4001_v52  ;;  %v4069_v52 = vld [vmem:[%s6671_s0 + $0x3a4] ss:$20 sps:$4 sm:$0xff]  }
  0xd2   :  { %1610 = vmatprep.mubr.bf16.mxu1 %v4003_v53  ;;  %1771 = vmatprep.mubr.bf16.mxu0 %v4005_v54  ;;  %v4071_v53 = vld [vmem:[%s6671_s0 + $0x240] ss:$20 sps:$4 sm:$0xff]  }
  0xd9   :  { %1611 = vmatmul.mubr.bf16.gmra.mrb[76].mxu1 %v4007_v55  ;;  %1772 = vmatmul.mubr.bf16.gmra.mrb[44].mxu0 %v4008_v56 }
  0xda   :  { %1618 = vmatprep.mubr.bf16.mxu1 %v4009_v57  ;;  %1779 = vmatprep.mubr.bf16.mxu0 %v4011_v58  ;;  %v4072_v57 = vld [vmem:[%s6671_s0 + $0x3a0] ss:$20 sps:$4 sm:$0xff]   ;;  %v4073_v58 = vld [vmem:[%s6671_s0 + $0x268] ss:$20 sps:$4 sm:$0xff]  }
  0xe1   :  { %1619 = vmatmul.mubr.bf16.gmra.mrb[80].mxu1 %v4013_v59  ;;  %1780 = vmatmul.mubr.bf16.gmra.mrb[48].mxu0 %v4014_v60  ;;  %v4074_v60 = vld [vmem:[%s6671_s0 + $0x3cc] ss:$20 sps:$4 sm:$0xff]  }
  0xe2   :  { %1626 = vmatprep.mubr.bf16.mxu1 %v4015_v61  ;;  %1787 = vmatprep.mubr.bf16.mxu0 %v4017_v62  ;;  %v4076_v61 = vld [vmem:[%s6671_s0 + $0x290] ss:$20 sps:$4 sm:$0xff]  }
  0xe9   :  { %1627 = vmatmul.mubr.bf16.gmra.mrb[84].mxu1 %v4019_v63  ;;  %1788 = vmatmul.mubr.bf16.gmra.mrb[52].mxu0 %v4020_v1 }
  0xea   :  { %1634 = vmatprep.mubr.bf16.mxu1 %v4022_v2  ;;  %1795 = vmatprep.mubr.bf16.mxu0 %v4024_v3  ;;  %v4077_v2 = vld [vmem:[%s6671_s0 + $0x3c8] ss:$20 sps:$4 sm:$0xff]   ;;  %v4078_v3 = vld [vmem:[%s6671_s0 + $0x2b8] ss:$20 sps:$4 sm:$0xff]  }
  0xf1   :  { %1635 = vmatmul.mubr.bf16.gmra.mrb[88].mxu1 %v4026_v4  ;;  %1796 = vmatmul.mubr.bf16.gmra.mrb[56].mxu0 %v4027_v5  ;;  %v4079_v5 = vld [vmem:[%s6671_s0 + $0x3f4] ss:$20 sps:$4 sm:$0xff]  }
  0xf2   :  { %1642 = vmatprep.mubr.bf16.mxu1 %v4028_v6  ;;  %1803 = vmatprep.mubr.bf16.mxu0 %v4030_v7  ;;  %v4081_v6 = vld [vmem:[%s6671_s0 + $0x2e0] ss:$20 sps:$4 sm:$0xff]  }
  0xf9   :  { %1643 = vmatmul.mubr.bf16.gmra.mrb[92].mxu1 %v4032_v8  ;;  %1804 = vmatmul.mubr.bf16.gmra.mrb[60].mxu0 %v4033_v9 }
  0xfa   :  { %1811 = vmatprep.mubr.bf16.mxu0 %v4034_v10  ;;  %3673 = vmatprep.mubr.bf16.mxu1 %v4036_v11  ;;  %v4082_v10 = vld [vmem:[%s6671_s0 + $0x3f0] ss:$20 sps:$4 sm:$0xff]   ;;  %v4083_v11 = vld [vmem:[%s6671_s0 + $0x308] ss:$20 sps:$4 sm:$0xff]  }
 0x101   :  { %1812 = vmatmul.mubr.bf16.gmra.mrb[64].mxu0 %v4037_v12  ;;  %3674 = vmatmul.mubr.bf16.vlgmr.msra.gmra.mrb[96].mxu1 %v4038_v13  ;;  %v4084_v13 = vld [vmem:[%s6671_s0 + $0x41c] ss:$20 sps:$4 sm:$0xff]  }
 0x102   :  { %1819 = vmatprep.mubr.bf16.mxu0 %v4039_v14  ;;  %3677 = vmatprep.mubr.bf16.mxu1 %v4041_v15  ;;  %v4086_v14 = vld [vmem:[%s6671_s0 + $0x330] ss:$20 sps:$4 sm:$0xff]  }
 0x109   :  { %1820 = vmatmul.mubr.bf16.gmra.mrb[68].mxu0 %v4042_v0  ;;  %3678 = vmatmul.mubr.bf16.gmra.mrb[100].mxu1 %v4043_v16 }
 0x10a   :  { %1827 = vmatprep.mubr.bf16.mxu0 %v4044_v17  ;;  %3681 = vmatprep.mubr.bf16.mxu1 %v4046_v18  ;;  %v4087_v17 = vld [vmem:[%s6671_s0 + $0x418] ss:$20 sps:$4 sm:$0xff]  }
 0x10b   :  { %v4088_v18 = vld [vmem:[%s6671_s0 + $0x358] ss:$20 sps:$4 sm:$0xff]  }
 0x111   :  { %1828 = vmatmul.mubr.bf16.gmra.mrb[72].mxu0 %v4047_v19  ;;  %3682 = vmatmul.mubr.bf16.gmra.mrb[104].mxu1 %v4048_v20  ;;  %v4089_v20 = vld [vmem:[%s6671_s0 + $0x444] ss:$20 sps:$4 sm:$0xff]  }
 0x112   :  { %1835 = vmatprep.mubr.bf16.mxu0 %v4049_v21  ;;  %3685 = vmatprep.mubr.bf16.mxu1 %v4051_v22  ;;  %v4091_v21 = vld [vmem:[%s6671_s0 + $0x380] ss:$20 sps:$4 sm:$0xff]  }
 0x114   :  { %v4640_v23 = vpop.f32.mrb[0].mxu1 }
 0x115   :  { %v1462_v24 = vpop.f32.mrb[1].mxu1 }
 0x116   :  { %v4648_v27 = vpop.f32.mrb[2].mxu1 }
 0x117   :  { %v1465_v30 = vpop.f32.mrb[3].mxu1 }
 0x118   :  { %v4093_v30 = vld [vmem:[%s6671_s0 + $0x3a8] ss:$20 sps:$4 sm:$0xff]  }
 0x119   :  { %1836 = vmatmul.mubr.bf16.gmra.mrb[76].mxu0 %v4052_v25  ;;  %3686 = vmatmul.mubr.bf16.gmra.mrb[108].mxu1 %v4053_v26 }
 0x11a   :  { %1843 = vmatprep.mubr.bf16.mxu0 %v4054_v28  ;;  %3689 = vmatprep.mubr.bf16.mxu1 %v4056_v29  ;;  %v4092_v29 = vld [vmem:[%s6671_s0 + $0x440] ss:$20 sps:$4 sm:$0xff]  }
 0x11c   :  { %v4656_v31 = vpop.f32.mrb[4].mxu1 }
 0x11d   :  { %v1470_v32 = vpop.f32.mrb[5].mxu1 }
 0x11e   :  { %v4664_v35 = vpop.f32.mrb[6].mxu1 }
 0x11f   :  { %v1473_v38 = vpop.f32.mrb[7].mxu1 }
 0x121   :  { %1844 = vmatmul.mubr.bf16.gmra.mrb[80].mxu0 %v4057_v33  ;;  %3690 = vmatmul.mubr.bf16.gmra.mrb[112].mxu1 %v4058_v34  ;;  %v4094_v34 = vld [vmem:[%s6671_s0 + $0x46c] ss:$20 sps:$4 sm:$0xff]  }
 0x122   :  { %1851 = vmatprep.mubr.bf16.mxu0 %v4059_v36  ;;  %3693 = vmatprep.mubr.bf16.mxu1 %v4061_v37  ;;  %v4096_v36 = vld [vmem:[%s6671_s0 + $0x3d0] ss:$20 sps:$4 sm:$0xff]  }
 0x124   :  { %v4672_v39 = vpop.f32.mrb[8].mxu1 }
 0x125   :  { %v1478_v40 = vpop.f32.mrb[9].mxu1 }
 0x126   :  { %v4680_v43 = vpop.f32.mrb[10].mxu1 }
 0x127   :  { %v1481_v46 = vpop.f32.mrb[11].mxu1 }
 0x128   :  { %v4098_v46 = vld [vmem:[%s6671_s0 + $0x3f8] ss:$20 sps:$4 sm:$0xff]  }
 0x129   :  { %1852 = vmatmul.mubr.bf16.gmra.mrb[84].mxu0 %v4062_v41  ;;  %3694 = vmatmul.mubr.bf16.gmra.mrb[116].mxu1 %v4063_v42 }
 0x12a   :  { %1859 = vmatprep.mubr.bf16.mxu0 %v4064_v44  ;;  %3697 = vmatprep.mubr.bf16.mxu1 %v4066_v45  ;;  %v4097_v45 = vld [vmem:[%s6671_s0 + $0x468] ss:$20 sps:$4 sm:$0xff]  }
 0x12c   :  { %v4688_v47 = vpop.f32.mrb[12].mxu1 }
 0x12d   :  { %v1486_v48 = vpop.f32.mrb[13].mxu1 }
 0x12e   :  { %v4696_v51 = vpop.f32.mrb[14].mxu1 }
 0x12f   :  { %v1489_v54 = vpop.f32.mrb[15].mxu1 }
 0x131   :  { %1860 = vmatmul.mubr.bf16.gmra.mrb[88].mxu0 %v4067_v49  ;;  %3698 = vmatmul.mubr.bf16.gmra.mrb[120].mxu1 %v4068_v50  ;;  %v4099_v50 = vld [vmem:[%s6671_s0 + $0x494] ss:$20 sps:$4 sm:$0xff]  }
 0x132   :  { %1867 = vmatprep.mubr.bf16.mxu0 %v4069_v52  ;;  %3701 = vmatprep.mubr.bf16.mxu1 %v4071_v53  ;;  %v4101_v52 = vld [vmem:[%s6671_s0 + $0x420] ss:$20 sps:$4 sm:$0xff]  }
 0x134   :  { %v4704_v55 = vpop.f32.mrb[16].mxu1 }
 0x135   :  { %v1494_v56 = vpop.f32.mrb[17].mxu1 }
 0x136   :  { %v4712_v59 = vpop.f32.mrb[18].mxu1 }
 0x137   :  { %v1497_v62 = vpop.f32.mrb[19].mxu1 }
 0x138   :  { %v4103_v62 = vld [vmem:[%s6671_s0 + $0x448] ss:$20 sps:$4 sm:$0xff]  }
 0x139   :  { %1868 = vmatmul.mubr.bf16.gmra.mrb[92].mxu0 %v4072_v57  ;;  %3702 = vmatmul.mubr.bf16.gmra.mrb[124].mxu1 %v4073_v58 }
 0x13a   :  { %1875 = vmatprep.mubr.bf16.mxu0 %v4074_v60  ;;  %3705 = vmatprep.mubr.bf16.mxu1 %v4076_v61  ;;  %v4102_v61 = vld [vmem:[%s6671_s0 + $0x490] ss:$20 sps:$4 sm:$0xff]  }
 0x13c   :  { %v4720_v63 = vpop.f32.mrb[20].mxu1 }
 0x13d   :  { %v1502_v1 = vpop.f32.mrb[21].mxu1 }
 0x13e   :  { %v4728_v4 = vpop.f32.mrb[22].mxu1 }
 0x13f   :  { %v1505_v7 = vpop.f32.mrb[23].mxu1 }
 0x141   :  { %1876 = vmatmul.mubr.bf16.gmra.mrb[96].mxu0 %v4077_v2  ;;  %3706 = vmatmul.mubr.bf16.gmra.mrb[128].mxu1 %v4078_v3  ;;  %v4104_v3 = vld [vmem:[%s6671_s0 + $0x4bc] ss:$20 sps:$4 sm:$0xff]  }
 0x142   :  { %1883 = vmatprep.mubr.bf16.mxu0 %v4079_v5  ;;  %3709 = vmatprep.mubr.bf16.mxu1 %v4081_v6  ;;  %v4106_v5 = vld [vmem:[%s6671_s0 + $0x470] ss:$20 sps:$4 sm:$0xff]  }
 0x144   :  { %v4736_v8 = vpop.f32.mrb[24].mxu1 }
 0x145   :  { %v1510_v9 = vpop.f32.mrb[25].mxu1 }
 0x146   :  { %v4744_v12 = vpop.f32.mrb[26].mxu1 }
 0x147   :  { %v1513_v15 = vpop.f32.mrb[27].mxu1 }
 0x148   :  { %v4108_v15 = vld [vmem:[%s6671_s0 + $0x498] ss:$20 sps:$4 sm:$0xff]  }
 0x149   :  { %1884 = vmatmul.mubr.bf16.gmra.mrb[100].mxu0 %v4082_v10  ;;  %3710 = vmatmul.mubr.bf16.gmra.mrb[132].mxu1 %v4083_v11 }
 0x14a   :  { %1891 = vmatprep.mubr.bf16.mxu0 %v4084_v13  ;;  %3713 = vmatprep.mubr.bf16.mxu1 %v4086_v14  ;;  %v4107_v14 = vld [vmem:[%s6671_s0 + $0x4b8] ss:$20 sps:$4 sm:$0xff]  }
 0x14c   :  { %v4752_v0 = vpop.f32.mrb[28].mxu1 }
 0x14d   :  { %v1518_v16 = vpop.f32.mrb[29].mxu1 }
 0x14e   :  { %v4760_v19 = vpop.f32.mrb[30].mxu1 }
 0x14f   :  { %v1521_v22 = vpop.f32.mrb[31].mxu1 }
 0x151   :  { %1892 = vmatmul.mubr.bf16.gmra.mrb[104].mxu0 %v4087_v17  ;;  %3714 = vmatmul.mubr.bf16.gmra.mrb[136].mxu1 %v4088_v18  ;;  %v4109_v18 = vld [vmem:[%s6671_s0 + $0x4e4] ss:$20 sps:$4 sm:$0xff]  }
 0x152   :  { %1899 = vmatprep.mubr.bf16.mxu0 %v4089_v20  ;;  %3717 = vmatprep.mubr.bf16.mxu1 %v4091_v21  ;;  %v4111_v20 = vld [vmem:[%s6671_s0 + $0x4c0] ss:$20 sps:$4 sm:$0xff]  }
 0x154   :  { %v4768_v24 = vpop.f32.mrb[32].mxu1  ;;  %v4770_v25 = vpop.f32.mrb[0].mxu0 }
 0x155   :  { %v1526_v26 = vpop.f32.mrb[33].mxu1  ;;  %v1687_v28 = vpop.f32.mrb[1].mxu0 }
 0x156   :  { %v4778_v32 = vpop.f32.mrb[34].mxu1  ;;  %v4780_v33 = vpop.f32.mrb[2].mxu0 }
 0x157   :  { %v1529_v37 = vpop.f32.mrb[35].mxu1  ;;  %v1690_v38 = vpop.f32.mrb[3].mxu0 }
 0x159   :  { %1900 = vmatmul.mubr.bf16.gmra.mrb[108].mxu0 %v4092_v29  ;;  %3718 = vmatmul.mubr.bf16.gmra.mrb[140].mxu1 %v4093_v30 }
 0x15a   :  { %1907 = vmatprep.mubr.bf16.mxu0 %v4094_v34  ;;  %3721 = vmatprep.mubr.bf16.mxu1 %v4096_v36  ;;  %v4112_v34 = vld [vmem:[%s6671_s0 + $0x4e0] ss:$20 sps:$4 sm:$0xff]   ;;  %v4113_v36 = vld [vmem:[%s6671_s0 + $0x4e8] ss:$20 sps:$4 sm:$0xff]  }
 0x15c   :  { %v4788_v40 = vpop.f32.mrb[36].mxu1  ;;  %v4790_v41 = vpop.f32.mrb[4].mxu0 }
 0x15d   :  { %v1534_v42 = vpop.f32.mrb[37].mxu1  ;;  %v1695_v44 = vpop.f32.mrb[5].mxu0 }
 0x15e   :  { %v4798_v48 = vpop.f32.mrb[38].mxu1  ;;  %v4800_v49 = vpop.f32.mrb[6].mxu0 }
 0x15f   :  { %v1537_v53 = vpop.f32.mrb[39].mxu1  ;;  %v1698_v54 = vpop.f32.mrb[7].mxu0 }
 0x161   :  { %1908 = vmatmul.mubr.bf16.gmra.mrb[112].mxu0 %v4097_v45  ;;  %3722 = vmatmul.mubr.bf16.gmra.mrb[144].mxu1 %v4098_v46 }
 0x162   :  { %1915 = vmatprep.mubr.bf16.mxu0 %v4099_v50  ;;  %3725 = vmatprep.mubr.bf16.mxu1 %v4101_v52 }
 0x164   :  { %v4808_v56 = vpop.f32.mrb[40].mxu1  ;;  %v4810_v57 = vpop.f32.mrb[8].mxu0 }
 0x165   :  { %v1542_v58 = vpop.f32.mrb[41].mxu1  ;;  %v1703_v60 = vpop.f32.mrb[9].mxu0 }
 0x166   :  { %v4818_v1 = vpop.f32.mrb[42].mxu1  ;;  %v4820_v2 = vpop.f32.mrb[10].mxu0 }
 0x167   :  { %v1545_v6 = vpop.f32.mrb[43].mxu1  ;;  %v1706_v7 = vpop.f32.mrb[11].mxu0 }
 0x169   :  { %1916 = vmatmul.mubr.bf16.gmra.mrb[116].mxu0 %v4102_v61  ;;  %3726 = vmatmul.mubr.bf16.gmra.mrb[148].mxu1 %v4103_v62 }
 0x16a   :  { %1923 = vmatprep.mubr.bf16.mxu0 %v4104_v3  ;;  %3729 = vmatprep.mubr.bf16.mxu1 %v4106_v5 }
 0x16c   :  { %v4828_v9 = vpop.f32.mrb[44].mxu1  ;;  %v4830_v10 = vpop.f32.mrb[12].mxu0 }
 0x16d   :  { %v1550_v11 = vpop.f32.mrb[45].mxu1  ;;  %v1711_v13 = vpop.f32.mrb[13].mxu0 }
 0x16e   :  { %v4838_v16 = vpop.f32.mrb[46].mxu1  ;;  %v4840_v17 = vpop.f32.mrb[14].mxu0 }
 0x16f   :  { %v1553_v21 = vpop.f32.mrb[47].mxu1  ;;  %v1714_v22 = vpop.f32.mrb[15].mxu0 }
 0x171   :  { %1924 = vmatmul.mubr.bf16.gmra.mrb[120].mxu0 %v4107_v14  ;;  %3730 = vmatmul.mubr.bf16.gmra.mrb[152].mxu1 %v4108_v15 }
 0x172   :  { %1931 = vmatprep.mubr.bf16.mxu0 %v4109_v18  ;;  %3733 = vmatprep.mubr.bf16.mxu1 %v4111_v20 }
 0x174   :  { %v4848_v26 = vpop.f32.mrb[48].mxu1  ;;  %v4850_v28 = vpop.f32.mrb[16].mxu0 }
 0x175   :  { %v1558_v29 = vpop.f32.mrb[49].mxu1  ;;  %v1719_v30 = vpop.f32.mrb[17].mxu0 }
 0x176   :  { %v4858_v37 = vpop.f32.mrb[50].mxu1  ;;  %v4860_v38 = vpop.f32.mrb[18].mxu0 }
 0x177   :  { %v1561_v42 = vpop.f32.mrb[51].mxu1  ;;  %v1722_v44 = vpop.f32.mrb[19].mxu0 }
 0x179   :  { %1932 = vmatmul.mubr.bf16.gmra.mrb[124].mxu0 %v4112_v34  ;;  %3734 = vmatmul.mubr.bf16.gmra.mrb[156].mxu1 %v4113_v36 }
 0x17c   :  { %v4862_v45 = vpop.f32.mrb[52].mxu1  ;;  %v4864_v46 = vpop.f32.mrb[20].mxu0 }
 0x17d   :  { %v1566_v50 = vpop.f32.mrb[53].mxu1  ;;  %v1727_v52 = vpop.f32.mrb[21].mxu0 }
 0x17e   :  { %v4866_v53 = vpop.f32.mrb[54].mxu1  ;;  %v4868_v54 = vpop.f32.mrb[22].mxu0 }
 0x17f   :  { %v1569_v58 = vpop.f32.mrb[55].mxu1  ;;  %v1730_v60 = vpop.f32.mrb[23].mxu0 }
 0x184   :  { %v4870_v61 = vpop.f32.mrb[56].mxu1  ;;  %v4872_v62 = vpop.f32.mrb[24].mxu0 }
 0x185   :  { %v1574_v3 = vpop.f32.mrb[57].mxu1  ;;  %v1735_v5 = vpop.f32.mrb[25].mxu0 }
 0x186   :  { %v4874_v6 = vpop.f32.mrb[58].mxu1  ;;  %v4876_v7 = vpop.f32.mrb[26].mxu0 }
 0x187   :  { %v1577_v11 = vpop.f32.mrb[59].mxu1  ;;  %v1738_v13 = vpop.f32.mrb[27].mxu0 }
 0x18c   :  { %v4878_v14 = vpop.f32.mrb[60].mxu1  ;;  %v4880_v15 = vpop.f32.mrb[28].mxu0 }
 0x18d   :  { %v1582_v18 = vpop.f32.mrb[61].mxu1  ;;  %v1743_v20 = vpop.f32.mrb[29].mxu0 }
 0x18e   :  { %v4882_v21 = vpop.f32.mrb[62].mxu1  ;;  %v4884_v22 = vpop.f32.mrb[30].mxu0 }
 0x18f   :  { %v1585_v29 = vpop.f32.mrb[63].mxu1  ;;  %v1746_v30 = vpop.f32.mrb[31].mxu0 }
 0x194   :  { %v4886_v34 = vpop.f32.mrb[64].mxu1  ;;  %v1749_v36 = vpop.f32.mrb[32].mxu0 }
 0x195   :  { %v4889_v42 = vadd.f32 %v1749_v36, %v4640_v23  ;;  %v1590_v44 = vpop.f32.mrb[65].mxu1  ;;  %v1751_v50 = vpop.f32.mrb[33].mxu0 }
 0x196   :  { %v4891_v52 = vpop.f32.mrb[66].mxu1  ;;  %v1752_v58 = vpop.f32.mrb[34].mxu0 }
 0x197   :  { %v4894_v60 = vadd.f32 %v1752_v58, %v4648_v27  ;;  %v1593_v3 = vpop.f32.mrb[67].mxu1  ;;  %v1754_v5 = vpop.f32.mrb[35].mxu0 }
 0x19c   :  { %v4896_v11 = vpop.f32.mrb[68].mxu1  ;;  %v1757_v13 = vpop.f32.mrb[36].mxu0 }
 0x19d   :  { %6731 = vst [vmem:[#allocation2_spill] sm:$0xff] %v4896_v11  ;;  %v4899_v18 = vadd.f32 %v1757_v13, %v4656_v31  ;;  %v1598_v20 = vpop.f32.mrb[69].mxu1  ;;  %v1759_v29 = vpop.f32.mrb[37].mxu0 }
 0x19e   :  { %v4901_v23 = vpop.f32.mrb[70].mxu1  ;;  %v1760_v30 = vpop.f32.mrb[38].mxu0 }
 0x19f   :  { %6732 = vst [vmem:[#allocation3_spill] sm:$0xff] %v4901_v23  ;;  %v4904_v36 = vadd.f32 %v1760_v30, %v4664_v35  ;;  %v1601_v44 = vpop.f32.mrb[71].mxu1  ;;  %v1762_v50 = vpop.f32.mrb[39].mxu0 }
 0x1a4   :  { %v4906_v27 = vpop.f32.mrb[72].mxu1  ;;  %v1765_v58 = vpop.f32.mrb[40].mxu0 }
 0x1a5   :  { %6733 = vst [vmem:[#allocation4_spill] sm:$0xff] %v4906_v27  ;;  %v4909_v3 = vadd.f32 %v1765_v58, %v4672_v39  ;;  %v1606_v5 = vpop.f32.mrb[73].mxu1  ;;  %v1767_v11 = vpop.f32.mrb[41].mxu0 }
 0x1a6   :  { %v4911_v31 = vpop.f32.mrb[74].mxu1  ;;  %v1768_v13 = vpop.f32.mrb[42].mxu0 }
 0x1a7   :  { %6734 = vst [vmem:[#allocation5_spill] sm:$0xff] %v4911_v31  ;;  %v4914_v20 = vadd.f32 %v1768_v13, %v4680_v43  ;;  %v1609_v29 = vpop.f32.mrb[75].mxu1  ;;  %v1770_v23 = vpop.f32.mrb[43].mxu0 }
 0x1ac   :  { %v4916_v35 = vpop.f32.mrb[76].mxu1  ;;  %v1773_v30 = vpop.f32.mrb[44].mxu0 }
 0x1ad   :  { %6735 = vst [vmem:[#allocation6_spill] sm:$0xff] %v4916_v35  ;;  %v4919_v44 = vadd.f32 %v1773_v30, %v4688_v47  ;;  %v1614_v50 = vpop.f32.mrb[77].mxu1  ;;  %v1775_v27 = vpop.f32.mrb[45].mxu0 }
 0x1ae   :  { %v4921_v39 = vpop.f32.mrb[78].mxu1  ;;  %v1776_v58 = vpop.f32.mrb[46].mxu0 }
 0x1af   :  { %6736 = vst [vmem:[#allocation7_spill] sm:$0xff] %v4921_v39  ;;  %v4924_v11 = vadd.f32 %v1776_v58, %v4696_v51  ;;  %v1617_v5 = vpop.f32.mrb[79].mxu1  ;;  %v1778_v31 = vpop.f32.mrb[47].mxu0 }
 0x1b4   :  { %v4926_v43 = vpop.f32.mrb[80].mxu1  ;;  %v1781_v13 = vpop.f32.mrb[48].mxu0 }
 0x1b5   :  { %6737 = vst [vmem:[#allocation8_spill] sm:$0xff] %v4926_v43  ;;  %v4929_v23 = vadd.f32 %v1781_v13, %v4704_v55  ;;  %v1622_v29 = vpop.f32.mrb[81].mxu1  ;;  %v1783_v35 = vpop.f32.mrb[49].mxu0 }
 0x1b6   :  { %v4931_v47 = vpop.f32.mrb[82].mxu1  ;;  %v1784_v30 = vpop.f32.mrb[50].mxu0 }
 0x1b7   :  { %6738 = vst [vmem:[#allocation9_spill] sm:$0xff] %v4931_v47  ;;  %v4934_v27 = vadd.f32 %v1784_v30, %v4712_v59  ;;  %v1625_v50 = vpop.f32.mrb[83].mxu1  ;;  %v1786_v39 = vpop.f32.mrb[51].mxu0 }
 0x1bc   :  { %v4936_v51 = vpop.f32.mrb[84].mxu1  ;;  %v1789_v58 = vpop.f32.mrb[52].mxu0 }
 0x1bd   :  { %6739 = vst [vmem:[#allocation10_spill] sm:$0xff] %v4936_v51  ;;  %v4939_v31 = vadd.f32 %v1789_v58, %v4720_v63  ;;  %v1630_v5 = vpop.f32.mrb[85].mxu1  ;;  %v1791_v43 = vpop.f32.mrb[53].mxu0 }
 0x1be   :  { %v4941_v55 = vpop.f32.mrb[86].mxu1  ;;  %v1792_v13 = vpop.f32.mrb[54].mxu0 }
 0x1bf   :  { %6740 = vst [vmem:[#allocation11_spill] sm:$0xff] %v4941_v55  ;;  %v4944_v35 = vadd.f32 %v1792_v13, %v4728_v4  ;;  %v1633_v29 = vpop.f32.mrb[87].mxu1  ;;  %v1794_v47 = vpop.f32.mrb[55].mxu0 }
 0x1c4   :  { %v4946_v59 = vpop.f32.mrb[88].mxu1  ;;  %v1797_v30 = vpop.f32.mrb[56].mxu0 }
 0x1c5   :  { %6741 = vst [vmem:[#allocation12_spill] sm:$0xff] %v4946_v59  ;;  %v4949_v39 = vadd.f32 %v1797_v30, %v4736_v8  ;;  %v1638_v50 = vpop.f32.mrb[89].mxu1  ;;  %v1799_v51 = vpop.f32.mrb[57].mxu0 }
 0x1c6   :  { %v4951_v63 = vpop.f32.mrb[90].mxu1  ;;  %v1800_v58 = vpop.f32.mrb[58].mxu0 }
 0x1c7   :  { %6742 = vst [vmem:[#allocation13_spill] sm:$0xff] %v4951_v63  ;;  %v4954_v43 = vadd.f32 %v1800_v58, %v4744_v12  ;;  %v1641_v5 = vpop.f32.mrb[91].mxu1  ;;  %v1802_v55 = vpop.f32.mrb[59].mxu0 }
 0x1cc   :  { %v4956_v4 = vpop.f32.mrb[92].mxu1  ;;  %v1805_v13 = vpop.f32.mrb[60].mxu0 }
 0x1cd   :  { %v4959_v47 = vadd.f32 %v1805_v13, %v4752_v0  ;;  %v1646_v29 = vpop.f32.mrb[93].mxu1  ;;  %v1807_v59 = vpop.f32.mrb[61].mxu0 }
 0x1ce   :  { %v4961_v8 = vpop.f32.mrb[94].mxu1  ;;  %v1808_v30 = vpop.f32.mrb[62].mxu0 }
 0x1cf   :  { %6743 = vst [vmem:[#allocation14_spill] sm:$0xff] %v4961_v8  ;;  %v4964_v51 = vadd.f32 %v1808_v30, %v4760_v19  ;;  %v1649_v50 = vpop.f32.mrb[95].mxu1  ;;  %v1810_v63 = vpop.f32.mrb[63].mxu0 }
 0x1d4   :  { %v1813_v12 = vpop.f32.mrb[64].mxu0  ;;  %v3675_v58 = vpop.f32.mrb[96].mxu1 }
 0x1d5   :  { %v4967_v55 = vadd.f32 %v1813_v12, %v4768_v24  ;;  %v4970_v5 = vadd.f32 %v3675_v58, %v4790_v41  ;;  %v1815_v0 = vpop.f32.mrb[65].mxu0  ;;  %v1974_v13 = vpop.f32.mrb[97].mxu1 }
 0x1d6   :  { %v4973_v59 = vadd.f32 %v1974_v13, %v4770_v25  ;;  %v1816_v29 = vpop.f32.mrb[66].mxu0  ;;  %v3676_v8 = vpop.f32.mrb[98].mxu1 }
 0x1d7   :  { %6744 = vst [vmem:[#allocation15_spill] sm:$0xff] %v4970_v5  ;;  %v4976_v19 = vadd.f32 %v1816_v29, %v4778_v32  ;;  %v4979_v63 = vadd.f32 %v3676_v8, %v4800_v49  ;;  %v1977_v30 = vpop.f32.mrb[99].mxu1  ;;  %v1818_v50 = vpop.f32.mrb[67].mxu0  ;;  %v2301_v32 = vmul.f32 %v4970_v5, %v4970_v5 }
 0x1d8   :  { %6745 = vst [vmem:[#allocation16_spill] sm:$0xff] %v4973_v59  ;;  %v4982_v24 = vadd.f32 %v1977_v30, %v4780_v33  ;;  %v2299_v41 = vmul.f32 %v4973_v59, %v4973_v59 }
 0x1d9   :  { %v2302_v50 = vmul.f32 %v4979_v63, %v4979_v63 }
 0x1da   :  { %6746 = vst [vmem:[#allocation17_spill] sm:$0xff] %v4982_v24  ;;  %v2229_v25 = vadd.f32 %v4982_v24, %v4973_v59  ;;  %v2300_v12 = vmul.f32 %v4982_v24, %v4982_v24 }
 0x1dc   :  { %v2230_v49 = vadd.f32 %v2229_v25, %v4970_v5  ;;  %v2363_v8 = vadd.f32 %v2300_v12, %v2299_v41  ;;  %v1821_v58 = vpop.f32.mrb[68].mxu0  ;;  %v3679_v0 = vpop.f32.mrb[100].mxu1 }
 0x1dd   :  { %v4994_v33 = vadd.f32 %v1821_v58, %v4788_v40  ;;  %v4997_v13 = vadd.f32 %v3679_v0, %v4830_v10  ;;  %v1823_v29 = vpop.f32.mrb[69].mxu0  ;;  %v1990_v30 = vpop.f32.mrb[101].mxu1 }
 0x1de   :  { %v2364_v24 = vadd.f32 %v2363_v8, %v2301_v32  ;;  %v5002_v59 = vadd.f32 %v1990_v30, %v4810_v57  ;;  %v2231_v25 = vadd.f32 %v2230_v49, %v4979_v63  ;;  %v1824_v41 = vpop.f32.mrb[70].mxu0  ;;  %v3680_v12 = vpop.f32.mrb[102].mxu1 }
 0x1df   :  { %v5006_v5 = vadd.f32 %v1824_v41, %v4798_v48  ;;  %v5009_v40 = vadd.f32 %v3680_v12, %v4840_v17  ;;  %v1993_v10 = vpop.f32.mrb[103].mxu1  ;;  %v1826_v58 = vpop.f32.mrb[71].mxu0  ;;  %v2305_v17 = vmul.f32 %v4997_v13, %v4997_v13 }
 0x1e0   :  { %v2232_v0 = vadd.f32 %v2231_v25, %v5002_v59  ;;  %v2303_v32 = vmul.f32 %v5002_v59, %v5002_v59  ;;  %v2365_v8 = vadd.f32 %v2364_v24, %v2302_v50  ;;  %v5015_v57 = vadd.f32 %v1993_v10, %v4820_v2 }
 0x1e1   :  { %v2306_v10 = vmul.f32 %v5009_v40, %v5009_v40 }
 0x1e2   :  { %v2366_v49 = vadd.f32 %v2365_v8, %v2303_v32  ;;  %v2233_v29 = vadd.f32 %v2232_v0, %v5015_v57  ;;  %v2304_v48 = vmul.f32 %v5015_v57, %v5015_v57 }
 0x1e4   :  { %v2234_v30 = vadd.f32 %v2233_v29, %v4997_v13  ;;  %v2367_v41 = vadd.f32 %v2366_v49, %v2304_v48  ;;  %v1829_v25 = vpop.f32.mrb[72].mxu0  ;;  %v3683_v12 = vpop.f32.mrb[104].mxu1 }
 0x1e5   :  { %v5024_v58 = vadd.f32 %v1829_v25, %v4808_v56  ;;  %v5027_v2 = vadd.f32 %v3683_v12, %v4864_v46  ;;  %v1831_v24 = vpop.f32.mrb[73].mxu0  ;;  %v2006_v50 = vpop.f32.mrb[105].mxu1 }
 0x1e6   :  { %v2368_v0 = vadd.f32 %v2367_v41, %v2305_v17  ;;  %v5032_v32 = vadd.f32 %v2006_v50, %v4850_v28  ;;  %v2235_v8 = vadd.f32 %v2234_v30, %v5009_v40  ;;  %v1832_v49 = vpop.f32.mrb[74].mxu0  ;;  %v3684_v29 = vpop.f32.mrb[106].mxu1 }
 0x1e7   :  { %v5036_v48 = vadd.f32 %v1832_v49, %v4818_v1  ;;  %v5039_v56 = vadd.f32 %v3684_v29, %v4868_v54  ;;  %v2009_v46 = vpop.f32.mrb[107].mxu1  ;;  %v1834_v25 = vpop.f32.mrb[75].mxu0  ;;  %v2309_v54 = vmul.f32 %v5027_v2, %v5027_v2 }
 0x1e8   :  { %v2236_v12 = vadd.f32 %v2235_v8, %v5032_v32  ;;  %v2307_v17 = vmul.f32 %v5032_v32, %v5032_v32  ;;  %v2369_v41 = vadd.f32 %v2368_v0, %v2306_v10  ;;  %v5045_v28 = vadd.f32 %v2009_v46, %v4860_v38 }
 0x1e9   :  { %v2310_v46 = vmul.f32 %v5039_v56, %v5039_v56 }
 0x1ea   :  { %v2370_v30 = vadd.f32 %v2369_v41, %v2307_v17  ;;  %v2237_v24 = vadd.f32 %v2236_v12, %v5045_v28  ;;  %v2308_v1 = vmul.f32 %v5045_v28, %v5045_v28 }
 0x1ec   :  { %v2238_v50 = vadd.f32 %v2237_v24, %v5027_v2  ;;  %v2371_v49 = vadd.f32 %v2370_v30, %v2308_v1  ;;  %v1837_v8 = vpop.f32.mrb[76].mxu0  ;;  %v3687_v29 = vpop.f32.mrb[108].mxu1 }
 0x1ed   :  { %v5054_v25 = vadd.f32 %v1837_v8, %v4828_v9  ;;  %v5057_v38 = vadd.f32 %v3687_v29, %v4880_v15  ;;  %v1839_v10 = vpop.f32.mrb[77].mxu0  ;;  %v2022_v0 = vpop.f32.mrb[109].mxu1 }
 0x1ee   :  { %v2372_v12 = vadd.f32 %v2371_v49, %v2309_v54  ;;  %v5062_v17 = vadd.f32 %v2022_v0, %v4872_v62  ;;  %v2239_v41 = vadd.f32 %v2238_v50, %v5039_v56  ;;  %v1840_v30 = vpop.f32.mrb[78].mxu0  ;;  %v3688_v24 = vpop.f32.mrb[110].mxu1 }
 0x1ef   :  { %v5066_v1 = vadd.f32 %v1840_v30, %v4838_v16  ;;  %v5069_v9 = vadd.f32 %v3688_v24, %v4884_v22  ;;  %v2025_v15 = vpop.f32.mrb[111].mxu1  ;;  %v1842_v8 = vpop.f32.mrb[79].mxu0  ;;  %v2313_v22 = vmul.f32 %v5057_v38, %v5057_v38 }
 0x1f0   :  { %v2240_v29 = vadd.f32 %v2239_v41, %v5062_v17  ;;  %v2311_v54 = vmul.f32 %v5062_v17, %v5062_v17  ;;  %v2373_v49 = vadd.f32 %v2372_v12, %v2310_v46  ;;  %v5075_v62 = vadd.f32 %v2025_v15, %v4876_v7 }
 0x1f1   :  { %v2314_v15 = vmul.f32 %v5069_v9, %v5069_v9 }
 0x1f2   :  { %v2374_v50 = vadd.f32 %v2373_v49, %v2311_v54  ;;  %v2241_v10 = vadd.f32 %v2240_v29, %v5075_v62  ;;  %v2312_v16 = vmul.f32 %v5075_v62, %v5075_v62 }
 0x1f4   :  { %v2242_v0 = vadd.f32 %v2241_v10, %v5057_v38  ;;  %v2375_v30 = vadd.f32 %v2374_v50, %v2312_v16  ;;  %v1845_v41 = vpop.f32.mrb[80].mxu0  ;;  %v3691_v24 = vpop.f32.mrb[112].mxu1 }
 0x1f5   :  { %v5084_v8 = vadd.f32 %v1845_v41, %v4848_v26  ;;  %v5087_v7 = vadd.f32 %v3691_v24, %v4899_v18  ;;  %v1847_v46 = vpop.f32.mrb[81].mxu0  ;;  %v2038_v12 = vpop.f32.mrb[113].mxu1 }
 0x1f6   :  { %v2376_v29 = vadd.f32 %v2375_v30, %v2313_v22  ;;  %v5092_v54 = vadd.f32 %v2038_v12, %v4889_v42  ;;  %v2243_v49 = vadd.f32 %v2242_v0, %v5069_v9  ;;  %v1848_v50 = vpop.f32.mrb[82].mxu0  ;;  %v3692_v10 = vpop.f32.mrb[114].mxu1 }
 0x1f7   :  { %v5096_v16 = vadd.f32 %v1848_v50, %v4858_v37  ;;  %v5099_v26 = vadd.f32 %v3692_v10, %v4904_v36  ;;  %v2041_v18 = vpop.f32.mrb[115].mxu1  ;;  %v1850_v41 = vpop.f32.mrb[83].mxu0  ;;  %v2317_v36 = vmul.f32 %v5087_v7, %v5087_v7 }
 0x1f8   :  { %v2244_v24 = vadd.f32 %v2243_v49, %v5092_v54  ;;  %v2315_v22 = vmul.f32 %v5092_v54, %v5092_v54  ;;  %v2377_v30 = vadd.f32 %v2376_v29, %v2314_v15  ;;  %v5105_v42 = vadd.f32 %v2041_v18, %v4894_v60 }
 0x1f9   :  { %v2318_v18 = vmul.f32 %v5099_v26, %v5099_v26 }
 0x1fa   :  { %v2378_v0 = vadd.f32 %v2377_v30, %v2315_v22  ;;  %v2245_v46 = vadd.f32 %v2244_v24, %v5105_v42  ;;  %v2316_v37 = vmul.f32 %v5105_v42, %v5105_v42 }
 0x1fc   :  { %v2246_v12 = vadd.f32 %v2245_v46, %v5087_v7  ;;  %v2379_v50 = vadd.f32 %v2378_v0, %v2316_v37  ;;  %v1853_v49 = vpop.f32.mrb[84].mxu0  ;;  %v3695_v10 = vpop.f32.mrb[116].mxu1 }
 0x1fd   :  { %v5114_v41 = vadd.f32 %v1853_v49, %v4862_v45  ;;  %v5117_v60 = vadd.f32 %v3695_v10, %v4919_v44  ;;  %v1855_v15 = vpop.f32.mrb[85].mxu0  ;;  %v2054_v29 = vpop.f32.mrb[117].mxu1 }
 0x1fe   :  { %v2380_v24 = vadd.f32 %v2379_v50, %v2317_v36  ;;  %v5122_v22 = vadd.f32 %v2054_v29, %v4909_v3  ;;  %v2247_v30 = vadd.f32 %v2246_v12, %v5099_v26  ;;  %v1856_v0 = vpop.f32.mrb[86].mxu0  ;;  %v3696_v46 = vpop.f32.mrb[118].mxu1 }
 0x1ff   :  { %v5126_v37 = vadd.f32 %v1856_v0, %v4866_v53  ;;  %v5129_v45 = vadd.f32 %v3696_v46, %v4924_v11  ;;  %v2057_v44 = vpop.f32.mrb[119].mxu1  ;;  %v1858_v49 = vpop.f32.mrb[87].mxu0  ;;  %v2321_v11 = vmul.f32 %v5117_v60, %v5117_v60 }
 0x200   :  { %v2248_v10 = vadd.f32 %v2247_v30, %v5122_v22  ;;  %v2319_v36 = vmul.f32 %v5122_v22, %v5122_v22  ;;  %v2381_v50 = vadd.f32 %v2380_v24, %v2318_v18  ;;  %v5135_v3 = vadd.f32 %v2057_v44, %v4914_v20 }
 0x201   :  { %v2322_v44 = vmul.f32 %v5129_v45, %v5129_v45 }
 0x202   :  { %v2382_v12 = vadd.f32 %v2381_v50, %v2319_v36  ;;  %v2249_v15 = vadd.f32 %v2248_v10, %v5135_v3  ;;  %v2320_v53 = vmul.f32 %v5135_v3, %v5135_v3 }
 0x204   :  { %v2250_v29 = vadd.f32 %v2249_v15, %v5117_v60  ;;  %v2383_v0 = vadd.f32 %v2382_v12, %v2320_v53  ;;  %v1861_v30 = vpop.f32.mrb[88].mxu0  ;;  %v3699_v46 = vpop.f32.mrb[120].mxu1 }
 0x205   :  { %v5144_v49 = vadd.f32 %v1861_v30, %v4870_v61  ;;  %v5147_v20 = vadd.f32 %v3699_v46, %v4939_v31  ;;  %v1863_v18 = vpop.f32.mrb[89].mxu0  ;;  %v2070_v24 = vpop.f32.mrb[121].mxu1 }
 0x206   :  { %v2384_v10 = vadd.f32 %v2383_v0, %v2321_v11  ;;  %v5152_v36 = vadd.f32 %v2070_v24, %v4929_v23  ;;  %v2251_v50 = vadd.f32 %v2250_v29, %v5129_v45  ;;  %v1864_v12 = vpop.f32.mrb[90].mxu0  ;;  %v3700_v15 = vpop.f32.mrb[122].mxu1 }
 0x207   :  { %v5156_v53 = vadd.f32 %v1864_v12, %v4874_v6  ;;  %v5159_v61 = vadd.f32 %v3700_v15, %v4944_v35  ;;  %v2073_v31 = vpop.f32.mrb[123].mxu1  ;;  %v1866_v30 = vpop.f32.mrb[91].mxu0  ;;  %v2325_v35 = vmul.f32 %v5147_v20, %v5147_v20 }
 0x208   :  { %v2252_v46 = vadd.f32 %v2251_v50, %v5152_v36  ;;  %v2323_v11 = vmul.f32 %v5152_v36, %v5152_v36  ;;  %v2385_v0 = vadd.f32 %v2384_v10, %v2322_v44  ;;  %v5165_v23 = vadd.f32 %v2073_v31, %v4934_v27 }
 0x209   :  { %v2326_v31 = vmul.f32 %v5159_v61, %v5159_v61 }
 0x20a   :  { %v2386_v29 = vadd.f32 %v2385_v0, %v2323_v11  ;;  %v2253_v18 = vadd.f32 %v2252_v46, %v5165_v23  ;;  %v2324_v6 = vmul.f32 %v5165_v23, %v5165_v23 }
 0x20c   :  { %v2254_v24 = vadd.f32 %v2253_v18, %v5147_v20  ;;  %v2387_v12 = vadd.f32 %v2386_v29, %v2324_v6  ;;  %v1869_v50 = vpop.f32.mrb[92].mxu0  ;;  %v3703_v15 = vpop.f32.mrb[124].mxu1 }
 0x20d   :  { %v5174_v30 = vadd.f32 %v1869_v50, %v4878_v14  ;;  %v5177_v27 = vadd.f32 %v3703_v15, %v4959_v47  ;;  %v1871_v44 = vpop.f32.mrb[93].mxu0  ;;  %v2086_v10 = vpop.f32.mrb[125].mxu1 }
 0x20e   :  { %v2388_v46 = vadd.f32 %v2387_v12, %v2325_v35  ;;  %v5182_v11 = vadd.f32 %v2086_v10, %v4949_v39  ;;  %v2255_v0 = vadd.f32 %v2254_v24, %v5159_v61  ;;  %v1872_v29 = vpop.f32.mrb[94].mxu0  ;;  %v3704_v18 = vpop.f32.mrb[126].mxu1 }
 0x20f   :  { %v5186_v6 = vadd.f32 %v1872_v29, %v4882_v21  ;;  %v5189_v14 = vadd.f32 %v3704_v18, %v4964_v51  ;;  %v2089_v47 = vpop.f32.mrb[127].mxu1  ;;  %v1874_v50 = vpop.f32.mrb[95].mxu0  ;;  %v2329_v51 = vmul.f32 %v5177_v27, %v5177_v27 }
 0x210   :  { %v2256_v15 = vadd.f32 %v2255_v0, %v5182_v11  ;;  %v2327_v35 = vmul.f32 %v5182_v11, %v5182_v11  ;;  %v2389_v12 = vadd.f32 %v2388_v46, %v2326_v31  ;;  %v5195_v39 = vadd.f32 %v2089_v47, %v4954_v43 }
 0x211   :  { %v2330_v47 = vmul.f32 %v5189_v14, %v5189_v14 }
 0x212   :  { %v2390_v24 = vadd.f32 %v2389_v12, %v2327_v35  ;;  %v2257_v44 = vadd.f32 %v2256_v15, %v5195_v39  ;;  %v2328_v21 = vmul.f32 %v5195_v39, %v5195_v39 }
 0x214   :  { %v2258_v10 = vadd.f32 %v2257_v44, %v5177_v27  ;;  %v2391_v29 = vadd.f32 %v2390_v24, %v2328_v21  ;;  %v1877_v0 = vpop.f32.mrb[96].mxu0  ;;  %v3707_v18 = vpop.f32.mrb[128].mxu1 }
 0x215   :  { %v5204_v50 = vadd.f32 %v1877_v0, %v4886_v34  ;;  %v5207_v43 = vadd.f32 %v3707_v18, %v4994_v33  ;;  %v1879_v31 = vpop.f32.mrb[97].mxu0  ;;  %v2102_v46 = vpop.f32.mrb[129].mxu1 }
 0x216   :  { %v2392_v15 = vadd.f32 %v2391_v29, %v2329_v51  ;;  %v5212_v35 = vadd.f32 %v2102_v46, %v4967_v55  ;;  %v2259_v12 = vadd.f32 %v2258_v10, %v5189_v14  ;;  %v1880_v24 = vpop.f32.mrb[98].mxu0  ;;  %v3708_v44 = vpop.f32.mrb[130].mxu1 }
 0x217   :  { %6747 = vst [vmem:[#allocation18_spill] sm:$0xff] %v5207_v43  ;;  %v5216_v21 = vadd.f32 %v1880_v24, %v4891_v52  ;;  %v5219_v34 = vadd.f32 %v3708_v44, %v5006_v5  ;;  %v2105_v33 = vpop.f32.mrb[131].mxu1  ;;  %v1882_v0 = vpop.f32.mrb[99].mxu0  ;;  %v2333_v5 = vmul.f32 %v5207_v43, %v5207_v43 }
 0x218   :  { %6748 = vst [vmem:[#allocation19_spill] sm:$0xff] %v5212_v35  ;;  %v2260_v18 = vadd.f32 %v2259_v12, %v5212_v35  ;;  %v2331_v51 = vmul.f32 %v5212_v35, %v5212_v35  ;;  %v2393_v29 = vadd.f32 %v2392_v15, %v2330_v47  ;;  %v5225_v55 = vadd.f32 %v2105_v33, %v4976_v19  ;;  %v6749_v0 = vld [vmem:[#allocation2_spill] sm:$0xff] }
 0x219   :  { %v2334_v33 = vmul.f32 %v5219_v34, %v5219_v34 }
 0x21a   :  { %v2394_v10 = vadd.f32 %v2393_v29, %v2331_v51  ;;  %v2261_v31 = vadd.f32 %v2260_v18, %v5225_v55  ;;  %v2332_v52 = vmul.f32 %v5225_v55, %v5225_v55 }
 0x21c   :  { %v2262_v46 = vadd.f32 %v2261_v31, %v5207_v43  ;;  %v2395_v24 = vadd.f32 %v2394_v10, %v2332_v52  ;;  %v1885_v12 = vpop.f32.mrb[100].mxu0  ;;  %v3711_v44 = vpop.f32.mrb[132].mxu1  ;;  %v6752_v52 = vld [vmem:[#allocation3_spill] sm:$0xff] }
 0x21d   :  { %v5234_v35 = vadd.f32 %v1885_v12, %v6749_v0  ;;  %v5237_v19 = vadd.f32 %v3711_v44, %v5054_v25  ;;  %v1887_v47 = vpop.f32.mrb[101].mxu0  ;;  %v2118_v15 = vpop.f32.mrb[133].mxu1 }
 0x21e   :  { %v2396_v18 = vadd.f32 %v2395_v24, %v2333_v5  ;;  %v5242_v51 = vadd.f32 %v2118_v15, %v5024_v58  ;;  %v2263_v29 = vadd.f32 %v2262_v46, %v5219_v34  ;;  %v1888_v10 = vpop.f32.mrb[102].mxu0  ;;  %v3712_v31 = vpop.f32.mrb[134].mxu1 }
 0x21f   :  { %6750 = vst [vmem:[#allocation2_spill] sm:$0xff] %v5237_v19  ;;  %v5246_v43 = vadd.f32 %v1888_v10, %v6752_v52  ;;  %v5249_v12 = vadd.f32 %v3712_v31, %v5066_v1  ;;  %v2121_v25 = vpop.f32.mrb[135].mxu1  ;;  %v1890_v44 = vpop.f32.mrb[103].mxu0  ;;  %v2337_v1 = vmul.f32 %v5237_v19, %v5237_v19 }
 0x220   :  { %6751 = vst [vmem:[#allocation20_spill] sm:$0xff] %v5242_v51  ;;  %v2264_v0 = vadd.f32 %v2263_v29, %v5242_v51  ;;  %v2335_v5 = vmul.f32 %v5242_v51, %v5242_v51  ;;  %v2397_v24 = vadd.f32 %v2396_v18, %v2334_v33  ;;  %v5255_v58 = vadd.f32 %v2121_v25, %v5036_v48  ;;  %v6753_v44 = vld [vmem:[#allocation4_spill] sm:$0xff] }
 0x221   :  { %v2338_v25 = vmul.f32 %v5249_v12, %v5249_v12 }
 0x222   :  { %v2398_v46 = vadd.f32 %v2397_v24, %v2335_v5  ;;  %v2265_v47 = vadd.f32 %v2264_v0, %v5255_v58  ;;  %v2336_v15 = vmul.f32 %v5255_v58, %v5255_v58 }
 0x224   :  { %v2266_v10 = vadd.f32 %v2265_v47, %v5237_v19  ;;  %v2399_v31 = vadd.f32 %v2398_v46, %v2336_v15  ;;  %v1893_v29 = vpop.f32.mrb[104].mxu0  ;;  %v3715_v52 = vpop.f32.mrb[136].mxu1  ;;  %v6756_v15 = vld [vmem:[#allocation5_spill] sm:$0xff] }
 0x225   :  { %v5264_v51 = vadd.f32 %v1893_v29, %v6753_v44  ;;  %v5267_v48 = vadd.f32 %v3715_v52, %v5114_v41  ;;  %v1895_v33 = vpop.f32.mrb[105].mxu0  ;;  %v2134_v18 = vpop.f32.mrb[137].mxu1 }
 0x226   :  { %v2400_v0 = vadd.f32 %v2399_v31, %v2337_v1  ;;  %v5272_v5 = vadd.f32 %v2134_v18, %v5084_v8  ;;  %v2267_v24 = vadd.f32 %v2266_v10, %v5249_v12  ;;  %v1896_v46 = vpop.f32.mrb[106].mxu0  ;;  %v3716_v47 = vpop.f32.mrb[138].mxu1 }
 0x227   :  { %6754 = vst [vmem:[#allocation3_spill] sm:$0xff] %v5267_v48  ;;  %v5276_v19 = vadd.f32 %v1896_v46, %v6756_v15  ;;  %v5279_v29 = vadd.f32 %v3716_v47, %v5126_v37  ;;  %v2137_v41 = vpop.f32.mrb[139].mxu1  ;;  %v1898_v52 = vpop.f32.mrb[107].mxu0  ;;  %v2341_v37 = vmul.f32 %v5267_v48, %v5267_v48 }
 0x228   :  { %6755 = vst [vmem:[#allocation4_spill] sm:$0xff] %v5272_v5  ;;  %v2268_v44 = vadd.f32 %v2267_v24, %v5272_v5  ;;  %v2339_v1 = vmul.f32 %v5272_v5, %v5272_v5  ;;  %v2401_v31 = vadd.f32 %v2400_v0, %v2338_v25  ;;  %v5285_v8 = vadd.f32 %v2137_v41, %v5096_v16  ;;  %v6757_v52 = vld [vmem:[#allocation6_spill] sm:$0xff] }
 0x229   :  { %v2342_v41 = vmul.f32 %v5279_v29, %v5279_v29 }
 0x22a   :  { %v2402_v10 = vadd.f32 %v2401_v31, %v2339_v1  ;;  %v2269_v33 = vadd.f32 %v2268_v44, %v5285_v8  ;;  %v2340_v18 = vmul.f32 %v5285_v8, %v5285_v8 }
 0x22c   :  { %v2270_v46 = vadd.f32 %v2269_v33, %v5267_v48  ;;  %v2403_v47 = vadd.f32 %v2402_v10, %v2340_v18  ;;  %v1901_v24 = vpop.f32.mrb[108].mxu0  ;;  %v3719_v15 = vpop.f32.mrb[140].mxu1  ;;  %v6760_v18 = vld [vmem:[#allocation7_spill] sm:$0xff] }
 0x22d   :  { %v1902_v5 = vadd.f32 %v1901_v24, %v6757_v52  ;;  %v5295_v25 = vadd.f32 %v3719_v15, %v5174_v30  ;;  %v1903_v16 = vpop.f32.mrb[109].mxu0  ;;  %v2150_v0 = vpop.f32.mrb[141].mxu1 }
 0x22e   :  { %v2404_v44 = vadd.f32 %v2403_v47, %v2341_v37  ;;  %v5300_v1 = vadd.f32 %v2150_v0, %v5144_v49  ;;  %v2271_v31 = vadd.f32 %v2270_v46, %v5279_v29  ;;  %v1904_v33 = vpop.f32.mrb[110].mxu0  ;;  %v3720_v10 = vpop.f32.mrb[142].mxu1 }
 0x22f   :  { %6758 = vst [vmem:[#allocation5_spill] sm:$0xff] %v5295_v25  ;;  %v1905_v48 = vadd.f32 %v1904_v33, %v6760_v18  ;;  %v5305_v24 = vadd.f32 %v3720_v10, %v5186_v6  ;;  %v2153_v30 = vpop.f32.mrb[143].mxu1  ;;  %v1906_v15 = vpop.f32.mrb[111].mxu0  ;;  %v2345_v6 = vmul.f32 %v5295_v25, %v5295_v25 }
 0x230   :  { %6759 = vst [vmem:[#allocation6_spill] sm:$0xff] %v5300_v1  ;;  %v2272_v52 = vadd.f32 %v2271_v31, %v5300_v1  ;;  %v2343_v16 = vmul.f32 %v5300_v1, %v5300_v1  ;;  %v2405_v37 = vadd.f32 %v2404_v44, %v2342_v41  ;;  %v5311_v49 = vadd.f32 %v2153_v30, %v5156_v53  ;;  %v6761_v15 = vld [vmem:[#allocation8_spill] sm:$0xff] }
 0x231   :  { %v2346_v30 = vmul.f32 %v5305_v24, %v5305_v24 }
 0x232   :  { %v2406_v47 = vadd.f32 %v2405_v37, %v2343_v16  ;;  %v2273_v46 = vadd.f32 %v2272_v52, %v5311_v49  ;;  %v2344_v0 = vmul.f32 %v5311_v49, %v5311_v49 }
 0x234   :  { %v2274_v33 = vadd.f32 %v2273_v46, %v5295_v25  ;;  %v2407_v10 = vadd.f32 %v2406_v47, %v2344_v0  ;;  %v1909_v31 = vpop.f32.mrb[112].mxu0  ;;  %v3723_v18 = vpop.f32.mrb[144].mxu1  ;;  %v6764_v0 = vld [vmem:[#allocation9_spill] sm:$0xff] }
 0x235   :  { %v1910_v1 = vadd.f32 %v1909_v31, %v6761_v15  ;;  %v5321_v41 = vadd.f32 %v3723_v18, %v5234_v35  ;;  %v1911_v53 = vpop.f32.mrb[113].mxu0  ;;  %v2166_v44 = vpop.f32.mrb[145].mxu1 }
 0x236   :  { %v2408_v52 = vadd.f32 %v2407_v10, %v2345_v6  ;;  %v5326_v16 = vadd.f32 %v2166_v44, %v5204_v50  ;;  %v2275_v37 = vadd.f32 %v2274_v33, %v5305_v24  ;;  %v1912_v46 = vpop.f32.mrb[114].mxu0  ;;  %v3724_v47 = vpop.f32.mrb[146].mxu1 }
 0x237   :  { %6762 = vst [vmem:[#allocation7_spill] sm:$0xff] %v5321_v41  ;;  %v1913_v25 = vadd.f32 %v1912_v46, %v6764_v0  ;;  %v5331_v31 = vadd.f32 %v3724_v47, %v5246_v43  ;;  %v2169_v35 = vpop.f32.mrb[147].mxu1  ;;  %v1914_v18 = vpop.f32.mrb[115].mxu0  ;;  %v2349_v43 = vmul.f32 %v5321_v41, %v5321_v41 }
 0x238   :  { %6763 = vst [vmem:[#allocation8_spill] sm:$0xff] %v5326_v16  ;;  %v2276_v15 = vadd.f32 %v2275_v37, %v5326_v16  ;;  %v2347_v53 = vmul.f32 %v5326_v16, %v5326_v16  ;;  %v2409_v6 = vadd.f32 %v2408_v52, %v2346_v30  ;;  %v5337_v50 = vadd.f32 %v2169_v35, %v5216_v21  ;;  %v6767_v18 = vld [vmem:[#allocation10_spill] sm:$0xff] }
 0x239   :  { %6765 = vst [vmem:[#allocation9_spill] sm:$0xff] %v5331_v31  ;;  %v2350_v35 = vmul.f32 %v5331_v31, %v5331_v31 }
 0x23a   :  { %6766 = vst [vmem:[#allocation21_spill] sm:$0xff] %v5337_v50  ;;  %v2410_v10 = vadd.f32 %v2409_v6, %v2347_v53  ;;  %v2277_v33 = vadd.f32 %v2276_v15, %v5337_v50  ;;  %v2348_v44 = vmul.f32 %v5337_v50, %v5337_v50 }
 0x23c   :  { %v2278_v46 = vadd.f32 %v2277_v33, %v5321_v41  ;;  %v2411_v47 = vadd.f32 %v2410_v10, %v2348_v44  ;;  %v1917_v37 = vpop.f32.mrb[116].mxu0  ;;  %v3727_v0 = vpop.f32.mrb[148].mxu1  ;;  %v6769_v10 = vld [vmem:[#allocation11_spill] sm:$0xff] }
 0x23d   :  { %v1918_v16 = vadd.f32 %v1917_v37, %v6767_v18  ;;  %v5346_v30 = vadd.f32 %v3727_v0, %v1902_v5  ;;  %v1919_v21 = vpop.f32.mrb[117].mxu0  ;;  %v2182_v52 = vpop.f32.mrb[149].mxu1 }
 0x23e   :  { %v2412_v15 = vadd.f32 %v2411_v47, %v2349_v43  ;;  %v5351_v53 = vadd.f32 %v2182_v52, %v5264_v51  ;;  %v2279_v6 = vadd.f32 %v2278_v46, %v5331_v31  ;;  %v1920_v50 = vpop.f32.mrb[118].mxu0  ;;  %v3728_v33 = vpop.f32.mrb[150].mxu1 }
 0x23f   :  { %v1921_v44 = vadd.f32 %v1920_v50, %v6769_v10  ;;  %v5355_v41 = vadd.f32 %v3728_v33, %v1905_v48  ;;  %v2185_v37 = vpop.f32.mrb[151].mxu1  ;;  %v1922_v5 = vpop.f32.mrb[119].mxu0  ;;  %v2353_v48 = vmul.f32 %v5346_v30, %v5346_v30  ;;  %v6771_v10 = vld [vmem:[#allocation12_spill] sm:$0xff] }
 0x240   :  { %6768 = vst [vmem:[#allocation10_spill] sm:$0xff] %v5351_v53  ;;  %v2280_v0 = vadd.f32 %v2279_v6, %v5351_v53  ;;  %v2351_v18 = vmul.f32 %v5351_v53, %v5351_v53  ;;  %v2413_v21 = vadd.f32 %v2412_v15, %v2350_v35  ;;  %v5361_v43 = vadd.f32 %v2185_v37, %v5276_v19 }
 0x241   :  { %v2354_v37 = vmul.f32 %v5355_v41, %v5355_v41 }
 0x242   :  { %6770 = vst [vmem:[#allocation11_spill] sm:$0xff] %v5361_v43  ;;  %v2414_v51 = vadd.f32 %v2413_v21, %v2351_v18  ;;  %v2281_v46 = vadd.f32 %v2280_v0, %v5361_v43  ;;  %v2352_v47 = vmul.f32 %v5361_v43, %v5361_v43 }
 0x244   :  { %v2282_v50 = vadd.f32 %v2281_v46, %v5346_v30  ;;  %v2415_v52 = vadd.f32 %v2414_v51, %v2352_v47  ;;  %v1925_v6 = vpop.f32.mrb[120].mxu0  ;;  %v3731_v33 = vpop.f32.mrb[152].mxu1  ;;  %v6774_v46 = vld [vmem:[#allocation13_spill] sm:$0xff] }
 0x245   :  { %v1926_v5 = vadd.f32 %v1925_v6, %v6771_v10  ;;  %v5370_v35 = vadd.f32 %v3731_v33, %v1918_v16  ;;  %v1927_v19 = vpop.f32.mrb[121].mxu0  ;;  %v2198_v15 = vpop.f32.mrb[153].mxu1 }
 0x246   :  { %v2416_v0 = vadd.f32 %v2415_v52, %v2353_v48  ;;  %v5374_v18 = vadd.f32 %v2198_v15, %v1910_v1  ;;  %v2283_v21 = vadd.f32 %v2282_v50, %v5355_v41  ;;  %v1928_v43 = vpop.f32.mrb[122].mxu0  ;;  %v3732_v53 = vpop.f32.mrb[154].mxu1 }
 0x247   :  { %6772 = vst [vmem:[#allocation12_spill] sm:$0xff] %v5370_v35  ;;  %v1929_v51 = vadd.f32 %v1928_v43, %v6774_v46  ;;  %v5378_v47 = vadd.f32 %v3732_v53, %v1921_v44  ;;  %v2201_v31 = vpop.f32.mrb[155].mxu1  ;;  %v1930_v6 = vpop.f32.mrb[123].mxu0  ;;  %v2357_v53 = vmul.f32 %v5370_v35, %v5370_v35 }
 0x248   :  { %6773 = vst [vmem:[#allocation22_spill] sm:$0xff] %v5374_v18  ;;  %v2284_v16 = vadd.f32 %v2283_v21, %v5374_v18  ;;  %v2355_v33 = vmul.f32 %v5374_v18, %v5374_v18  ;;  %v2417_v10 = vadd.f32 %v2416_v0, %v2354_v37  ;;  %v5383_v19 = vadd.f32 %v2201_v31, %v1913_v25 }
 0x249   :  { %6775 = vst [vmem:[#allocation13_spill] sm:$0xff] %v5378_v47  ;;  %v2358_v25 = vmul.f32 %v5378_v47, %v5378_v47 }
 0x24a   :  { %6776 = vst [vmem:[#allocation23_spill] sm:$0xff] %v5383_v19  ;;  %v2418_v1 = vadd.f32 %v2417_v10, %v2355_v33  ;;  %v2285_v48 = vadd.f32 %v2284_v16, %v5383_v19  ;;  %v2356_v50 = vmul.f32 %v5383_v19, %v5383_v19 }
 0x24c   :  { %v2286_v44 = vadd.f32 %v2285_v48, %v5370_v35  ;;  %v2419_v43 = vadd.f32 %v2418_v1, %v2356_v50  ;;  %v1933_v52 = vpop.f32.mrb[124].mxu0  ;;  %v3735_v15 = vpop.f32.mrb[156].mxu1  ;;  %v6779_v48 = vld [vmem:[#allocation14_spill] sm:$0xff] }
 0x24d   :  { %v1934_v21 = vadd.f32 %v1933_v52, %v4956_v4  ;;  %v1935_v46 = vpop.f32.mrb[125].mxu0  ;;  %v2214_v37 = vpop.f32.mrb[157].mxu1 }
 0x24e   :  { %v2420_v31 = vadd.f32 %v2419_v43, %v2357_v53  ;;  %v5394_v0 = vadd.f32 %v2214_v37, %v1926_v5  ;;  %v2287_v6 = vadd.f32 %v2286_v44, %v5378_v47  ;;  %v1936_v16 = vpop.f32.mrb[126].mxu0  ;;  %v3736_v33 = vpop.f32.mrb[158].mxu1 }
 0x24f   :  { %v5397_v10 = vadd.f32 %v3735_v15, %v1934_v21  ;;  %v1937_v1 = vadd.f32 %v1936_v16, %v6779_v48  ;;  %v2217_v50 = vpop.f32.mrb[159].mxu1  ;;  %v1938_v35 = vpop.f32.mrb[127].mxu0 }
 0x250   :  { %6777 = vst [vmem:[#allocation24_spill] sm:$0xff] %v5394_v0  ;;  %v2288_v4 = vadd.f32 %v2287_v6, %v5394_v0  ;;  %v2359_v52 = vmul.f32 %v5394_v0, %v5394_v0  ;;  %v2421_v46 = vadd.f32 %v2420_v31, %v2358_v25  ;;  %v5403_v19 = vadd.f32 %v2217_v50, %v1929_v51 }
 0x251   :  { %6778 = vst [vmem:[#allocation25_spill] sm:$0xff] %v5397_v10  ;;  %v5405_v5 = vadd.f32 %v3736_v33, %v1937_v1  ;;  %v2361_v15 = vmul.f32 %v5397_v10, %v5397_v10 }
 0x252   :  { %6780 = vst [vmem:[#allocation14_spill] sm:$0xff] %v5403_v19  ;;  %v2422_v53 = vadd.f32 %v2421_v46, %v2359_v52  ;;  %v2289_v44 = vadd.f32 %v2288_v4, %v5403_v19  ;;  %v2360_v43 = vmul.f32 %v5403_v19, %v5403_v19 }
 0x253   :  { %v2362_v37 = vmul.f32 %v5405_v5, %v5405_v5 }
 0x254   :  { %v2290_v35 = vadd.f32 %v2289_v44, %v5397_v10  ;;  %v2423_v21 = vadd.f32 %v2422_v53, %v2360_v43 }
 0x256   :  { %v2291_v51 = vadd.f32 %v2290_v35, %v5405_v5  ;;  %v2424_v25 = vadd.f32 %v2423_v21, %v2361_v15  ;;  %v2443_v15 = vlaneseq  ;;  %v2435_v21 = vld [vmem:[%s6672_s2] sm:$0x1] }
 0x258   :  { %v2292_v31 = vrot.slane %v2291_v51, 4  ;;  %v2425_v6 = vadd.f32 %v2424_v25, %v2362_v37  ;;  %v5416_v35 = vshrl.u32 %v2443_v15, 7 }
 0x25a   :  { %v2293_v16 = vadd.f32 %v2292_v31, %v2291_v51  ;;  %v2426_v33 = vrot.slane %v2425_v6, 4  ;;  %v6699_v37 = vsub.s32 0, %v5416_v35 }
 0x25c   :  { %v2294_v48 = vrot.slane %v2293_v16, 2  ;;  %v2427_v1 = vadd.f32 %v2426_v33, %v2425_v6  ;;  %v6782_v6 = vld [vmem:[#allocation17_spill] sm:$0xff]  ;;  %v6783_v33 = vld [vmem:[#allocation15_spill] sm:$0xff] }
 0x25e   :  { %v2295_v50 = vadd.f32 %v2294_v48, %v2293_v16  ;;  %v2428_v4 = vrot.slane %v2427_v1, 2 }
 0x260   :  { %v2296_v52 = vrot.slane %v2295_v50, 1  ;;  %v2429_v46 = vadd.f32 %v2428_v4, %v2427_v1 }
 0x262   :  { %v2297_v19 = vadd.f32 %v2296_v52, %v2295_v50  ;;  %v2430_v0 = vrot.slane %v2429_v46, 1 }
 0x264   :  { %v2298_v44 = vmul.f32 0.001953125, %v2297_v19  ;;  %v2431_v53 = vadd.f32 %v2430_v0, %v2429_v46  ;;  %v5425_v19 = vld [vmem:[%s6673_s3] sm:$0x1] }
 0x266   :  { %v2432_v43 = vmul.f32 0.001953125, %v2431_v53  ;;  %v2433_v10 = vmul.f32 %v2298_v44, %v2298_v44  ;;  %v6785_v53 = vld [vmem:[#allocation18_spill] sm:$0xff] }
 0x268   :  { %v2434_v47 = vsub.f32 %v2432_v43, %v2433_v10  ;;  %v6781_v10 = vld [vmem:[#allocation16_spill] sm:$0xff] }
 0x269   :  { %v6786_v43 = vld [vmem:[#allocation20_spill] sm:$0xff] }
 0x26a   :  { %v2436_v18 = vadd.f32 1e-05, %v2434_v47 }
 0x26c   :  { %4114 = vrsqrt.f32 %v2436_v18 }
 0x276   :  { %v4115_v51 = vpop.eup %4114 }
 0x277   :  { %v2438_v25 = vmul.f32 %v4115_v51, %v2435_v21  ;;  %v6787_v21 = vld [vmem:[#allocation2_spill] sm:$0xff] }
 0x279   :  { %v5427_v0 = vmul.f32 %v2438_v25, %v2298_v44  ;;  %v5431_v18 = vrot.slane %v2438_v25, %v6699_v37  ;;  %v6784_v44 = vld [vmem:[#allocation19_spill] sm:$0xff]  ;;  %v6788_v25 = vld [vmem:[#allocation4_spill] sm:$0xff] }
 0x27a   :  { %v6803_v37 = vld [vmem:[#allocation24_spill] sm:$0xff] }
 0x27b   :  { %v2441_v47 = vsub.f32 %v5425_v19, %v5427_v0  ;;  %v5437_v31 = vmul.f32 %v5431_v18, %v6781_v10  ;;  %v5441_v16 = vmul.f32 %v5431_v18, %v6782_v6  ;;  %v5445_v48 = vmul.f32 %v5431_v18, %v6783_v33  ;;  %v6789_v0 = vld [vmem:[#allocation3_spill] sm:$0xff]  ;;  %v6790_v6 = vld [vmem:[#allocation6_spill] sm:$0xff] }
 0x27c   :  { %v5449_v1 = vmul.f32 %v5431_v18, %v4979_v63  ;;  %v5453_v50 = vmul.f32 %v5431_v18, %v5002_v59  ;;  %v5457_v4 = vmul.f32 %v5431_v18, %v5015_v57  ;;  %v5461_v52 = vmul.f32 %v5431_v18, %v4997_v13 }
 0x27d   :  { %v5465_v46 = vmul.f32 %v5431_v18, %v5009_v40  ;;  %v5469_v63 = vmul.f32 %v5431_v18, %v5032_v32  ;;  %v5473_v59 = vmul.f32 %v5431_v18, %v5045_v28  ;;  %v5477_v57 = vmul.f32 %v5431_v18, %v5027_v2 }
 0x27e   :  { %v5481_v13 = vmul.f32 %v5431_v18, %v5039_v56  ;;  %v5485_v40 = vmul.f32 %v5431_v18, %v5062_v17  ;;  %v5489_v32 = vmul.f32 %v5431_v18, %v5075_v62  ;;  %v5493_v28 = vmul.f32 %v5431_v18, %v5057_v38 }
 0x27f   :  { %v5497_v2 = vmul.f32 %v5431_v18, %v5069_v9  ;;  %v5501_v56 = vmul.f32 %v5431_v18, %v5092_v54  ;;  %v5505_v17 = vmul.f32 %v5431_v18, %v5105_v42  ;;  %v5509_v62 = vmul.f32 %v5431_v18, %v5087_v7 }
 0x280   :  { %v5513_v38 = vmul.f32 %v5431_v18, %v5099_v26  ;;  %v5517_v9 = vmul.f32 %v5431_v18, %v5122_v22  ;;  %v5521_v54 = vmul.f32 %v5431_v18, %v5135_v3  ;;  %v5525_v42 = vmul.f32 %v5431_v18, %v5117_v60 }
 0x281   :  { %v5529_v7 = vmul.f32 %v5431_v18, %v5129_v45  ;;  %v5533_v26 = vmul.f32 %v5431_v18, %v5152_v36  ;;  %v5537_v22 = vmul.f32 %v5431_v18, %v5165_v23  ;;  %v5541_v3 = vmul.f32 %v5431_v18, %v5147_v20 }
 0x282   :  { %v5545_v60 = vmul.f32 %v5431_v18, %v5159_v61  ;;  %v5549_v45 = vmul.f32 %v5431_v18, %v5182_v11  ;;  %v5553_v36 = vmul.f32 %v5431_v18, %v5195_v39  ;;  %v5557_v23 = vmul.f32 %v5431_v18, %v5177_v27 }
 0x283   :  { %v5561_v20 = vmul.f32 %v5431_v18, %v5189_v14  ;;  %v5565_v61 = vmul.f32 %v5431_v18, %v6784_v44  ;;  %v5569_v11 = vmul.f32 %v5431_v18, %v5225_v55  ;;  %v5573_v39 = vmul.f32 %v5431_v18, %v6785_v53  ;;  %v6791_v44 = vld [vmem:[#allocation5_spill] sm:$0xff] }
 0x284   :  { %v5577_v27 = vmul.f32 %v5431_v18, %v5219_v34  ;;  %v5581_v14 = vmul.f32 %v5431_v18, %v6786_v43  ;;  %v5585_v15 = vmul.f32 %v5431_v18, %v5255_v58  ;;  %v5589_v55 = vmul.f32 %v5431_v18, %v6787_v21  ;;  %v6795_v21 = vld [vmem:[#allocation22_spill] sm:$0xff] }
 0x285   :  { %v5593_v51 = vmul.f32 %v5431_v18, %v5249_v12  ;;  %v5597_v34 = vmul.f32 %v5431_v18, %v6788_v25  ;;  %v5601_v19 = vmul.f32 %v5431_v18, %v5285_v8  ;;  %v5605_v58 = vmul.f32 %v5431_v18, %v6789_v0  ;;  %v6797_v25 = vld [vmem:[#allocation23_spill] sm:$0xff] }
 0x286   :  { %v5609_v10 = vmul.f32 %v5431_v18, %v5279_v29  ;;  %v5613_v12 = vmul.f32 %v5431_v18, %v6790_v6  ;;  %v5617_v33 = vmul.f32 %v5431_v18, %v5311_v49  ;;  %v5621_v8 = vmul.f32 %v5431_v18, %v6791_v44  ;;  %v6799_v6 = vld [vmem:[#allocation12_spill] sm:$0xff]  ;;  %v6801_v44 = vld [vmem:[#allocation13_spill] sm:$0xff] }
 0x287   :  { %v5625_v53 = vmul.f32 %v5431_v18, %v5305_v24  ;;  %v5629_v29 = vmul.f32 %v5431_v18, %v5346_v30  ;;  %v5633_v43 = vmul.f32 %v5431_v18, %v5355_v41  ;;  %v5637_v49 = vmul.f32 %v5431_v18, %v6795_v21 }
 0x288   :  { %v5641_v0 = vmul.f32 %v5431_v18, %v6797_v25  ;;  %v5645_v24 = vmul.f32 %v5431_v18, %v6799_v6  ;;  %v5649_v30 = vmul.f32 %v5431_v18, %v6801_v44  ;;  %v5653_v41 = vmul.f32 %v5431_v18, %v6803_v37 }
 0x289   :  { %6792 = vst [vmem:[#allocation16_spill] sm:$0xff] %v5625_v53  ;;  %6793 = vst [vmem:[#allocation17_spill] sm:$0xff] %v5629_v29  ;;  %v5669_v44 = vmul.f32 %v5431_v18, %v5405_v5  ;;  %v6811_v37 = vsub.s32 0, %v5416_v35  ;;  %v6815_v53 = vld [vmem:[#allocation11_spill] sm:$0xff] }
 0x28a   :  { %6794 = vst [vmem:[#allocation15_spill] sm:$0xff] %v5633_v43  ;;  %6796 = vst [vmem:[#allocation19_spill] sm:$0xff] %v5637_v49  ;;  %v6805_v43 = vld [vmem:[#allocation14_spill] sm:$0xff]  ;;  %v6807_v49 = vld [vmem:[#allocation25_spill] sm:$0xff] }
 0x28b   :  { %6798 = vst [vmem:[#allocation18_spill] sm:$0xff] %v5641_v0  ;;  %6800 = vst [vmem:[#allocation20_spill] sm:$0xff] %v5645_v24  ;;  %v5657_v21 = vmul.f32 %v5431_v18, %v6805_v43  ;;  %v5661_v25 = vmul.f32 %v5431_v18, %v6807_v49  ;;  %v6809_v0 = vld [vmem:[#allocation8_spill] sm:$0xff]  ;;  %v6810_v24 = vld [vmem:[#allocation21_spill] sm:$0xff] }
 0x28c   :  { %6802 = vst [vmem:[#allocation2_spill] sm:$0xff] %v5649_v30  ;;  %6804 = vst [vmem:[#allocation4_spill] sm:$0xff] %v5653_v41  ;;  %v2496_v6 = vmul.f32 %v5431_v18, %v6809_v0  ;;  %v2497_v29 = vmul.f32 %v5431_v18, %v6810_v24  ;;  %v5673_v41 = vrot.slane %v2441_v47, %v6811_v37  ;;  %v6812_v43 = vld [vmem:[#allocation7_spill] sm:$0xff]  ;;  %v6813_v30 = vld [vmem:[#allocation9_spill] sm:$0xff] }
 0x28d   :  { %6806 = vst [vmem:[#allocation3_spill] sm:$0xff] %v5657_v21  ;;  %6808 = vst [vmem:[#allocation6_spill] sm:$0xff] %v5661_v25  ;;  %v2498_v21 = vmul.f32 %v5431_v18, %v6812_v43  ;;  %v2499_v49 = vmul.f32 %v5431_v18, %v6813_v30  ;;  %v6814_v25 = vld [vmem:[#allocation10_spill] sm:$0xff]  ;;  %v2501_v24 = vmul.f32 %v5431_v18, %v6815_v53 }
 0x28e   :  { %v2500_v0 = vmul.f32 %v5431_v18, %v6814_v25  ;;  %v5685_v5 = vadd.f32 %v5673_v41, %v5437_v31  ;;  %v5689_v35 = vadd.f32 %v5673_v41, %v5441_v16  ;;  %v5693_v47 = vadd.f32 %v5673_v41, %v5445_v48 }
 0x28f   :  { %v5697_v30 = vadd.f32 %v5673_v41, %v5449_v1  ;;  %v5701_v25 = vadd.f32 %v5673_v41, %v5453_v50  ;;  %v5705_v18 = vadd.f32 %v5673_v41, %v5457_v4  ;;  %v5709_v31 = vadd.f32 %v5673_v41, %v5461_v52 }
 0x290   :  { %v5713_v16 = vadd.f32 %v5673_v41, %v5465_v46  ;;  %v5717_v48 = vadd.f32 %v5673_v41, %v5469_v63  ;;  %v5721_v1 = vadd.f32 %v5673_v41, %v5473_v59  ;;  %v5725_v50 = vadd.f32 %v5673_v41, %v5477_v57  ;;  %v6824_v43 = vld [vmem:[#allocation17_spill] sm:$0xff] }
 0x291   :  { %v5729_v4 = vadd.f32 %v5673_v41, %v5481_v13  ;;  %v5733_v52 = vadd.f32 %v5673_v41, %v5485_v40  ;;  %v5737_v46 = vadd.f32 %v5673_v41, %v5489_v32  ;;  %v5741_v63 = vadd.f32 %v5673_v41, %v5493_v28 }
 0x292   :  { %v5745_v59 = vadd.f32 %v5673_v41, %v5497_v2  ;;  %v5749_v57 = vadd.f32 %v5673_v41, %v5501_v56  ;;  %v5753_v13 = vadd.f32 %v5673_v41, %v5505_v17  ;;  %v5757_v40 = vadd.f32 %v5673_v41, %v5509_v62 }
 0x293   :  { %v5761_v32 = vadd.f32 %v5673_v41, %v5513_v38  ;;  %v5765_v28 = vadd.f32 %v5673_v41, %v5517_v9  ;;  %v5769_v2 = vadd.f32 %v5673_v41, %v5521_v54  ;;  %v5773_v56 = vadd.f32 %v5673_v41, %v5525_v42 }
 0x294   :  { %v5777_v17 = vadd.f32 %v5673_v41, %v5529_v7  ;;  %v5781_v62 = vadd.f32 %v5673_v41, %v5533_v26  ;;  %v5785_v38 = vadd.f32 %v5673_v41, %v5537_v22  ;;  %v5789_v9 = vadd.f32 %v5673_v41, %v5541_v3 }
 0x295   :  { %v5793_v54 = vadd.f32 %v5673_v41, %v5545_v60  ;;  %v5797_v42 = vadd.f32 %v5673_v41, %v5549_v45  ;;  %v5801_v7 = vadd.f32 %v5673_v41, %v5553_v36  ;;  %v5805_v26 = vadd.f32 %v5673_v41, %v5557_v23 }
 0x296   :  { %v5809_v22 = vadd.f32 %v5673_v41, %v5561_v20  ;;  %v5813_v3 = vadd.f32 %v5673_v41, %v5565_v61  ;;  %v5817_v60 = vadd.f32 %v5673_v41, %v5569_v11  ;;  %v5821_v45 = vadd.f32 %v5673_v41, %v5573_v39 }
 0x297   :  { %v5825_v36 = vadd.f32 %v5673_v41, %v5577_v27  ;;  %v5829_v23 = vadd.f32 %v5673_v41, %v5581_v14  ;;  %v5833_v20 = vadd.f32 %v5673_v41, %v5585_v15  ;;  %v5837_v61 = vadd.f32 %v5673_v41, %v5589_v55 }
 0x298   :  { %v5841_v11 = vadd.f32 %v5673_v41, %v5593_v51  ;;  %v5845_v39 = vadd.f32 %v5673_v41, %v5597_v34  ;;  %v5849_v27 = vadd.f32 %v5673_v41, %v5601_v19  ;;  %v5853_v14 = vadd.f32 %v5673_v41, %v5605_v58  ;;  %v6817_v19 = vld [vmem:[#allocation16_spill] sm:$0xff] }
 0x299   :  { %v5857_v15 = vadd.f32 %v5673_v41, %v5609_v10  ;;  %v5861_v55 = vadd.f32 %v5673_v41, %v5613_v12  ;;  %v5865_v51 = vadd.f32 %v5673_v41, %v5617_v33  ;;  %v5869_v34 = vadd.f32 %v5673_v41, %v5621_v8 }
 0x29a   :  { %v5873_v58 = vadd.f32 %v5673_v41, %v6817_v19  ;;  %v5876_v53 = vadd.f32 %v5673_v41, %v2496_v6  ;;  %v5879_v10 = vadd.f32 %v5673_v41, %v2497_v29  ;;  %v5882_v12 = vadd.f32 %v5673_v41, %v2498_v21  ;;  %v6826_v6 = vld [vmem:[#allocation15_spill] sm:$0xff] }
 0x29b   :  { %6816 = vst [vmem:[#allocation5_spill] sm:$0xff] %v5865_v51  ;;  %v5885_v33 = vadd.f32 %v5673_v41, %v2499_v49  ;;  %v5888_v37 = vadd.f32 %v5673_v41, %v2500_v0  ;;  %v5891_v8 = vadd.f32 %v5673_v41, %v2501_v24  ;;  %v5895_v19 = vadd.f32 %v5673_v41, %v6824_v43  ;;  %v6830_v49 = vld [vmem:[#allocation18_spill] sm:$0xff]  ;;  %v6832_v0 = vld [vmem:[#allocation20_spill] sm:$0xff] }
 0x29c   :  { %6818 = vst [vmem:[#allocation22_spill] sm:$0xff] %v5876_v53  ;;  %6819 = vst [vmem:[#allocation23_spill] sm:$0xff] %v5879_v10  ;;  %v5899_v29 = vadd.f32 %v5673_v41, %v6826_v6  ;;  %v6828_v10 = vld [vmem:[#allocation19_spill] sm:$0xff]  ;;  %v5911_v24 = vadd.f32 %v5673_v41, %v6832_v0  ;;  %v5931_v0 = vadd.f32 %v5673_v41, %v5669_v44  ;;  %vm2582_vm0 = vcmp.gt.f32.partialorder %v5685_v5, 0.0 }
 0x29d   :  { %6820 = vst [vmem:[#allocation12_spill] sm:$0xff] %v5882_v12  ;;  %6821 = vst [vmem:[#allocation13_spill] sm:$0xff] %v5885_v33  ;;  %v5903_v21 = vadd.f32 %v5673_v41, %v6828_v10  ;;  %v5907_v33 = vadd.f32 %v5673_v41, %v6830_v49  ;;  %vm2583_vm1 = vcmp.gt.f32.partialorder %v5689_v35, 0.0  ;;  %vm2584_vm2 = vcmp.gt.f32.partialorder %v5693_v47, 0.0 }
 0x29e   :  { %6822 = vst [vmem:[#allocation24_spill] sm:$0xff] %v5888_v37  ;;  %6823 = vst [vmem:[#allocation14_spill] sm:$0xff] %v5891_v8  ;;  %v6834_v8 = vld [vmem:[#allocation2_spill] sm:$0xff]  ;;  %vm2585_vm3 = vcmp.gt.f32.partialorder %v5697_v30, 0.0  ;;  %vm2586_vm4 = vcmp.gt.f32.partialorder %v5701_v25, 0.0  ;;  %vm2587_vm5 = vcmp.gt.f32.partialorder %v5705_v18, 0.0 }
 0x29f   :  { %6825 = vst [vmem:[#allocation25_spill] sm:$0xff] %v5895_v19  ;;  %6827 = vst [vmem:[#allocation8_spill] sm:$0xff] %v5899_v29  ;;  %v5915_v43 = vadd.f32 %v5673_v41, %v6834_v8  ;;  %v6836_v19 = vld [vmem:[#allocation4_spill] sm:$0xff]  ;;  %v6838_v29 = vld [vmem:[#allocation3_spill] sm:$0xff]  ;;  %vm2588_vm6 = vcmp.gt.f32.partialorder %v5709_v31, 0.0  ;;  %vm2589_vm7 = vcmp.gt.f32.partialorder %v5713_v16, 0.0 }
 0x2a0   :  { %6829 = vst [vmem:[#allocation21_spill] sm:$0xff] %v5903_v21  ;;  %6831 = vst [vmem:[#allocation7_spill] sm:$0xff] %v5907_v33  ;;  %v5919_v6 = vadd.f32 %v5673_v41, %v6836_v19  ;;  %v5923_v10 = vadd.f32 %v5673_v41, %v6838_v29  ;;  %v6840_v21 = vld [vmem:[#allocation6_spill] sm:$0xff]  ;;  %vm2590_vm8 = vcmp.gt.f32.partialorder %v5717_v48, 0.0  ;;  %vm2591_vm9 = vcmp.gt.f32.partialorder %v5721_v1, 0.0 }
 0x2a1   :  { %6833 = vst [vmem:[#allocation9_spill] sm:$0xff] %v5911_v24  ;;  %6835 = vst [vmem:[#allocation10_spill] sm:$0xff] %v5915_v43  ;;  %v5927_v49 = vadd.f32 %v5673_v41, %v6840_v21  ;;  %v2646_v41 = vmul.f32 0.2, %v5685_v5  ;;  %v2647_v44 = vmul.f32 0.2, %v5689_v35 }
 0x2a2   :  { %6837 = vst [vmem:[#allocation11_spill] sm:$0xff] %v5919_v6  ;;  %6839 = vst [vmem:[#allocation16_spill] sm:$0xff] %v5923_v10  ;;  %v2648_v8 = vmul.f32 0.2, %v5693_v47  ;;  %vm2592_vm10 = vcmp.gt.f32.partialorder %v5725_v50, 0.0  ;;  %vm2593_vm11 = vcmp.gt.f32.partialorder %v5729_v4, 0.0 }
 0x2a3   :  { %6841 = vst [vmem:[#allocation17_spill] sm:$0xff] %v5927_v49  ;;  %6842 = vst [vmem:[#allocation15_spill] sm:$0xff] %v5931_v0  ;;  %v2649_v19 = vmul.f32 0.2, %v5697_v30  ;;  %v2650_v29 = vmul.f32 0.2, %v5701_v25  ;;  %v5957_v6 = vsel %vm2582_vm0, %v5685_v5, %v2646_v41  ;;  %v5968_v37 = vsel %vm2583_vm1, %v5689_v35, %v2647_v44 }
 0x2a4   :  { %v2651_v21 = vmul.f32 0.2, %v5705_v18  ;;  %v2652_v0 = vmul.f32 0.2, %v5709_v31  ;;  %v2653_v49 = vmul.f32 0.2, %v5713_v16 }
 0x2a5   :  { %v2654_v10 = vmul.f32 0.2, %v5717_v48  ;;  %6843 = vst [vmem:[#allocation19_spill] sm:$0xff] %v5957_v6  ;;  %vm2594_vm12 = vcmp.gt.f32.partialorder %v5733_v52, 0.0  ;;  %v2655_v43 = vmul.f32 0.2, %v5721_v1  ;;  %v5983_v6 = vsel %vm2584_vm2, %v5693_v47, %v2648_v8 }
 0x2a6   :  { %v2656_v24 = vmul.f32 0.2, %v5725_v50  ;;  %v5963_v33 = vmul.f32 0.2, %v5729_v4  ;;  %6844 = vst [vmem:[#allocation18_spill] sm:$0xff] %v5968_v37  ;;  %vm2595_vm13 = vcmp.gt.f32.partialorder %v5737_v46, 0.0 }
 0x2a7   :  { %v5972_v12 = vmul.f32 0.2, %v5733_v52  ;;  %v5975_v5 = vmul.f32 0.2, %v5737_v46  ;;  %v5978_v41 = vmul.f32 0.2, %v5741_v63 }
 0x2a8   :  { %6846 = vst [vmem:[#allocation2_spill] sm:$0xff] %v5983_v6  ;;  %vm2596_vm14 = vcmp.gt.f32.partialorder %v5741_v63, 0.0  ;;  %v5987_v35 = vmul.f32 0.2, %v5745_v59  ;;  %v5990_v44 = vmul.f32 0.2, %v5749_v57 }
 0x2a9   :  { %6845 = vst [vmem:[#allocation20_spill] sm:$0xff] %v5978_v41  ;;  %v5993_v37 = vmul.f32 0.2, %v5753_v13  ;;  %v5998_v41 = vsel %vm2585_vm3, %v5697_v30, %v2649_v19  ;;  %vm2597_vm15 = vcmp.gt.f32.partialorder %v5745_v59, 0.0  ;;  %v6002_v47 = vmul.f32 0.2, %v5757_v40 }
 0x2aa   :  { %6848 = vst [vmem:[#allocation3_spill] sm:$0xff] %v5998_v41  ;;  %v6005_v8 = vmul.f32 0.2, %v5761_v32  ;;  %v6008_v6 = vmul.f32 0.2, %v5765_v28  ;;  %vm2598_vm0 = vcmp.gt.f32.partialorder %v5749_v57, 0.0 }
 0x2ab   :  { %6847 = vst [vmem:[#allocation4_spill] sm:$0xff] %v5993_v37  ;;  %v6013_v37 = vsel %vm2586_vm4, %v5701_v25, %v2650_v29  ;;  %v6017_v30 = vmul.f32 0.2, %v5769_v2  ;;  %v6020_v19 = vmul.f32 0.2, %v5773_v56  ;;  %vm2599_vm1 = vcmp.gt.f32.partialorder %v5753_v13, 0.0 }
 0x2ac   :  { %6849 = vst [vmem:[#allocation6_spill] sm:$0xff] %v6008_v6  ;;  %6850 = vst [vmem:[#allocation26_spill] sm:$0xff] %v6013_v37  ;;  %v6023_v41 = vmul.f32 0.2, %v5777_v17  ;;  %v6028_v6 = vsel %vm2587_vm5, %v5705_v18, %v2651_v21  ;;  %v6032_v25 = vmul.f32 0.2, %v5781_v62 }
 0x2ad   :  { %6852 = vst [vmem:[#allocation28_spill] sm:$0xff] %v6028_v6  ;;  %v6035_v29 = vmul.f32 0.2, %v5785_v38  ;;  %v6038_v37 = vmul.f32 0.2, %v5789_v9  ;;  %vm2600_vm2 = vcmp.gt.f32.partialorder %v5757_v40, 0.0 }
 0x2ae   :  { %6851 = vst [vmem:[#allocation27_spill] sm:$0xff] %v6023_v41  ;;  %v6043_v41 = vsel %vm2588_vm6, %v5709_v31, %v2652_v0  ;;  %v6047_v18 = vmul.f32 0.2, %v5793_v54  ;;  %v6050_v21 = vmul.f32 0.2, %v5797_v42  ;;  %vm2601_vm3 = vcmp.gt.f32.partialorder %v5761_v32, 0.0 }
 0x2af   :  { %6853 = vst [vmem:[#allocation29_spill] sm:$0xff] %v6038_v37  ;;  %6854 = vst [vmem:[#allocation30_spill] sm:$0xff] %v6043_v41  ;;  %v6053_v6 = vmul.f32 0.2, %v5801_v7  ;;  %v6058_v37 = vsel %vm2589_vm7, %v5713_v16, %v2653_v49  ;;  %v6064_v31 = vmul.f32 0.2, %v5805_v26  ;;  %v6075_v16 = vsel %vm2590_vm8, %v5717_v48, %v2654_v10 }
 0x2b0   :  { %6855 = vst [vmem:[#allocation31_spill] sm:$0xff] %v6058_v37  ;;  %v6067_v0 = vmul.f32 0.2, %v5809_v22  ;;  %v6070_v41 = vmul.f32 0.2, %v5813_v3  ;;  %6857 = vst [vmem:[#allocation33_spill] sm:$0xff] %v6075_v16  ;;  %v6093_v48 = vsel %vm2591_vm9, %v5721_v1, %v2655_v43  ;;  %v6111_v1 = vsel %vm2592_vm10, %v5725_v50, %v2656_v24 }
 0x2b1   :  { %vm2604_vm6 = vcmp.gt.f32.partialorder %v5773_v56, 0.0  ;;  %v6082_v49 = vmul.f32 0.2, %v5817_v60  ;;  %v6085_v37 = vmul.f32 0.2, %v5821_v45  ;;  %6859 = vst [vmem:[#allocation35_spill] sm:$0xff] %v6093_v48  ;;  %v6130_v50 = vsel %vm2593_vm11, %v5729_v4, %v5963_v33 }
 0x2b2   :  { %6856 = vst [vmem:[#allocation32_spill] sm:$0xff] %v6070_v41  ;;  %v6088_v41 = vmul.f32 0.2, %v5825_v36  ;;  %vm2608_vm8 = vcmp.gt.f32.partialorder %v5789_v9, 0.0  ;;  %v6100_v10 = vmul.f32 0.2, %v5829_v23  ;;  %v6149_v4 = vsel %vm2594_vm12, %v5733_v52, %v5972_v12 }
 0x2b3   :  { %v6103_v16 = vmul.f32 0.2, %v5833_v20  ;;  %6861 = vst [vmem:[#allocation37_spill] sm:$0xff] %v6111_v1  ;;  %vm2612_vm9 = vcmp.gt.f32.partialorder %v5805_v26, 0.0  ;;  %v6118_v43 = vmul.f32 0.2, %v5841_v11  ;;  %v6168_v52 = vsel %vm2595_vm13, %v5737_v46, %v5975_v5 }
 0x2b4   :  { %6858 = vst [vmem:[#allocation34_spill] sm:$0xff] %v6088_v41  ;;  %v6106_v41 = vmul.f32 0.2, %v5837_v61  ;;  %v6121_v48 = vmul.f32 0.2, %v5845_v39  ;;  %6863 = vst [vmem:[#allocation39_spill] sm:$0xff] %v6130_v50 }
 0x2b5   :  { %vm2616_vm10 = vcmp.gt.f32.partialorder %v5821_v45, 0.0  ;;  %v6137_v24 = vmul.f32 0.2, %v5853_v14  ;;  %v6140_v1 = vmul.f32 0.2, %v5857_v15  ;;  %6866 = vst [vmem:[#allocation42_spill] sm:$0xff] %v6149_v4 }
 0x2b6   :  { %6860 = vst [vmem:[#allocation36_spill] sm:$0xff] %v6106_v41  ;;  %v6124_v41 = vmul.f32 0.2, %v5849_v27  ;;  %vm2620_vm11 = vcmp.gt.f32.partialorder %v5837_v61, 0.0  ;;  %v6156_v33 = vmul.f32 0.2, %v5865_v51 }
 0x2b7   :  { %6864 = vst [vmem:[#allocation40_spill] sm:$0xff] %v6140_v1  ;;  %v6159_v50 = vmul.f32 0.2, %v5869_v34  ;;  %6870 = vst [vmem:[#allocation46_spill] sm:$0xff] %v6168_v52  ;;  %vm2624_vm12 = vcmp.gt.f32.partialorder %v5853_v14, 0.0  ;;  %v6872_v4 = vld [vmem:[#allocation23_spill] sm:$0xff] }
 0x2b8   :  { %6862 = vst [vmem:[#allocation38_spill] sm:$0xff] %v6124_v41  ;;  %v6143_v41 = vmul.f32 0.2, %v5861_v55  ;;  %6867 = vst [vmem:[#allocation43_spill] sm:$0xff] %v6156_v33  ;;  %v6175_v12 = vmul.f32 0.2, %v5876_v53 }
 0x2b9   :  { %6868 = vst [vmem:[#allocation44_spill] sm:$0xff] %v6159_v50  ;;  %v6178_v50 = vmul.f32 0.2, %v6872_v4  ;;  %v6876_v1 = vld [vmem:[#allocation20_spill] sm:$0xff]  ;;  %vm2628_vm13 = vcmp.gt.f32.partialorder %v5869_v34, 0.0  ;;  %v6878_v5 = vld [vmem:[#allocation13_spill] sm:$0xff] }
 0x2ba   :  { %6865 = vst [vmem:[#allocation41_spill] sm:$0xff] %v6143_v41  ;;  %v6162_v41 = vmul.f32 0.2, %v5873_v58  ;;  %6871 = vst [vmem:[#allocation47_spill] sm:$0xff] %v6175_v12  ;;  %v6187_v46 = vsel %vm2596_vm14, %v5741_v63, %v6876_v1  ;;  %v6194_v52 = vmul.f32 0.2, %v6878_v5  ;;  %v6206_v63 = vsel %vm2597_vm15, %v5745_v59, %v5987_v35 }
 0x2bb   :  { %6873 = vst [vmem:[#allocation48_spill] sm:$0xff] %v6178_v50  ;;  %6877 = vst [vmem:[#allocation20_spill] sm:$0xff] %v6187_v46  ;;  %v6880_v50 = vld [vmem:[#allocation24_spill] sm:$0xff]  ;;  %v6885_v1 = vld [vmem:[#allocation25_spill] sm:$0xff]  ;;  %v6219_v59 = vsel %vm2598_vm0, %v5749_v57, %v5990_v44  ;;  %vm6899_vm7 = vcmp.gt.f32.partialorder %v5765_v28, 0.0 }
 0x2bc   :  { %6869 = vst [vmem:[#allocation45_spill] sm:$0xff] %v6162_v41  ;;  %v6874_v41 = vld [vmem:[#allocation12_spill] sm:$0xff]  ;;  %6879 = vst [vmem:[#allocation50_spill] sm:$0xff] %v6194_v52  ;;  %v6197_v12 = vmul.f32 0.2, %v6880_v50  ;;  %v6887_v4 = vld [vmem:[#allocation21_spill] sm:$0xff] }
 0x2bd   :  { %v6181_v33 = vmul.f32 0.2, %v6874_v41  ;;  %6884 = vst [vmem:[#allocation53_spill] sm:$0xff] %v6206_v63  ;;  %vm2632_vm14 = vcmp.gt.f32.partialorder %v6874_v41, 0.0  ;;  %v2700_v46 = vmul.f32 0.2, %v6885_v1 }
 0x2be   :  { %6881 = vst [vmem:[#allocation51_spill] sm:$0xff] %v6197_v12  ;;  %v6886_v12 = vld [vmem:[#allocation8_spill] sm:$0xff]  ;;  %6888 = vst [vmem:[#allocation54_spill] sm:$0xff] %v6219_v59  ;;  %vm2636_vm15 = vcmp.gt.f32.partialorder %v6885_v1, 0.0  ;;  %v6889_v35 = vld [vmem:[#allocation7_spill] sm:$0xff] }
 0x2bf   :  { %6875 = vst [vmem:[#allocation49_spill] sm:$0xff] %v6181_v33  ;;  %v6882_v33 = vld [vmem:[#allocation14_spill] sm:$0xff]  ;;  %v2701_v52 = vmul.f32 0.2, %v6886_v12  ;;  %v2703_v63 = vmul.f32 0.2, %v6889_v35 }
 0x2c0   :  { %v6200_v51 = vmul.f32 0.2, %v6882_v33  ;;  %v6890_v33 = vld [vmem:[#allocation9_spill] sm:$0xff]  ;;  %v6891_v5 = vld [vmem:[#allocation10_spill] sm:$0xff]  ;;  %v6892_v53 = vld [vmem:[#allocation4_spill] sm:$0xff] }
 0x2c1   :  { %v2704_v50 = vmul.f32 0.2, %v6890_v33  ;;  %v2705_v41 = vmul.f32 0.2, %v6891_v5  ;;  %v6232_v57 = vsel %vm2599_vm1, %v5753_v13, %v6892_v53  ;;  %vm2640_vm0 = vcmp.gt.f32.partialorder %v6890_v33, 0.0  ;;  %v6894_v44 = vld [vmem:[#allocation11_spill] sm:$0xff] }
 0x2c2   :  { %6883 = vst [vmem:[#allocation52_spill] sm:$0xff] %v6200_v51  ;;  %v2702_v51 = vmul.f32 0.2, %v6887_v4  ;;  %6893 = vst [vmem:[#allocation9_spill] sm:$0xff] %v6232_v57  ;;  %vm2642_vm4 = vcmp.gt.f32.partialorder %v6894_v44, 0.0  ;;  %v6895_v59 = vld [vmem:[#allocation16_spill] sm:$0xff]  ;;  %v6245_v13 = vsel %vm2600_vm2, %v5757_v40, %v6002_v47  ;;  %v6272_v47 = vsel %vm2604_vm6, %v5773_v56, %v6020_v19 }
 0x2c3   :  { %v2706_v35 = vmul.f32 0.2, %v6894_v44  ;;  %v2707_v4 = vmul.f32 0.2, %v6895_v59  ;;  %v6896_v12 = vld [vmem:[#allocation17_spill] sm:$0xff]  ;;  %v6897_v53 = vld [vmem:[#allocation15_spill] sm:$0xff]  ;;  %v6254_v44 = vsel %vm2601_vm3, %v5761_v32, %v6005_v8 }
 0x2c4   :  { %v2708_v1 = vmul.f32 0.2, %v6896_v12  ;;  %vm2644_vm1 = vcmp.gt.f32.partialorder %v6896_v12, 0.0  ;;  %vm2645_vm5 = vcmp.gt.f32.partialorder %v6897_v53, 0.0  ;;  %v2709_v57 = vmul.f32 0.2, %v6897_v53 }
 0x2c5   :  { %v6898_v59 = vld [vmem:[#allocation6_spill] sm:$0xff]  ;;  %vm6900_vm2 = vcmp.gt.f32.partialorder %v5769_v2, 0.0  ;;  %v6901_v32 = vld [vmem:[#allocation27_spill] sm:$0xff]  ;;  %vm6902_vm3 = vcmp.gt.f32.partialorder %v5777_v17, 0.0  ;;  %v6905_v56 = vld [vmem:[#allocation29_spill] sm:$0xff]  ;;  %vm6906_vm6 = vcmp.gt.f32.partialorder %v5793_v54, 0.0 }
 0x2c6   :  { %v6260_v5 = vsel %vm6899_vm7, %v5765_v28, %v6898_v59  ;;  %v6266_v40 = vsel %vm6900_vm2, %v5769_v2, %v6017_v30  ;;  %v6278_v8 = vsel %vm6902_vm3, %v5777_v17, %v6901_v32  ;;  %vm6903_vm7 = vcmp.gt.f32.partialorder %v5781_v62, 0.0  ;;  %v6939_v59 = vld [vmem:[#allocation12_spill] sm:$0xff] }
 0x2c7   :  { %v6284_v28 = vsel %vm6903_vm7, %v5781_v62, %v6032_v25  ;;  %vm6904_vm2 = vcmp.gt.f32.partialorder %v5785_v38, 0.0  ;;  %v6296_v30 = vsel %vm2608_vm8, %v5789_v9, %v6905_v56  ;;  %v6302_v17 = vsel %vm6906_vm6, %v5793_v54, %v6047_v18  ;;  %v6941_v56 = vld [vmem:[#allocation13_spill] sm:$0xff] }
 0x2c8   :  { %v6290_v2 = vsel %vm6904_vm2, %v5785_v38, %v6035_v29  ;;  %vm6907_vm3 = vcmp.gt.f32.partialorder %v5797_v42, 0.0  ;;  %vm6908_vm7 = vcmp.gt.f32.partialorder %v5801_v7, 0.0  ;;  %v6320_v9 = vsel %vm2612_vm9, %v5805_v26, %v6064_v31 }
 0x2c9   :  { %v6308_v62 = vsel %vm6907_vm3, %v5797_v42, %v6050_v21  ;;  %v6314_v38 = vsel %vm6908_vm7, %v5801_v7, %v6053_v6  ;;  %vm6909_vm8 = vcmp.gt.f32.partialorder %v5809_v22, 0.0  ;;  %v6910_v42 = vld [vmem:[#allocation32_spill] sm:$0xff]  ;;  %vm6911_vm2 = vcmp.gt.f32.partialorder %v5813_v3, 0.0  ;;  %v6927_v21 = vld [vmem:[#allocation5_spill] sm:$0xff] }
 0x2ca   :  { %v6326_v54 = vsel %vm6909_vm8, %v5809_v22, %v6067_v0  ;;  %v6332_v19 = vsel %vm6911_vm2, %v5813_v3, %v6910_v42  ;;  %vm6912_vm6 = vcmp.gt.f32.partialorder %v5817_v60, 0.0  ;;  %v6344_v26 = vsel %vm2616_vm10, %v5821_v45, %v6085_v37  ;;  %v6913_v22 = vld [vmem:[#allocation34_spill] sm:$0xff]  ;;  %v6917_v45 = vld [vmem:[#allocation36_spill] sm:$0xff] }
 0x2cb   :  { %v6338_v7 = vsel %vm6912_vm6, %v5817_v60, %v6082_v49  ;;  %vm6914_vm9 = vcmp.gt.f32.partialorder %v5825_v36, 0.0  ;;  %vm6915_vm3 = vcmp.gt.f32.partialorder %v5829_v23, 0.0  ;;  %vm6916_vm7 = vcmp.gt.f32.partialorder %v5833_v20, 0.0  ;;  %v6933_v49 = vld [vmem:[#allocation22_spill] sm:$0xff] }
 0x2cc   :  { %v6350_v6 = vsel %vm6914_vm9, %v5825_v36, %v6913_v22  ;;  %v6356_v3 = vsel %vm6915_vm3, %v5829_v23, %v6100_v10  ;;  %v6362_v60 = vsel %vm6916_vm7, %v5833_v20, %v6103_v16  ;;  %v6368_v37 = vsel %vm2620_vm11, %v5837_v61, %v6917_v45  ;;  %v6920_v20 = vld [vmem:[#allocation38_spill] sm:$0xff]  ;;  %v6935_v10 = vld [vmem:[#allocation48_spill] sm:$0xff]  ;;  %v6943_v22 = vld [vmem:[#allocation51_spill] sm:$0xff] }
 0x2cd   :  { %vm6918_vm10 = vcmp.gt.f32.partialorder %v5841_v11, 0.0  ;;  %vm6919_vm8 = vcmp.gt.f32.partialorder %v5845_v39, 0.0  ;;  %vm6921_vm2 = vcmp.gt.f32.partialorder %v5849_v27, 0.0  ;;  %v6392_v61 = vsel %vm2624_vm12, %v5853_v14, %v6137_v24  ;;  %v6929_v14 = vld [vmem:[#allocation44_spill] sm:$0xff] }
 0x2ce   :  { %v6374_v36 = vsel %vm6918_vm10, %v5841_v11, %v6118_v43  ;;  %v6380_v23 = vsel %vm6919_vm8, %v5845_v39, %v6121_v48  ;;  %v6386_v25 = vsel %vm6921_vm2, %v5849_v27, %v6920_v20  ;;  %v6922_v11 = vld [vmem:[#allocation40_spill] sm:$0xff]  ;;  %vm6923_vm11 = vcmp.gt.f32.partialorder %v5857_v15, 0.0  ;;  %v6924_v39 = vld [vmem:[#allocation41_spill] sm:$0xff]  ;;  %v6926_v27 = vld [vmem:[#allocation43_spill] sm:$0xff] }
 0x2cf   :  { %v6398_v29 = vsel %vm6923_vm11, %v5857_v15, %v6922_v11  ;;  %vm6925_vm6 = vcmp.gt.f32.partialorder %v5861_v55, 0.0  ;;  %vm6928_vm9 = vcmp.gt.f32.partialorder %v6927_v21, 0.0  ;;  %v6416_v0 = vsel %vm2628_vm13, %v5869_v34, %v6929_v14  ;;  %v6930_v15 = vld [vmem:[#allocation45_spill] sm:$0xff]  ;;  %v6936_v43 = vld [vmem:[#allocation23_spill] sm:$0xff]  ;;  %v6944_v45 = vld [vmem:[#allocation24_spill] sm:$0xff] }
 0x2d0   :  { %v6404_v18 = vsel %vm6925_vm6, %v5861_v55, %v6924_v39  ;;  %v6410_v31 = vsel %vm6928_vm9, %v6927_v21, %v6926_v27  ;;  %vm6931_vm12 = vcmp.gt.f32.partialorder %v5873_v58, 0.0  ;;  %v6932_v55 = vld [vmem:[#allocation47_spill] sm:$0xff]  ;;  %vm6934_vm3 = vcmp.gt.f32.partialorder %v6933_v49, 0.0  ;;  %v6938_v34 = vld [vmem:[#allocation49_spill] sm:$0xff]  ;;  %v6946_v11 = vld [vmem:[#allocation52_spill] sm:$0xff] }
 0x2d1   :  { %v6422_v16 = vsel %vm6931_vm12, %v5873_v58, %v6930_v15  ;;  %v6428_v48 = vsel %vm6934_vm3, %v6933_v49, %v6932_v55  ;;  %vm6937_vm7 = vcmp.gt.f32.partialorder %v6936_v43, 0.0  ;;  %v6440_v32 = vsel %vm2632_vm14, %v6939_v59, %v6938_v34  ;;  %v6940_v58 = vld [vmem:[#allocation50_spill] sm:$0xff]  ;;  %v6949_v21 = vld [vmem:[#allocation25_spill] sm:$0xff]  ;;  %v6950_v15 = vld [vmem:[#allocation8_spill] sm:$0xff] }
 0x2d2   :  { %v6434_v24 = vsel %vm6937_vm7, %v6936_v43, %v6935_v10  ;;  %vm6942_vm13 = vcmp.gt.f32.partialorder %v6941_v56, 0.0  ;;  %vm6945_vm10 = vcmp.gt.f32.partialorder %v6944_v45, 0.0  ;;  %v6947_v39 = vld [vmem:[#allocation14_spill] sm:$0xff]  ;;  %v6463_v14 = vsel %vm2636_vm15, %v6949_v21, %v2700_v46  ;;  %v6952_v49 = vld [vmem:[#allocation21_spill] sm:$0xff]  ;;  %v6954_v43 = vld [vmem:[#allocation7_spill] sm:$0xff] }
 0x2d3   :  { %v6446_v42 = vsel %vm6942_vm13, %v6941_v56, %v6940_v58  ;;  %v6452_v20 = vsel %vm6945_vm10, %v6944_v45, %v6943_v22  ;;  %vm6948_vm8 = vcmp.gt.f32.partialorder %v6947_v39, 0.0  ;;  %vm6951_vm14 = vcmp.gt.f32.partialorder %v6950_v15, 0.0  ;;  %v6956_v59 = vld [vmem:[#allocation10_spill] sm:$0xff]  ;;  %v6958_v58 = vld [vmem:[#allocation11_spill] sm:$0xff]  ;;  %v6959_v56 = vld [vmem:[#allocation16_spill] sm:$0xff] }
 0x2d4   :  { %v6458_v27 = vsel %vm6948_vm8, %v6947_v39, %v6946_v11  ;;  %v6468_v55 = vsel %vm6951_vm14, %v6950_v15, %v2701_v52  ;;  %vm6953_vm2 = vcmp.gt.f32.partialorder %v6952_v49, 0.0  ;;  %vm6955_vm11 = vcmp.gt.f32.partialorder %v6954_v43, 0.0  ;;  %v6964_v22 = vld [vmem:[#allocation18_spill] sm:$0xff]  ;;  %v6966_v11 = vld [vmem:[#allocation3_spill] sm:$0xff]  ;;  %v6968_v15 = vld [vmem:[#allocation28_spill] sm:$0xff] }
 0x2d5   :  { %v6473_v10 = vsel %vm6953_vm2, %v6952_v49, %v2702_v51  ;;  %v6478_v34 = vsel %vm6955_vm11, %v6954_v43, %v2703_v63  ;;  %v6483_v46 = vsel %vm2640_vm0, %v6890_v33, %v2704_v50  ;;  %vm6957_vm15 = vcmp.gt.f32.partialorder %v6956_v59, 0.0  ;;  %v6963_v33 = vld [vmem:[#allocation19_spill] sm:$0xff]  ;;  %v6967_v21 = vld [vmem:[#allocation26_spill] sm:$0xff] }
 0x2d6   :  { %v6488_v52 = vsel %vm6957_vm15, %v6956_v59, %v2705_v41  ;;  %v6493_v51 = vsel %vm2642_vm4, %v6958_v58, %v2706_v35  ;;  %vm6960_vm6 = vcmp.gt.f32.partialorder %v6959_v56, 0.0  ;;  %v6503_v50 = vsel %vm2644_vm1, %v6896_v12, %v2708_v1  ;;  %v6965_v35 = vld [vmem:[#allocation2_spill] sm:$0xff]  ;;  %v6970_v43 = vld [vmem:[#allocation31_spill] sm:$0xff]  ;;  %v6971_v58 = vld [vmem:[#allocation33_spill] sm:$0xff] }
 0x2d7   :  { %v6498_v63 = vsel %vm6960_vm6, %v6959_v56, %v2707_v4  ;;  %6962 = vst [vmem:[#allocation17_spill] sm:$0xff] %v6503_v50  ;;  %v6508_v41 = vsel %vm2645_vm5, %v6897_v53, %v2709_v57  ;;  %v3429_v45 = vpack.c.bf16 %v6964_v22, %v6963_v33  ;;  %v3434_v39 = vpack.c.bf16 %v6966_v11, %v6965_v35  ;;  %v6969_v49 = vld [vmem:[#allocation30_spill] sm:$0xff]  ;;  %v6972_v12 = vld [vmem:[#allocation35_spill] sm:$0xff]  ;;  %v6973_v56 = vld [vmem:[#allocation37_spill] sm:$0xff] }
 0x2d8   :  { %6961 = vst [vmem:[#allocation4_spill] sm:$0xff] %v6498_v63  ;;  %v3439_v4 = vpack.c.bf16 %v6968_v15, %v6967_v21  ;;  %v3444_v59 = vpack.c.bf16 %v6970_v43, %v6969_v49  ;;  %v3449_v1 = vpack.c.bf16 %v6972_v12, %v6971_v58  ;;  %v6974_v50 = vld [vmem:[#allocation39_spill] sm:$0xff]  ;;  %v6975_v57 = vld [vmem:[#allocation42_spill] sm:$0xff]  ;;  %v6977_v22 = vld [vmem:[#allocation20_spill] sm:$0xff] }
 0x2d9   :  { %v3454_v63 = vpack.c.bf16 %v6974_v50, %v6973_v56  ;;  %3430 = vst [vmem:[%s6674_s4] sm:$0xff] %v3429_v45   ;;  %3586 = vst [vmem:[%s6674_s4 + $0x8] sm:$0xff] %v3434_v39   ;;  %v6976_v53 = vld [vmem:[#allocation46_spill] sm:$0xff]  ;;  %v6978_v35 = vld [vmem:[#allocation53_spill] sm:$0xff]  ;;  %v3474_v50 = vpack.c.bf16 %v6254_v44, %v6245_v13  ;;  %v3479_v45 = vpack.c.bf16 %v6266_v40, %v6260_v5 }
 0x2da   :  { %v3459_v33 = vpack.c.bf16 %v6976_v53, %v6975_v57  ;;  %v3464_v11 = vpack.c.bf16 %v6978_v35, %v6977_v22  ;;  %v6979_v21 = vld [vmem:[#allocation54_spill] sm:$0xff]  ;;  %v6980_v15 = vld [vmem:[#allocation9_spill] sm:$0xff]  ;;  %3587 = vst [vmem:[%s6674_s4 + $0x10] sm:$0xff] %v3439_v4   ;;  %3588 = vst [vmem:[%s6674_s4 + $0x18] sm:$0xff] %v3444_v59   ;;  %v3484_v44 = vpack.c.bf16 %v6278_v8, %v6272_v47 }
 0x2db   :  { %v3469_v49 = vpack.c.bf16 %v6980_v15, %v6979_v21  ;;  %3589 = vst [vmem:[%s6674_s4 + $0x20] sm:$0xff] %v3449_v1   ;;  %3590 = vst [vmem:[%s6674_s4 + $0x28] sm:$0xff] %v3454_v63   ;;  %v3489_v13 = vpack.c.bf16 %v6290_v2, %v6284_v28  ;;  %v3494_v39 = vpack.c.bf16 %v6302_v17, %v6296_v30 }
 0x2dc   :  { %3591 = vst [vmem:[%s6674_s4 + $0x30] sm:$0xff] %v3459_v33   ;;  %3592 = vst [vmem:[%s6674_s4 + $0x38] sm:$0xff] %v3464_v11   ;;  %v3499_v5 = vpack.c.bf16 %v6314_v38, %v6308_v62  ;;  %v3504_v40 = vpack.c.bf16 %v6326_v54, %v6320_v9  ;;  %v3509_v47 = vpack.c.bf16 %v6338_v7, %v6332_v19 }
 0x2dd   :  { %3593 = vst [vmem:[%s6674_s4 + $0x40] sm:$0xff] %v3469_v49   ;;  %3594 = vst [vmem:[%s6674_s4 + $0x48] sm:$0xff] %v3474_v50   ;;  %v3514_v8 = vpack.c.bf16 %v6350_v6, %v6344_v26  ;;  %v3519_v28 = vpack.c.bf16 %v6362_v60, %v6356_v3  ;;  %v3524_v2 = vpack.c.bf16 %v6374_v36, %v6368_v37 }
 0x2de   :  { %3595 = vst [vmem:[%s6674_s4 + $0x50] sm:$0xff] %v3479_v45   ;;  %3596 = vst [vmem:[%s6674_s4 + $0x58] sm:$0xff] %v3484_v44   ;;  %v3529_v30 = vpack.c.bf16 %v6386_v25, %v6380_v23  ;;  %v3534_v17 = vpack.c.bf16 %v6398_v29, %v6392_v61  ;;  %v3539_v62 = vpack.c.bf16 %v6410_v31, %v6404_v18  ;;  %v6982_v37 = vld [vmem:[#allocation17_spill] sm:$0xff] }
 0x2df   :  { %3597 = vst [vmem:[%s6674_s4 + $0x60] sm:$0xff] %v3489_v13   ;;  %3598 = vst [vmem:[%s6674_s4 + $0x68] sm:$0xff] %v3494_v39   ;;  %v3544_v38 = vpack.c.bf16 %v6422_v16, %v6416_v0  ;;  %v3549_v9 = vpack.c.bf16 %v6434_v24, %v6428_v48  ;;  %v3554_v54 = vpack.c.bf16 %v6446_v42, %v6440_v32  ;;  %v6981_v3 = vld [vmem:[#allocation4_spill] sm:$0xff] }
 0x2e0   :  { %3599 = vst [vmem:[%s6674_s4 + $0x70] sm:$0xff] %v3499_v5   ;;  %3600 = vst [vmem:[%s6674_s4 + $0x78] sm:$0xff] %v3504_v40   ;;  %v3559_v19 = vpack.c.bf16 %v6458_v27, %v6452_v20  ;;  %v3564_v7 = vpack.c.bf16 %v6468_v55, %v6463_v14  ;;  %v3569_v26 = vpack.c.bf16 %v6478_v34, %v6473_v10 }
 0x2e1   :  { %3601 = vst [vmem:[%s6674_s4 + $0x80] sm:$0xff] %v3509_v47   ;;  %3602 = vst [vmem:[%s6674_s4 + $0x88] sm:$0xff] %v3514_v8   ;;  %v3574_v6 = vpack.c.bf16 %v6488_v52, %v6483_v46  ;;  %v3579_v60 = vpack.c.bf16 %v6981_v3, %v6493_v51  ;;  %v3584_v36 = vpack.c.bf16 %v6508_v41, %v6982_v37 }
 0x2e2   :  { %3603 = vst [vmem:[%s6674_s4 + $0x90] sm:$0xff] %v3519_v28   ;;  %3604 = vst [vmem:[%s6674_s4 + $0x98] sm:$0xff] %v3524_v2  }
 0x2e3   :  { %3605 = vst [vmem:[%s6674_s4 + $0xa0] sm:$0xff] %v3529_v30   ;;  %3606 = vst [vmem:[%s6674_s4 + $0xa8] sm:$0xff] %v3534_v17  }
 0x2e4   :  { %3607 = vst [vmem:[%s6674_s4 + $0xb0] sm:$0xff] %v3539_v62   ;;  %3608 = vst [vmem:[%s6674_s4 + $0xb8] sm:$0xff] %v3544_v38  }
 0x2e5   :  { %3609 = vst [vmem:[%s6674_s4 + $0xc0] sm:$0xff] %v3549_v9   ;;  %3610 = vst [vmem:[%s6674_s4 + $0xc8] sm:$0xff] %v3554_v54  }
 0x2e6   :  { %3611 = vst [vmem:[%s6674_s4 + $0xd0] sm:$0xff] %v3559_v19   ;;  %3612 = vst [vmem:[%s6674_s4 + $0xd8] sm:$0xff] %v3564_v7  }
 0x2e7   :  { %3613 = vst [vmem:[%s6674_s4 + $0xe0] sm:$0xff] %v3569_v26   ;;  %3614 = vst [vmem:[%s6674_s4 + $0xe8] sm:$0xff] %v3574_v6  }
 0x2e8   :  { %3615 = vst [vmem:[%s6674_s4 + $0xf0] sm:$0xff] %v3579_v60   ;;  %3616 = vst [vmem:[%s6674_s4 + $0xf8] sm:$0xff] %v3584_v36  }

// kernel: discriminator_forward.8
= control target key start
LH: loop header
LB: loop body
LE: loop exit
PB: predicated region body
PF: predicated region fallthrough
CT: control target
= control target key end

     0   :  { %s3573_s15 = smov 0   ;;  %s3575_s16 = smov 0   ;;  %s4443_s0 = inlined_call_operand.vmem [shape: bf16[128,1152], index: 0, kind: input, shape index: {}]   ;;  %s4444_s1 = inlined_call_operand.vmem [shape: bf16[1152,256], index: 1, kind: input, shape index: {}]   ;;  %s4445_s2 = inlined_call_operand.vmem [shape: f32[1,256], index: 2, kind: input, shape index: {}]   ;;  %s4446_s3 = inlined_call_operand.vmem [shape: f32[1,256], index: 3, kind: input, shape index: {}]   ;;  %s4447_s4 = inlined_call_operand.vmem [shape: bf16[128,256], index: 4, kind: output, shape index: {}]  }
   0x1   :  { %s3577_s17 = smov 0  }
   0x2 LB: > { %s3589_s18 = sadd.s32 4294967295, %s3546_s17   ;;  %s3592_s19 = sadd.s32 1, %s3546_s17   ;;  %s3546_s17 = sphi %s3577_s17, %s4451_s17   ;;  %s3542_s16 = sphi %s3575_s16, %s4450_s16   ;;  %s3538_s15 = sphi %s3573_s15, %s4449_s15  }
   0x3   : > { %s39_s20 = ssub.s32 %s3546_s17, %s3592_s19  ;;  %s42_s21 = sadd.s32 1, %s3542_s16 }
   0x4   : > { %p40_p0 = scmp.eq.s32.totalorder %s39_s20, 0  ;;  %p49_p1 = scmp.ne.s32.totalorder %s3542_s16, %s3538_s15 }
   0x5   : > { %p50_p2 = scmp.eq.s32.totalorder %s3546_s17, 0  ;;  %p131_p3 = scmp.eq.s32.totalorder %s3589_s18, 1 }
   0x6   : > { %s3602_s22 = scalar_select %p40_p0, %s3542_s16, %s42_s21  }
   0x7   : > { %p51_p4 = por %p50_p2, %p49_p1  ;;  %p3604_p5 = por %p131_p3, %p49_p1 }
   0x8   : > { %p2769_p6 = scmp.ge.s32.totalorder %s3546_s17, 2 }
   0xa   : > { %156 = sbr.rel (%p2769_p6) target bundleno = 117 (0x75), region = 20 }
  0x11   : > { %159 = sbr.rel (!%p51_p4) target bundleno = 117 (0x75), region = 24  ;;  %s161_s24 = sand.u32 (%p51_p4), 1, %s3542_s16  }
  0x12   : > { %s2770_s25 = sshll.u32 (%p51_p4), %s3546_s17, 2  ;;  %s3320_s26 = smul.u32 (%p51_p4), 576, %s161_s24 }
  0x13   : > { %s3614_s29 = scalar_lea.vmem (%p51_p4), %s4444_s1, %s2770_s25 }
  0x14   : > { %v181_v0 = vld [vmem:[%s3614_s29] sm:$0xf] (%p51_p4)  ;;  %v183_v1 = vld [vmem:[%s3614_s29 + $0x8] sm:$0xf] (%p51_p4)  ;;  %v185_v2 = vld [vmem:[%s3614_s29 + $0x10] sm:$0xf] (%p51_p4) }
  0x15   : > { %v187_v3 = vld [vmem:[%s3614_s29 + $0x18] sm:$0xf] (%p51_p4)  ;;  %v189_v4 = vld [vmem:[%s3614_s29 + $0x20] sm:$0xf] (%p51_p4)  ;;  %s3621_s30 = scalar_lea.vmem (%p51_p4), [#allocation2], %s3320_s26 }
  0x16   : > { %182 = vst [vmem:[%s3621_s30] sm:$0xf] (%p51_p4), %v181_v0  ;;  %184 = vst [vmem:[%s3621_s30 + $0x4] sm:$0xf] (%p51_p4), %v183_v1  ;;  %v191_v5 = vld [vmem:[%s3614_s29 + $0x28] sm:$0xf] (%p51_p4) }
  0x17   : > { %186 = vst [vmem:[%s3621_s30 + $0x8] sm:$0xf] (%p51_p4), %v185_v2  ;;  %188 = vst [vmem:[%s3621_s30 + $0xc] sm:$0xf] (%p51_p4), %v187_v3  ;;  %v193_v6 = vld [vmem:[%s3614_s29 + $0x30] sm:$0xf] (%p51_p4) }
  0x18   : > { %190 = vst [vmem:[%s3621_s30 + $0x10] sm:$0xf] %v189_v4  ;;  %v195_v7 = vld [vmem:[%s3614_s29 + $0x38] sm:$0xf]  ;;  %192 = vst [vmem:[%s3621_s30 + $0x14] sm:$0xf] %v191_v5 }
  0x19   : > { %194 = vst [vmem:[%s3621_s30 + $0x18] sm:$0xf] %v193_v6  ;;  %196 = vst [vmem:[%s3621_s30 + $0x1c] sm:$0xf] %v195_v7  ;;  %v197_v8 = vld [vmem:[%s3614_s29 + $0x40] sm:$0xf] }
  0x1a   : > { %v199_v9 = vld [vmem:[%s3614_s29 + $0x48] sm:$0xf]  ;;  %v201_v10 = vld [vmem:[%s3614_s29 + $0x50] sm:$0xf]  ;;  %198 = vst [vmem:[%s3621_s30 + $0x20] sm:$0xf] %v197_v8 }
  0x1b   : > { %200 = vst [vmem:[%s3621_s30 + $0x24] sm:$0xf] %v199_v9  ;;  %202 = vst [vmem:[%s3621_s30 + $0x28] sm:$0xf] %v201_v10  ;;  %v203_v11 = vld [vmem:[%s3614_s29 + $0x58] sm:$0xf] }
  0x1c   : > { %v205_v12 = vld [vmem:[%s3614_s29 + $0x60] sm:$0xf]  ;;  %v207_v13 = vld [vmem:[%s3614_s29 + $0x68] sm:$0xf]  ;;  %204 = vst [vmem:[%s3621_s30 + $0x2c] sm:$0xf] %v203_v11 }
  0x1d   : > { %206 = vst [vmem:[%s3621_s30 + $0x30] sm:$0xf] %v205_v12  ;;  %208 = vst [vmem:[%s3621_s30 + $0x34] sm:$0xf] %v207_v13  ;;  %v209_v14 = vld [vmem:[%s3614_s29 + $0x70] sm:$0xf] }
  0x1e   : > { %v211_v15 = vld [vmem:[%s3614_s29 + $0x78] sm:$0xf]  ;;  %v213_v16 = vld [vmem:[%s3614_s29 + $0x80] sm:$0xf]  ;;  %210 = vst [vmem:[%s3621_s30 + $0x38] sm:$0xf] %v209_v14 }
  0x1f   : > { %212 = vst [vmem:[%s3621_s30 + $0x3c] sm:$0xf] %v211_v15  ;;  %214 = vst [vmem:[%s3621_s30 + $0x40] sm:$0xf] %v213_v16  ;;  %v215_v17 = vld [vmem:[%s3614_s29 + $0x88] sm:$0xf] }
  0x20   : > { %v217_v18 = vld [vmem:[%s3614_s29 + $0x90] sm:$0xf]  ;;  %v219_v19 = vld [vmem:[%s3614_s29 + $0x98] sm:$0xf]  ;;  %216 = vst [vmem:[%s3621_s30 + $0x44] sm:$0xf] %v215_v17 }
  0x21   : > { %218 = vst [vmem:[%s3621_s30 + $0x48] sm:$0xf] %v217_v18  ;;  %220 = vst [vmem:[%s3621_s30 + $0x4c] sm:$0xf] %v219_v19  ;;  %v221_v20 = vld [vmem:[%s3614_s29 + $0xa0] sm:$0xf] }
  0x22   : > { %v223_v21 = vld [vmem:[%s3614_s29 + $0xa8] sm:$0xf]  ;;  %v225_v22 = vld [vmem:[%s3614_s29 + $0xb0] sm:$0xf]  ;;  %222 = vst [vmem:[%s3621_s30 + $0x50] sm:$0xf] %v221_v20 }
  0x23   : > { %224 = vst [vmem:[%s3621_s30 + $0x54] sm:$0xf] %v223_v21  ;;  %226 = vst [vmem:[%s3621_s30 + $0x58] sm:$0xf] %v225_v22  ;;  %v227_v23 = vld [vmem:[%s3614_s29 + $0xb8] sm:$0xf] }
  0x24   : > { %v229_v24 = vld [vmem:[%s3614_s29 + $0xc0] sm:$0xf]  ;;  %v231_v25 = vld [vmem:[%s3614_s29 + $0xc8] sm:$0xf]  ;;  %228 = vst [vmem:[%s3621_s30 + $0x5c] sm:$0xf] %v227_v23 }
  0x25   : > { %230 = vst [vmem:[%s3621_s30 + $0x60] sm:$0xf] %v229_v24  ;;  %232 = vst [vmem:[%s3621_s30 + $0x64] sm:$0xf] %v231_v25  ;;  %v233_v26 = vld [vmem:[%s3614_s29 + $0xd0] sm:$0xf] }
  0x26   : > { %v235_v27 = vld [vmem:[%s3614_s29 + $0xd8] sm:$0xf]  ;;  %v237_v28 = vld [vmem:[%s3614_s29 + $0xe0] sm:$0xf]  ;;  %234 = vst [vmem:[%s3621_s30 + $0x68] sm:$0xf] %v233_v26 }
  0x27   : > { %236 = vst [vmem:[%s3621_s30 + $0x6c] sm:$0xf] %v235_v27  ;;  %238 = vst [vmem:[%s3621_s30 + $0x70] sm:$0xf] %v237_v28  ;;  %v239_v29 = vld [vmem:[%s3614_s29 + $0xe8] sm:$0xf] }
  0x28   : > { %v241_v30 = vld [vmem:[%s3614_s29 + $0xf0] sm:$0xf]  ;;  %v243_v31 = vld [vmem:[%s3614_s29 + $0xf8] sm:$0xf]  ;;  %240 = vst [vmem:[%s3621_s30 + $0x74] sm:$0xf] %v239_v29 }
  0x29   : > { %242 = vst [vmem:[%s3621_s30 + $0x78] sm:$0xf] %v241_v30  ;;  %244 = vst [vmem:[%s3621_s30 + $0x7c] sm:$0xf] %v243_v31  ;;  %v245_v32 = vld [vmem:[%s3614_s29 + $0x100] sm:$0xf] }
  0x2a   : > { %v247_v33 = vld [vmem:[%s3614_s29 + $0x108] sm:$0xf]  ;;  %v249_v34 = vld [vmem:[%s3614_s29 + $0x110] sm:$0xf]  ;;  %246 = vst [vmem:[%s3621_s30 + $0x80] sm:$0xf] %v245_v32 }
  0x2b   : > { %248 = vst [vmem:[%s3621_s30 + $0x84] sm:$0xf] %v247_v33  ;;  %250 = vst [vmem:[%s3621_s30 + $0x88] sm:$0xf] %v249_v34  ;;  %v251_v35 = vld [vmem:[%s3614_s29 + $0x118] sm:$0xf] }
  0x2c   : > { %v253_v36 = vld [vmem:[%s3614_s29 + $0x120] sm:$0xf]  ;;  %v255_v37 = vld [vmem:[%s3614_s29 + $0x128] sm:$0xf]  ;;  %252 = vst [vmem:[%s3621_s30 + $0x8c] sm:$0xf] %v251_v35 }
  0x2d   : > { %254 = vst [vmem:[%s3621_s30 + $0x90] sm:$0xf] %v253_v36  ;;  %256 = vst [vmem:[%s3621_s30 + $0x94] sm:$0xf] %v255_v37  ;;  %v257_v38 = vld [vmem:[%s3614_s29 + $0x130] sm:$0xf] }
  0x2e   : > { %v259_v39 = vld [vmem:[%s3614_s29 + $0x138] sm:$0xf]  ;;  %v261_v40 = vld [vmem:[%s3614_s29 + $0x140] sm:$0xf]  ;;  %258 = vst [vmem:[%s3621_s30 + $0x98] sm:$0xf] %v257_v38 }
  0x2f   : > { %260 = vst [vmem:[%s3621_s30 + $0x9c] sm:$0xf] %v259_v39  ;;  %262 = vst [vmem:[%s3621_s30 + $0xa0] sm:$0xf] %v261_v40  ;;  %v263_v41 = vld [vmem:[%s3614_s29 + $0x148] sm:$0xf] }
  0x30   : > { %v265_v42 = vld [vmem:[%s3614_s29 + $0x150] sm:$0xf]  ;;  %v267_v43 = vld [vmem:[%s3614_s29 + $0x158] sm:$0xf]  ;;  %264 = vst [vmem:[%s3621_s30 + $0xa4] sm:$0xf] %v263_v41 }
  0x31   : > { %266 = vst [vmem:[%s3621_s30 + $0xa8] sm:$0xf] %v265_v42  ;;  %268 = vst [vmem:[%s3621_s30 + $0xac] sm:$0xf] %v267_v43  ;;  %v269_v44 = vld [vmem:[%s3614_s29 + $0x160] sm:$0xf] }
  0x32   : > { %v271_v45 = vld [vmem:[%s3614_s29 + $0x168] sm:$0xf]  ;;  %v273_v46 = vld [vmem:[%s3614_s29 + $0x170] sm:$0xf]  ;;  %270 = vst [vmem:[%s3621_s30 + $0xb0] sm:$0xf] %v269_v44 }
  0x33   : > { %272 = vst [vmem:[%s3621_s30 + $0xb4] sm:$0xf] %v271_v45  ;;  %274 = vst [vmem:[%s3621_s30 + $0xb8] sm:$0xf] %v273_v46  ;;  %v275_v47 = vld [vmem:[%s3614_s29 + $0x178] sm:$0xf] }
  0x34   : > { %v277_v48 = vld [vmem:[%s3614_s29 + $0x180] sm:$0xf]  ;;  %v279_v49 = vld [vmem:[%s3614_s29 + $0x188] sm:$0xf]  ;;  %276 = vst [vmem:[%s3621_s30 + $0xbc] sm:$0xf] %v275_v47 }
  0x35   : > { %278 = vst [vmem:[%s3621_s30 + $0xc0] sm:$0xf] %v277_v48  ;;  %280 = vst [vmem:[%s3621_s30 + $0xc4] sm:$0xf] %v279_v49  ;;  %v281_v50 = vld [vmem:[%s3614_s29 + $0x190] sm:$0xf] }
  0x36   : > { %v283_v51 = vld [vmem:[%s3614_s29 + $0x198] sm:$0xf]  ;;  %v285_v52 = vld [vmem:[%s3614_s29 + $0x1a0] sm:$0xf]  ;;  %282 = vst [vmem:[%s3621_s30 + $0xc8] sm:$0xf] %v281_v50 }
  0x37   : > { %284 = vst [vmem:[%s3621_s30 + $0xcc] sm:$0xf] %v283_v51  ;;  %286 = vst [vmem:[%s3621_s30 + $0xd0] sm:$0xf] %v285_v52  ;;  %v287_v53 = vld [vmem:[%s3614_s29 + $0x1a8] sm:$0xf] }
  0x38   : > { %v289_v54 = vld [vmem:[%s3614_s29 + $0x1b0] sm:$0xf]  ;;  %v291_v55 = vld [vmem:[%s3614_s29 + $0x1b8] sm:$0xf]  ;;  %288 = vst [vmem:[%s3621_s30 + $0xd4] sm:$0xf] %v287_v53 }
  0x39   : > { %290 = vst [vmem:[%s3621_s30 + $0xd8] sm:$0xf] %v289_v54  ;;  %292 = vst [vmem:[%s3621_s30 + $0xdc] sm:$0xf] %v291_v55  ;;  %v293_v56 = vld [vmem:[%s3614_s29 + $0x1c0] sm:$0xf] }
  0x3a   : > { %v295_v57 = vld [vmem:[%s3614_s29 + $0x1c8] sm:$0xf]  ;;  %v297_v58 = vld [vmem:[%s3614_s29 + $0x1d0] sm:$0xf]  ;;  %294 = vst [vmem:[%s3621_s30 + $0xe0] sm:$0xf] %v293_v56 }
  0x3b   : > { %296 = vst [vmem:[%s3621_s30 + $0xe4] sm:$0xf] %v295_v57  ;;  %298 = vst [vmem:[%s3621_s30 + $0xe8] sm:$0xf] %v297_v58  ;;  %v299_v59 = vld [vmem:[%s3614_s29 + $0x1d8] sm:$0xf] }
  0x3c   : > { %v301_v60 = vld [vmem:[%s3614_s29 + $0x1e0] sm:$0xf]  ;;  %v303_v61 = vld [vmem:[%s3614_s29 + $0x1e8] sm:$0xf]  ;;  %300 = vst [vmem:[%s3621_s30 + $0xec] sm:$0xf] %v299_v59 }
  0x3d   : > { %302 = vst [vmem:[%s3621_s30 + $0xf0] sm:$0xf] %v301_v60  ;;  %304 = vst [vmem:[%s3621_s30 + $0xf4] sm:$0xf] %v303_v61  ;;  %v305_v62 = vld [vmem:[%s3614_s29 + $0x1f0] sm:$0xf] }
  0x3e   : > { %v307_v63 = vld [vmem:[%s3614_s29 + $0x1f8] sm:$0xf]  ;;  %v309_v0 = vld [vmem:[%s3614_s29 + $0x200] sm:$0xf]  ;;  %306 = vst [vmem:[%s3621_s30 + $0xf8] sm:$0xf] %v305_v62 }
  0x3f   : > { %308 = vst [vmem:[%s3621_s30 + $0xfc] sm:$0xf] %v307_v63  ;;  %310 = vst [vmem:[%s3621_s30 + $0x100] sm:$0xf] %v309_v0  ;;  %v311_v1 = vld [vmem:[%s3614_s29 + $0x208] sm:$0xf] }
  0x40   : > { %v313_v2 = vld [vmem:[%s3614_s29 + $0x210] sm:$0xf]  ;;  %v315_v3 = vld [vmem:[%s3614_s29 + $0x218] sm:$0xf]  ;;  %312 = vst [vmem:[%s3621_s30 + $0x104] sm:$0xf] %v311_v1 }
  0x41   : > { %314 = vst [vmem:[%s3621_s30 + $0x108] sm:$0xf] %v313_v2  ;;  %316 = vst [vmem:[%s3621_s30 + $0x10c] sm:$0xf] %v315_v3  ;;  %v317_v4 = vld [vmem:[%s3614_s29 + $0x220] sm:$0xf] }
  0x42   : > { %v319_v5 = vld [vmem:[%s3614_s29 + $0x228] sm:$0xf]  ;;  %v321_v6 = vld [vmem:[%s3614_s29 + $0x230] sm:$0xf]  ;;  %318 = vst [vmem:[%s3621_s30 + $0x110] sm:$0xf] %v317_v4 }
  0x43   : > { %320 = vst [vmem:[%s3621_s30 + $0x114] sm:$0xf] %v319_v5  ;;  %322 = vst [vmem:[%s3621_s30 + $0x118] sm:$0xf] %v321_v6  ;;  %v323_v7 = vld [vmem:[%s3614_s29 + $0x238] sm:$0xf] }
  0x44   : > { %v325_v8 = vld [vmem:[%s3614_s29 + $0x240] sm:$0xf]  ;;  %v327_v9 = vld [vmem:[%s3614_s29 + $0x248] sm:$0xf]  ;;  %324 = vst [vmem:[%s3621_s30 + $0x11c] sm:$0xf] %v323_v7 }
  0x45   : > { %326 = vst [vmem:[%s3621_s30 + $0x120] sm:$0xf] %v325_v8  ;;  %328 = vst [vmem:[%s3621_s30 + $0x124] sm:$0xf] %v327_v9  ;;  %v329_v10 = vld [vmem:[%s3614_s29 + $0x250] sm:$0xf] }
  0x46   : > { %v331_v11 = vld [vmem:[%s3614_s29 + $0x258] sm:$0xf]  ;;  %v333_v12 = vld [vmem:[%s3614_s29 + $0x260] sm:$0xf]  ;;  %330 = vst [vmem:[%s3621_s30 + $0x128] sm:$0xf] %v329_v10 }
  0x47   : > { %332 = vst [vmem:[%s3621_s30 + $0x12c] sm:$0xf] %v331_v11  ;;  %334 = vst [vmem:[%s3621_s30 + $0x130] sm:$0xf] %v333_v12  ;;  %v335_v13 = vld [vmem:[%s3614_s29 + $0x268] sm:$0xf] }
  0x48   : > { %v337_v14 = vld [vmem:[%s3614_s29 + $0x270] sm:$0xf]  ;;  %v339_v15 = vld [vmem:[%s3614_s29 + $0x278] sm:$0xf]  ;;  %336 = vst [vmem:[%s3621_s30 + $0x134] sm:$0xf] %v335_v13 }
  0x49   : > { %338 = vst [vmem:[%s3621_s30 + $0x138] sm:$0xf] %v337_v14  ;;  %340 = vst [vmem:[%s3621_s30 + $0x13c] sm:$0xf] %v339_v15  ;;  %v341_v16 = vld [vmem:[%s3614_s29 + $0x280] sm:$0xf] }
  0x4a   : > { %v343_v17 = vld [vmem:[%s3614_s29 + $0x288] sm:$0xf]  ;;  %v345_v18 = vld [vmem:[%s3614_s29 + $0x290] sm:$0xf]  ;;  %342 = vst [vmem:[%s3621_s30 + $0x140] sm:$0xf] %v341_v16 }
  0x4b   : > { %344 = vst [vmem:[%s3621_s30 + $0x144] sm:$0xf] %v343_v17  ;;  %346 = vst [vmem:[%s3621_s30 + $0x148] sm:$0xf] %v345_v18  ;;  %v347_v19 = vld [vmem:[%s3614_s29 + $0x298] sm:$0xf] }
  0x4c   : > { %v349_v20 = vld [vmem:[%s3614_s29 + $0x2a0] sm:$0xf]  ;;  %v351_v21 = vld [vmem:[%s3614_s29 + $0x2a8] sm:$0xf]  ;;  %348 = vst [vmem:[%s3621_s30 + $0x14c] sm:$0xf] %v347_v19 }
  0x4d   : > { %350 = vst [vmem:[%s3621_s30 + $0x150] sm:$0xf] %v349_v20  ;;  %352 = vst [vmem:[%s3621_s30 + $0x154] sm:$0xf] %v351_v21  ;;  %v353_v22 = vld [vmem:[%s3614_s29 + $0x2b0] sm:$0xf] }
  0x4e   : > { %v355_v23 = vld [vmem:[%s3614_s29 + $0x2b8] sm:$0xf]  ;;  %v357_v24 = vld [vmem:[%s3614_s29 + $0x2c0] sm:$0xf]  ;;  %354 = vst [vmem:[%s3621_s30 + $0x158] sm:$0xf] %v353_v22 }
  0x4f   : > { %356 = vst [vmem:[%s3621_s30 + $0x15c] sm:$0xf] %v355_v23  ;;  %358 = vst [vmem:[%s3621_s30 + $0x160] sm:$0xf] %v357_v24  ;;  %v359_v25 = vld [vmem:[%s3614_s29 + $0x2c8] sm:$0xf] }
  0x50   : > { %v361_v26 = vld [vmem:[%s3614_s29 + $0x2d0] sm:$0xf]  ;;  %v363_v27 = vld [vmem:[%s3614_s29 + $0x2d8] sm:$0xf]  ;;  %360 = vst [vmem:[%s3621_s30 + $0x164] sm:$0xf] %v359_v25 }
  0x51   : > { %362 = vst [vmem:[%s3621_s30 + $0x168] sm:$0xf] %v361_v26  ;;  %364 = vst [vmem:[%s3621_s30 + $0x16c] sm:$0xf] %v363_v27  ;;  %v365_v28 = vld [vmem:[%s3614_s29 + $0x2e0] sm:$0xf] }
  0x52   : > { %v367_v29 = vld [vmem:[%s3614_s29 + $0x2e8] sm:$0xf]  ;;  %v369_v30 = vld [vmem:[%s3614_s29 + $0x2f0] sm:$0xf]  ;;  %366 = vst [vmem:[%s3621_s30 + $0x170] sm:$0xf] %v365_v28 }
  0x53   : > { %368 = vst [vmem:[%s3621_s30 + $0x174] sm:$0xf] %v367_v29  ;;  %370 = vst [vmem:[%s3621_s30 + $0x178] sm:$0xf] %v369_v30  ;;  %v371_v31 = vld [vmem:[%s3614_s29 + $0x2f8] sm:$0xf] }
  0x54   : > { %v373_v32 = vld [vmem:[%s3614_s29 + $0x300] sm:$0xf]  ;;  %v375_v33 = vld [vmem:[%s3614_s29 + $0x308] sm:$0xf]  ;;  %372 = vst [vmem:[%s3621_s30 + $0x17c] sm:$0xf] %v371_v31 }
  0x55   : > { %374 = vst [vmem:[%s3621_s30 + $0x180] sm:$0xf] %v373_v32  ;;  %376 = vst [vmem:[%s3621_s30 + $0x184] sm:$0xf] %v375_v33  ;;  %v377_v34 = vld [vmem:[%s3614_s29 + $0x310] sm:$0xf] }
  0x56   : > { %v379_v35 = vld [vmem:[%s3614_s29 + $0x318] sm:$0xf]  ;;  %v381_v36 = vld [vmem:[%s3614_s29 + $0x320] sm:$0xf]  ;;  %378 = vst [vmem:[%s3621_s30 + $0x188] sm:$0xf] %v377_v34 }
  0x57   : > { %380 = vst [vmem:[%s3621_s30 + $0x18c] sm:$0xf] %v379_v35  ;;  %382 = vst [vmem:[%s3621_s30 + $0x190] sm:$0xf] %v381_v36  ;;  %v383_v37 = vld [vmem:[%s3614_s29 + $0x328] sm:$0xf] }
  0x58   : > { %v385_v38 = vld [vmem:[%s3614_s29 + $0x330] sm:$0xf]  ;;  %v387_v39 = vld [vmem:[%s3614_s29 + $0x338] sm:$0xf]  ;;  %384 = vst [vmem:[%s3621_s30 + $0x194] sm:$0xf] %v383_v37 }
  0x59   : > { %386 = vst [vmem:[%s3621_s30 + $0x198] sm:$0xf] %v385_v38  ;;  %388 = vst [vmem:[%s3621_s30 + $0x19c] sm:$0xf] %v387_v39  ;;  %v389_v40 = vld [vmem:[%s3614_s29 + $0x340] sm:$0xf] }
  0x5a   : > { %v391_v41 = vld [vmem:[%s3614_s29 + $0x348] sm:$0xf]  ;;  %v393_v42 = vld [vmem:[%s3614_s29 + $0x350] sm:$0xf]  ;;  %390 = vst [vmem:[%s3621_s30 + $0x1a0] sm:$0xf] %v389_v40 }
  0x5b   : > { %392 = vst [vmem:[%s3621_s30 + $0x1a4] sm:$0xf] %v391_v41  ;;  %394 = vst [vmem:[%s3621_s30 + $0x1a8] sm:$0xf] %v393_v42  ;;  %v395_v43 = vld [vmem:[%s3614_s29 + $0x358] sm:$0xf] }
  0x5c   : > { %v397_v44 = vld [vmem:[%s3614_s29 + $0x360] sm:$0xf]  ;;  %v399_v45 = vld [vmem:[%s3614_s29 + $0x368] sm:$0xf]  ;;  %396 = vst [vmem:[%s3621_s30 + $0x1ac] sm:$0xf] %v395_v43 }
  0x5d   : > { %398 = vst [vmem:[%s3621_s30 + $0x1b0] sm:$0xf] %v397_v44  ;;  %400 = vst [vmem:[%s3621_s30 + $0x1b4] sm:$0xf] %v399_v45  ;;  %v401_v46 = vld [vmem:[%s3614_s29 + $0x370] sm:$0xf] }
  0x5e   : > { %v403_v47 = vld [vmem:[%s3614_s29 + $0x378] sm:$0xf]  ;;  %v405_v48 = vld [vmem:[%s3614_s29 + $0x380] sm:$0xf]  ;;  %402 = vst [vmem:[%s3621_s30 + $0x1b8] sm:$0xf] %v401_v46 }
  0x5f   : > { %404 = vst [vmem:[%s3621_s30 + $0x1bc] sm:$0xf] %v403_v47  ;;  %406 = vst [vmem:[%s3621_s30 + $0x1c0] sm:$0xf] %v405_v48  ;;  %v407_v49 = vld [vmem:[%s3614_s29 + $0x388] sm:$0xf] }
  0x60   : > { %v409_v50 = vld [vmem:[%s3614_s29 + $0x390] sm:$0xf]  ;;  %v411_v51 = vld [vmem:[%s3614_s29 + $0x398] sm:$0xf]  ;;  %408 = vst [vmem:[%s3621_s30 + $0x1c4] sm:$0xf] %v407_v49 }
  0x61   : > { %410 = vst [vmem:[%s3621_s30 + $0x1c8] sm:$0xf] %v409_v50  ;;  %412 = vst [vmem:[%s3621_s30 + $0x1cc] sm:$0xf] %v411_v51  ;;  %v413_v52 = vld [vmem:[%s3614_s29 + $0x3a0] sm:$0xf] }
  0x62   : > { %v415_v53 = vld [vmem:[%s3614_s29 + $0x3a8] sm:$0xf]  ;;  %v417_v54 = vld [vmem:[%s3614_s29 + $0x3b0] sm:$0xf]  ;;  %414 = vst [vmem:[%s3621_s30 + $0x1d0] sm:$0xf] %v413_v52 }
  0x63   : > { %416 = vst [vmem:[%s3621_s30 + $0x1d4] sm:$0xf] %v415_v53  ;;  %418 = vst [vmem:[%s3621_s30 + $0x1d8] sm:$0xf] %v417_v54  ;;  %v419_v55 = vld [vmem:[%s3614_s29 + $0x3b8] sm:$0xf] }
  0x64   : > { %v421_v56 = vld [vmem:[%s3614_s29 + $0x3c0] sm:$0xf]  ;;  %v423_v57 = vld [vmem:[%s3614_s29 + $0x3c8] sm:$0xf]  ;;  %420 = vst [vmem:[%s3621_s30 + $0x1dc] sm:$0xf] %v419_v55 }
  0x65   : > { %422 = vst [vmem:[%s3621_s30 + $0x1e0] sm:$0xf] %v421_v56  ;;  %424 = vst [vmem:[%s3621_s30 + $0x1e4] sm:$0xf] %v423_v57  ;;  %v425_v58 = vld [vmem:[%s3614_s29 + $0x3d0] sm:$0xf] }
  0x66   : > { %v427_v59 = vld [vmem:[%s3614_s29 + $0x3d8] sm:$0xf]  ;;  %v429_v60 = vld [vmem:[%s3614_s29 + $0x3e0] sm:$0xf]  ;;  %426 = vst [vmem:[%s3621_s30 + $0x1e8] sm:$0xf] %v425_v58 }
  0x67   : > { %428 = vst [vmem:[%s3621_s30 + $0x1ec] sm:$0xf] %v427_v59  ;;  %430 = vst [vmem:[%s3621_s30 + $0x1f0] sm:$0xf] %v429_v60  ;;  %v431_v61 = vld [vmem:[%s3614_s29 + $0x3e8] sm:$0xf] }
  0x68   : > { %v433_v62 = vld [vmem:[%s3614_s29 + $0x3f0] sm:$0xf]  ;;  %v435_v63 = vld [vmem:[%s3614_s29 + $0x3f8] sm:$0xf]  ;;  %432 = vst [vmem:[%s3621_s30 + $0x1f4] sm:$0xf] %v431_v61 }
  0x69   : > { %434 = vst [vmem:[%s3621_s30 + $0x1f8] sm:$0xf] %v433_v62  ;;  %436 = vst [vmem:[%s3621_s30 + $0x1fc] sm:$0xf] %v435_v63  ;;  %v437_v0 = vld [vmem:[%s3614_s29 + $0x400] sm:$0xf] }
  0x6a   : > { %v439_v1 = vld [vmem:[%s3614_s29 + $0x408] sm:$0xf]  ;;  %v441_v2 = vld [vmem:[%s3614_s29 + $0x410] sm:$0xf]  ;;  %438 = vst [vmem:[%s3621_s30 + $0x200] sm:$0xf] %v437_v0 }
  0x6b   : > { %440 = vst [vmem:[%s3621_s30 + $0x204] sm:$0xf] %v439_v1  ;;  %442 = vst [vmem:[%s3621_s30 + $0x208] sm:$0xf] %v441_v2  ;;  %v443_v3 = vld [vmem:[%s3614_s29 + $0x418] sm:$0xf] }
  0x6c   : > { %v445_v4 = vld [vmem:[%s3614_s29 + $0x420] sm:$0xf]  ;;  %v447_v5 = vld [vmem:[%s3614_s29 + $0x428] sm:$0xf]  ;;  %444 = vst [vmem:[%s3621_s30 + $0x20c] sm:$0xf] %v443_v3 }
  0x6d   : > { %446 = vst [vmem:[%s3621_s30 + $0x210] sm:$0xf] %v445_v4  ;;  %448 = vst [vmem:[%s3621_s30 + $0x214] sm:$0xf] %v447_v5  ;;  %v449_v6 = vld [vmem:[%s3614_s29 + $0x430] sm:$0xf] }
  0x6e   : > { %v451_v7 = vld [vmem:[%s3614_s29 + $0x438] sm:$0xf]  ;;  %v453_v8 = vld [vmem:[%s3614_s29 + $0x440] sm:$0xf]  ;;  %450 = vst [vmem:[%s3621_s30 + $0x218] sm:$0xf] %v449_v6 }
  0x6f   : > { %452 = vst [vmem:[%s3621_s30 + $0x21c] sm:$0xf] %v451_v7  ;;  %454 = vst [vmem:[%s3621_s30 + $0x220] sm:$0xf] %v453_v8  ;;  %v455_v9 = vld [vmem:[%s3614_s29 + $0x448] sm:$0xf] }
  0x70   : > { %v457_v10 = vld [vmem:[%s3614_s29 + $0x450] sm:$0xf]  ;;  %v459_v11 = vld [vmem:[%s3614_s29 + $0x458] sm:$0xf]  ;;  %456 = vst [vmem:[%s3621_s30 + $0x224] sm:$0xf] %v455_v9 }
  0x71   : > { %458 = vst [vmem:[%s3621_s30 + $0x228] sm:$0xf] %v457_v10  ;;  %460 = vst [vmem:[%s3621_s30 + $0x22c] sm:$0xf] %v459_v11  ;;  %v461_v12 = vld [vmem:[%s3614_s29 + $0x460] sm:$0xf] }
  0x72   : > { %v463_v13 = vld [vmem:[%s3614_s29 + $0x468] sm:$0xf]  ;;  %v465_v14 = vld [vmem:[%s3614_s29 + $0x470] sm:$0xf]  ;;  %462 = vst [vmem:[%s3621_s30 + $0x230] sm:$0xf] %v461_v12 }
  0x73   : > { %464 = vst [vmem:[%s3621_s30 + $0x234] sm:$0xf] %v463_v13  ;;  %466 = vst [vmem:[%s3621_s30 + $0x238] sm:$0xf] %v465_v14  ;;  %v467_v15 = vld [vmem:[%s3614_s29 + $0x478] sm:$0xf] }
  0x74   : > { %468 = vst [vmem:[%s3621_s30 + $0x23c] sm:$0xf] %v467_v15 }
  0x75 PF: > { %p2771_p7 = scmp.ge.s32.totalorder %s3546_s17, 1  ;;  %p790_p8 = scmp.lt.s32.totalorder %s3546_s17, 3 }
  0x77   : > { %p791_p9 = pnand %p2771_p7, %p790_p8 }
  0x78   : > { %s797_s5 = sand.u32 (!%p791_p9), 1, %s3538_s15   ;;  %v3380_v16 = vld [vmem:[%s4443_s0 + $0x4] ss:$36 sps:$4 sm:$0xff] (!%p791_p9)   ;;  %v3383_v17 = vld [vmem:[%s4443_s0 + $0xc] ss:$36 sps:$4 sm:$0xff] (!%p791_p9)   ;;  %p827_p10 = scmp.lt.s32.totalorder (!%p791_p9), %s3589_s18, 1 }
  0x79   : > { %794 = sbr.rel (%p791_p9) target bundleno = 612 (0x264), region = 73  ;;  %1890 = vmatprep.mubr.bf16.mxu0 (!%p791_p9), %v3380_v16  ;;  %1987 = vmatprep.mubr.bf16.mxu1 (!%p791_p9), %v3383_v17  ;;  %v3378_v48 = vld [vmem:[%s4443_s0] ss:$36 sps:$4 sm:$0xff] (!%p791_p9)   ;;  %v3381_v50 = vld [vmem:[%s4443_s0 + $0x8] ss:$36 sps:$4 sm:$0xff] (!%p791_p9)   ;;  %s4382_s12 = sshll.u32 (!%p791_p9), %s797_s5, 6 }
  0x7a   : > { %s3321_s6 = smul.u32 (!%p791_p9), 576, %s797_s5  ;;  %v3386_v52 = vld [vmem:[%s4443_s0 + $0x4c] ss:$36 sps:$4 sm:$0xff] (!%p791_p9)   ;;  %v3388_v55 = vld [vmem:[%s4443_s0 + $0x54] ss:$36 sps:$4 sm:$0xff] (!%p791_p9)   ;;  %s4401_s15 = scalar_lea.vmem (!%p791_p9), [#allocation3], %s4382_s12 }
  0x7b   : > { %v3390_v58 = vld [vmem:[%s4443_s0 + $0x48] ss:$36 sps:$4 sm:$0xff] (!%p791_p9)   ;;  %v3391_v59 = vld [vmem:[%s4443_s0 + $0x50] ss:$36 sps:$4 sm:$0xff] (!%p791_p9)   ;;  %v3396_v61 = vld [vmem:[%s4443_s0 + $0x9c] ss:$36 sps:$4 sm:$0xff] (!%p791_p9)  }
  0x7c   : > { %s3917_s11 = scalar_lea.vmem (!%p791_p9), [#allocation2], %s3321_s6  ;;  %v3394_v60 = vld [vmem:[%s4443_s0 + $0x94] ss:$36 sps:$4 sm:$0xff] (!%p791_p9)   ;;  %v3404_v4 = vld [vmem:[%s4443_s0 + $0xdc] ss:$36 sps:$4 sm:$0xff] (!%p791_p9)  }
  0x7d   : > { %v3346_v18 = vld [vmem:[%s3917_s11 + $0x40] sm:$0xff] (!%p791_p9)   ;;  %v3350_v22 = vld [vmem:[%s3917_s11 + $0x48] sm:$0xff] (!%p791_p9)   ;;  %v3354_v26 = vld [vmem:[%s3917_s11 + $0x50] sm:$0xff] (!%p791_p9)  }
  0x7e   : > { %v3347_v19 = vld [vmem:[%s3917_s11 + $0xc0] sm:$0xff] (!%p791_p9)   ;;  %3000 = vmatprep.subr.bf16.mxu0 (!%p791_p9), %v3346_v18  ;;  %v3351_v23 = vld [vmem:[%s3917_s11 + $0xc8] sm:$0xff] (!%p791_p9)   ;;  %v3355_v27 = vld [vmem:[%s3917_s11 + $0xd0] sm:$0xff] (!%p791_p9)  }
  0x7f   : > { %v3348_v20 = vld [vmem:[%s3917_s11] sm:$0xff] (!%p791_p9)   ;;  %3064 = vmatprep.subr.bf16.mxu1 (!%p791_p9), %v3347_v19  ;;  %v3352_v24 = vld [vmem:[%s3917_s11 + $0x8] sm:$0xff] (!%p791_p9)   ;;  %v3356_v28 = vld [vmem:[%s3917_s11 + $0x10] sm:$0xff] (!%p791_p9)  }
  0x80   : > { %v3349_v21 = vld [vmem:[%s3917_s11 + $0x80] sm:$0xff]   ;;  %3001 = vmatpush3.bf16.msra.mxu0 %v3348_v20  ;;  %v3353_v25 = vld [vmem:[%s3917_s11 + $0x88] sm:$0xff]   ;;  %v3357_v29 = vld [vmem:[%s3917_s11 + $0x90] sm:$0xff]   ;;  %s2934_s5 = sshll.u32 (%p3604_p5), %s3589_s18, 2 }
  0x81   : > { %3065 = vmatpush3.bf16.msra.mxu1 %v3349_v21  ;;  %3002 = vmatprep.subr.bf16.mxu0 %v3350_v22  ;;  %v3358_v30 = vld [vmem:[%s3917_s11 + $0x58] sm:$0xff]   ;;  %v3362_v34 = vld [vmem:[%s3917_s11 + $0x60] sm:$0xff]   ;;  %v3366_v38 = vld [vmem:[%s3917_s11 + $0x68] sm:$0xff]   ;;  %s2592_s17 = scalar_lea.vmem (%p3604_p5), %s4447_s4, %s2934_s5 }
  0x82   : > { %3066 = vmatprep.subr.bf16.mxu1 %v3351_v23  ;;  %v3359_v31 = vld [vmem:[%s3917_s11 + $0xd8] sm:$0xff]   ;;  %v3363_v35 = vld [vmem:[%s3917_s11 + $0xe0] sm:$0xff]   ;;  %v3367_v39 = vld [vmem:[%s3917_s11 + $0xe8] sm:$0xff]  }
  0x83   : > { %v3360_v32 = vld [vmem:[%s3917_s11 + $0x18] sm:$0xff]   ;;  %v3364_v36 = vld [vmem:[%s3917_s11 + $0x20] sm:$0xff]   ;;  %v3368_v40 = vld [vmem:[%s3917_s11 + $0x28] sm:$0xff]  }
  0x84   : > { %3003 = vmatpush3.bf16.msra.mxu0 %v3352_v24  ;;  %v3361_v33 = vld [vmem:[%s3917_s11 + $0x98] sm:$0xff]   ;;  %v3365_v37 = vld [vmem:[%s3917_s11 + $0xa0] sm:$0xff]   ;;  %v3369_v41 = vld [vmem:[%s3917_s11 + $0xa8] sm:$0xff]  }
  0x85   : > { %3067 = vmatpush3.bf16.msra.mxu1 %v3353_v25  ;;  %3004 = vmatprep.subr.bf16.mxu0 %v3354_v26  ;;  %v3370_v42 = vld [vmem:[%s3917_s11 + $0x70] sm:$0xff]   ;;  %v3374_v46 = vld [vmem:[%s3917_s11 + $0x78] sm:$0xff]   ;;  %v3384_v53 = vld [vmem:[%s3917_s11 + $0x140] sm:$0xff]  }
  0x86   : > { %3068 = vmatprep.subr.bf16.mxu1 %v3355_v27  ;;  %v3371_v43 = vld [vmem:[%s3917_s11 + $0xf0] sm:$0xff]   ;;  %v3375_v47 = vld [vmem:[%s3917_s11 + $0xf8] sm:$0xff]   ;;  %v3385_v54 = vld [vmem:[%s3917_s11 + $0x100] sm:$0xff]  }
  0x87   : > { %v3372_v44 = vld [vmem:[%s3917_s11 + $0x30] sm:$0xff]   ;;  %v3376_v49 = vld [vmem:[%s3917_s11 + $0x38] sm:$0xff]   ;;  %v3392_v56 = vld [vmem:[%s3917_s11 + $0x148] sm:$0xff]  }
  0x88   : > { %3005 = vmatpush3.bf16.msra.mxu0 %v3356_v28  ;;  %v3373_v45 = vld [vmem:[%s3917_s11 + $0xb0] sm:$0xff]   ;;  %v3377_v51 = vld [vmem:[%s3917_s11 + $0xb8] sm:$0xff]   ;;  %v3393_v57 = vld [vmem:[%s3917_s11 + $0x108] sm:$0xff]  }
  0x89   : > { %3069 = vmatpush3.bf16.msra.mxu1 %v3357_v29  ;;  %3006 = vmatprep.subr.bf16.mxu0 %v3358_v30  ;;  %v3400_v62 = vld [vmem:[%s3917_s11 + $0x150] sm:$0xff]   ;;  %v3401_v63 = vld [vmem:[%s3917_s11 + $0x1c0] sm:$0xff]   ;;  %v3399_v3 = vld [vmem:[%s4443_s0 + $0x98] ss:$36 sps:$4 sm:$0xff]  }
  0x8a   : > { %3070 = vmatprep.subr.bf16.mxu1 %v3359_v31  ;;  %v3402_v0 = vld [vmem:[%s3917_s11 + $0x110] sm:$0xff]   ;;  %v3403_v1 = vld [vmem:[%s3917_s11 + $0x180] sm:$0xff]   ;;  %v3410_v6 = vld [vmem:[%s3917_s11 + $0x158] sm:$0xff]  }
  0x8b   : > { %v3398_v2 = vld [vmem:[%s4443_s0 + $0x90] ss:$36 sps:$4 sm:$0xff]   ;;  %v3406_v5 = vld [vmem:[%s4443_s0 + $0xe4] ss:$36 sps:$4 sm:$0xff]   ;;  %v3412_v8 = vld [vmem:[%s3917_s11 + $0x118] sm:$0xff]  }
  0x8c   : > { %3007 = vmatpush3.bf16.msra.mxu0 %v3360_v32  ;;  %v3411_v7 = vld [vmem:[%s3917_s11 + $0x1c8] sm:$0xff]   ;;  %v3408_v10 = vld [vmem:[%s4443_s0 + $0xd8] ss:$36 sps:$4 sm:$0xff]   ;;  %v3409_v11 = vld [vmem:[%s4443_s0 + $0xe0] ss:$36 sps:$4 sm:$0xff]  }
  0x8d   : > { %3071 = vmatpush3.bf16.msra.mxu1 %v3361_v33  ;;  %3008 = vmatprep.subr.bf16.mxu0 %v3362_v34  ;;  %v3413_v9 = vld [vmem:[%s3917_s11 + $0x188] sm:$0xff]   ;;  %v3420_v13 = vld [vmem:[%s3917_s11 + $0x160] sm:$0xff]   ;;  %v3421_v15 = vld [vmem:[%s3917_s11 + $0x1d0] sm:$0xff]  }
  0x8e   : > { %3072 = vmatprep.subr.bf16.mxu1 %v3363_v35  ;;  %v3414_v12 = vld [vmem:[%s4443_s0 + $0x124] ss:$36 sps:$4 sm:$0xff]   ;;  %v3416_v14 = vld [vmem:[%s4443_s0 + $0x12c] ss:$36 sps:$4 sm:$0xff]   ;;  %v3431_v20 = vld [vmem:[%s3917_s11 + $0x1d8] sm:$0xff]  }
  0x8f   : > { %v3422_v16 = vld [vmem:[%s3917_s11 + $0x120] sm:$0xff]   ;;  %v3423_v17 = vld [vmem:[%s3917_s11 + $0x190] sm:$0xff]   ;;  %v3430_v18 = vld [vmem:[%s3917_s11 + $0x168] sm:$0xff]  }
  0x90   : > { %3009 = vmatpush3.bf16.msra.mxu0 %v3364_v36  ;;  %v3418_v19 = vld [vmem:[%s4443_s0 + $0x120] ss:$36 sps:$4 sm:$0xff]   ;;  %v3419_v21 = vld [vmem:[%s4443_s0 + $0x128] ss:$36 sps:$4 sm:$0xff]   ;;  %v3433_v23 = vld [vmem:[%s3917_s11 + $0x198] sm:$0xff]  }
  0x91   : > { %3073 = vmatpush3.bf16.msra.mxu1 %v3365_v37  ;;  %3010 = vmatprep.subr.bf16.mxu0 %v3366_v38  ;;  %v3432_v22 = vld [vmem:[%s3917_s11 + $0x128] sm:$0xff]   ;;  %v3426_v25 = vld [vmem:[%s4443_s0 + $0x174] ss:$36 sps:$4 sm:$0xff]   ;;  %v3441_v27 = vld [vmem:[%s3917_s11 + $0x1e0] sm:$0xff]  }
  0x92   : > { %3074 = vmatprep.subr.bf16.mxu1 %v3367_v39  ;;  %v3424_v24 = vld [vmem:[%s4443_s0 + $0x16c] ss:$36 sps:$4 sm:$0xff]   ;;  %v3434_v31 = vld [vmem:[%s4443_s0 + $0x1b4] ss:$36 sps:$4 sm:$0xff]   ;;  %v3443_v32 = vld [vmem:[%s3917_s11 + $0x1a0] sm:$0xff]  }
  0x93   : > { %v3440_v26 = vld [vmem:[%s3917_s11 + $0x170] sm:$0xff]   ;;  %v3428_v28 = vld [vmem:[%s4443_s0 + $0x168] ss:$36 sps:$4 sm:$0xff]   ;;  %v3436_v34 = vld [vmem:[%s4443_s0 + $0x1bc] ss:$36 sps:$4 sm:$0xff]  }
  0x94   : > { %3011 = vmatpush3.bf16.msra.mxu0 %v3368_v40  ;;  %v3442_v29 = vld [vmem:[%s3917_s11 + $0x130] sm:$0xff]   ;;  %v3444_v33 = vld [vmem:[%s3917_s11 + $0x1e8] sm:$0xff]   ;;  %v3452_v36 = vld [vmem:[%s3917_s11 + $0x178] sm:$0xff]  }
  0x95   : > { %3075 = vmatpush3.bf16.msra.mxu1 %v3369_v41  ;;  %3012 = vmatprep.subr.bf16.mxu0 %v3370_v42  ;;  %v3429_v30 = vld [vmem:[%s4443_s0 + $0x170] ss:$36 sps:$4 sm:$0xff]   ;;  %v3445_v35 = vld [vmem:[%s3917_s11 + $0x1a8] sm:$0xff]   ;;  %v3439_v39 = vld [vmem:[%s4443_s0 + $0x1b8] ss:$36 sps:$4 sm:$0xff]  }
  0x96   : > { %3076 = vmatprep.subr.bf16.mxu1 %v3371_v43  ;;  %v3438_v37 = vld [vmem:[%s4443_s0 + $0x1b0] ss:$36 sps:$4 sm:$0xff]   ;;  %v3446_v40 = vld [vmem:[%s4443_s0 + $0x1fc] ss:$36 sps:$4 sm:$0xff]   ;;  %v3448_v42 = vld [vmem:[%s4443_s0 + $0x204] ss:$36 sps:$4 sm:$0xff]  }
  0x97   : > { %v3453_v38 = vld [vmem:[%s3917_s11 + $0x1f0] sm:$0xff]   ;;  %v3454_v41 = vld [vmem:[%s3917_s11 + $0x138] sm:$0xff]  }
  0x98   : > { %3013 = vmatpush3.bf16.msra.mxu0 %v3372_v44  ;;  %v3455_v43 = vld [vmem:[%s3917_s11 + $0x1b0] sm:$0xff]   ;;  %v3456_v44 = vld [vmem:[%s3917_s11 + $0x1f8] sm:$0xff]  }
  0x99   : > { %3077 = vmatpush3.bf16.msra.mxu1 %v3373_v45  ;;  %3014 = vmatprep.subr.bf16.mxu0 %v3374_v46  ;;  %v3457_v45 = vld [vmem:[%s3917_s11 + $0x1b8] sm:$0xff]   ;;  %v3464_v46 = vld [vmem:[%s3917_s11 + $0x200] sm:$0xff]  }
  0x9a   : > { %3078 = vmatprep.subr.bf16.mxu1 %v3375_v47  ;;  %v3450_v47 = vld [vmem:[%s4443_s0 + $0x1f8] ss:$36 sps:$4 sm:$0xff]  }
  0x9c   : > { %3015 = vmatpush3.bf16.msra.mxu0 %v3376_v49  ;;  %v3460_v49 = vld [vmem:[%s4443_s0 + $0x14] ss:$36 sps:$4 sm:$0xff]  }
  0x9d   : > { %3079 = vmatpush3.bf16.msra.mxu1 %v3377_v51  ;;  %3128 = vmatprep.subr.bf16.mxu0 %v3384_v53  ;;  %v3458_v51 = vld [vmem:[%s4443_s0 + $0x10] ss:$36 sps:$4 sm:$0xff]   ;;  %v3465_v53 = vld [vmem:[%s4443_s0 + $0x5c] ss:$36 sps:$4 sm:$0xff]  }
  0x9e   : > { %3192 = vmatprep.subr.bf16.mxu1 %v3401_v63  ;;  %v3492_v63 = vld [vmem:[%s3917_s11 + $0x220] sm:$0xff]  }
  0x9f   : > { %1891 = vmatmul.mubr.bf16.vlgmr.msra.gmra.mrb[0].mxu0 %v3378_v48  ;;  %v3451_v48 = vld [vmem:[%s4443_s0 + $0x200] ss:$36 sps:$4 sm:$0xff]  }
  0xa0   : > { %1988 = vmatmul.mubr.bf16.vlgmr.msra.gmra.mrb[0].mxu1 %v3381_v50  ;;  %3129 = vmatpush3.bf16.msra.mxu0 %v3385_v54  ;;  %v3463_v50 = vld [vmem:[%s4443_s0 + $0x1c] ss:$36 sps:$4 sm:$0xff]   ;;  %v3467_v54 = vld [vmem:[%s4443_s0 + $0x64] ss:$36 sps:$4 sm:$0xff]  }
  0xa1   : > { %1898 = vmatprep.mubr.bf16.mxu0 %v3386_v52  ;;  %1995 = vmatprep.mubr.bf16.mxu1 %v3388_v55  ;;  %v3461_v52 = vld [vmem:[%s4443_s0 + $0x18] ss:$36 sps:$4 sm:$0xff]   ;;  %v3471_v55 = vld [vmem:[%s3917_s11 + $0x208] sm:$0xff]  }
  0xa2   : > { %3130 = vmatprep.subr.bf16.mxu0 %v3392_v56  ;;  %3193 = vmatpush3.bf16.msra.mxu1 %v3403_v1  ;;  %v3478_v56 = vld [vmem:[%s3917_s11 + $0x210] sm:$0xff]  }
  0xa3   : > { %3194 = vmatprep.subr.bf16.mxu1 %v3411_v7  ;;  %v3479_v1 = vld [vmem:[%s4443_s0 + $0xec] ss:$36 sps:$4 sm:$0xff]   ;;  %v3486_v7 = vld [vmem:[%s4443_s0 + $0x134] ss:$36 sps:$4 sm:$0xff]  }
  0xa4   : > { %3131 = vmatpush3.bf16.msra.mxu0 %v3393_v57  ;;  %v3469_v57 = vld [vmem:[%s4443_s0 + $0x58] ss:$36 sps:$4 sm:$0xff]  }
  0xa5   : > { %3132 = vmatprep.subr.bf16.mxu0 %v3400_v62  ;;  %v3476_v62 = vld [vmem:[%s4443_s0 + $0xa0] ss:$36 sps:$4 sm:$0xff]  }
  0xa6   : > { %3195 = vmatpush3.bf16.msra.mxu1 %v3413_v9  ;;  %v3513_v9 = vld [vmem:[%s3917_s11 + $0x238] sm:$0xff]  }
  0xa7   : > { %1899 = vmatmul.mubr.bf16.gmra.mrb[4].mxu0 %v3390_v58  ;;  %3196 = vmatprep.subr.bf16.mxu1 %v3421_v15  ;;  %v3470_v58 = vld [vmem:[%s4443_s0 + $0x60] ss:$36 sps:$4 sm:$0xff]  }
  0xa8   : > { %1996 = vmatmul.mubr.bf16.gmra.mrb[4].mxu1 %v3391_v59  ;;  %1906 = vmatprep.mubr.bf16.mxu0 %v3394_v60  ;;  %v3472_v59 = vld [vmem:[%s4443_s0 + $0xa4] ss:$36 sps:$4 sm:$0xff]   ;;  %v3474_v60 = vld [vmem:[%s4443_s0 + $0xac] ss:$36 sps:$4 sm:$0xff]  }
  0xa9   : > { %2003 = vmatprep.mubr.bf16.mxu1 %v3396_v61  ;;  %3133 = vmatpush3.bf16.msra.mxu0 %v3402_v0  ;;  %v3485_v61 = vld [vmem:[%s3917_s11 + $0x218] sm:$0xff]   ;;  %v3477_v0 = vld [vmem:[%s4443_s0 + $0xa8] ss:$36 sps:$4 sm:$0xff]   ;;  %v3498_v15 = vld [vmem:[%s4443_s0 + $0x180] ss:$36 sps:$4 sm:$0xff]  }
  0xaa   : > { %3134 = vmatprep.subr.bf16.mxu0 %v3410_v6  ;;  %3197 = vmatpush3.bf16.msra.mxu1 %v3423_v17  ;;  %v3484_v6 = vld [vmem:[%s4443_s0 + $0xf0] ss:$36 sps:$4 sm:$0xff]  }
  0xab   : > { %3198 = vmatprep.subr.bf16.mxu1 %v3431_v20  ;;  %v3502_v17 = vld [vmem:[%s4443_s0 + $0x1cc] ss:$36 sps:$4 sm:$0xff]  }
  0xac   : > { %v3507_v20 = vld [vmem:[%s4443_s0 + $0x20c] ss:$36 sps:$4 sm:$0xff]  }
  0xad   : > { %3135 = vmatpush3.bf16.msra.mxu0 %v3412_v8  ;;  %v3488_v8 = vld [vmem:[%s4443_s0 + $0x13c] ss:$36 sps:$4 sm:$0xff]  }
  0xae   : > { %3136 = vmatprep.subr.bf16.mxu0 %v3420_v13  ;;  %3199 = vmatpush3.bf16.msra.mxu1 %v3433_v23  ;;  %v3495_v13 = vld [vmem:[%s4443_s0 + $0x184] ss:$36 sps:$4 sm:$0xff]   ;;  %v3512_v23 = vld [vmem:[%s4443_s0 + $0x210] ss:$36 sps:$4 sm:$0xff]  }
  0xaf   : > { %1907 = vmatmul.mubr.bf16.gmra.mrb[8].mxu0 %v3398_v2  ;;  %3200 = vmatprep.subr.bf16.mxu1 %v3441_v27  ;;  %v3481_v2 = vld [vmem:[%s4443_s0 + $0xf4] ss:$36 sps:$4 sm:$0xff]   ;;  %v3517_v27 = vld [vmem:[%s4443_s0 + $0x188] ss:$36 sps:$4 sm:$0xff]  }
  0xb0   : > { %2004 = vmatmul.mubr.bf16.gmra.mrb[8].mxu1 %v3399_v3  ;;  %1914 = vmatprep.mubr.bf16.mxu0 %v3404_v4  ;;  %v3499_v3 = vld [vmem:[%s3917_s11 + $0x228] sm:$0xff]   ;;  %v3506_v4 = vld [vmem:[%s3917_s11 + $0x230] sm:$0xff]   ;;  %s828_s11 = scalar_select %p827_p10, %s3589_s18, 1 }
  0xb1   : > { %2011 = vmatprep.mubr.bf16.mxu1 %v3406_v5  ;;  %3137 = vmatpush3.bf16.msra.mxu0 %v3422_v16  ;;  %v3483_v5 = vld [vmem:[%s4443_s0 + $0xe8] ss:$36 sps:$4 sm:$0xff]  }
  0xb2   : > { %3138 = vmatprep.subr.bf16.mxu0 %v3430_v18  ;;  %3201 = vmatpush3.bf16.msra.mxu1 %v3443_v32  ;;  %v3500_v16 = vld [vmem:[%s4443_s0 + $0x1c4] ss:$36 sps:$4 sm:$0xff]   ;;  %s829_s7 = scalar_lea.vmem %s4445_s2, %s828_s11  ;;  %s832_s10 = scalar_lea.vmem %s4446_s3, %s828_s11 }
  0xb3   : > { %3202 = vmatprep.subr.bf16.mxu1 %v3444_v33  ;;  %v3504_v18 = vld [vmem:[%s4443_s0 + $0x1c0] ss:$36 sps:$4 sm:$0xff]  }
  0xb5   : > { %3139 = vmatpush3.bf16.msra.mxu0 %v3432_v22  ;;  %v3511_v22 = vld [vmem:[%s4443_s0 + $0x208] ss:$36 sps:$4 sm:$0xff]  }
  0xb6   : > { %3140 = vmatprep.subr.bf16.mxu0 %v3440_v26  ;;  %3203 = vmatpush3.bf16.msra.mxu1 %v3445_v35  ;;  %v3516_v26 = vld [vmem:[%s4443_s0 + $0x68] ss:$36 sps:$4 sm:$0xff]  }
  0xb7   : > { %1915 = vmatmul.mubr.bf16.gmra.mrb[12].mxu0 %v3408_v10  ;;  %3204 = vmatprep.subr.bf16.mxu1 %v3453_v38  ;;  %v3490_v10 = vld [vmem:[%s4443_s0 + $0x130] ss:$36 sps:$4 sm:$0xff]  }
  0xb8   : > { %2012 = vmatmul.mubr.bf16.gmra.mrb[12].mxu1 %v3409_v11  ;;  %1922 = vmatprep.mubr.bf16.mxu0 %v3414_v12  ;;  %v3491_v11 = vld [vmem:[%s4443_s0 + $0x138] ss:$36 sps:$4 sm:$0xff]  }
  0xb9   : > { %2019 = vmatprep.mubr.bf16.mxu1 %v3416_v14  ;;  %3141 = vmatpush3.bf16.msra.mxu0 %v3442_v29  ;;  %v3493_v12 = vld [vmem:[%s4443_s0 + $0x17c] ss:$36 sps:$4 sm:$0xff]   ;;  %v3519_v29 = vld [vmem:[%s4443_s0 + $0x1d0] ss:$36 sps:$4 sm:$0xff]  }
  0xba   : > { %3142 = vmatprep.subr.bf16.mxu0 %v3452_v36  ;;  %3205 = vmatpush3.bf16.msra.mxu1 %v3455_v43  ;;  %v3497_v14 = vld [vmem:[%s4443_s0 + $0x178] ss:$36 sps:$4 sm:$0xff]  }
  0xbb   : > { %3206 = vmatprep.subr.bf16.mxu1 %v3456_v44 }
  0xbd   : > { %3143 = vmatpush3.bf16.msra.mxu0 %v3454_v41 }
  0xbe   : > { %3207 = vmatpush3.bf16.msra.mxu1 %v3457_v45  ;;  %3272 = vmatprep.subr.bf16.mxu0 %v3464_v46 }
  0xbf   : > { %1923 = vmatmul.mubr.bf16.gmra.mrb[16].mxu0 %v3418_v19  ;;  %3304 = vmatprep.subr.bf16.mxu1 %v3464_v46  ;;  %v3505_v19 = vld [vmem:[%s4443_s0 + $0x1c8] ss:$36 sps:$4 sm:$0xff]  }
  0xc0   : > { %2020 = vmatmul.mubr.bf16.gmra.mrb[16].mxu1 %v3419_v21  ;;  %1930 = vmatprep.mubr.bf16.mxu0 %v3424_v24  ;;  %v3509_v21 = vld [vmem:[%s4443_s0 + $0x214] ss:$36 sps:$4 sm:$0xff]   ;;  %v3514_v24 = vld [vmem:[%s4443_s0 + $0x20] ss:$36 sps:$4 sm:$0xff]  }
  0xc1   : > { %2027 = vmatprep.mubr.bf16.mxu1 %v3426_v25  ;;  %v3515_v25 = vld [vmem:[%s4443_s0 + $0x140] ss:$36 sps:$4 sm:$0xff]  }
  0xc7   : > { %1931 = vmatmul.mubr.bf16.gmra.mrb[20].mxu0 %v3428_v28  ;;  %v3518_v28 = vld [vmem:[%s4443_s0 + $0xb0] ss:$36 sps:$4 sm:$0xff]  }
  0xc8   : > { %2028 = vmatmul.mubr.bf16.gmra.mrb[20].mxu1 %v3429_v30  ;;  %1938 = vmatprep.mubr.bf16.mxu0 %v3434_v31  ;;  %v3520_v30 = vld [vmem:[%s4443_s0 + $0xf8] ss:$36 sps:$4 sm:$0xff]  }
  0xc9   : > { %2035 = vmatprep.mubr.bf16.mxu1 %v3436_v34  ;;  %v3521_v31 = vld [vmem:[%s4443_s0 + $0x218] ss:$36 sps:$4 sm:$0xff]  }
  0xcf   : > { %1939 = vmatmul.mubr.bf16.gmra.mrb[24].mxu0 %v3438_v37 }
  0xd0   : > { %2036 = vmatmul.mubr.bf16.gmra.mrb[24].mxu1 %v3439_v39  ;;  %1946 = vmatprep.mubr.bf16.mxu0 %v3446_v40 }
  0xd1   : > { %2043 = vmatprep.mubr.bf16.mxu1 %v3448_v42 }
  0xd7   : > { %1947 = vmatmul.mubr.bf16.gmra.mrb[28].mxu0 %v3450_v47 }
  0xd8   : > { %2044 = vmatmul.mubr.bf16.gmra.mrb[28].mxu1 %v3451_v48  ;;  %2084 = vmatprep.mubr.bf16.mxu0 %v3460_v49 }
  0xd9   : > { %2181 = vmatprep.mubr.bf16.mxu1 %v3463_v50 }
  0xdf   : > { %2085 = vmatmul.mubr.bf16.vlgmr.msra.gmra.mrb[32].mxu0 %v3458_v51 }
  0xe0   : > { %2182 = vmatmul.mubr.bf16.vlgmr.msra.gmra.mrb[32].mxu1 %v3461_v52  ;;  %3273 = vmatpush3.bf16.msra.mxu0 %v3464_v46 }
  0xe1   : > { %2092 = vmatprep.mubr.bf16.mxu0 %v3465_v53  ;;  %2189 = vmatprep.mubr.bf16.mxu1 %v3467_v54 }
  0xe2   : > { %3274 = vmatprep.subr.bf16.mxu0 %v3471_v55  ;;  %3312 = vmatpush3.bf16.msra.mxu1 %v3464_v46 }
  0xe3   : > { %3305 = vmatprep.subr.bf16.mxu1 %v3471_v55 }
  0xe4   : > { %3275 = vmatpush3.bf16.msra.mxu0 %v3471_v55 }
  0xe5   : > { %3276 = vmatprep.subr.bf16.mxu0 %v3478_v56 }
  0xe6   : > { %3313 = vmatpush3.bf16.msra.mxu1 %v3471_v55 }
  0xe7   : > { %2093 = vmatmul.mubr.bf16.gmra.mrb[36].mxu0 %v3469_v57  ;;  %3306 = vmatprep.subr.bf16.mxu1 %v3478_v56 }
  0xe8   : > { %2190 = vmatmul.mubr.bf16.gmra.mrb[36].mxu1 %v3470_v58  ;;  %2100 = vmatprep.mubr.bf16.mxu0 %v3472_v59 }
  0xe9   : > { %2197 = vmatprep.mubr.bf16.mxu1 %v3474_v60  ;;  %3277 = vmatpush3.bf16.msra.mxu0 %v3478_v56 }
  0xea   : > { %3278 = vmatprep.subr.bf16.mxu0 %v3485_v61  ;;  %3314 = vmatpush3.bf16.msra.mxu1 %v3478_v56 }
  0xeb   : > { %3307 = vmatprep.subr.bf16.mxu1 %v3485_v61 }
  0xed   : > { %3279 = vmatpush3.bf16.msra.mxu0 %v3485_v61 }
  0xee   : > { %3280 = vmatprep.subr.bf16.mxu0 %v3492_v63  ;;  %3315 = vmatpush3.bf16.msra.mxu1 %v3485_v61 }
  0xef   : > { %2101 = vmatmul.mubr.bf16.gmra.mrb[40].mxu0 %v3476_v62  ;;  %3308 = vmatprep.subr.bf16.mxu1 %v3492_v63 }
  0xf0   : > { %2198 = vmatmul.mubr.bf16.gmra.mrb[40].mxu1 %v3477_v0  ;;  %2108 = vmatprep.mubr.bf16.mxu0 %v3479_v1 }
  0xf1   : > { %2205 = vmatprep.mubr.bf16.mxu1 %v3481_v2  ;;  %3281 = vmatpush3.bf16.msra.mxu0 %v3492_v63 }
  0xf2   : > { %3282 = vmatprep.subr.bf16.mxu0 %v3499_v3  ;;  %3316 = vmatpush3.bf16.msra.mxu1 %v3492_v63 }
  0xf3   : > { %3309 = vmatprep.subr.bf16.mxu1 %v3499_v3 }
  0xf5   : > { %3283 = vmatpush3.bf16.msra.mxu0 %v3499_v3 }
  0xf6   : > { %3284 = vmatprep.subr.bf16.mxu0 %v3506_v4  ;;  %3317 = vmatpush3.bf16.msra.mxu1 %v3499_v3 }
  0xf7   : > { %2109 = vmatmul.mubr.bf16.gmra.mrb[44].mxu0 %v3483_v5  ;;  %3310 = vmatprep.subr.bf16.mxu1 %v3506_v4 }
  0xf8   : > { %2206 = vmatmul.mubr.bf16.gmra.mrb[44].mxu1 %v3484_v6  ;;  %2116 = vmatprep.mubr.bf16.mxu0 %v3486_v7 }
  0xf9   : > { %2213 = vmatprep.mubr.bf16.mxu1 %v3488_v8  ;;  %3285 = vmatpush3.bf16.msra.mxu0 %v3506_v4 }
  0xfa   : > { %3286 = vmatprep.subr.bf16.mxu0 %v3513_v9  ;;  %3318 = vmatpush3.bf16.msra.mxu1 %v3506_v4 }
  0xfb   : > { %3311 = vmatprep.subr.bf16.mxu1 %v3513_v9 }
  0xfd   : > { %3287 = vmatpush3.bf16.msra.mxu0 %v3513_v9 }
  0xfe   : > { %3319 = vmatpush3.bf16.msra.mxu1 %v3513_v9 }
  0xff   : > { %2117 = vmatmul.mubr.bf16.gmra.mrb[48].mxu0 %v3490_v10 }
 0x100   : > { %2214 = vmatmul.mubr.bf16.gmra.mrb[48].mxu1 %v3491_v11  ;;  %2124 = vmatprep.mubr.bf16.mxu0 %v3493_v12 }
 0x101   : > { %2221 = vmatprep.mubr.bf16.mxu1 %v3495_v13 }
 0x107   : > { %2125 = vmatmul.mubr.bf16.gmra.mrb[52].mxu0 %v3497_v14 }
 0x108   : > { %2222 = vmatmul.mubr.bf16.gmra.mrb[52].mxu1 %v3498_v15  ;;  %2132 = vmatprep.mubr.bf16.mxu0 %v3500_v16 }
 0x109   : > { %2229 = vmatprep.mubr.bf16.mxu1 %v3502_v17 }
 0x10f   : > { %2133 = vmatmul.mubr.bf16.gmra.mrb[56].mxu0 %v3504_v18 }
 0x110   : > { %2230 = vmatmul.mubr.bf16.gmra.mrb[56].mxu1 %v3505_v19  ;;  %2140 = vmatprep.mubr.bf16.mxu0 %v3507_v20 }
 0x111   : > { %2237 = vmatprep.mubr.bf16.mxu1 %v3509_v21 }
 0x117   : > { %2141 = vmatmul.mubr.bf16.gmra.mrb[60].mxu0 %v3511_v22 }
 0x118   : > { %2238 = vmatmul.mubr.bf16.gmra.mrb[60].mxu1 %v3512_v23  ;;  %3288 = vmatprep.mubr.bf16.mxu0 %v3514_v24 }
 0x119   : > { %3296 = vmatprep.mubr.bf16.mxu1 %v3515_v25 }
 0x11f   : > { %3289 = vmatmul.mubr.bf16.vlgmr.msra.gmra.mrb[64].mxu0 %v3516_v26 }
 0x120   : > { %3297 = vmatmul.mubr.bf16.vlgmr.msra.gmra.mrb[64].mxu1 %v3517_v27  ;;  %3292 = vmatprep.mubr.bf16.mxu0 %v3518_v28 }
 0x121   : > { %3300 = vmatprep.mubr.bf16.mxu1 %v3519_v29 }
 0x127   : > { %3293 = vmatmul.mubr.bf16.gmra.mrb[68].mxu0 %v3520_v30 }
 0x128   : > { %3301 = vmatmul.mubr.bf16.gmra.mrb[68].mxu1 %v3521_v31 }
 0x172   : > { %v3016_v32 = vpop.f32.mrb[0].mxu0 }
 0x173   : > { %v3080_v33 = vpop.f32.mrb[0].mxu1  ;;  %v3017_v34 = vpop.f32.mrb[1].mxu0 }
 0x174   : > { %v3018_v35 = vadd.f32 %v3017_v34, %v3016_v32  ;;  %v3081_v36 = vpop.f32.mrb[1].mxu1  ;;  %v3019_v37 = vpop.f32.mrb[2].mxu0 }
 0x175   : > { %v3082_v38 = vadd.f32 %v3081_v36, %v3080_v33  ;;  %v3083_v39 = vpop.f32.mrb[2].mxu1  ;;  %v3020_v40 = vpop.f32.mrb[3].mxu0 }
 0x176   : > { %v3021_v41 = vadd.f32 %v3020_v40, %v3019_v37  ;;  %v3084_v42 = vpop.f32.mrb[3].mxu1 }
 0x177   : > { %v4201_v43 = vadd.f32 %v3082_v38, %v3018_v35  ;;  %v3085_v44 = vadd.f32 %v3084_v42, %v3083_v39 }
 0x179   : > { %v4203_v45 = vadd.f32 %v3085_v44, %v3021_v41 }
 0x17a   : > { %v3022_v46 = vpop.f32.mrb[4].mxu0 }
 0x17b   : > { %v3086_v47 = vpop.f32.mrb[4].mxu1  ;;  %v3023_v48 = vpop.f32.mrb[5].mxu0 }
 0x17c   : > { %v3024_v49 = vadd.f32 %v3023_v48, %v3022_v46  ;;  %v3087_v50 = vpop.f32.mrb[5].mxu1  ;;  %v3025_v51 = vpop.f32.mrb[6].mxu0 }
 0x17d   : > { %v3088_v52 = vadd.f32 %v3087_v50, %v3086_v47  ;;  %v3089_v53 = vpop.f32.mrb[6].mxu1  ;;  %v3026_v54 = vpop.f32.mrb[7].mxu0 }
 0x17e   : > { %v3027_v55 = vadd.f32 %v3026_v54, %v3025_v51  ;;  %v3090_v56 = vpop.f32.mrb[7].mxu1 }
 0x17f   : > { %v4205_v57 = vadd.f32 %v3088_v52, %v3024_v49  ;;  %v3091_v58 = vadd.f32 %v3090_v56, %v3089_v53 }
 0x181   : > { %v4207_v59 = vadd.f32 %v3091_v58, %v3027_v55 }
 0x182   : > { %v3028_v60 = vpop.f32.mrb[8].mxu0 }
 0x183   : > { %v3092_v61 = vpop.f32.mrb[8].mxu1  ;;  %v3029_v62 = vpop.f32.mrb[9].mxu0 }
 0x184   : > { %v3030_v63 = vadd.f32 %v3029_v62, %v3028_v60  ;;  %v3093_v0 = vpop.f32.mrb[9].mxu1  ;;  %v3031_v1 = vpop.f32.mrb[10].mxu0 }
 0x185   : > { %v3094_v2 = vadd.f32 %v3093_v0, %v3092_v61  ;;  %v3095_v3 = vpop.f32.mrb[10].mxu1  ;;  %v3032_v4 = vpop.f32.mrb[11].mxu0 }
 0x186   : > { %v3033_v5 = vadd.f32 %v3032_v4, %v3031_v1  ;;  %v3096_v6 = vpop.f32.mrb[11].mxu1 }
 0x187   : > { %v4209_v7 = vadd.f32 %v3094_v2, %v3030_v63  ;;  %v3097_v8 = vadd.f32 %v3096_v6, %v3095_v3 }
 0x189   : > { %v4211_v9 = vadd.f32 %v3097_v8, %v3033_v5 }
 0x18a   : > { %v3034_v10 = vpop.f32.mrb[12].mxu0 }
 0x18b   : > { %v3098_v11 = vpop.f32.mrb[12].mxu1  ;;  %v3035_v12 = vpop.f32.mrb[13].mxu0 }
 0x18c   : > { %v3036_v13 = vadd.f32 %v3035_v12, %v3034_v10  ;;  %v3099_v14 = vpop.f32.mrb[13].mxu1  ;;  %v3037_v15 = vpop.f32.mrb[14].mxu0 }
 0x18d   : > { %v3100_v16 = vadd.f32 %v3099_v14, %v3098_v11  ;;  %v3101_v17 = vpop.f32.mrb[14].mxu1  ;;  %v3038_v18 = vpop.f32.mrb[15].mxu0 }
 0x18e   : > { %v3039_v19 = vadd.f32 %v3038_v18, %v3037_v15  ;;  %v3102_v20 = vpop.f32.mrb[15].mxu1 }
 0x18f   : > { %v4213_v21 = vadd.f32 %v3100_v16, %v3036_v13  ;;  %v3103_v22 = vadd.f32 %v3102_v20, %v3101_v17 }
 0x191   : > { %v4215_v23 = vadd.f32 %v3103_v22, %v3039_v19 }
 0x192   : > { %v3040_v24 = vpop.f32.mrb[16].mxu0 }
 0x193   : > { %v3104_v25 = vpop.f32.mrb[16].mxu1  ;;  %v3041_v26 = vpop.f32.mrb[17].mxu0 }
 0x194   : > { %v3042_v27 = vadd.f32 %v3041_v26, %v3040_v24  ;;  %v3105_v28 = vpop.f32.mrb[17].mxu1  ;;  %v3043_v29 = vpop.f32.mrb[18].mxu0 }
 0x195   : > { %v3106_v30 = vadd.f32 %v3105_v28, %v3104_v25  ;;  %v3107_v31 = vpop.f32.mrb[18].mxu1  ;;  %v3044_v32 = vpop.f32.mrb[19].mxu0 }
 0x196   : > { %v3045_v33 = vadd.f32 %v3044_v32, %v3043_v29  ;;  %v3108_v34 = vpop.f32.mrb[19].mxu1 }
 0x197   : > { %v4217_v35 = vadd.f32 %v3106_v30, %v3042_v27  ;;  %v3109_v36 = vadd.f32 %v3108_v34, %v3107_v31 }
 0x199   : > { %v4219_v37 = vadd.f32 %v3109_v36, %v3045_v33 }
 0x19a   : > { %v3046_v38 = vpop.f32.mrb[20].mxu0 }
 0x19b   : > { %v3110_v39 = vpop.f32.mrb[20].mxu1  ;;  %v3047_v40 = vpop.f32.mrb[21].mxu0 }
 0x19c   : > { %v3048_v41 = vadd.f32 %v3047_v40, %v3046_v38  ;;  %v3111_v42 = vpop.f32.mrb[21].mxu1  ;;  %v3049_v44 = vpop.f32.mrb[22].mxu0 }
 0x19d   : > { %v3112_v46 = vadd.f32 %v3111_v42, %v3110_v39  ;;  %v3113_v47 = vpop.f32.mrb[22].mxu1  ;;  %v3050_v48 = vpop.f32.mrb[23].mxu0 }
 0x19e   : > { %v3051_v49 = vadd.f32 %v3050_v48, %v3049_v44  ;;  %v3114_v50 = vpop.f32.mrb[23].mxu1 }
 0x19f   : > { %v4221_v51 = vadd.f32 %v3112_v46, %v3048_v41  ;;  %v3115_v52 = vadd.f32 %v3114_v50, %v3113_v47 }
 0x1a1   : > { %v4223_v53 = vadd.f32 %v3115_v52, %v3051_v49 }
 0x1a2   : > { %v3052_v54 = vpop.f32.mrb[24].mxu0 }
 0x1a3   : > { %v3116_v55 = vpop.f32.mrb[24].mxu1  ;;  %v3053_v56 = vpop.f32.mrb[25].mxu0 }
 0x1a4   : > { %v3054_v58 = vadd.f32 %v3053_v56, %v3052_v54  ;;  %v3117_v60 = vpop.f32.mrb[25].mxu1  ;;  %v3055_v61 = vpop.f32.mrb[26].mxu0 }
 0x1a5   : > { %v3118_v62 = vadd.f32 %v3117_v60, %v3116_v55  ;;  %v3119_v63 = vpop.f32.mrb[26].mxu1  ;;  %v3056_v0 = vpop.f32.mrb[27].mxu0 }
 0x1a6   : > { %v3057_v1 = vadd.f32 %v3056_v0, %v3055_v61  ;;  %v3120_v2 = vpop.f32.mrb[27].mxu1 }
 0x1a7   : > { %v4225_v3 = vadd.f32 %v3118_v62, %v3054_v58  ;;  %v3121_v4 = vadd.f32 %v3120_v2, %v3119_v63 }
 0x1a9   : > { %v4227_v5 = vadd.f32 %v3121_v4, %v3057_v1 }
 0x1aa   : > { %v3058_v6 = vpop.f32.mrb[28].mxu0 }
 0x1ab   : > { %v3122_v8 = vpop.f32.mrb[28].mxu1  ;;  %v3059_v10 = vpop.f32.mrb[29].mxu0 }
 0x1ac   : > { %v3060_v11 = vadd.f32 %v3059_v10, %v3058_v6  ;;  %v3123_v12 = vpop.f32.mrb[29].mxu1  ;;  %v3061_v13 = vpop.f32.mrb[30].mxu0 }
 0x1ad   : > { %v3124_v14 = vadd.f32 %v3123_v12, %v3122_v8  ;;  %v3125_v15 = vpop.f32.mrb[30].mxu1  ;;  %v3062_v16 = vpop.f32.mrb[31].mxu0 }
 0x1ae   : > { %v3063_v17 = vadd.f32 %v3062_v16, %v3061_v13  ;;  %v3126_v18 = vpop.f32.mrb[31].mxu1 }
 0x1af   : > { %v4229_v19 = vadd.f32 %v3124_v14, %v3060_v11  ;;  %v3127_v20 = vadd.f32 %v3126_v18, %v3125_v15 }
 0x1b1   : > { %v4231_v22 = vadd.f32 %v3127_v20, %v3063_v17 }
 0x1b2   : > { %v3144_v24 = vpop.f32.mrb[32].mxu0 }
 0x1b3   : > { %v3145_v25 = vpop.f32.mrb[33].mxu0  ;;  %v3208_v26 = vpop.f32.mrb[32].mxu1 }
 0x1b4   : > { %v3146_v27 = vadd.f32 %v3145_v25, %v3144_v24  ;;  %v3147_v28 = vpop.f32.mrb[34].mxu0  ;;  %v3209_v29 = vpop.f32.mrb[33].mxu1 }
 0x1b5   : > { %v3148_v30 = vpop.f32.mrb[35].mxu0  ;;  %v3210_v31 = vadd.f32 %v3209_v29, %v3208_v26  ;;  %v3211_v32 = vpop.f32.mrb[34].mxu1 }
 0x1b6   : > { %v2087_v33 = vadd.f32 %v3146_v27, %v4201_v43  ;;  %v3149_v34 = vadd.f32 %v3148_v30, %v3147_v28  ;;  %v3212_v36 = vpop.f32.mrb[35].mxu1 }
 0x1b7   : > { %v3213_v38 = vadd.f32 %v3212_v36, %v3211_v32 }
 0x1b8   : > { %v2090_v39 = vadd.f32 %v3149_v34, %v4203_v45  ;;  %v4235_v40 = vadd.f32 %v3210_v31, %v2087_v33 }
 0x1ba   : > { %v3150_v41 = vpop.f32.mrb[36].mxu0  ;;  %v4237_v42 = vadd.f32 %v3213_v38, %v2090_v39 }
 0x1bb   : > { %v3151_v44 = vpop.f32.mrb[37].mxu0  ;;  %v3214_v46 = vpop.f32.mrb[36].mxu1 }
 0x1bc   : > { %v3152_v47 = vadd.f32 %v3151_v44, %v3150_v41  ;;  %v3153_v48 = vpop.f32.mrb[38].mxu0  ;;  %v3215_v49 = vpop.f32.mrb[37].mxu1 }
 0x1bd   : > { %v3154_v50 = vpop.f32.mrb[39].mxu0  ;;  %v3216_v52 = vadd.f32 %v3215_v49, %v3214_v46  ;;  %v3217_v54 = vpop.f32.mrb[38].mxu1 }
 0x1be   : > { %v2095_v43 = vadd.f32 %v3152_v47, %v4205_v57  ;;  %v3155_v55 = vadd.f32 %v3154_v50, %v3153_v48  ;;  %v3218_v56 = vpop.f32.mrb[39].mxu1 }
 0x1bf   : > { %v3219_v58 = vadd.f32 %v3218_v56, %v3217_v54 }
 0x1c0   : > { %v2098_v45 = vadd.f32 %v3155_v55, %v4207_v59  ;;  %v4241_v60 = vadd.f32 %v3216_v52, %v2095_v43 }
 0x1c2   : > { %v3156_v61 = vpop.f32.mrb[40].mxu0  ;;  %v4243_v62 = vadd.f32 %v3219_v58, %v2098_v45 }
 0x1c3   : > { %v3157_v63 = vpop.f32.mrb[41].mxu0  ;;  %v3220_v0 = vpop.f32.mrb[40].mxu1 }
 0x1c4   : > { %v3158_v1 = vadd.f32 %v3157_v63, %v3156_v61  ;;  %v3159_v2 = vpop.f32.mrb[42].mxu0  ;;  %v3221_v4 = vpop.f32.mrb[41].mxu1 }
 0x1c5   : > { %v3160_v6 = vpop.f32.mrb[43].mxu0  ;;  %v3222_v8 = vadd.f32 %v3221_v4, %v3220_v0  ;;  %v3223_v10 = vpop.f32.mrb[42].mxu1 }
 0x1c6   : > { %v2103_v57 = vadd.f32 %v3158_v1, %v4209_v7  ;;  %v3161_v11 = vadd.f32 %v3160_v6, %v3159_v2  ;;  %v3224_v12 = vpop.f32.mrb[43].mxu1 }
 0x1c7   : > { %v3225_v13 = vadd.f32 %v3224_v12, %v3223_v10 }
 0x1c8   : > { %v2106_v59 = vadd.f32 %v3161_v11, %v4211_v9  ;;  %v4247_v14 = vadd.f32 %v3222_v8, %v2103_v57 }
 0x1ca   : > { %v3162_v15 = vpop.f32.mrb[44].mxu0  ;;  %v4249_v16 = vadd.f32 %v3225_v13, %v2106_v59 }
 0x1cb   : > { %v3163_v17 = vpop.f32.mrb[45].mxu0  ;;  %v3226_v18 = vpop.f32.mrb[44].mxu1 }
 0x1cc   : > { %v3164_v20 = vadd.f32 %v3163_v17, %v3162_v15  ;;  %v3165_v24 = vpop.f32.mrb[46].mxu0  ;;  %v3227_v25 = vpop.f32.mrb[45].mxu1 }
 0x1cd   : > { %v3166_v26 = vpop.f32.mrb[47].mxu0  ;;  %v3228_v27 = vadd.f32 %v3227_v25, %v3226_v18  ;;  %v3229_v28 = vpop.f32.mrb[46].mxu1 }
 0x1ce   : > { %v2111_v7 = vadd.f32 %v3164_v20, %v4213_v21  ;;  %v3167_v29 = vadd.f32 %v3166_v26, %v3165_v24  ;;  %v3230_v30 = vpop.f32.mrb[47].mxu1 }
 0x1cf   : > { %v3231_v31 = vadd.f32 %v3230_v30, %v3229_v28 }
 0x1d0   : > { %v2114_v9 = vadd.f32 %v3167_v29, %v4215_v23  ;;  %v4253_v32 = vadd.f32 %v3228_v27, %v2111_v7 }
 0x1d2   : > { %v3168_v33 = vpop.f32.mrb[48].mxu0  ;;  %v4255_v34 = vadd.f32 %v3231_v31, %v2114_v9 }
 0x1d3   : > { %v3169_v36 = vpop.f32.mrb[49].mxu0  ;;  %v3232_v38 = vpop.f32.mrb[48].mxu1 }
 0x1d4   : > { %v3170_v39 = vadd.f32 %v3169_v36, %v3168_v33  ;;  %v3171_v41 = vpop.f32.mrb[50].mxu0  ;;  %v3233_v44 = vpop.f32.mrb[49].mxu1 }
 0x1d5   : > { %v3172_v46 = vpop.f32.mrb[51].mxu0  ;;  %v3234_v47 = vadd.f32 %v3233_v44, %v3232_v38  ;;  %v3235_v48 = vpop.f32.mrb[50].mxu1 }
 0x1d6   : > { %v2119_v21 = vadd.f32 %v3170_v39, %v4217_v35  ;;  %v3173_v49 = vadd.f32 %v3172_v46, %v3171_v41  ;;  %v3236_v50 = vpop.f32.mrb[51].mxu1 }
 0x1d7   : > { %v3237_v52 = vadd.f32 %v3236_v50, %v3235_v48 }
 0x1d8   : > { %v2122_v23 = vadd.f32 %v3173_v49, %v4219_v37  ;;  %v2216_v54 = vadd.f32 %v3234_v47, %v2119_v21 }
 0x1da   : > { %v3174_v43 = vpop.f32.mrb[52].mxu0  ;;  %v4259_v55 = vadd.f32 %v3237_v52, %v2122_v23 }
 0x1db   : > { %v3175_v56 = vpop.f32.mrb[53].mxu0  ;;  %v3238_v58 = vpop.f32.mrb[52].mxu1 }
 0x1dc   : > { %v3176_v45 = vadd.f32 %v3175_v56, %v3174_v43  ;;  %v3177_v61 = vpop.f32.mrb[54].mxu0  ;;  %v3239_v63 = vpop.f32.mrb[53].mxu1 }
 0x1dd   : > { %v3178_v0 = vpop.f32.mrb[55].mxu0  ;;  %v3240_v1 = vadd.f32 %v3239_v63, %v3238_v58  ;;  %v3241_v2 = vpop.f32.mrb[54].mxu1 }
 0x1de   : > { %v2127_v4 = vadd.f32 %v3176_v45, %v4221_v51  ;;  %v3179_v35 = vadd.f32 %v3178_v0, %v3177_v61  ;;  %v3242_v6 = vpop.f32.mrb[55].mxu1 }
 0x1df   : > { %v3243_v8 = vadd.f32 %v3242_v6, %v3241_v2 }
 0x1e0   : > { %v2130_v10 = vadd.f32 %v3179_v35, %v4223_v53  ;;  %v2224_v37 = vadd.f32 %v3240_v1, %v2127_v4 }
 0x1e2   : > { %v3180_v57 = vpop.f32.mrb[56].mxu0  ;;  %v2227_v11 = vadd.f32 %v3243_v8, %v2130_v10 }
 0x1e3   : > { %v3181_v12 = vpop.f32.mrb[57].mxu0  ;;  %v3244_v13 = vpop.f32.mrb[56].mxu1 }
 0x1e4   : > { %v3182_v59 = vadd.f32 %v3181_v12, %v3180_v57  ;;  %v3183_v15 = vpop.f32.mrb[58].mxu0  ;;  %v3245_v17 = vpop.f32.mrb[57].mxu1 }
 0x1e5   : > { %v3184_v18 = vpop.f32.mrb[59].mxu0  ;;  %v3246_v20 = vadd.f32 %v3245_v17, %v3244_v13  ;;  %v3247_v24 = vpop.f32.mrb[58].mxu1 }
 0x1e6   : > { %v2135_v25 = vadd.f32 %v3182_v59, %v4225_v3  ;;  %v3185_v26 = vadd.f32 %v3184_v18, %v3183_v15  ;;  %v3248_v51 = vpop.f32.mrb[59].mxu1 }
 0x1e7   : > { %v3249_v27 = vadd.f32 %v3248_v51, %v3247_v24 }
 0x1e8   : > { %v2138_v28 = vadd.f32 %v3185_v26, %v4227_v5  ;;  %v2232_v7 = vadd.f32 %v3246_v20, %v2135_v25 }
 0x1ea   : > { %v3186_v53 = vpop.f32.mrb[60].mxu0  ;;  %v2235_v29 = vadd.f32 %v3249_v27, %v2138_v28 }
 0x1eb   : > { %v3187_v30 = vpop.f32.mrb[61].mxu0  ;;  %v3250_v31 = vpop.f32.mrb[60].mxu1 }
 0x1ec   : > { %v3188_v9 = vadd.f32 %v3187_v30, %v3186_v53  ;;  %v3189_v33 = vpop.f32.mrb[62].mxu0  ;;  %v3251_v36 = vpop.f32.mrb[61].mxu1 }
 0x1ed   : > { %v3190_v38 = vpop.f32.mrb[63].mxu0  ;;  %v3252_v39 = vadd.f32 %v3251_v36, %v3250_v31  ;;  %v3253_v41 = vpop.f32.mrb[62].mxu1 }
 0x1ee   : > { %v2143_v44 = vadd.f32 %v3188_v9, %v4229_v19  ;;  %v3191_v46 = vadd.f32 %v3190_v38, %v3189_v33  ;;  %v3254_v3 = vpop.f32.mrb[63].mxu1 }
 0x1ef   : > { %v3255_v47 = vadd.f32 %v3254_v3, %v3253_v41 }
 0x1f0   : > { %v2146_v48 = vadd.f32 %v3191_v46, %v4231_v22  ;;  %v2240_v21 = vadd.f32 %v3252_v39, %v2143_v44 }
 0x1f2   : > { %v3290_v5 = vpop.f32.mrb[64].mxu0  ;;  %v2243_v49 = vadd.f32 %v3255_v47, %v2146_v48 }
 0x1f3   : > { %v4268_v50 = vadd.f32 %v3290_v5, %v4241_v60  ;;  %v3298_v52 = vpop.f32.mrb[64].mxu1  ;;  %v2280_v23 = vpop.f32.mrb[65].mxu0 }
 0x1f4   : > { %v4270_v43 = vadd.f32 %v3298_v52, %v2224_v37  ;;  %v4273_v56 = vadd.f32 %v2280_v23, %v4235_v40  ;;  %v2312_v58 = vpop.f32.mrb[65].mxu1  ;;  %v3291_v19 = vpop.f32.mrb[66].mxu0 }
 0x1f5   : > { %v4275_v45 = vadd.f32 %v2312_v58, %v2216_v54  ;;  %v4278_v61 = vadd.f32 %v3291_v19, %v4243_v62  ;;  %v3299_v22 = vpop.f32.mrb[66].mxu1  ;;  %v2283_v63 = vpop.f32.mrb[67].mxu0  ;;  %v2367_v4 = vmul.f32 %v4268_v50, %v4268_v50 }
 0x1f6   : > { %v4280_v0 = vadd.f32 %v3299_v22, %v2227_v11  ;;  %v4283_v60 = vadd.f32 %v2283_v63, %v4237_v42  ;;  %v2315_v1 = vpop.f32.mrb[67].mxu1  ;;  %v2365_v40 = vmul.f32 %v4273_v56, %v4273_v56  ;;  %v2375_v3 = vmul.f32 %v4270_v43, %v4270_v43 }
 0x1f7   : > { %v4286_v2 = vadd.f32 %v2315_v1, %v4259_v55  ;;  %v2368_v55 = vmul.f32 %v4278_v61, %v4278_v61 }
 0x1f8   : > { %v2343_v54 = vadd.f32 %v4283_v60, %v4273_v56  ;;  %v2366_v62 = vmul.f32 %v4283_v60, %v4283_v60 }
 0x1f9   : > { %v2374_v41 = vmul.f32 %v4286_v2, %v4286_v2 }
 0x1fa   : > { %v2344_v35 = vadd.f32 %v2343_v54, %v4268_v50  ;;  %v2381_v42 = vadd.f32 %v2366_v62, %v2365_v40  ;;  %v3294_v6 = vpop.f32.mrb[68].mxu0 }
 0x1fb   : > { %v4300_v8 = vadd.f32 %v3294_v6, %v4253_v32  ;;  %v3302_v10 = vpop.f32.mrb[68].mxu1  ;;  %v2296_v37 = vpop.f32.mrb[69].mxu0 }
 0x1fc   : > { %v2382_v57 = vadd.f32 %v2381_v42, %v2367_v4  ;;  %v4302_v11 = vadd.f32 %v3302_v10, %v2240_v21  ;;  %v4305_v12 = vadd.f32 %v2296_v37, %v4247_v14  ;;  %v2345_v13 = vadd.f32 %v2344_v35, %v4278_v61  ;;  %v2328_v59 = vpop.f32.mrb[69].mxu1  ;;  %v3295_v15 = vpop.f32.mrb[70].mxu0 }
 0x1fd   : > { %v4308_v17 = vadd.f32 %v2328_v59, %v2232_v7  ;;  %v4311_v18 = vadd.f32 %v3295_v15, %v4255_v34  ;;  %v3303_v20 = vpop.f32.mrb[70].mxu1  ;;  %v2299_v32 = vpop.f32.mrb[71].mxu0  ;;  %v2371_v30 = vmul.f32 %v4300_v8, %v4300_v8  ;;  %v2376_v21 = vmul.f32 %v4280_v0, %v4280_v0 }
 0x1fe   : > { %v2346_v24 = vadd.f32 %v2345_v13, %v4305_v12  ;;  %v2369_v25 = vmul.f32 %v4305_v12, %v4305_v12  ;;  %v2383_v26 = vadd.f32 %v2382_v57, %v2368_v55  ;;  %v2331_v51 = vpop.f32.mrb[71].mxu1  ;;  %v4316_v14 = vadd.f32 %v3303_v20, %v2243_v49 }
 0x1ff   : > { %v4319_v27 = vadd.f32 %v2299_v32, %v4249_v16  ;;  %v4321_v7 = vadd.f32 %v2331_v51, %v2235_v29  ;;  %v2372_v33 = vmul.f32 %v4311_v18, %v4311_v18  ;;  %v2373_v29 = vmul.f32 %v4275_v45, %v4275_v45 }
 0x200   : > { %v2384_v28 = vadd.f32 %v2383_v26, %v2369_v25  ;;  %v2377_v52 = vmul.f32 %v4308_v17, %v4308_v17  ;;  %v2379_v1 = vmul.f32 %v4302_v11, %v4302_v11  ;;  %v2380_v62 = vmul.f32 %v4316_v14, %v4316_v14 }
 0x201   : > { %v2347_v34 = vadd.f32 %v2346_v24, %v4319_v27  ;;  %v2370_v53 = vmul.f32 %v4319_v27, %v4319_v27  ;;  %v2378_v22 = vmul.f32 %v4321_v7, %v4321_v7 }
 0x203   : > { %v2348_v31 = vadd.f32 %v2347_v34, %v4300_v8  ;;  %v2385_v9 = vadd.f32 %v2384_v28, %v2370_v53 }
 0x205   : > { %v2349_v16 = vadd.f32 %v2348_v31, %v4311_v18  ;;  %v2386_v36 = vadd.f32 %v2385_v9, %v2371_v30  ;;  %v2413_v30 = vlaneseq  ;;  %v2405_v9 = vld [vmem:[%s829_s7] sm:$0x1] }
 0x207   : > { %v2350_v38 = vadd.f32 %v2349_v16, %v4275_v45  ;;  %v2387_v39 = vadd.f32 %v2386_v36, %v2372_v33  ;;  %v2414_v31 = vshrl.u32 %v2413_v30, 7 }
 0x209   : > { %v2388_v44 = vadd.f32 %v2387_v39, %v2373_v29  ;;  %v2351_v46 = vadd.f32 %v2350_v38, %v4286_v2  ;;  %v2415_v33 = vsub.s32 0, %v2414_v31  ;;  %v2409_v29 = vld [vmem:[%s832_s10] sm:$0x1] }
 0x20b   : > { %v2352_v47 = vadd.f32 %v2351_v46, %v4270_v43  ;;  %v2389_v48 = vadd.f32 %v2388_v44, %v2374_v41 }
 0x20d   : > { %v2353_v5 = vadd.f32 %v2352_v47, %v4280_v0  ;;  %v2390_v49 = vadd.f32 %v2389_v48, %v2375_v3 }
 0x20f   : > { %v2354_v23 = vadd.f32 %v2353_v5, %v4308_v17  ;;  %v2391_v58 = vadd.f32 %v2390_v49, %v2376_v21 }
 0x211   : > { %v2355_v19 = vadd.f32 %v2354_v23, %v4321_v7  ;;  %v2392_v63 = vadd.f32 %v2391_v58, %v2377_v52 }
 0x213   : > { %v2356_v40 = vadd.f32 %v2355_v19, %v4302_v11  ;;  %v2393_v54 = vadd.f32 %v2392_v63, %v2378_v22 }
 0x215   : > { %v2357_v4 = vadd.f32 %v2356_v40, %v4316_v14  ;;  %v2394_v35 = vadd.f32 %v2393_v54, %v2379_v1 }
 0x217   : > { %v2358_v42 = vrot.slane %v2357_v4, 4  ;;  %v2395_v6 = vadd.f32 %v2394_v35, %v2380_v62 }
 0x219   : > { %v2359_v55 = vadd.f32 %v2358_v42, %v2357_v4  ;;  %v2396_v10 = vrot.slane %v2395_v6, 4 }
 0x21b   : > { %v2360_v37 = vrot.slane %v2359_v55, 2  ;;  %v2397_v57 = vadd.f32 %v2396_v10, %v2395_v6 }
 0x21d   : > { %v2361_v13 = vadd.f32 %v2360_v37, %v2359_v55  ;;  %v2398_v59 = vrot.slane %v2397_v57, 2 }
 0x21f   : > { %v2362_v15 = vrot.slane %v2361_v13, 1  ;;  %v2399_v20 = vadd.f32 %v2398_v59, %v2397_v57 }
 0x221   : > { %v2363_v32 = vadd.f32 %v2362_v15, %v2361_v13  ;;  %v2400_v24 = vrot.slane %v2399_v20, 1 }
 0x223   : > { %v2364_v25 = vmul.f32 0.0078125, %v2363_v32  ;;  %v2401_v26 = vadd.f32 %v2400_v24, %v2399_v20 }
 0x225   : > { %v2402_v51 = vmul.f32 0.0078125, %v2401_v26  ;;  %v2403_v28 = vmul.f32 %v2364_v25, %v2364_v25 }
 0x227   : > { %v2404_v34 = vsub.f32 %v2402_v51, %v2403_v28 }
 0x229   : > { %v2406_v53 = vadd.f32 1e-05, %v2404_v34 }
 0x22b   : > { %3522 = vrsqrt.f32 %v2406_v53 }
 0x235   : > { %v3523_v16 = vpop.eup %3522 }
 0x236   : > { %v2408_v36 = vmul.f32 %v3523_v16, %v2405_v9 }
 0x238   : > { %v2410_v38 = vmul.f32 %v2408_v36, %v2364_v25  ;;  %v2416_v39 = vrot.slane %v2408_v36, %v2415_v33 }
 0x23a   : > { %v2411_v41 = vsub.f32 %v2409_v29, %v2410_v38  ;;  %v2418_v44 = vmul.f32 %v2416_v39, %v4273_v56  ;;  %v2421_v46 = vmul.f32 %v2416_v39, %v4278_v61  ;;  %v2422_v3 = vmul.f32 %v2416_v39, %v4305_v12 }
 0x23b   : > { %v2423_v47 = vmul.f32 %v2416_v39, %v4319_v27  ;;  %v2424_v48 = vmul.f32 %v2416_v39, %v4300_v8  ;;  %v2425_v21 = vmul.f32 %v2416_v39, %v4311_v18  ;;  %v2426_v5 = vmul.f32 %v2416_v39, %v4275_v45 }
 0x23c   : > { %v2427_v49 = vmul.f32 %v2416_v39, %v4286_v2  ;;  %v2428_v52 = vmul.f32 %v2416_v39, %v4270_v43  ;;  %v2429_v23 = vmul.f32 %v2416_v39, %v4280_v0  ;;  %v2430_v56 = vmul.f32 %v2416_v39, %v4308_v17 }
 0x23d   : > { %v2431_v61 = vmul.f32 %v2416_v39, %v4321_v7  ;;  %v2432_v12 = vmul.f32 %v2416_v39, %v4302_v11  ;;  %v2419_v27 = vmul.f32 %v2416_v39, %v4283_v60  ;;  %v2420_v8 = vmul.f32 %v2416_v39, %v4268_v50 }
 0x23e   : > { %v2433_v18 = vmul.f32 %v2416_v39, %v4316_v14  ;;  %v2438_v58 = vrot.slane %v2411_v41, %v2415_v33 }
 0x240   : > { %v2440_v45 = vadd.f32 %v2438_v58, %v2418_v44  ;;  %v2441_v19 = vadd.f32 %v2438_v58, %v2419_v27  ;;  %v2442_v2 = vadd.f32 %v2438_v58, %v2420_v8  ;;  %v2443_v22 = vadd.f32 %v2438_v58, %v2421_v46 }
 0x241   : > { %v2444_v43 = vadd.f32 %v2438_v58, %v2422_v3  ;;  %v2445_v63 = vadd.f32 %v2438_v58, %v2423_v47  ;;  %v2446_v0 = vadd.f32 %v2438_v58, %v2424_v48  ;;  %v2447_v1 = vadd.f32 %v2438_v58, %v2425_v21 }
 0x242   : > { %v2448_v17 = vadd.f32 %v2438_v58, %v2426_v5  ;;  %v2449_v40 = vadd.f32 %v2438_v58, %v2427_v49  ;;  %v2450_v7 = vadd.f32 %v2438_v58, %v2428_v52  ;;  %v2451_v54 = vadd.f32 %v2438_v58, %v2429_v23 }
 0x243   : > { %v2452_v11 = vadd.f32 %v2438_v58, %v2430_v56  ;;  %v2453_v60 = vadd.f32 %v2438_v58, %v2431_v61  ;;  %v2454_v62 = vadd.f32 %v2438_v58, %v2432_v12  ;;  %v2455_v50 = vadd.f32 %v2438_v58, %v2433_v18 }
 0x244   : > { %vm2456_vm0 = vcmp.gt.f32.partialorder %v2440_v45, 0.0  ;;  %vm2457_vm1 = vcmp.gt.f32.partialorder %v2441_v19, 0.0  ;;  %vm2458_vm2 = vcmp.gt.f32.partialorder %v2442_v2, 0.0  ;;  %vm2459_vm3 = vcmp.gt.f32.partialorder %v2443_v22, 0.0 }
 0x245   : > { %vm2460_vm4 = vcmp.gt.f32.partialorder %v2444_v43, 0.0  ;;  %vm2461_vm5 = vcmp.gt.f32.partialorder %v2445_v63, 0.0  ;;  %vm2462_vm6 = vcmp.gt.f32.partialorder %v2446_v0, 0.0  ;;  %vm2463_vm7 = vcmp.gt.f32.partialorder %v2447_v1, 0.0 }
 0x246   : > { %vm2464_vm8 = vcmp.gt.f32.partialorder %v2448_v17, 0.0  ;;  %vm2465_vm9 = vcmp.gt.f32.partialorder %v2449_v40, 0.0  ;;  %vm2466_vm10 = vcmp.gt.f32.partialorder %v2450_v7, 0.0  ;;  %vm2467_vm11 = vcmp.gt.f32.partialorder %v2451_v54, 0.0 }
 0x247   : > { %vm2468_vm12 = vcmp.gt.f32.partialorder %v2452_v11, 0.0  ;;  %vm2469_vm13 = vcmp.gt.f32.partialorder %v2453_v60, 0.0  ;;  %vm2470_vm14 = vcmp.gt.f32.partialorder %v2454_v62, 0.0  ;;  %vm2471_vm15 = vcmp.gt.f32.partialorder %v2455_v50, 0.0 }
 0x248   : > { %v2472_v14 = vmul.f32 0.2, %v2440_v45  ;;  %v2473_v4 = vmul.f32 0.2, %v2441_v19  ;;  %v2474_v35 = vmul.f32 0.2, %v2442_v2 }
 0x249   : > { %v2475_v42 = vmul.f32 0.2, %v2443_v22  ;;  %v2476_v6 = vmul.f32 0.2, %v2444_v43  ;;  %v2477_v55 = vmul.f32 0.2, %v2445_v63 }
 0x24a   : > { %v2478_v10 = vmul.f32 0.2, %v2446_v0  ;;  %v2479_v37 = vmul.f32 0.2, %v2447_v1  ;;  %v2480_v57 = vmul.f32 0.2, %v2448_v17  ;;  %v2488_v13 = vsel %vm2456_vm0, %v2440_v45, %v2472_v14 }
 0x24b   : > { %v2481_v59 = vmul.f32 0.2, %v2449_v40  ;;  %v2482_v15 = vmul.f32 0.2, %v2450_v7  ;;  %v2483_v20 = vmul.f32 0.2, %v2451_v54  ;;  %v2489_v32 = vsel %vm2457_vm1, %v2441_v19, %v2473_v4 }
 0x24c   : > { %v2484_v24 = vmul.f32 0.2, %v2452_v11  ;;  %v2485_v25 = vmul.f32 0.2, %v2453_v60  ;;  %v2486_v26 = vmul.f32 0.2, %v2454_v62  ;;  %v2490_v51 = vsel %vm2458_vm2, %v2442_v2, %v2474_v35 }
 0x24d   : > { %v2487_v28 = vmul.f32 0.2, %v2455_v50  ;;  %v2491_v34 = vsel %vm2459_vm3, %v2443_v22, %v2475_v42  ;;  %v2492_v53 = vsel %vm2460_vm4, %v2444_v43, %v2476_v6  ;;  %v2493_v30 = vsel %vm2461_vm5, %v2445_v63, %v2477_v55 }
 0x24e   : > { %v2494_v31 = vsel %vm2462_vm6, %v2446_v0, %v2478_v10  ;;  %v2495_v9 = vsel %vm2463_vm7, %v2447_v1, %v2479_v37  ;;  %v2496_v33 = vsel %vm2464_vm8, %v2448_v17, %v2480_v57  ;;  %v2497_v16 = vsel %vm2465_vm9, %v2449_v40, %v2481_v59 }
 0x24f   : > { %v2498_v36 = vsel %vm2466_vm10, %v2450_v7, %v2482_v15  ;;  %v2499_v29 = vsel %vm2467_vm11, %v2451_v54, %v2483_v20  ;;  %v2500_v38 = vsel %vm2468_vm12, %v2452_v11, %v2484_v24  ;;  %v2501_v39 = vsel %vm2469_vm13, %v2453_v60, %v2485_v25  ;;  %2590 = sbr.rel (!%p3604_p5) target bundleno = 612 (0x264), region = 81 }
 0x250   : > { %v2502_v41 = vsel %vm2470_vm14, %v2454_v62, %v2486_v26  ;;  %v2503_v44 = vsel %vm2471_vm15, %v2455_v50, %v2487_v28  ;;  %v2956_v46 = vpack.c.bf16 %v2489_v32, %v2488_v13  ;;  %v2961_v3 = vpack.c.bf16 %v2491_v34, %v2490_v51 }
 0x251   : > { %v2966_v47 = vpack.c.bf16 %v2493_v30, %v2492_v53  ;;  %v2971_v48 = vpack.c.bf16 %v2495_v9, %v2494_v31  ;;  %v2976_v21 = vpack.c.bf16 %v2497_v16, %v2496_v33  ;;  %v2981_v5 = vpack.c.bf16 %v2499_v29, %v2498_v36 }
 0x252   : > { %2957 = vst [vmem:[%s4401_s15] sm:$0xff] %v2956_v46   ;;  %2993 = vst [vmem:[%s4401_s15 + $0x8] sm:$0xff] %v2961_v3   ;;  %v2986_v49 = vpack.c.bf16 %v2501_v39, %v2500_v38  ;;  %v2991_v52 = vpack.c.bf16 %v2503_v44, %v2502_v41 }
 0x253   : > { %2994 = vst [vmem:[%s4401_s15 + $0x10] sm:$0xff] %v2966_v47   ;;  %2995 = vst [vmem:[%s4401_s15 + $0x18] sm:$0xff] %v2971_v48  }
 0x254   : > { %2996 = vst [vmem:[%s4401_s15 + $0x20] sm:$0xff] %v2976_v21   ;;  %2997 = vst [vmem:[%s4401_s15 + $0x28] sm:$0xff] %v2981_v5  }
 0x255   : > { %2998 = vst [vmem:[%s4401_s15 + $0x30] sm:$0xff] %v2986_v49   ;;  %2999 = vst [vmem:[%s4401_s15 + $0x38] sm:$0xff] %v2991_v52  }
 0x259   : > { %v2608_v23 = vld [vmem:[%s4401_s15] sm:$0xf]  ;;  %v2610_v56 = vld [vmem:[%s4401_s15 + $0x4] sm:$0xf]  ;;  %v2612_v61 = vld [vmem:[%s4401_s15 + $0x8] sm:$0xf] }
 0x25a   : > { %v2614_v12 = vld [vmem:[%s4401_s15 + $0xc] sm:$0xf]  ;;  %v2616_v27 = vld [vmem:[%s4401_s15 + $0x10] sm:$0xf]  ;;  %2609 = vst [vmem:[%s2592_s17] sm:$0xf] %v2608_v23 }
 0x25b   : > { %2611 = vst [vmem:[%s2592_s17 + $0x8] sm:$0xf] %v2610_v56  ;;  %2613 = vst [vmem:[%s2592_s17 + $0x10] sm:$0xf] %v2612_v61  ;;  %v2618_v8 = vld [vmem:[%s4401_s15 + $0x14] sm:$0xf] }
 0x25c   : > { %2615 = vst [vmem:[%s2592_s17 + $0x18] sm:$0xf] %v2614_v12  ;;  %2617 = vst [vmem:[%s2592_s17 + $0x20] sm:$0xf] %v2616_v27  ;;  %v2620_v18 = vld [vmem:[%s4401_s15 + $0x18] sm:$0xf] }
 0x25d   : > { %v2622_v58 = vld [vmem:[%s4401_s15 + $0x1c] sm:$0xf]  ;;  %2619 = vst [vmem:[%s2592_s17 + $0x28] sm:$0xf] %v2618_v8  ;;  %2621 = vst [vmem:[%s2592_s17 + $0x30] sm:$0xf] %v2620_v18 }
 0x25e   : > { %2623 = vst [vmem:[%s2592_s17 + $0x38] sm:$0xf] %v2622_v58  ;;  %v2624_v45 = vld [vmem:[%s4401_s15 + $0x20] sm:$0xf]  ;;  %v2626_v19 = vld [vmem:[%s4401_s15 + $0x24] sm:$0xf] }
 0x25f   : > { %v2628_v2 = vld [vmem:[%s4401_s15 + $0x28] sm:$0xf]  ;;  %2625 = vst [vmem:[%s2592_s17 + $0x40] sm:$0xf] %v2624_v45  ;;  %2627 = vst [vmem:[%s2592_s17 + $0x48] sm:$0xf] %v2626_v19 }
 0x260   : > { %2629 = vst [vmem:[%s2592_s17 + $0x50] sm:$0xf] %v2628_v2  ;;  %v2630_v22 = vld [vmem:[%s4401_s15 + $0x2c] sm:$0xf]  ;;  %v2632_v43 = vld [vmem:[%s4401_s15 + $0x30] sm:$0xf] }
 0x261   : > { %v2634_v63 = vld [vmem:[%s4401_s15 + $0x34] sm:$0xf]  ;;  %2631 = vst [vmem:[%s2592_s17 + $0x58] sm:$0xf] %v2630_v22  ;;  %2633 = vst [vmem:[%s2592_s17 + $0x60] sm:$0xf] %v2632_v43 }
 0x262   : > { %2635 = vst [vmem:[%s2592_s17 + $0x68] sm:$0xf] %v2634_v63  ;;  %v2636_v0 = vld [vmem:[%s4401_s15 + $0x38] sm:$0xf]  ;;  %v2638_v1 = vld [vmem:[%s4401_s15 + $0x3c] sm:$0xf] }
 0x263   : > { %2637 = vst [vmem:[%s2592_s17 + $0x70] sm:$0xf] %v2636_v0  ;;  %2639 = vst [vmem:[%s2592_s17 + $0x78] sm:$0xf] %v2638_v1 }
 0x264 PF: > { %p11_p11 = scmp.ge.s32.totalorder %s3592_s19, 4   ;;  %s4449_s15 = smov %s3542_s16 }
 0x265   : > { %s4450_s16 = smov %s3602_s22  ;;  %s4451_s17 = smov %s3592_s19 }
 0x266   :  { %13 = sbr.rel (!%p11_p11) target bundleno = 2 (0x2), region = 159 }

// kernel: discriminator_forward.9
= control target key start
LH: loop header
LB: loop body
LE: loop exit
PB: predicated region body
PF: predicated region fallthrough
CT: control target
= control target key end

     0   :  { %s5164_s15 = smov 0   ;;  %s5166_s16 = smov 0   ;;  %s6269_s0 = inlined_call_operand.vmem [shape: bf16[32,2304], index: 0, kind: input, shape index: {}]   ;;  %s6270_s1 = inlined_call_operand.vmem [shape: bf16[2304,512], index: 1, kind: input, shape index: {}]   ;;  %s6271_s2 = inlined_call_operand.vmem [shape: f32[1,512], index: 2, kind: input, shape index: {}]   ;;  %s6272_s3 = inlined_call_operand.vmem [shape: f32[1,512], index: 3, kind: input, shape index: {}]   ;;  %s6273_s4 = inlined_call_operand.vmem [shape: bf16[32,512], index: 4, kind: output, shape index: {}]  }
   0x1   :  { %s5168_s17 = smov 0  }
   0x2 LB: > { %s5180_s18 = sadd.s32 4294967295, %s5136_s17   ;;  %s5183_s19 = sadd.s32 1, %s5136_s17   ;;  %s5136_s17 = sphi %s5168_s17, %s6277_s17   ;;  %s5132_s16 = sphi %s5166_s16, %s6276_s16   ;;  %s5128_s15 = sphi %s5164_s15, %s6275_s15  }
   0x3   : > { %s39_s20 = ssub.s32 %s5136_s17, %s5183_s19  ;;  %s42_s21 = sadd.s32 1, %s5132_s16 }
   0x4   : > { %p40_p0 = scmp.eq.s32.totalorder %s39_s20, 0  ;;  %p49_p1 = scmp.ne.s32.totalorder %s5132_s16, %s5128_s15 }
   0x5   : > { %p50_p2 = scmp.eq.s32.totalorder %s5136_s17, 0  ;;  %p131_p3 = scmp.eq.s32.totalorder %s5180_s18, 1 }
   0x6   : > { %s5193_s22 = scalar_select %p40_p0, %s5132_s16, %s42_s21  }
   0x7   : > { %p51_p4 = por %p50_p2, %p49_p1  ;;  %p5195_p5 = por %p131_p3, %p49_p1 }
   0x8   : > { %p4155_p6 = scmp.ge.s32.totalorder %s5136_s17, 2 }
   0xa   : > { %156 = sbr.rel (%p4155_p6) target bundleno = 165 (0xa5), region = 20 }
  0x11   : > { %159 = sbr.rel (!%p51_p4) target bundleno = 165 (0xa5), region = 24  ;;  %s161_s24 = sand.u32 (%p51_p4), 1, %s5132_s16  }
  0x12   : > { %s4495_s25 = sshll.u32 (%p51_p4), %s5136_s17, 3  ;;  %s4597_s26 = smul.u32 (%p51_p4), 2304, %s161_s24 }
  0x13   : > { %s5205_s29 = scalar_lea.vmem (%p51_p4), %s6270_s1, %s4495_s25 }
  0x14   : > { %v768_v0 = vld [vmem:[%s5205_s29] sm:$0xff] (%p51_p4)  ;;  %v770_v1 = vld [vmem:[%s5205_s29 + $0x10] sm:$0xff] (%p51_p4)  ;;  %s5213_s30 = scalar_lea.vmem (%p51_p4), [#allocation2], %s4597_s26 }
  0x15   : > { %v772_v2 = vld [vmem:[%s5205_s29 + $0x20] sm:$0xff] (%p51_p4)  ;;  %v774_v3 = vld [vmem:[%s5205_s29 + $0x30] sm:$0xff] (%p51_p4)  ;;  %769 = vst [vmem:[%s5213_s30] sm:$0xff] (%p51_p4), %v768_v0  ;;  %771 = vst [vmem:[%s5213_s30 + $0x8] sm:$0xff] (%p51_p4), %v770_v1 }
  0x16   : > { %v776_v4 = vld [vmem:[%s5205_s29 + $0x40] sm:$0xff] (%p51_p4)  ;;  %v778_v5 = vld [vmem:[%s5205_s29 + $0x50] sm:$0xff] (%p51_p4)  ;;  %773 = vst [vmem:[%s5213_s30 + $0x10] sm:$0xff] (%p51_p4), %v772_v2  ;;  %775 = vst [vmem:[%s5213_s30 + $0x18] sm:$0xff] (%p51_p4), %v774_v3 }
  0x17   : > { %777 = vst [vmem:[%s5213_s30 + $0x20] sm:$0xff] (%p51_p4), %v776_v4  ;;  %779 = vst [vmem:[%s5213_s30 + $0x28] sm:$0xff] (%p51_p4), %v778_v5  ;;  %v780_v6 = vld [vmem:[%s5205_s29 + $0x60] sm:$0xff] (%p51_p4)  ;;  %v782_v7 = vld [vmem:[%s5205_s29 + $0x70] sm:$0xff] (%p51_p4) }
  0x18   : > { %v784_v8 = vld [vmem:[%s5205_s29 + $0x80] sm:$0xff]  ;;  %781 = vst [vmem:[%s5213_s30 + $0x30] sm:$0xff] %v780_v6  ;;  %783 = vst [vmem:[%s5213_s30 + $0x38] sm:$0xff] %v782_v7  ;;  %v786_v9 = vld [vmem:[%s5205_s29 + $0x90] sm:$0xff] }
  0x19   : > { %785 = vst [vmem:[%s5213_s30 + $0x40] sm:$0xff] %v784_v8  ;;  %v788_v10 = vld [vmem:[%s5205_s29 + $0xa0] sm:$0xff]  ;;  %v790_v11 = vld [vmem:[%s5205_s29 + $0xb0] sm:$0xff]  ;;  %787 = vst [vmem:[%s5213_s30 + $0x48] sm:$0xff] %v786_v9 }
  0x1a   : > { %789 = vst [vmem:[%s5213_s30 + $0x50] sm:$0xff] %v788_v10  ;;  %791 = vst [vmem:[%s5213_s30 + $0x58] sm:$0xff] %v790_v11  ;;  %v792_v12 = vld [vmem:[%s5205_s29 + $0xc0] sm:$0xff]  ;;  %v794_v13 = vld [vmem:[%s5205_s29 + $0xd0] sm:$0xff] }
  0x1b   : > { %v796_v14 = vld [vmem:[%s5205_s29 + $0xe0] sm:$0xff]  ;;  %793 = vst [vmem:[%s5213_s30 + $0x60] sm:$0xff] %v792_v12  ;;  %795 = vst [vmem:[%s5213_s30 + $0x68] sm:$0xff] %v794_v13  ;;  %v798_v15 = vld [vmem:[%s5205_s29 + $0xf0] sm:$0xff] }
  0x1c   : > { %797 = vst [vmem:[%s5213_s30 + $0x70] sm:$0xff] %v796_v14  ;;  %v800_v16 = vld [vmem:[%s5205_s29 + $0x100] sm:$0xff]  ;;  %v802_v17 = vld [vmem:[%s5205_s29 + $0x110] sm:$0xff]  ;;  %799 = vst [vmem:[%s5213_s30 + $0x78] sm:$0xff] %v798_v15 }
  0x1d   : > { %801 = vst [vmem:[%s5213_s30 + $0x80] sm:$0xff] %v800_v16  ;;  %803 = vst [vmem:[%s5213_s30 + $0x88] sm:$0xff] %v802_v17  ;;  %v804_v18 = vld [vmem:[%s5205_s29 + $0x120] sm:$0xff]  ;;  %v806_v19 = vld [vmem:[%s5205_s29 + $0x130] sm:$0xff] }
  0x1e   : > { %v808_v20 = vld [vmem:[%s5205_s29 + $0x140] sm:$0xff]  ;;  %805 = vst [vmem:[%s5213_s30 + $0x90] sm:$0xff] %v804_v18  ;;  %807 = vst [vmem:[%s5213_s30 + $0x98] sm:$0xff] %v806_v19  ;;  %v810_v21 = vld [vmem:[%s5205_s29 + $0x150] sm:$0xff] }
  0x1f   : > { %809 = vst [vmem:[%s5213_s30 + $0xa0] sm:$0xff] %v808_v20  ;;  %v812_v22 = vld [vmem:[%s5205_s29 + $0x160] sm:$0xff]  ;;  %v814_v23 = vld [vmem:[%s5205_s29 + $0x170] sm:$0xff]  ;;  %811 = vst [vmem:[%s5213_s30 + $0xa8] sm:$0xff] %v810_v21 }
  0x20   : > { %813 = vst [vmem:[%s5213_s30 + $0xb0] sm:$0xff] %v812_v22  ;;  %815 = vst [vmem:[%s5213_s30 + $0xb8] sm:$0xff] %v814_v23  ;;  %v816_v24 = vld [vmem:[%s5205_s29 + $0x180] sm:$0xff]  ;;  %v818_v25 = vld [vmem:[%s5205_s29 + $0x190] sm:$0xff] }
  0x21   : > { %v820_v26 = vld [vmem:[%s5205_s29 + $0x1a0] sm:$0xff]  ;;  %817 = vst [vmem:[%s5213_s30 + $0xc0] sm:$0xff] %v816_v24  ;;  %819 = vst [vmem:[%s5213_s30 + $0xc8] sm:$0xff] %v818_v25  ;;  %v822_v27 = vld [vmem:[%s5205_s29 + $0x1b0] sm:$0xff] }
  0x22   : > { %821 = vst [vmem:[%s5213_s30 + $0xd0] sm:$0xff] %v820_v26  ;;  %v824_v28 = vld [vmem:[%s5205_s29 + $0x1c0] sm:$0xff]  ;;  %v826_v29 = vld [vmem:[%s5205_s29 + $0x1d0] sm:$0xff]  ;;  %823 = vst [vmem:[%s5213_s30 + $0xd8] sm:$0xff] %v822_v27 }
  0x23   : > { %825 = vst [vmem:[%s5213_s30 + $0xe0] sm:$0xff] %v824_v28  ;;  %827 = vst [vmem:[%s5213_s30 + $0xe8] sm:$0xff] %v826_v29  ;;  %v828_v30 = vld [vmem:[%s5205_s29 + $0x1e0] sm:$0xff]  ;;  %v830_v31 = vld [vmem:[%s5205_s29 + $0x1f0] sm:$0xff] }
  0x24   : > { %v832_v32 = vld [vmem:[%s5205_s29 + $0x200] sm:$0xff]  ;;  %829 = vst [vmem:[%s5213_s30 + $0xf0] sm:$0xff] %v828_v30  ;;  %831 = vst [vmem:[%s5213_s30 + $0xf8] sm:$0xff] %v830_v31  ;;  %v834_v33 = vld [vmem:[%s5205_s29 + $0x210] sm:$0xff] }
  0x25   : > { %833 = vst [vmem:[%s5213_s30 + $0x100] sm:$0xff] %v832_v32  ;;  %v836_v34 = vld [vmem:[%s5205_s29 + $0x220] sm:$0xff]  ;;  %v838_v35 = vld [vmem:[%s5205_s29 + $0x230] sm:$0xff]  ;;  %835 = vst [vmem:[%s5213_s30 + $0x108] sm:$0xff] %v834_v33 }
  0x26   : > { %837 = vst [vmem:[%s5213_s30 + $0x110] sm:$0xff] %v836_v34  ;;  %839 = vst [vmem:[%s5213_s30 + $0x118] sm:$0xff] %v838_v35  ;;  %v840_v36 = vld [vmem:[%s5205_s29 + $0x240] sm:$0xff]  ;;  %v842_v37 = vld [vmem:[%s5205_s29 + $0x250] sm:$0xff] }
  0x27   : > { %v844_v38 = vld [vmem:[%s5205_s29 + $0x260] sm:$0xff]  ;;  %841 = vst [vmem:[%s5213_s30 + $0x120] sm:$0xff] %v840_v36  ;;  %843 = vst [vmem:[%s5213_s30 + $0x128] sm:$0xff] %v842_v37  ;;  %v846_v39 = vld [vmem:[%s5205_s29 + $0x270] sm:$0xff] }
  0x28   : > { %845 = vst [vmem:[%s5213_s30 + $0x130] sm:$0xff] %v844_v38  ;;  %v848_v40 = vld [vmem:[%s5205_s29 + $0x280] sm:$0xff]  ;;  %v850_v41 = vld [vmem:[%s5205_s29 + $0x290] sm:$0xff]  ;;  %847 = vst [vmem:[%s5213_s30 + $0x138] sm:$0xff] %v846_v39 }
  0x29   : > { %849 = vst [vmem:[%s5213_s30 + $0x140] sm:$0xff] %v848_v40  ;;  %851 = vst [vmem:[%s5213_s30 + $0x148] sm:$0xff] %v850_v41  ;;  %v852_v42 = vld [vmem:[%s5205_s29 + $0x2a0] sm:$0xff]  ;;  %v854_v43 = vld [vmem:[%s5205_s29 + $0x2b0] sm:$0xff] }
  0x2a   : > { %v856_v44 = vld [vmem:[%s5205_s29 + $0x2c0] sm:$0xff]  ;;  %853 = vst [vmem:[%s5213_s30 + $0x150] sm:$0xff] %v852_v42  ;;  %855 = vst [vmem:[%s5213_s30 + $0x158] sm:$0xff] %v854_v43  ;;  %v858_v45 = vld [vmem:[%s5205_s29 + $0x2d0] sm:$0xff] }
  0x2b   : > { %857 = vst [vmem:[%s5213_s30 + $0x160] sm:$0xff] %v856_v44  ;;  %v860_v46 = vld [vmem:[%s5205_s29 + $0x2e0] sm:$0xff]  ;;  %v862_v47 = vld [vmem:[%s5205_s29 + $0x2f0] sm:$0xff]  ;;  %859 = vst [vmem:[%s5213_s30 + $0x168] sm:$0xff] %v858_v45 }
  0x2c   : > { %861 = vst [vmem:[%s5213_s30 + $0x170] sm:$0xff] %v860_v46  ;;  %863 = vst [vmem:[%s5213_s30 + $0x178] sm:$0xff] %v862_v47  ;;  %v864_v48 = vld [vmem:[%s5205_s29 + $0x300] sm:$0xff]  ;;  %v866_v49 = vld [vmem:[%s5205_s29 + $0x310] sm:$0xff] }
  0x2d   : > { %v868_v50 = vld [vmem:[%s5205_s29 + $0x320] sm:$0xff]  ;;  %865 = vst [vmem:[%s5213_s30 + $0x180] sm:$0xff] %v864_v48  ;;  %867 = vst [vmem:[%s5213_s30 + $0x188] sm:$0xff] %v866_v49  ;;  %v870_v51 = vld [vmem:[%s5205_s29 + $0x330] sm:$0xff] }
  0x2e   : > { %869 = vst [vmem:[%s5213_s30 + $0x190] sm:$0xff] %v868_v50  ;;  %v872_v52 = vld [vmem:[%s5205_s29 + $0x340] sm:$0xff]  ;;  %v874_v53 = vld [vmem:[%s5205_s29 + $0x350] sm:$0xff]  ;;  %871 = vst [vmem:[%s5213_s30 + $0x198] sm:$0xff] %v870_v51 }
  0x2f   : > { %873 = vst [vmem:[%s5213_s30 + $0x1a0] sm:$0xff] %v872_v52  ;;  %875 = vst [vmem:[%s5213_s30 + $0x1a8] sm:$0xff] %v874_v53  ;;  %v876_v54 = vld [vmem:[%s5205_s29 + $0x360] sm:$0xff]  ;;  %v878_v55 = vld [vmem:[%s5205_s29 + $0x370] sm:$0xff] }
  0x30   : > { %v880_v56 = vld [vmem:[%s5205_s29 + $0x380] sm:$0xff]  ;;  %877 = vst [vmem:[%s5213_s30 + $0x1b0] sm:$0xff] %v876_v54  ;;  %879 = vst [vmem:[%s5213_s30 + $0x1b8] sm:$0xff] %v878_v55  ;;  %v882_v57 = vld [vmem:[%s5205_s29 + $0x390] sm:$0xff] }
  0x31   : > { %881 = vst [vmem:[%s5213_s30 + $0x1c0] sm:$0xff] %v880_v56  ;;  %v884_v58 = vld [vmem:[%s5205_s29 + $0x3a0] sm:$0xff]  ;;  %v886_v59 = vld [vmem:[%s5205_s29 + $0x3b0] sm:$0xff]  ;;  %883 = vst [vmem:[%s5213_s30 + $0x1c8] sm:$0xff] %v882_v57 }
  0x32   : > { %885 = vst [vmem:[%s5213_s30 + $0x1d0] sm:$0xff] %v884_v58  ;;  %887 = vst [vmem:[%s5213_s30 + $0x1d8] sm:$0xff] %v886_v59  ;;  %v888_v60 = vld [vmem:[%s5205_s29 + $0x3c0] sm:$0xff]  ;;  %v890_v61 = vld [vmem:[%s5205_s29 + $0x3d0] sm:$0xff] }
  0x33   : > { %v892_v62 = vld [vmem:[%s5205_s29 + $0x3e0] sm:$0xff]  ;;  %889 = vst [vmem:[%s5213_s30 + $0x1e0] sm:$0xff] %v888_v60  ;;  %891 = vst [vmem:[%s5213_s30 + $0x1e8] sm:$0xff] %v890_v61  ;;  %v894_v63 = vld [vmem:[%s5205_s29 + $0x3f0] sm:$0xff] }
  0x34   : > { %893 = vst [vmem:[%s5213_s30 + $0x1f0] sm:$0xff] %v892_v62  ;;  %v896_v0 = vld [vmem:[%s5205_s29 + $0x400] sm:$0xff]  ;;  %v898_v1 = vld [vmem:[%s5205_s29 + $0x410] sm:$0xff]  ;;  %895 = vst [vmem:[%s5213_s30 + $0x1f8] sm:$0xff] %v894_v63 }
  0x35   : > { %897 = vst [vmem:[%s5213_s30 + $0x200] sm:$0xff] %v896_v0  ;;  %899 = vst [vmem:[%s5213_s30 + $0x208] sm:$0xff] %v898_v1  ;;  %v900_v2 = vld [vmem:[%s5205_s29 + $0x420] sm:$0xff]  ;;  %v902_v3 = vld [vmem:[%s5205_s29 + $0x430] sm:$0xff] }
  0x36   : > { %v904_v4 = vld [vmem:[%s5205_s29 + $0x440] sm:$0xff]  ;;  %901 = vst [vmem:[%s5213_s30 + $0x210] sm:$0xff] %v900_v2  ;;  %903 = vst [vmem:[%s5213_s30 + $0x218] sm:$0xff] %v902_v3  ;;  %v906_v5 = vld [vmem:[%s5205_s29 + $0x450] sm:$0xff] }
  0x37   : > { %905 = vst [vmem:[%s5213_s30 + $0x220] sm:$0xff] %v904_v4  ;;  %v908_v6 = vld [vmem:[%s5205_s29 + $0x460] sm:$0xff]  ;;  %v910_v7 = vld [vmem:[%s5205_s29 + $0x470] sm:$0xff]  ;;  %907 = vst [vmem:[%s5213_s30 + $0x228] sm:$0xff] %v906_v5 }
  0x38   : > { %909 = vst [vmem:[%s5213_s30 + $0x230] sm:$0xff] %v908_v6  ;;  %911 = vst [vmem:[%s5213_s30 + $0x238] sm:$0xff] %v910_v7  ;;  %v912_v8 = vld [vmem:[%s5205_s29 + $0x480] sm:$0xff]  ;;  %v914_v9 = vld [vmem:[%s5205_s29 + $0x490] sm:$0xff] }
  0x39   : > { %v916_v10 = vld [vmem:[%s5205_s29 + $0x4a0] sm:$0xff]  ;;  %913 = vst [vmem:[%s5213_s30 + $0x240] sm:$0xff] %v912_v8  ;;  %915 = vst [vmem:[%s5213_s30 + $0x248] sm:$0xff] %v914_v9  ;;  %v918_v11 = vld [vmem:[%s5205_s29 + $0x4b0] sm:$0xff] }
  0x3a   : > { %917 = vst [vmem:[%s5213_s30 + $0x250] sm:$0xff] %v916_v10  ;;  %v920_v12 = vld [vmem:[%s5205_s29 + $0x4c0] sm:$0xff]  ;;  %v922_v13 = vld [vmem:[%s5205_s29 + $0x4d0] sm:$0xff]  ;;  %919 = vst [vmem:[%s5213_s30 + $0x258] sm:$0xff] %v918_v11 }
  0x3b   : > { %921 = vst [vmem:[%s5213_s30 + $0x260] sm:$0xff] %v920_v12  ;;  %923 = vst [vmem:[%s5213_s30 + $0x268] sm:$0xff] %v922_v13  ;;  %v924_v14 = vld [vmem:[%s5205_s29 + $0x4e0] sm:$0xff]  ;;  %v926_v15 = vld [vmem:[%s5205_s29 + $0x4f0] sm:$0xff] }
  0x3c   : > { %v928_v16 = vld [vmem:[%s5205_s29 + $0x500] sm:$0xff]  ;;  %925 = vst [vmem:[%s5213_s30 + $0x270] sm:$0xff] %v924_v14  ;;  %927 = vst [vmem:[%s5213_s30 + $0x278] sm:$0xff] %v926_v15  ;;  %v930_v17 = vld [vmem:[%s5205_s29 + $0x510] sm:$0xff] }
  0x3d   : > { %929 = vst [vmem:[%s5213_s30 + $0x280] sm:$0xff] %v928_v16  ;;  %v932_v18 = vld [vmem:[%s5205_s29 + $0x520] sm:$0xff]  ;;  %v934_v19 = vld [vmem:[%s5205_s29 + $0x530] sm:$0xff]  ;;  %931 = vst [vmem:[%s5213_s30 + $0x288] sm:$0xff] %v930_v17 }
  0x3e   : > { %933 = vst [vmem:[%s5213_s30 + $0x290] sm:$0xff] %v932_v18  ;;  %935 = vst [vmem:[%s5213_s30 + $0x298] sm:$0xff] %v934_v19  ;;  %v936_v20 = vld [vmem:[%s5205_s29 + $0x540] sm:$0xff]  ;;  %v938_v21 = vld [vmem:[%s5205_s29 + $0x550] sm:$0xff] }
  0x3f   : > { %v940_v22 = vld [vmem:[%s5205_s29 + $0x560] sm:$0xff]  ;;  %937 = vst [vmem:[%s5213_s30 + $0x2a0] sm:$0xff] %v936_v20  ;;  %939 = vst [vmem:[%s5213_s30 + $0x2a8] sm:$0xff] %v938_v21  ;;  %v942_v23 = vld [vmem:[%s5205_s29 + $0x570] sm:$0xff] }
  0x40   : > { %941 = vst [vmem:[%s5213_s30 + $0x2b0] sm:$0xff] %v940_v22  ;;  %v944_v24 = vld [vmem:[%s5205_s29 + $0x580] sm:$0xff]  ;;  %v946_v25 = vld [vmem:[%s5205_s29 + $0x590] sm:$0xff]  ;;  %943 = vst [vmem:[%s5213_s30 + $0x2b8] sm:$0xff] %v942_v23 }
  0x41   : > { %945 = vst [vmem:[%s5213_s30 + $0x2c0] sm:$0xff] %v944_v24  ;;  %947 = vst [vmem:[%s5213_s30 + $0x2c8] sm:$0xff] %v946_v25  ;;  %v948_v26 = vld [vmem:[%s5205_s29 + $0x5a0] sm:$0xff]  ;;  %v950_v27 = vld [vmem:[%s5205_s29 + $0x5b0] sm:$0xff] }
  0x42   : > { %v952_v28 = vld [vmem:[%s5205_s29 + $0x5c0] sm:$0xff]  ;;  %949 = vst [vmem:[%s5213_s30 + $0x2d0] sm:$0xff] %v948_v26  ;;  %951 = vst [vmem:[%s5213_s30 + $0x2d8] sm:$0xff] %v950_v27  ;;  %v954_v29 = vld [vmem:[%s5205_s29 + $0x5d0] sm:$0xff] }
  0x43   : > { %953 = vst [vmem:[%s5213_s30 + $0x2e0] sm:$0xff] %v952_v28  ;;  %v956_v30 = vld [vmem:[%s5205_s29 + $0x5e0] sm:$0xff]  ;;  %v958_v31 = vld [vmem:[%s5205_s29 + $0x5f0] sm:$0xff]  ;;  %955 = vst [vmem:[%s5213_s30 + $0x2e8] sm:$0xff] %v954_v29 }
  0x44   : > { %957 = vst [vmem:[%s5213_s30 + $0x2f0] sm:$0xff] %v956_v30  ;;  %959 = vst [vmem:[%s5213_s30 + $0x2f8] sm:$0xff] %v958_v31  ;;  %v960_v32 = vld [vmem:[%s5205_s29 + $0x600] sm:$0xff]  ;;  %v962_v33 = vld [vmem:[%s5205_s29 + $0x610] sm:$0xff] }
  0x45   : > { %v964_v34 = vld [vmem:[%s5205_s29 + $0x620] sm:$0xff]  ;;  %961 = vst [vmem:[%s5213_s30 + $0x300] sm:$0xff] %v960_v32  ;;  %963 = vst [vmem:[%s5213_s30 + $0x308] sm:$0xff] %v962_v33  ;;  %v966_v35 = vld [vmem:[%s5205_s29 + $0x630] sm:$0xff] }
  0x46   : > { %965 = vst [vmem:[%s5213_s30 + $0x310] sm:$0xff] %v964_v34  ;;  %v968_v36 = vld [vmem:[%s5205_s29 + $0x640] sm:$0xff]  ;;  %v970_v37 = vld [vmem:[%s5205_s29 + $0x650] sm:$0xff]  ;;  %967 = vst [vmem:[%s5213_s30 + $0x318] sm:$0xff] %v966_v35 }
  0x47   : > { %969 = vst [vmem:[%s5213_s30 + $0x320] sm:$0xff] %v968_v36  ;;  %971 = vst [vmem:[%s5213_s30 + $0x328] sm:$0xff] %v970_v37  ;;  %v972_v38 = vld [vmem:[%s5205_s29 + $0x660] sm:$0xff]  ;;  %v974_v39 = vld [vmem:[%s5205_s29 + $0x670] sm:$0xff] }
  0x48   : > { %v976_v40 = vld [vmem:[%s5205_s29 + $0x680] sm:$0xff]  ;;  %973 = vst [vmem:[%s5213_s30 + $0x330] sm:$0xff] %v972_v38  ;;  %975 = vst [vmem:[%s5213_s30 + $0x338] sm:$0xff] %v974_v39  ;;  %v978_v41 = vld [vmem:[%s5205_s29 + $0x690] sm:$0xff] }
  0x49   : > { %977 = vst [vmem:[%s5213_s30 + $0x340] sm:$0xff] %v976_v40  ;;  %v980_v42 = vld [vmem:[%s5205_s29 + $0x6a0] sm:$0xff]  ;;  %v982_v43 = vld [vmem:[%s5205_s29 + $0x6b0] sm:$0xff]  ;;  %979 = vst [vmem:[%s5213_s30 + $0x348] sm:$0xff] %v978_v41 }
  0x4a   : > { %981 = vst [vmem:[%s5213_s30 + $0x350] sm:$0xff] %v980_v42  ;;  %983 = vst [vmem:[%s5213_s30 + $0x358] sm:$0xff] %v982_v43  ;;  %v984_v44 = vld [vmem:[%s5205_s29 + $0x6c0] sm:$0xff]  ;;  %v986_v45 = vld [vmem:[%s5205_s29 + $0x6d0] sm:$0xff] }
  0x4b   : > { %v988_v46 = vld [vmem:[%s5205_s29 + $0x6e0] sm:$0xff]  ;;  %985 = vst [vmem:[%s5213_s30 + $0x360] sm:$0xff] %v984_v44  ;;  %987 = vst [vmem:[%s5213_s30 + $0x368] sm:$0xff] %v986_v45  ;;  %v990_v47 = vld [vmem:[%s5205_s29 + $0x6f0] sm:$0xff] }
  0x4c   : > { %989 = vst [vmem:[%s5213_s30 + $0x370] sm:$0xff] %v988_v46  ;;  %v992_v48 = vld [vmem:[%s5205_s29 + $0x700] sm:$0xff]  ;;  %v994_v49 = vld [vmem:[%s5205_s29 + $0x710] sm:$0xff]  ;;  %991 = vst [vmem:[%s5213_s30 + $0x378] sm:$0xff] %v990_v47 }
  0x4d   : > { %993 = vst [vmem:[%s5213_s30 + $0x380] sm:$0xff] %v992_v48  ;;  %995 = vst [vmem:[%s5213_s30 + $0x388] sm:$0xff] %v994_v49  ;;  %v996_v50 = vld [vmem:[%s5205_s29 + $0x720] sm:$0xff]  ;;  %v998_v51 = vld [vmem:[%s5205_s29 + $0x730] sm:$0xff] }
  0x4e   : > { %v1000_v52 = vld [vmem:[%s5205_s29 + $0x740] sm:$0xff]  ;;  %997 = vst [vmem:[%s5213_s30 + $0x390] sm:$0xff] %v996_v50  ;;  %999 = vst [vmem:[%s5213_s30 + $0x398] sm:$0xff] %v998_v51  ;;  %v1002_v53 = vld [vmem:[%s5205_s29 + $0x750] sm:$0xff] }
  0x4f   : > { %1001 = vst [vmem:[%s5213_s30 + $0x3a0] sm:$0xff] %v1000_v52  ;;  %v1004_v54 = vld [vmem:[%s5205_s29 + $0x760] sm:$0xff]  ;;  %v1006_v55 = vld [vmem:[%s5205_s29 + $0x770] sm:$0xff]  ;;  %1003 = vst [vmem:[%s5213_s30 + $0x3a8] sm:$0xff] %v1002_v53 }
  0x50   : > { %1005 = vst [vmem:[%s5213_s30 + $0x3b0] sm:$0xff] %v1004_v54  ;;  %1007 = vst [vmem:[%s5213_s30 + $0x3b8] sm:$0xff] %v1006_v55  ;;  %v1008_v56 = vld [vmem:[%s5205_s29 + $0x780] sm:$0xff]  ;;  %v1010_v57 = vld [vmem:[%s5205_s29 + $0x790] sm:$0xff] }
  0x51   : > { %v1012_v58 = vld [vmem:[%s5205_s29 + $0x7a0] sm:$0xff]  ;;  %1009 = vst [vmem:[%s5213_s30 + $0x3c0] sm:$0xff] %v1008_v56  ;;  %1011 = vst [vmem:[%s5213_s30 + $0x3c8] sm:$0xff] %v1010_v57  ;;  %v1014_v59 = vld [vmem:[%s5205_s29 + $0x7b0] sm:$0xff] }
  0x52   : > { %1013 = vst [vmem:[%s5213_s30 + $0x3d0] sm:$0xff] %v1012_v58  ;;  %v1016_v60 = vld [vmem:[%s5205_s29 + $0x7c0] sm:$0xff]  ;;  %v1018_v61 = vld [vmem:[%s5205_s29 + $0x7d0] sm:$0xff]  ;;  %1015 = vst [vmem:[%s5213_s30 + $0x3d8] sm:$0xff] %v1014_v59 }
  0x53   : > { %1017 = vst [vmem:[%s5213_s30 + $0x3e0] sm:$0xff] %v1016_v60  ;;  %1019 = vst [vmem:[%s5213_s30 + $0x3e8] sm:$0xff] %v1018_v61  ;;  %v1020_v62 = vld [vmem:[%s5205_s29 + $0x7e0] sm:$0xff]  ;;  %v1022_v63 = vld [vmem:[%s5205_s29 + $0x7f0] sm:$0xff] }
  0x54   : > { %v1024_v0 = vld [vmem:[%s5205_s29 + $0x800] sm:$0xff]  ;;  %1021 = vst [vmem:[%s5213_s30 + $0x3f0] sm:$0xff] %v1020_v62  ;;  %1023 = vst [vmem:[%s5213_s30 + $0x3f8] sm:$0xff] %v1022_v63  ;;  %v1026_v1 = vld [vmem:[%s5205_s29 + $0x810] sm:$0xff] }
  0x55   : > { %1025 = vst [vmem:[%s5213_s30 + $0x400] sm:$0xff] %v1024_v0  ;;  %v1028_v2 = vld [vmem:[%s5205_s29 + $0x820] sm:$0xff]  ;;  %v1030_v3 = vld [vmem:[%s5205_s29 + $0x830] sm:$0xff]  ;;  %1027 = vst [vmem:[%s5213_s30 + $0x408] sm:$0xff] %v1026_v1 }
  0x56   : > { %1029 = vst [vmem:[%s5213_s30 + $0x410] sm:$0xff] %v1028_v2  ;;  %1031 = vst [vmem:[%s5213_s30 + $0x418] sm:$0xff] %v1030_v3  ;;  %v1032_v4 = vld [vmem:[%s5205_s29 + $0x840] sm:$0xff]  ;;  %v1034_v5 = vld [vmem:[%s5205_s29 + $0x850] sm:$0xff] }
  0x57   : > { %v1036_v6 = vld [vmem:[%s5205_s29 + $0x860] sm:$0xff]  ;;  %1033 = vst [vmem:[%s5213_s30 + $0x420] sm:$0xff] %v1032_v4  ;;  %1035 = vst [vmem:[%s5213_s30 + $0x428] sm:$0xff] %v1034_v5  ;;  %v1038_v7 = vld [vmem:[%s5205_s29 + $0x870] sm:$0xff] }
  0x58   : > { %1037 = vst [vmem:[%s5213_s30 + $0x430] sm:$0xff] %v1036_v6  ;;  %v1040_v8 = vld [vmem:[%s5205_s29 + $0x880] sm:$0xff]  ;;  %v1042_v9 = vld [vmem:[%s5205_s29 + $0x890] sm:$0xff]  ;;  %1039 = vst [vmem:[%s5213_s30 + $0x438] sm:$0xff] %v1038_v7 }
  0x59   : > { %1041 = vst [vmem:[%s5213_s30 + $0x440] sm:$0xff] %v1040_v8  ;;  %1043 = vst [vmem:[%s5213_s30 + $0x448] sm:$0xff] %v1042_v9  ;;  %v1044_v10 = vld [vmem:[%s5205_s29 + $0x8a0] sm:$0xff]  ;;  %v1046_v11 = vld [vmem:[%s5205_s29 + $0x8b0] sm:$0xff] }
  0x5a   : > { %v1048_v12 = vld [vmem:[%s5205_s29 + $0x8c0] sm:$0xff]  ;;  %1045 = vst [vmem:[%s5213_s30 + $0x450] sm:$0xff] %v1044_v10  ;;  %1047 = vst [vmem:[%s5213_s30 + $0x458] sm:$0xff] %v1046_v11  ;;  %v1050_v13 = vld [vmem:[%s5205_s29 + $0x8d0] sm:$0xff] }
  0x5b   : > { %1049 = vst [vmem:[%s5213_s30 + $0x460] sm:$0xff] %v1048_v12  ;;  %v1052_v14 = vld [vmem:[%s5205_s29 + $0x8e0] sm:$0xff]  ;;  %v1054_v15 = vld [vmem:[%s5205_s29 + $0x8f0] sm:$0xff]  ;;  %1051 = vst [vmem:[%s5213_s30 + $0x468] sm:$0xff] %v1050_v13 }
  0x5c   : > { %1053 = vst [vmem:[%s5213_s30 + $0x470] sm:$0xff] %v1052_v14  ;;  %1055 = vst [vmem:[%s5213_s30 + $0x478] sm:$0xff] %v1054_v15  ;;  %v1056_v16 = vld [vmem:[%s5205_s29 + $0x900] sm:$0xff]  ;;  %v1058_v17 = vld [vmem:[%s5205_s29 + $0x910] sm:$0xff] }
  0x5d   : > { %v1060_v18 = vld [vmem:[%s5205_s29 + $0x920] sm:$0xff]  ;;  %1057 = vst [vmem:[%s5213_s30 + $0x480] sm:$0xff] %v1056_v16  ;;  %1059 = vst [vmem:[%s5213_s30 + $0x488] sm:$0xff] %v1058_v17  ;;  %v1062_v19 = vld [vmem:[%s5205_s29 + $0x930] sm:$0xff] }
  0x5e   : > { %1061 = vst [vmem:[%s5213_s30 + $0x490] sm:$0xff] %v1060_v18  ;;  %v1064_v20 = vld [vmem:[%s5205_s29 + $0x940] sm:$0xff]  ;;  %v1066_v21 = vld [vmem:[%s5205_s29 + $0x950] sm:$0xff]  ;;  %1063 = vst [vmem:[%s5213_s30 + $0x498] sm:$0xff] %v1062_v19 }
  0x5f   : > { %1065 = vst [vmem:[%s5213_s30 + $0x4a0] sm:$0xff] %v1064_v20  ;;  %1067 = vst [vmem:[%s5213_s30 + $0x4a8] sm:$0xff] %v1066_v21  ;;  %v1068_v22 = vld [vmem:[%s5205_s29 + $0x960] sm:$0xff]  ;;  %v1070_v23 = vld [vmem:[%s5205_s29 + $0x970] sm:$0xff] }
  0x60   : > { %v1072_v24 = vld [vmem:[%s5205_s29 + $0x980] sm:$0xff]  ;;  %1069 = vst [vmem:[%s5213_s30 + $0x4b0] sm:$0xff] %v1068_v22  ;;  %1071 = vst [vmem:[%s5213_s30 + $0x4b8] sm:$0xff] %v1070_v23  ;;  %v1074_v25 = vld [vmem:[%s5205_s29 + $0x990] sm:$0xff] }
  0x61   : > { %1073 = vst [vmem:[%s5213_s30 + $0x4c0] sm:$0xff] %v1072_v24  ;;  %v1076_v26 = vld [vmem:[%s5205_s29 + $0x9a0] sm:$0xff]  ;;  %v1078_v27 = vld [vmem:[%s5205_s29 + $0x9b0] sm:$0xff]  ;;  %1075 = vst [vmem:[%s5213_s30 + $0x4c8] sm:$0xff] %v1074_v25 }
  0x62   : > { %1077 = vst [vmem:[%s5213_s30 + $0x4d0] sm:$0xff] %v1076_v26  ;;  %1079 = vst [vmem:[%s5213_s30 + $0x4d8] sm:$0xff] %v1078_v27  ;;  %v1080_v28 = vld [vmem:[%s5205_s29 + $0x9c0] sm:$0xff]  ;;  %v1082_v29 = vld [vmem:[%s5205_s29 + $0x9d0] sm:$0xff] }
  0x63   : > { %v1084_v30 = vld [vmem:[%s5205_s29 + $0x9e0] sm:$0xff]  ;;  %1081 = vst [vmem:[%s5213_s30 + $0x4e0] sm:$0xff] %v1080_v28  ;;  %1083 = vst [vmem:[%s5213_s30 + $0x4e8] sm:$0xff] %v1082_v29  ;;  %v1086_v31 = vld [vmem:[%s5205_s29 + $0x9f0] sm:$0xff] }
  0x64   : > { %1085 = vst [vmem:[%s5213_s30 + $0x4f0] sm:$0xff] %v1084_v30  ;;  %v1088_v32 = vld [vmem:[%s5205_s29 + $0xa00] sm:$0xff]  ;;  %v1090_v33 = vld [vmem:[%s5205_s29 + $0xa10] sm:$0xff]  ;;  %1087 = vst [vmem:[%s5213_s30 + $0x4f8] sm:$0xff] %v1086_v31 }
  0x65   : > { %1089 = vst [vmem:[%s5213_s30 + $0x500] sm:$0xff] %v1088_v32  ;;  %1091 = vst [vmem:[%s5213_s30 + $0x508] sm:$0xff] %v1090_v33  ;;  %v1092_v34 = vld [vmem:[%s5205_s29 + $0xa20] sm:$0xff]  ;;  %v1094_v35 = vld [vmem:[%s5205_s29 + $0xa30] sm:$0xff] }
  0x66   : > { %v1096_v36 = vld [vmem:[%s5205_s29 + $0xa40] sm:$0xff]  ;;  %1093 = vst [vmem:[%s5213_s30 + $0x510] sm:$0xff] %v1092_v34  ;;  %1095 = vst [vmem:[%s5213_s30 + $0x518] sm:$0xff] %v1094_v35  ;;  %v1098_v37 = vld [vmem:[%s5205_s29 + $0xa50] sm:$0xff] }
  0x67   : > { %1097 = vst [vmem:[%s5213_s30 + $0x520] sm:$0xff] %v1096_v36  ;;  %v1100_v38 = vld [vmem:[%s5205_s29 + $0xa60] sm:$0xff]  ;;  %v1102_v39 = vld [vmem:[%s5205_s29 + $0xa70] sm:$0xff]  ;;  %1099 = vst [vmem:[%s5213_s30 + $0x528] sm:$0xff] %v1098_v37 }
  0x68   : > { %1101 = vst [vmem:[%s5213_s30 + $0x530] sm:$0xff] %v1100_v38  ;;  %1103 = vst [vmem:[%s5213_s30 + $0x538] sm:$0xff] %v1102_v39  ;;  %v1104_v40 = vld [vmem:[%s5205_s29 + $0xa80] sm:$0xff]  ;;  %v1106_v41 = vld [vmem:[%s5205_s29 + $0xa90] sm:$0xff] }
  0x69   : > { %v1108_v42 = vld [vmem:[%s5205_s29 + $0xaa0] sm:$0xff]  ;;  %1105 = vst [vmem:[%s5213_s30 + $0x540] sm:$0xff] %v1104_v40  ;;  %1107 = vst [vmem:[%s5213_s30 + $0x548] sm:$0xff] %v1106_v41  ;;  %v1110_v43 = vld [vmem:[%s5205_s29 + $0xab0] sm:$0xff] }
  0x6a   : > { %1109 = vst [vmem:[%s5213_s30 + $0x550] sm:$0xff] %v1108_v42  ;;  %v1112_v44 = vld [vmem:[%s5205_s29 + $0xac0] sm:$0xff]  ;;  %v1114_v45 = vld [vmem:[%s5205_s29 + $0xad0] sm:$0xff]  ;;  %1111 = vst [vmem:[%s5213_s30 + $0x558] sm:$0xff] %v1110_v43 }
  0x6b   : > { %1113 = vst [vmem:[%s5213_s30 + $0x560] sm:$0xff] %v1112_v44  ;;  %1115 = vst [vmem:[%s5213_s30 + $0x568] sm:$0xff] %v1114_v45  ;;  %v1116_v46 = vld [vmem:[%s5205_s29 + $0xae0] sm:$0xff]  ;;  %v1118_v47 = vld [vmem:[%s5205_s29 + $0xaf0] sm:$0xff] }
  0x6c   : > { %v1120_v48 = vld [vmem:[%s5205_s29 + $0xb00] sm:$0xff]  ;;  %1117 = vst [vmem:[%s5213_s30 + $0x570] sm:$0xff] %v1116_v46  ;;  %1119 = vst [vmem:[%s5213_s30 + $0x578] sm:$0xff] %v1118_v47  ;;  %v1122_v49 = vld [vmem:[%s5205_s29 + $0xb10] sm:$0xff] }
  0x6d   : > { %1121 = vst [vmem:[%s5213_s30 + $0x580] sm:$0xff] %v1120_v48  ;;  %v1124_v50 = vld [vmem:[%s5205_s29 + $0xb20] sm:$0xff]  ;;  %v1126_v51 = vld [vmem:[%s5205_s29 + $0xb30] sm:$0xff]  ;;  %1123 = vst [vmem:[%s5213_s30 + $0x588] sm:$0xff] %v1122_v49 }
  0x6e   : > { %1125 = vst [vmem:[%s5213_s30 + $0x590] sm:$0xff] %v1124_v50  ;;  %1127 = vst [vmem:[%s5213_s30 + $0x598] sm:$0xff] %v1126_v51  ;;  %v1128_v52 = vld [vmem:[%s5205_s29 + $0xb40] sm:$0xff]  ;;  %v1130_v53 = vld [vmem:[%s5205_s29 + $0xb50] sm:$0xff] }
  0x6f   : > { %v1132_v54 = vld [vmem:[%s5205_s29 + $0xb60] sm:$0xff]  ;;  %1129 = vst [vmem:[%s5213_s30 + $0x5a0] sm:$0xff] %v1128_v52  ;;  %1131 = vst [vmem:[%s5213_s30 + $0x5a8] sm:$0xff] %v1130_v53  ;;  %v1134_v55 = vld [vmem:[%s5205_s29 + $0xb70] sm:$0xff] }
  0x70   : > { %1133 = vst [vmem:[%s5213_s30 + $0x5b0] sm:$0xff] %v1132_v54  ;;  %v1136_v56 = vld [vmem:[%s5205_s29 + $0xb80] sm:$0xff]  ;;  %v1138_v57 = vld [vmem:[%s5205_s29 + $0xb90] sm:$0xff]  ;;  %1135 = vst [vmem:[%s5213_s30 + $0x5b8] sm:$0xff] %v1134_v55 }
  0x71   : > { %1137 = vst [vmem:[%s5213_s30 + $0x5c0] sm:$0xff] %v1136_v56  ;;  %1139 = vst [vmem:[%s5213_s30 + $0x5c8] sm:$0xff] %v1138_v57  ;;  %v1140_v58 = vld [vmem:[%s5205_s29 + $0xba0] sm:$0xff]  ;;  %v1142_v59 = vld [vmem:[%s5205_s29 + $0xbb0] sm:$0xff] }
  0x72   : > { %v1144_v60 = vld [vmem:[%s5205_s29 + $0xbc0] sm:$0xff]  ;;  %1141 = vst [vmem:[%s5213_s30 + $0x5d0] sm:$0xff] %v1140_v58  ;;  %1143 = vst [vmem:[%s5213_s30 + $0x5d8] sm:$0xff] %v1142_v59  ;;  %v1146_v61 = vld [vmem:[%s5205_s29 + $0xbd0] sm:$0xff] }
  0x73   : > { %1145 = vst [vmem:[%s5213_s30 + $0x5e0] sm:$0xff] %v1144_v60  ;;  %v1148_v62 = vld [vmem:[%s5205_s29 + $0xbe0] sm:$0xff]  ;;  %v1150_v63 = vld [vmem:[%s5205_s29 + $0xbf0] sm:$0xff]  ;;  %1147 = vst [vmem:[%s5213_s30 + $0x5e8] sm:$0xff] %v1146_v61 }
  0x74   : > { %1149 = vst [vmem:[%s5213_s30 + $0x5f0] sm:$0xff] %v1148_v62  ;;  %1151 = vst [vmem:[%s5213_s30 + $0x5f8] sm:$0xff] %v1150_v63  ;;  %v1152_v0 = vld [vmem:[%s5205_s29 + $0xc00] sm:$0xff]  ;;  %v1154_v1 = vld [vmem:[%s5205_s29 + $0xc10] sm:$0xff] }
  0x75   : > { %v1156_v2 = vld [vmem:[%s5205_s29 + $0xc20] sm:$0xff]  ;;  %1153 = vst [vmem:[%s5213_s30 + $0x600] sm:$0xff] %v1152_v0  ;;  %1155 = vst [vmem:[%s5213_s30 + $0x608] sm:$0xff] %v1154_v1  ;;  %v1158_v3 = vld [vmem:[%s5205_s29 + $0xc30] sm:$0xff] }
  0x76   : > { %1157 = vst [vmem:[%s5213_s30 + $0x610] sm:$0xff] %v1156_v2  ;;  %v1160_v4 = vld [vmem:[%s5205_s29 + $0xc40] sm:$0xff]  ;;  %v1162_v5 = vld [vmem:[%s5205_s29 + $0xc50] sm:$0xff]  ;;  %1159 = vst [vmem:[%s5213_s30 + $0x618] sm:$0xff] %v1158_v3 }
  0x77   : > { %1161 = vst [vmem:[%s5213_s30 + $0x620] sm:$0xff] %v1160_v4  ;;  %1163 = vst [vmem:[%s5213_s30 + $0x628] sm:$0xff] %v1162_v5  ;;  %v1164_v6 = vld [vmem:[%s5205_s29 + $0xc60] sm:$0xff]  ;;  %v1166_v7 = vld [vmem:[%s5205_s29 + $0xc70] sm:$0xff] }
  0x78   : > { %v1168_v8 = vld [vmem:[%s5205_s29 + $0xc80] sm:$0xff]  ;;  %1165 = vst [vmem:[%s5213_s30 + $0x630] sm:$0xff] %v1164_v6  ;;  %1167 = vst [vmem:[%s5213_s30 + $0x638] sm:$0xff] %v1166_v7  ;;  %v1170_v9 = vld [vmem:[%s5205_s29 + $0xc90] sm:$0xff] }
  0x79   : > { %1169 = vst [vmem:[%s5213_s30 + $0x640] sm:$0xff] %v1168_v8  ;;  %v1172_v10 = vld [vmem:[%s5205_s29 + $0xca0] sm:$0xff]  ;;  %v1174_v11 = vld [vmem:[%s5205_s29 + $0xcb0] sm:$0xff]  ;;  %1171 = vst [vmem:[%s5213_s30 + $0x648] sm:$0xff] %v1170_v9 }
  0x7a   : > { %1173 = vst [vmem:[%s5213_s30 + $0x650] sm:$0xff] %v1172_v10  ;;  %1175 = vst [vmem:[%s5213_s30 + $0x658] sm:$0xff] %v1174_v11  ;;  %v1176_v12 = vld [vmem:[%s5205_s29 + $0xcc0] sm:$0xff]  ;;  %v1178_v13 = vld [vmem:[%s5205_s29 + $0xcd0] sm:$0xff] }
  0x7b   : > { %v1180_v14 = vld [vmem:[%s5205_s29 + $0xce0] sm:$0xff]  ;;  %1177 = vst [vmem:[%s5213_s30 + $0x660] sm:$0xff] %v1176_v12  ;;  %1179 = vst [vmem:[%s5213_s30 + $0x668] sm:$0xff] %v1178_v13  ;;  %v1182_v15 = vld [vmem:[%s5205_s29 + $0xcf0] sm:$0xff] }
  0x7c   : > { %1181 = vst [vmem:[%s5213_s30 + $0x670] sm:$0xff] %v1180_v14  ;;  %v1184_v16 = vld [vmem:[%s5205_s29 + $0xd00] sm:$0xff]  ;;  %v1186_v17 = vld [vmem:[%s5205_s29 + $0xd10] sm:$0xff]  ;;  %1183 = vst [vmem:[%s5213_s30 + $0x678] sm:$0xff] %v1182_v15 }
  0x7d   : > { %1185 = vst [vmem:[%s5213_s30 + $0x680] sm:$0xff] %v1184_v16  ;;  %1187 = vst [vmem:[%s5213_s30 + $0x688] sm:$0xff] %v1186_v17  ;;  %v1188_v18 = vld [vmem:[%s5205_s29 + $0xd20] sm:$0xff]  ;;  %v1190_v19 = vld [vmem:[%s5205_s29 + $0xd30] sm:$0xff] }
  0x7e   : > { %v1192_v20 = vld [vmem:[%s5205_s29 + $0xd40] sm:$0xff]  ;;  %1189 = vst [vmem:[%s5213_s30 + $0x690] sm:$0xff] %v1188_v18  ;;  %1191 = vst [vmem:[%s5213_s30 + $0x698] sm:$0xff] %v1190_v19  ;;  %v1194_v21 = vld [vmem:[%s5205_s29 + $0xd50] sm:$0xff] }
  0x7f   : > { %1193 = vst [vmem:[%s5213_s30 + $0x6a0] sm:$0xff] %v1192_v20  ;;  %v1196_v22 = vld [vmem:[%s5205_s29 + $0xd60] sm:$0xff]  ;;  %v1198_v23 = vld [vmem:[%s5205_s29 + $0xd70] sm:$0xff]  ;;  %1195 = vst [vmem:[%s5213_s30 + $0x6a8] sm:$0xff] %v1194_v21 }
  0x80   : > { %1197 = vst [vmem:[%s5213_s30 + $0x6b0] sm:$0xff] %v1196_v22  ;;  %1199 = vst [vmem:[%s5213_s30 + $0x6b8] sm:$0xff] %v1198_v23  ;;  %v1200_v24 = vld [vmem:[%s5205_s29 + $0xd80] sm:$0xff]  ;;  %v1202_v25 = vld [vmem:[%s5205_s29 + $0xd90] sm:$0xff] }
  0x81   : > { %v1204_v26 = vld [vmem:[%s5205_s29 + $0xda0] sm:$0xff]  ;;  %1201 = vst [vmem:[%s5213_s30 + $0x6c0] sm:$0xff] %v1200_v24  ;;  %1203 = vst [vmem:[%s5213_s30 + $0x6c8] sm:$0xff] %v1202_v25  ;;  %v1206_v27 = vld [vmem:[%s5205_s29 + $0xdb0] sm:$0xff] }
  0x82   : > { %1205 = vst [vmem:[%s5213_s30 + $0x6d0] sm:$0xff] %v1204_v26  ;;  %v1208_v28 = vld [vmem:[%s5205_s29 + $0xdc0] sm:$0xff]  ;;  %v1210_v29 = vld [vmem:[%s5205_s29 + $0xdd0] sm:$0xff]  ;;  %1207 = vst [vmem:[%s5213_s30 + $0x6d8] sm:$0xff] %v1206_v27 }
  0x83   : > { %1209 = vst [vmem:[%s5213_s30 + $0x6e0] sm:$0xff] %v1208_v28  ;;  %1211 = vst [vmem:[%s5213_s30 + $0x6e8] sm:$0xff] %v1210_v29  ;;  %v1212_v30 = vld [vmem:[%s5205_s29 + $0xde0] sm:$0xff]  ;;  %v1214_v31 = vld [vmem:[%s5205_s29 + $0xdf0] sm:$0xff] }
  0x84   : > { %v1216_v32 = vld [vmem:[%s5205_s29 + $0xe00] sm:$0xff]  ;;  %1213 = vst [vmem:[%s5213_s30 + $0x6f0] sm:$0xff] %v1212_v30  ;;  %1215 = vst [vmem:[%s5213_s30 + $0x6f8] sm:$0xff] %v1214_v31  ;;  %v1218_v33 = vld [vmem:[%s5205_s29 + $0xe10] sm:$0xff] }
  0x85   : > { %1217 = vst [vmem:[%s5213_s30 + $0x700] sm:$0xff] %v1216_v32  ;;  %v1220_v34 = vld [vmem:[%s5205_s29 + $0xe20] sm:$0xff]  ;;  %v1222_v35 = vld [vmem:[%s5205_s29 + $0xe30] sm:$0xff]  ;;  %1219 = vst [vmem:[%s5213_s30 + $0x708] sm:$0xff] %v1218_v33 }
  0x86   : > { %1221 = vst [vmem:[%s5213_s30 + $0x710] sm:$0xff] %v1220_v34  ;;  %1223 = vst [vmem:[%s5213_s30 + $0x718] sm:$0xff] %v1222_v35  ;;  %v1224_v36 = vld [vmem:[%s5205_s29 + $0xe40] sm:$0xff]  ;;  %v1226_v37 = vld [vmem:[%s5205_s29 + $0xe50] sm:$0xff] }
  0x87   : > { %v1228_v38 = vld [vmem:[%s5205_s29 + $0xe60] sm:$0xff]  ;;  %1225 = vst [vmem:[%s5213_s30 + $0x720] sm:$0xff] %v1224_v36  ;;  %1227 = vst [vmem:[%s5213_s30 + $0x728] sm:$0xff] %v1226_v37  ;;  %v1230_v39 = vld [vmem:[%s5205_s29 + $0xe70] sm:$0xff] }
  0x88   : > { %1229 = vst [vmem:[%s5213_s30 + $0x730] sm:$0xff] %v1228_v38  ;;  %v1232_v40 = vld [vmem:[%s5205_s29 + $0xe80] sm:$0xff]  ;;  %v1234_v41 = vld [vmem:[%s5205_s29 + $0xe90] sm:$0xff]  ;;  %1231 = vst [vmem:[%s5213_s30 + $0x738] sm:$0xff] %v1230_v39 }
  0x89   : > { %1233 = vst [vmem:[%s5213_s30 + $0x740] sm:$0xff] %v1232_v40  ;;  %1235 = vst [vmem:[%s5213_s30 + $0x748] sm:$0xff] %v1234_v41  ;;  %v1236_v42 = vld [vmem:[%s5205_s29 + $0xea0] sm:$0xff]  ;;  %v1238_v43 = vld [vmem:[%s5205_s29 + $0xeb0] sm:$0xff] }
  0x8a   : > { %v1240_v44 = vld [vmem:[%s5205_s29 + $0xec0] sm:$0xff]  ;;  %1237 = vst [vmem:[%s5213_s30 + $0x750] sm:$0xff] %v1236_v42  ;;  %1239 = vst [vmem:[%s5213_s30 + $0x758] sm:$0xff] %v1238_v43  ;;  %v1242_v45 = vld [vmem:[%s5205_s29 + $0xed0] sm:$0xff] }
  0x8b   : > { %1241 = vst [vmem:[%s5213_s30 + $0x760] sm:$0xff] %v1240_v44  ;;  %v1244_v46 = vld [vmem:[%s5205_s29 + $0xee0] sm:$0xff]  ;;  %v1246_v47 = vld [vmem:[%s5205_s29 + $0xef0] sm:$0xff]  ;;  %1243 = vst [vmem:[%s5213_s30 + $0x768] sm:$0xff] %v1242_v45 }
  0x8c   : > { %1245 = vst [vmem:[%s5213_s30 + $0x770] sm:$0xff] %v1244_v46  ;;  %1247 = vst [vmem:[%s5213_s30 + $0x778] sm:$0xff] %v1246_v47  ;;  %v1248_v48 = vld [vmem:[%s5205_s29 + $0xf00] sm:$0xff]  ;;  %v1250_v49 = vld [vmem:[%s5205_s29 + $0xf10] sm:$0xff] }
  0x8d   : > { %v1252_v50 = vld [vmem:[%s5205_s29 + $0xf20] sm:$0xff]  ;;  %1249 = vst [vmem:[%s5213_s30 + $0x780] sm:$0xff] %v1248_v48  ;;  %1251 = vst [vmem:[%s5213_s30 + $0x788] sm:$0xff] %v1250_v49  ;;  %v1254_v51 = vld [vmem:[%s5205_s29 + $0xf30] sm:$0xff] }
  0x8e   : > { %1253 = vst [vmem:[%s5213_s30 + $0x790] sm:$0xff] %v1252_v50  ;;  %v1256_v52 = vld [vmem:[%s5205_s29 + $0xf40] sm:$0xff]  ;;  %v1258_v53 = vld [vmem:[%s5205_s29 + $0xf50] sm:$0xff]  ;;  %1255 = vst [vmem:[%s5213_s30 + $0x798] sm:$0xff] %v1254_v51 }
  0x8f   : > { %1257 = vst [vmem:[%s5213_s30 + $0x7a0] sm:$0xff] %v1256_v52  ;;  %1259 = vst [vmem:[%s5213_s30 + $0x7a8] sm:$0xff] %v1258_v53  ;;  %v1260_v54 = vld [vmem:[%s5205_s29 + $0xf60] sm:$0xff]  ;;  %v1262_v55 = vld [vmem:[%s5205_s29 + $0xf70] sm:$0xff] }
  0x90   : > { %v1264_v56 = vld [vmem:[%s5205_s29 + $0xf80] sm:$0xff]  ;;  %1261 = vst [vmem:[%s5213_s30 + $0x7b0] sm:$0xff] %v1260_v54  ;;  %1263 = vst [vmem:[%s5213_s30 + $0x7b8] sm:$0xff] %v1262_v55  ;;  %v1266_v57 = vld [vmem:[%s5205_s29 + $0xf90] sm:$0xff] }
  0x91   : > { %1265 = vst [vmem:[%s5213_s30 + $0x7c0] sm:$0xff] %v1264_v56  ;;  %v1268_v58 = vld [vmem:[%s5205_s29 + $0xfa0] sm:$0xff]  ;;  %v1270_v59 = vld [vmem:[%s5205_s29 + $0xfb0] sm:$0xff]  ;;  %1267 = vst [vmem:[%s5213_s30 + $0x7c8] sm:$0xff] %v1266_v57 }
  0x92   : > { %1269 = vst [vmem:[%s5213_s30 + $0x7d0] sm:$0xff] %v1268_v58  ;;  %1271 = vst [vmem:[%s5213_s30 + $0x7d8] sm:$0xff] %v1270_v59  ;;  %v1272_v60 = vld [vmem:[%s5205_s29 + $0xfc0] sm:$0xff]  ;;  %v1274_v61 = vld [vmem:[%s5205_s29 + $0xfd0] sm:$0xff] }
  0x93   : > { %v1276_v62 = vld [vmem:[%s5205_s29 + $0xfe0] sm:$0xff]  ;;  %1273 = vst [vmem:[%s5213_s30 + $0x7e0] sm:$0xff] %v1272_v60  ;;  %1275 = vst [vmem:[%s5213_s30 + $0x7e8] sm:$0xff] %v1274_v61  ;;  %v1278_v63 = vld [vmem:[%s5205_s29 + $0xff0] sm:$0xff] }
  0x94   : > { %1277 = vst [vmem:[%s5213_s30 + $0x7f0] sm:$0xff] %v1276_v62  ;;  %v1280_v0 = vld [vmem:[%s5205_s29 + $0x1000] sm:$0xff]  ;;  %v1282_v1 = vld [vmem:[%s5205_s29 + $0x1010] sm:$0xff]  ;;  %1279 = vst [vmem:[%s5213_s30 + $0x7f8] sm:$0xff] %v1278_v63 }
  0x95   : > { %1281 = vst [vmem:[%s5213_s30 + $0x800] sm:$0xff] %v1280_v0  ;;  %1283 = vst [vmem:[%s5213_s30 + $0x808] sm:$0xff] %v1282_v1  ;;  %v1284_v2 = vld [vmem:[%s5205_s29 + $0x1020] sm:$0xff]  ;;  %v1286_v3 = vld [vmem:[%s5205_s29 + $0x1030] sm:$0xff] }
  0x96   : > { %v1288_v4 = vld [vmem:[%s5205_s29 + $0x1040] sm:$0xff]  ;;  %1285 = vst [vmem:[%s5213_s30 + $0x810] sm:$0xff] %v1284_v2  ;;  %1287 = vst [vmem:[%s5213_s30 + $0x818] sm:$0xff] %v1286_v3  ;;  %v1290_v5 = vld [vmem:[%s5205_s29 + $0x1050] sm:$0xff] }
  0x97   : > { %1289 = vst [vmem:[%s5213_s30 + $0x820] sm:$0xff] %v1288_v4  ;;  %v1292_v6 = vld [vmem:[%s5205_s29 + $0x1060] sm:$0xff]  ;;  %v1294_v7 = vld [vmem:[%s5205_s29 + $0x1070] sm:$0xff]  ;;  %1291 = vst [vmem:[%s5213_s30 + $0x828] sm:$0xff] %v1290_v5 }
  0x98   : > { %1293 = vst [vmem:[%s5213_s30 + $0x830] sm:$0xff] %v1292_v6  ;;  %1295 = vst [vmem:[%s5213_s30 + $0x838] sm:$0xff] %v1294_v7  ;;  %v1296_v8 = vld [vmem:[%s5205_s29 + $0x1080] sm:$0xff]  ;;  %v1298_v9 = vld [vmem:[%s5205_s29 + $0x1090] sm:$0xff] }
  0x99   : > { %v1300_v10 = vld [vmem:[%s5205_s29 + $0x10a0] sm:$0xff]  ;;  %1297 = vst [vmem:[%s5213_s30 + $0x840] sm:$0xff] %v1296_v8  ;;  %1299 = vst [vmem:[%s5213_s30 + $0x848] sm:$0xff] %v1298_v9  ;;  %v1302_v11 = vld [vmem:[%s5205_s29 + $0x10b0] sm:$0xff] }
  0x9a   : > { %1301 = vst [vmem:[%s5213_s30 + $0x850] sm:$0xff] %v1300_v10  ;;  %v1304_v12 = vld [vmem:[%s5205_s29 + $0x10c0] sm:$0xff]  ;;  %v1306_v13 = vld [vmem:[%s5205_s29 + $0x10d0] sm:$0xff]  ;;  %1303 = vst [vmem:[%s5213_s30 + $0x858] sm:$0xff] %v1302_v11 }
  0x9b   : > { %1305 = vst [vmem:[%s5213_s30 + $0x860] sm:$0xff] %v1304_v12  ;;  %1307 = vst [vmem:[%s5213_s30 + $0x868] sm:$0xff] %v1306_v13  ;;  %v1308_v14 = vld [vmem:[%s5205_s29 + $0x10e0] sm:$0xff]  ;;  %v1310_v15 = vld [vmem:[%s5205_s29 + $0x10f0] sm:$0xff] }
  0x9c   : > { %v1312_v16 = vld [vmem:[%s5205_s29 + $0x1100] sm:$0xff]  ;;  %1309 = vst [vmem:[%s5213_s30 + $0x870] sm:$0xff] %v1308_v14  ;;  %1311 = vst [vmem:[%s5213_s30 + $0x878] sm:$0xff] %v1310_v15  ;;  %v1314_v17 = vld [vmem:[%s5205_s29 + $0x1110] sm:$0xff] }
  0x9d   : > { %1313 = vst [vmem:[%s5213_s30 + $0x880] sm:$0xff] %v1312_v16  ;;  %v1316_v18 = vld [vmem:[%s5205_s29 + $0x1120] sm:$0xff]  ;;  %v1318_v19 = vld [vmem:[%s5205_s29 + $0x1130] sm:$0xff]  ;;  %1315 = vst [vmem:[%s5213_s30 + $0x888] sm:$0xff] %v1314_v17 }
  0x9e   : > { %1317 = vst [vmem:[%s5213_s30 + $0x890] sm:$0xff] %v1316_v18  ;;  %1319 = vst [vmem:[%s5213_s30 + $0x898] sm:$0xff] %v1318_v19  ;;  %v1320_v20 = vld [vmem:[%s5205_s29 + $0x1140] sm:$0xff]  ;;  %v1322_v21 = vld [vmem:[%s5205_s29 + $0x1150] sm:$0xff] }
  0x9f   : > { %v1324_v22 = vld [vmem:[%s5205_s29 + $0x1160] sm:$0xff]  ;;  %1321 = vst [vmem:[%s5213_s30 + $0x8a0] sm:$0xff] %v1320_v20  ;;  %1323 = vst [vmem:[%s5213_s30 + $0x8a8] sm:$0xff] %v1322_v21  ;;  %v1326_v23 = vld [vmem:[%s5205_s29 + $0x1170] sm:$0xff] }
  0xa0   : > { %1325 = vst [vmem:[%s5213_s30 + $0x8b0] sm:$0xff] %v1324_v22  ;;  %v1328_v24 = vld [vmem:[%s5205_s29 + $0x1180] sm:$0xff]  ;;  %v1330_v25 = vld [vmem:[%s5205_s29 + $0x1190] sm:$0xff]  ;;  %1327 = vst [vmem:[%s5213_s30 + $0x8b8] sm:$0xff] %v1326_v23 }
  0xa1   : > { %1329 = vst [vmem:[%s5213_s30 + $0x8c0] sm:$0xff] %v1328_v24  ;;  %1331 = vst [vmem:[%s5213_s30 + $0x8c8] sm:$0xff] %v1330_v25  ;;  %v1332_v26 = vld [vmem:[%s5205_s29 + $0x11a0] sm:$0xff]  ;;  %v1334_v27 = vld [vmem:[%s5205_s29 + $0x11b0] sm:$0xff] }
  0xa2   : > { %v1336_v28 = vld [vmem:[%s5205_s29 + $0x11c0] sm:$0xff]  ;;  %1333 = vst [vmem:[%s5213_s30 + $0x8d0] sm:$0xff] %v1332_v26  ;;  %1335 = vst [vmem:[%s5213_s30 + $0x8d8] sm:$0xff] %v1334_v27  ;;  %v1338_v29 = vld [vmem:[%s5205_s29 + $0x11d0] sm:$0xff] }
  0xa3   : > { %1337 = vst [vmem:[%s5213_s30 + $0x8e0] sm:$0xff] %v1336_v28  ;;  %v1340_v30 = vld [vmem:[%s5205_s29 + $0x11e0] sm:$0xff]  ;;  %v1342_v31 = vld [vmem:[%s5205_s29 + $0x11f0] sm:$0xff]  ;;  %1339 = vst [vmem:[%s5213_s30 + $0x8e8] sm:$0xff] %v1338_v29 }
  0xa4   : > { %1341 = vst [vmem:[%s5213_s30 + $0x8f0] sm:$0xff] %v1340_v30  ;;  %1343 = vst [vmem:[%s5213_s30 + $0x8f8] sm:$0xff] %v1342_v31 }
  0xa5 PF: > { %p4158_p7 = scmp.ge.s32.totalorder %s5136_s17, 1  ;;  %p1364_p8 = scmp.lt.s32.totalorder %s5136_s17, 3 }
  0xa7   : > { %p1365_p9 = pnand %p4158_p7, %p1364_p8 }
  0xa8   : > { %s1371_s5 = sand.u32 (!%p1365_p9), 1, %s5128_s15   ;;  %v4722_v32 = vld [vmem:[%s6269_s0 + $0x4] ss:$72 sps:$4 sm:$0xff] (!%p1365_p9)  }
  0xa9   : > { %1368 = sbr.rel (%p1365_p9) target bundleno = 791 (0x317), region = 70  ;;  %v4728_v33 = vld [vmem:[%s6269_s0 + $0x24] ss:$72 sps:$4 sm:$0xff] (!%p1365_p9)   ;;  %3391 = vmatprep.mubr.bf16.mxu1 (!%p1365_p9), %v4722_v32  ;;  %s4159_s14 = sshll.u32 (!%p1365_p9), %s1371_s5, 5 }
  0xaa   : > { %s4598_s6 = smul.u32 (!%p1365_p9), 2304, %s1371_s5  ;;  %3603 = vmatprep.mubr.bf16.mxu0 (!%p1365_p9), %v4728_v33  ;;  %s1402_s15 = scalar_lea.vmem (!%p1365_p9), [#allocation3], %s4159_s14 }
  0xac   : > { %s5796_s11 = scalar_lea.vmem (!%p1365_p9), [#allocation2], %s4598_s6 }
  0xad   : > { %v4624_v34 = vld [vmem:[%s5796_s11 + $0x4] ss:$8 sps:$4 sm:$0xff] (!%p1365_p9)   ;;  %v4628_v36 = vld [vmem:[%s5796_s11] ss:$8 sps:$4 sm:$0xff] (!%p1365_p9)   ;;  %v4630_v38 = vld [vmem:[%s5796_s11 + $0x14] ss:$8 sps:$4 sm:$0xff] (!%p1365_p9)  }
  0xae   : > { %v4626_v35 = vld [vmem:[%s5796_s11 + $0x404] ss:$8 sps:$4 sm:$0xff] (!%p1365_p9)   ;;  %3359 = vmatprep.subr.bf16.mxu1 (!%p1365_p9), %v4624_v34  ;;  %v4629_v37 = vld [vmem:[%s5796_s11 + $0x400] ss:$8 sps:$4 sm:$0xff] (!%p1365_p9)   ;;  %v4632_v39 = vld [vmem:[%s5796_s11 + $0x414] ss:$8 sps:$4 sm:$0xff] (!%p1365_p9)  }
  0xaf   : > { %3571 = vmatprep.subr.bf16.mxu0 (!%p1365_p9), %v4626_v35  ;;  %3360 = vmatpush1.bf16.msra.mxu1 (!%p1365_p9), %v4628_v36  ;;  %v4634_v40 = vld [vmem:[%s5796_s11 + $0x10] ss:$8 sps:$4 sm:$0xff] (!%p1365_p9)   ;;  %v4636_v42 = vld [vmem:[%s5796_s11 + $0x24] ss:$8 sps:$4 sm:$0xff] (!%p1365_p9)   ;;  %v4640_v44 = vld [vmem:[%s5796_s11 + $0x20] ss:$8 sps:$4 sm:$0xff] (!%p1365_p9)  }
  0xb0   : > { %3572 = vmatpush1.bf16.msra.mxu0 %v4629_v37  ;;  %3361 = vmatprep.subr.bf16.mxu1 %v4630_v38  ;;  %v4635_v41 = vld [vmem:[%s5796_s11 + $0x410] ss:$8 sps:$4 sm:$0xff]   ;;  %v4638_v43 = vld [vmem:[%s5796_s11 + $0x424] ss:$8 sps:$4 sm:$0xff]   ;;  %v4641_v45 = vld [vmem:[%s5796_s11 + $0x420] ss:$8 sps:$4 sm:$0xff]  }
  0xb1   : > { %3573 = vmatprep.subr.bf16.mxu0 %v4632_v39  ;;  %v4642_v46 = vld [vmem:[%s5796_s11 + $0x34] ss:$8 sps:$4 sm:$0xff]   ;;  %v4646_v48 = vld [vmem:[%s5796_s11 + $0x30] ss:$8 sps:$4 sm:$0xff]   ;;  %v4648_v50 = vld [vmem:[%s5796_s11 + $0x44] ss:$8 sps:$4 sm:$0xff]  }
  0xb2   : > { %v4644_v47 = vld [vmem:[%s5796_s11 + $0x434] ss:$8 sps:$4 sm:$0xff]   ;;  %v4647_v49 = vld [vmem:[%s5796_s11 + $0x430] ss:$8 sps:$4 sm:$0xff]   ;;  %v4650_v51 = vld [vmem:[%s5796_s11 + $0x444] ss:$8 sps:$4 sm:$0xff]  }
  0xb3   : > { %3362 = vmatpush1.bf16.msra.mxu1 %v4634_v40  ;;  %v4652_v52 = vld [vmem:[%s5796_s11 + $0x40] ss:$8 sps:$4 sm:$0xff]   ;;  %v4654_v54 = vld [vmem:[%s5796_s11 + $0x54] ss:$8 sps:$4 sm:$0xff]   ;;  %v4658_v56 = vld [vmem:[%s5796_s11 + $0x50] ss:$8 sps:$4 sm:$0xff]  }
  0xb4   : > { %3574 = vmatpush1.bf16.msra.mxu0 %v4635_v41  ;;  %3363 = vmatprep.subr.bf16.mxu1 %v4636_v42  ;;  %v4653_v53 = vld [vmem:[%s5796_s11 + $0x440] ss:$8 sps:$4 sm:$0xff]   ;;  %v4656_v55 = vld [vmem:[%s5796_s11 + $0x454] ss:$8 sps:$4 sm:$0xff]   ;;  %v4659_v57 = vld [vmem:[%s5796_s11 + $0x450] ss:$8 sps:$4 sm:$0xff]  }
  0xb5   : > { %3575 = vmatprep.subr.bf16.mxu0 %v4638_v43  ;;  %v4660_v58 = vld [vmem:[%s5796_s11 + $0x64] ss:$8 sps:$4 sm:$0xff]   ;;  %v4664_v60 = vld [vmem:[%s5796_s11 + $0x60] ss:$8 sps:$4 sm:$0xff]   ;;  %v4666_v62 = vld [vmem:[%s5796_s11 + $0x74] ss:$8 sps:$4 sm:$0xff]  }
  0xb6   : > { %v4662_v59 = vld [vmem:[%s5796_s11 + $0x464] ss:$8 sps:$4 sm:$0xff]   ;;  %v4665_v61 = vld [vmem:[%s5796_s11 + $0x460] ss:$8 sps:$4 sm:$0xff]   ;;  %v4668_v63 = vld [vmem:[%s5796_s11 + $0x474] ss:$8 sps:$4 sm:$0xff]  }
  0xb7   : > { %3364 = vmatpush1.bf16.msra.mxu1 %v4640_v44  ;;  %v4670_v0 = vld [vmem:[%s5796_s11 + $0x70] ss:$8 sps:$4 sm:$0xff]   ;;  %v4672_v2 = vld [vmem:[%s5796_s11 + $0x84] ss:$8 sps:$4 sm:$0xff]   ;;  %v4676_v4 = vld [vmem:[%s5796_s11 + $0x80] ss:$8 sps:$4 sm:$0xff]  }
  0xb8   : > { %3576 = vmatpush1.bf16.msra.mxu0 %v4641_v45  ;;  %3365 = vmatprep.subr.bf16.mxu1 %v4642_v46  ;;  %v4671_v1 = vld [vmem:[%s5796_s11 + $0x470] ss:$8 sps:$4 sm:$0xff]   ;;  %v4674_v3 = vld [vmem:[%s5796_s11 + $0x484] ss:$8 sps:$4 sm:$0xff]   ;;  %v4677_v5 = vld [vmem:[%s5796_s11 + $0x480] ss:$8 sps:$4 sm:$0xff]  }
  0xb9   : > { %3577 = vmatprep.subr.bf16.mxu0 %v4644_v47  ;;  %v4678_v6 = vld [vmem:[%s5796_s11 + $0x94] ss:$8 sps:$4 sm:$0xff]   ;;  %v4682_v8 = vld [vmem:[%s5796_s11 + $0x90] ss:$8 sps:$4 sm:$0xff]   ;;  %v4684_v10 = vld [vmem:[%s5796_s11 + $0xa4] ss:$8 sps:$4 sm:$0xff]  }
  0xba   : > { %v4680_v7 = vld [vmem:[%s5796_s11 + $0x494] ss:$8 sps:$4 sm:$0xff]   ;;  %v4683_v9 = vld [vmem:[%s5796_s11 + $0x490] ss:$8 sps:$4 sm:$0xff]   ;;  %v4686_v11 = vld [vmem:[%s5796_s11 + $0x4a4] ss:$8 sps:$4 sm:$0xff]  }
  0xbb   : > { %3366 = vmatpush1.bf16.msra.mxu1 %v4646_v48  ;;  %v4688_v12 = vld [vmem:[%s5796_s11 + $0xa0] ss:$8 sps:$4 sm:$0xff]   ;;  %v4690_v14 = vld [vmem:[%s5796_s11 + $0xb4] ss:$8 sps:$4 sm:$0xff]   ;;  %v4694_v16 = vld [vmem:[%s5796_s11 + $0xb0] ss:$8 sps:$4 sm:$0xff]  }
  0xbc   : > { %3578 = vmatpush1.bf16.msra.mxu0 %v4647_v49  ;;  %3367 = vmatprep.subr.bf16.mxu1 %v4648_v50  ;;  %v4689_v13 = vld [vmem:[%s5796_s11 + $0x4a0] ss:$8 sps:$4 sm:$0xff]   ;;  %v4692_v15 = vld [vmem:[%s5796_s11 + $0x4b4] ss:$8 sps:$4 sm:$0xff]   ;;  %v4695_v17 = vld [vmem:[%s5796_s11 + $0x4b0] ss:$8 sps:$4 sm:$0xff]  }
  0xbd   : > { %3579 = vmatprep.subr.bf16.mxu0 %v4650_v51  ;;  %v4696_v18 = vld [vmem:[%s5796_s11 + $0xc4] ss:$8 sps:$4 sm:$0xff]   ;;  %v4700_v20 = vld [vmem:[%s5796_s11 + $0xc0] ss:$8 sps:$4 sm:$0xff]   ;;  %v4702_v22 = vld [vmem:[%s5796_s11 + $0xd4] ss:$8 sps:$4 sm:$0xff]  }
  0xbe   : > { %v4698_v19 = vld [vmem:[%s5796_s11 + $0x4c4] ss:$8 sps:$4 sm:$0xff]   ;;  %v4701_v21 = vld [vmem:[%s5796_s11 + $0x4c0] ss:$8 sps:$4 sm:$0xff]   ;;  %v4704_v23 = vld [vmem:[%s5796_s11 + $0x4d4] ss:$8 sps:$4 sm:$0xff]  }
  0xbf   : > { %3368 = vmatpush1.bf16.msra.mxu1 %v4652_v52  ;;  %v4706_v24 = vld [vmem:[%s5796_s11 + $0xd0] ss:$8 sps:$4 sm:$0xff]   ;;  %v4708_v26 = vld [vmem:[%s5796_s11 + $0xe4] ss:$8 sps:$4 sm:$0xff]   ;;  %v4712_v28 = vld [vmem:[%s5796_s11 + $0xe0] ss:$8 sps:$4 sm:$0xff]  }
  0xc0   : > { %3580 = vmatpush1.bf16.msra.mxu0 %v4653_v53  ;;  %3369 = vmatprep.subr.bf16.mxu1 %v4654_v54  ;;  %v4707_v25 = vld [vmem:[%s5796_s11 + $0x4d0] ss:$8 sps:$4 sm:$0xff]   ;;  %v4710_v27 = vld [vmem:[%s5796_s11 + $0x4e4] ss:$8 sps:$4 sm:$0xff]   ;;  %v4713_v29 = vld [vmem:[%s5796_s11 + $0x4e0] ss:$8 sps:$4 sm:$0xff]  }
  0xc1   : > { %3581 = vmatprep.subr.bf16.mxu0 %v4656_v55  ;;  %v4714_v30 = vld [vmem:[%s5796_s11 + $0xf4] ss:$8 sps:$4 sm:$0xff]   ;;  %v4718_v32 = vld [vmem:[%s5796_s11 + $0xf0] ss:$8 sps:$4 sm:$0xff]   ;;  %v4725_v34 = vld [vmem:[%s5796_s11 + $0x104] ss:$8 sps:$4 sm:$0xff]  }
  0xc2   : > { %v4716_v31 = vld [vmem:[%s5796_s11 + $0x4f4] ss:$8 sps:$4 sm:$0xff]   ;;  %v4719_v33 = vld [vmem:[%s5796_s11 + $0x4f0] ss:$8 sps:$4 sm:$0xff]   ;;  %v4731_v35 = vld [vmem:[%s5796_s11 + $0x504] ss:$8 sps:$4 sm:$0xff]  }
  0xc3   : > { %3370 = vmatpush1.bf16.msra.mxu1 %v4658_v56  ;;  %v4720_v36 = vld [vmem:[%s6269_s0] ss:$72 sps:$4 sm:$0xff]   ;;  %v4734_v40 = vld [vmem:[%s5796_s11 + $0x114] ss:$8 sps:$4 sm:$0xff]   ;;  %v4732_v43 = vld [vmem:[%s5796_s11 + $0x110] ss:$8 sps:$4 sm:$0xff]  }
  0xc4   : > { %3582 = vmatpush1.bf16.msra.mxu0 %v4659_v57  ;;  %3371 = vmatprep.subr.bf16.mxu1 %v4660_v58  ;;  %v4726_v37 = vld [vmem:[%s6269_s0 + $0x20] ss:$72 sps:$4 sm:$0xff]   ;;  %v4737_v41 = vld [vmem:[%s5796_s11 + $0x514] ss:$8 sps:$4 sm:$0xff]   ;;  %v4735_v44 = vld [vmem:[%s5796_s11 + $0x510] ss:$8 sps:$4 sm:$0xff]  }
  0xc5   : > { %3583 = vmatprep.subr.bf16.mxu0 %v4662_v59  ;;  %v4723_v38 = vld [vmem:[%s5796_s11 + $0x100] ss:$8 sps:$4 sm:$0xff]   ;;  %v4810_v42 = vld [vmem:[%s6269_s0 + $0x94] ss:$72 sps:$4 sm:$0xff]   ;;  %v4740_v45 = vld [vmem:[%s5796_s11 + $0x124] ss:$8 sps:$4 sm:$0xff]  }
  0xc6   : > { %v4729_v39 = vld [vmem:[%s5796_s11 + $0x500] ss:$8 sps:$4 sm:$0xff]   ;;  %v4743_v46 = vld [vmem:[%s5796_s11 + $0x524] ss:$8 sps:$4 sm:$0xff]   ;;  %v4746_v49 = vld [vmem:[%s5796_s11 + $0x134] ss:$8 sps:$4 sm:$0xff]  }
  0xc7   : > { %3372 = vmatpush1.bf16.msra.mxu1 %v4664_v60  ;;  %v4738_v47 = vld [vmem:[%s5796_s11 + $0x120] ss:$8 sps:$4 sm:$0xff]   ;;  %v4749_v50 = vld [vmem:[%s5796_s11 + $0x534] ss:$8 sps:$4 sm:$0xff]   ;;  %v4744_v51 = vld [vmem:[%s5796_s11 + $0x130] ss:$8 sps:$4 sm:$0xff]  }
  0xc8   : > { %3584 = vmatpush1.bf16.msra.mxu0 %v4665_v61  ;;  %3373 = vmatprep.subr.bf16.mxu1 %v4666_v62  ;;  %v4741_v48 = vld [vmem:[%s5796_s11 + $0x520] ss:$8 sps:$4 sm:$0xff]   ;;  %v4747_v52 = vld [vmem:[%s5796_s11 + $0x530] ss:$8 sps:$4 sm:$0xff]   ;;  %v4752_v53 = vld [vmem:[%s5796_s11 + $0x144] ss:$8 sps:$4 sm:$0xff]  }
  0xc9   : > { %3585 = vmatprep.subr.bf16.mxu0 %v4668_v63  ;;  %v4755_v54 = vld [vmem:[%s5796_s11 + $0x544] ss:$8 sps:$4 sm:$0xff]   ;;  %v4750_v55 = vld [vmem:[%s5796_s11 + $0x140] ss:$8 sps:$4 sm:$0xff]   ;;  %v4758_v57 = vld [vmem:[%s5796_s11 + $0x154] ss:$8 sps:$4 sm:$0xff]  }
  0xca   : > { %v4753_v56 = vld [vmem:[%s5796_s11 + $0x540] ss:$8 sps:$4 sm:$0xff]   ;;  %v4761_v58 = vld [vmem:[%s5796_s11 + $0x554] ss:$8 sps:$4 sm:$0xff]   ;;  %v4756_v60 = vld [vmem:[%s5796_s11 + $0x150] ss:$8 sps:$4 sm:$0xff]  }
  0xcb   : > { %3374 = vmatpush1.bf16.msra.mxu1 %v4670_v0  ;;  %v4815_v59 = vld [vmem:[%s6269_s0 + $0xb4] ss:$72 sps:$4 sm:$0xff]   ;;  %v4759_v61 = vld [vmem:[%s5796_s11 + $0x550] ss:$8 sps:$4 sm:$0xff]   ;;  %v4764_v0 = vld [vmem:[%s5796_s11 + $0x164] ss:$8 sps:$4 sm:$0xff]  }
  0xcc   : > { %3586 = vmatpush1.bf16.msra.mxu0 %v4671_v1  ;;  %3375 = vmatprep.subr.bf16.mxu1 %v4672_v2  ;;  %v4820_v62 = vld [vmem:[%s6269_s0 + $0x90] ss:$72 sps:$4 sm:$0xff]   ;;  %v4767_v1 = vld [vmem:[%s5796_s11 + $0x564] ss:$8 sps:$4 sm:$0xff]   ;;  %v4762_v2 = vld [vmem:[%s5796_s11 + $0x160] ss:$8 sps:$4 sm:$0xff]  }
  0xcd   : > { %3587 = vmatprep.subr.bf16.mxu0 %v4674_v3  ;;  %v4821_v63 = vld [vmem:[%s6269_s0 + $0xb0] ss:$72 sps:$4 sm:$0xff]   ;;  %v4765_v3 = vld [vmem:[%s5796_s11 + $0x560] ss:$8 sps:$4 sm:$0xff]   ;;  %s4500_s5 = sshll.u32 (%p5195_p5), %s5180_s18, 3 }
  0xce   : > { %s4033_s21 = scalar_lea.vmem (%p5195_p5), %s6273_s4, %s4500_s5 }
  0xcf   : > { %3376 = vmatpush1.bf16.msra.mxu1 %v4676_v4  ;;  %v4830_v4 = vld [vmem:[%s6269_s0 + $0xc] ss:$72 sps:$4 sm:$0xff]  }
  0xd0   : > { %3588 = vmatpush1.bf16.msra.mxu0 %v4677_v5  ;;  %3377 = vmatprep.subr.bf16.mxu1 %v4678_v6  ;;  %v4770_v5 = vld [vmem:[%s5796_s11 + $0x174] ss:$8 sps:$4 sm:$0xff]  }
  0xd1   : > { %3589 = vmatprep.subr.bf16.mxu0 %v4680_v7  ;;  %v4773_v6 = vld [vmem:[%s5796_s11 + $0x574] ss:$8 sps:$4 sm:$0xff]  }
  0xd2   : > { %v4836_v7 = vld [vmem:[%s6269_s0 + $0x2c] ss:$72 sps:$4 sm:$0xff]  }
  0xd3   : > { %3378 = vmatpush1.bf16.msra.mxu1 %v4682_v8  ;;  %v4768_v8 = vld [vmem:[%s5796_s11 + $0x170] ss:$8 sps:$4 sm:$0xff]  }
  0xd4   : > { %3590 = vmatpush1.bf16.msra.mxu0 %v4683_v9  ;;  %3379 = vmatprep.subr.bf16.mxu1 %v4684_v10  ;;  %v4771_v9 = vld [vmem:[%s5796_s11 + $0x570] ss:$8 sps:$4 sm:$0xff]   ;;  %v4776_v10 = vld [vmem:[%s5796_s11 + $0x184] ss:$8 sps:$4 sm:$0xff]  }
  0xd5   : > { %3591 = vmatprep.subr.bf16.mxu0 %v4686_v11  ;;  %v4779_v11 = vld [vmem:[%s5796_s11 + $0x584] ss:$8 sps:$4 sm:$0xff]  }
  0xd7   : > { %3380 = vmatpush1.bf16.msra.mxu1 %v4688_v12  ;;  %v4774_v12 = vld [vmem:[%s5796_s11 + $0x180] ss:$8 sps:$4 sm:$0xff]  }
  0xd8   : > { %3592 = vmatpush1.bf16.msra.mxu0 %v4689_v13  ;;  %3381 = vmatprep.subr.bf16.mxu1 %v4690_v14  ;;  %v4777_v13 = vld [vmem:[%s5796_s11 + $0x580] ss:$8 sps:$4 sm:$0xff]   ;;  %v4782_v14 = vld [vmem:[%s5796_s11 + $0x194] ss:$8 sps:$4 sm:$0xff]  }
  0xd9   : > { %3593 = vmatprep.subr.bf16.mxu0 %v4692_v15  ;;  %v4785_v15 = vld [vmem:[%s5796_s11 + $0x594] ss:$8 sps:$4 sm:$0xff]  }
  0xdb   : > { %3382 = vmatpush1.bf16.msra.mxu1 %v4694_v16  ;;  %v4780_v16 = vld [vmem:[%s5796_s11 + $0x190] ss:$8 sps:$4 sm:$0xff]  }
  0xdc   : > { %3594 = vmatpush1.bf16.msra.mxu0 %v4695_v17  ;;  %3383 = vmatprep.subr.bf16.mxu1 %v4696_v18  ;;  %v4783_v17 = vld [vmem:[%s5796_s11 + $0x590] ss:$8 sps:$4 sm:$0xff]   ;;  %v4788_v18 = vld [vmem:[%s5796_s11 + $0x1a4] ss:$8 sps:$4 sm:$0xff]  }
  0xdd   : > { %3595 = vmatprep.subr.bf16.mxu0 %v4698_v19  ;;  %v4791_v19 = vld [vmem:[%s5796_s11 + $0x5a4] ss:$8 sps:$4 sm:$0xff]  }
  0xdf   : > { %3384 = vmatpush1.bf16.msra.mxu1 %v4700_v20  ;;  %v4786_v20 = vld [vmem:[%s5796_s11 + $0x1a0] ss:$8 sps:$4 sm:$0xff]  }
  0xe0   : > { %3596 = vmatpush1.bf16.msra.mxu0 %v4701_v21  ;;  %3385 = vmatprep.subr.bf16.mxu1 %v4702_v22  ;;  %v4789_v21 = vld [vmem:[%s5796_s11 + $0x5a0] ss:$8 sps:$4 sm:$0xff]   ;;  %v4794_v22 = vld [vmem:[%s5796_s11 + $0x1b4] ss:$8 sps:$4 sm:$0xff]  }
  0xe1   : > { %3597 = vmatprep.subr.bf16.mxu0 %v4704_v23  ;;  %v4797_v23 = vld [vmem:[%s5796_s11 + $0x5b4] ss:$8 sps:$4 sm:$0xff]  }
  0xe3   : > { %3386 = vmatpush1.bf16.msra.mxu1 %v4706_v24  ;;  %v4792_v24 = vld [vmem:[%s5796_s11 + $0x1b0] ss:$8 sps:$4 sm:$0xff]  }
  0xe4   : > { %3598 = vmatpush1.bf16.msra.mxu0 %v4707_v25  ;;  %3387 = vmatprep.subr.bf16.mxu1 %v4708_v26  ;;  %v4795_v25 = vld [vmem:[%s5796_s11 + $0x5b0] ss:$8 sps:$4 sm:$0xff]   ;;  %v4800_v26 = vld [vmem:[%s5796_s11 + $0x1c4] ss:$8 sps:$4 sm:$0xff]  }
  0xe5   : > { %3599 = vmatprep.subr.bf16.mxu0 %v4710_v27  ;;  %v4803_v27 = vld [vmem:[%s5796_s11 + $0x5c4] ss:$8 sps:$4 sm:$0xff]  }
  0xe7   : > { %3388 = vmatpush1.bf16.msra.mxu1 %v4712_v28  ;;  %v4798_v28 = vld [vmem:[%s5796_s11 + $0x1c0] ss:$8 sps:$4 sm:$0xff]  }
  0xe8   : > { %3600 = vmatpush1.bf16.msra.mxu0 %v4713_v29  ;;  %3389 = vmatprep.subr.bf16.mxu1 %v4714_v30  ;;  %v4801_v29 = vld [vmem:[%s5796_s11 + $0x5c0] ss:$8 sps:$4 sm:$0xff]   ;;  %v4806_v30 = vld [vmem:[%s5796_s11 + $0x1d4] ss:$8 sps:$4 sm:$0xff]  }
  0xe9   : > { %3601 = vmatprep.subr.bf16.mxu0 %v4716_v31  ;;  %v4809_v31 = vld [vmem:[%s5796_s11 + $0x5d4] ss:$8 sps:$4 sm:$0xff]  }
  0xeb   : > { %3390 = vmatpush1.bf16.msra.mxu1 %v4718_v32  ;;  %v4804_v32 = vld [vmem:[%s5796_s11 + $0x1d0] ss:$8 sps:$4 sm:$0xff]  }
  0xec   : > { %3602 = vmatpush1.bf16.msra.mxu0 %v4719_v33  ;;  %3412 = vmatprep.subr.bf16.mxu1 %v4725_v34  ;;  %v4807_v33 = vld [vmem:[%s5796_s11 + $0x5d0] ss:$8 sps:$4 sm:$0xff]   ;;  %v4814_v34 = vld [vmem:[%s5796_s11 + $0x1e4] ss:$8 sps:$4 sm:$0xff]  }
  0xed   : > { %3624 = vmatprep.subr.bf16.mxu0 %v4731_v35  ;;  %v4819_v35 = vld [vmem:[%s5796_s11 + $0x5e4] ss:$8 sps:$4 sm:$0xff]  }
  0xee   : > { %3392 = vmatmul.mubr.bf16.vlgmr.msra.gmra.mrb[0].mxu1 %v4720_v36  ;;  %v4812_v36 = vld [vmem:[%s5796_s11 + $0x1e0] ss:$8 sps:$4 sm:$0xff]  }
  0xef   : > { %3604 = vmatmul.mubr.bf16.vlgmr.msra.gmra.mrb[0].mxu0 %v4726_v37  ;;  %3413 = vmatpush1.bf16.msra.mxu1 %v4723_v38  ;;  %v4817_v37 = vld [vmem:[%s5796_s11 + $0x5e0] ss:$8 sps:$4 sm:$0xff]   ;;  %v4824_v38 = vld [vmem:[%s5796_s11 + $0x1f4] ss:$8 sps:$4 sm:$0xff]  }
  0xf0   : > { %3625 = vmatpush1.bf16.msra.mxu0 %v4729_v39  ;;  %3414 = vmatprep.subr.bf16.mxu1 %v4734_v40  ;;  %v4827_v39 = vld [vmem:[%s5796_s11 + $0x5f4] ss:$8 sps:$4 sm:$0xff]   ;;  %v4822_v40 = vld [vmem:[%s5796_s11 + $0x1f0] ss:$8 sps:$4 sm:$0xff]  }
  0xf1   : > { %3626 = vmatprep.subr.bf16.mxu0 %v4737_v41  ;;  %3401 = vmatprep.mubr.bf16.mxu1 %v4810_v42  ;;  %v4825_v41 = vld [vmem:[%s5796_s11 + $0x5f0] ss:$8 sps:$4 sm:$0xff]   ;;  %v4833_v42 = vld [vmem:[%s5796_s11 + $0x204] ss:$8 sps:$4 sm:$0xff]  }
  0xf2   : > { %3613 = vmatprep.mubr.bf16.mxu0 %v4815_v59  ;;  %v4929_v59 = vld [vmem:[%s6269_s0 + $0xb8] ss:$72 sps:$4 sm:$0xff]  }
  0xf3   : > { %3415 = vmatpush1.bf16.msra.mxu1 %v4732_v43  ;;  %v4828_v43 = vld [vmem:[%s6269_s0 + $0x8] ss:$72 sps:$4 sm:$0xff]  }
  0xf4   : > { %3627 = vmatpush1.bf16.msra.mxu0 %v4735_v44  ;;  %3416 = vmatprep.subr.bf16.mxu1 %v4740_v45  ;;  %v4839_v44 = vld [vmem:[%s5796_s11 + $0x604] ss:$8 sps:$4 sm:$0xff]   ;;  %v4831_v45 = vld [vmem:[%s5796_s11 + $0x200] ss:$8 sps:$4 sm:$0xff]  }
  0xf5   : > { %3628 = vmatprep.subr.bf16.mxu0 %v4743_v46  ;;  %v4834_v46 = vld [vmem:[%s6269_s0 + $0x28] ss:$72 sps:$4 sm:$0xff]  }
  0xf6   : > { %3402 = vmatmul.mubr.bf16.gmra.mrb[4].mxu1 %v4820_v62  ;;  %v4938_v62 = vld [vmem:[%s6269_s0 + $0x14] ss:$72 sps:$4 sm:$0xff]  }
  0xf7   : > { %3417 = vmatpush1.bf16.msra.mxu1 %v4738_v47  ;;  %3614 = vmatmul.mubr.bf16.gmra.mrb[4].mxu0 %v4821_v63  ;;  %v4837_v47 = vld [vmem:[%s5796_s11 + $0x600] ss:$8 sps:$4 sm:$0xff]   ;;  %v4944_v63 = vld [vmem:[%s6269_s0 + $0x34] ss:$72 sps:$4 sm:$0xff]  }
  0xf8   : > { %3629 = vmatpush1.bf16.msra.mxu0 %v4741_v48  ;;  %3418 = vmatprep.subr.bf16.mxu1 %v4746_v49  ;;  %v4842_v48 = vld [vmem:[%s5796_s11 + $0x214] ss:$8 sps:$4 sm:$0xff]  }
  0xf9   : > { %3630 = vmatprep.subr.bf16.mxu0 %v4749_v50  ;;  %3444 = vmatprep.mubr.bf16.mxu1 %v4830_v4  ;;  %v4845_v49 = vld [vmem:[%s5796_s11 + $0x614] ss:$8 sps:$4 sm:$0xff]   ;;  %v4858_v4 = vld [vmem:[%s5796_s11 + $0x240] ss:$8 sps:$4 sm:$0xff]  }
  0xfa   : > { %3656 = vmatprep.mubr.bf16.mxu0 %v4836_v7  ;;  %v4918_v50 = vld [vmem:[%s6269_s0 + $0x9c] ss:$72 sps:$4 sm:$0xff]  }
  0xfb   : > { %3419 = vmatpush1.bf16.msra.mxu1 %v4744_v51  ;;  %v4923_v51 = vld [vmem:[%s6269_s0 + $0xbc] ss:$72 sps:$4 sm:$0xff]  }
  0xfc   : > { %3631 = vmatpush1.bf16.msra.mxu0 %v4747_v52  ;;  %3420 = vmatprep.subr.bf16.mxu1 %v4752_v53  ;;  %v4840_v52 = vld [vmem:[%s5796_s11 + $0x210] ss:$8 sps:$4 sm:$0xff]   ;;  %v4869_v7 = vld [vmem:[%s5796_s11 + $0x654] ss:$8 sps:$4 sm:$0xff]  }
  0xfd   : > { %3632 = vmatprep.subr.bf16.mxu0 %v4755_v54  ;;  %v4843_v53 = vld [vmem:[%s5796_s11 + $0x610] ss:$8 sps:$4 sm:$0xff]   ;;  %v4848_v54 = vld [vmem:[%s5796_s11 + $0x224] ss:$8 sps:$4 sm:$0xff]  }
  0xff   : > { %3421 = vmatpush1.bf16.msra.mxu1 %v4750_v55  ;;  %v4851_v55 = vld [vmem:[%s5796_s11 + $0x624] ss:$8 sps:$4 sm:$0xff]  }
 0x100   : > { %3633 = vmatpush1.bf16.msra.mxu0 %v4753_v56  ;;  %3422 = vmatprep.subr.bf16.mxu1 %v4758_v57  ;;  %v4846_v56 = vld [vmem:[%s5796_s11 + $0x220] ss:$8 sps:$4 sm:$0xff]  }
 0x101   : > { %3634 = vmatprep.subr.bf16.mxu0 %v4761_v58  ;;  %v4849_v57 = vld [vmem:[%s5796_s11 + $0x620] ss:$8 sps:$4 sm:$0xff]  }
 0x102   : > { %v4928_v58 = vld [vmem:[%s6269_s0 + $0x98] ss:$72 sps:$4 sm:$0xff]  }
 0x103   : > { %3423 = vmatpush1.bf16.msra.mxu1 %v4756_v60  ;;  %v4854_v60 = vld [vmem:[%s5796_s11 + $0x234] ss:$8 sps:$4 sm:$0xff]  }
 0x104   : > { %3635 = vmatpush1.bf16.msra.mxu0 %v4759_v61  ;;  %3424 = vmatprep.subr.bf16.mxu1 %v4764_v0  ;;  %v4857_v61 = vld [vmem:[%s5796_s11 + $0x634] ss:$8 sps:$4 sm:$0xff]   ;;  %v4852_v0 = vld [vmem:[%s5796_s11 + $0x230] ss:$8 sps:$4 sm:$0xff]  }
 0x105   : > { %3636 = vmatprep.subr.bf16.mxu0 %v4767_v1  ;;  %v4855_v1 = vld [vmem:[%s5796_s11 + $0x630] ss:$8 sps:$4 sm:$0xff]  }
 0x107   : > { %3425 = vmatpush1.bf16.msra.mxu1 %v4762_v2  ;;  %v4860_v2 = vld [vmem:[%s5796_s11 + $0x244] ss:$8 sps:$4 sm:$0xff]  }
 0x108   : > { %3637 = vmatpush1.bf16.msra.mxu0 %v4765_v3  ;;  %3426 = vmatprep.subr.bf16.mxu1 %v4770_v5  ;;  %v4863_v3 = vld [vmem:[%s5796_s11 + $0x644] ss:$8 sps:$4 sm:$0xff]   ;;  %v4861_v5 = vld [vmem:[%s5796_s11 + $0x640] ss:$8 sps:$4 sm:$0xff]  }
 0x109   : > { %3638 = vmatprep.subr.bf16.mxu0 %v4773_v6  ;;  %v4866_v6 = vld [vmem:[%s5796_s11 + $0x254] ss:$8 sps:$4 sm:$0xff]  }
 0x10b   : > { %3427 = vmatpush1.bf16.msra.mxu1 %v4768_v8  ;;  %v4864_v8 = vld [vmem:[%s5796_s11 + $0x250] ss:$8 sps:$4 sm:$0xff]  }
 0x10c   : > { %3639 = vmatpush1.bf16.msra.mxu0 %v4771_v9  ;;  %3428 = vmatprep.subr.bf16.mxu1 %v4776_v10  ;;  %v4867_v9 = vld [vmem:[%s5796_s11 + $0x650] ss:$8 sps:$4 sm:$0xff]   ;;  %v4872_v10 = vld [vmem:[%s5796_s11 + $0x264] ss:$8 sps:$4 sm:$0xff]  }
 0x10d   : > { %3640 = vmatprep.subr.bf16.mxu0 %v4779_v11  ;;  %v4875_v11 = vld [vmem:[%s5796_s11 + $0x664] ss:$8 sps:$4 sm:$0xff]  }
 0x10f   : > { %3429 = vmatpush1.bf16.msra.mxu1 %v4774_v12  ;;  %v4870_v12 = vld [vmem:[%s5796_s11 + $0x260] ss:$8 sps:$4 sm:$0xff]  }
 0x110   : > { %3641 = vmatpush1.bf16.msra.mxu0 %v4777_v13  ;;  %3430 = vmatprep.subr.bf16.mxu1 %v4782_v14  ;;  %v4873_v13 = vld [vmem:[%s5796_s11 + $0x660] ss:$8 sps:$4 sm:$0xff]   ;;  %v4878_v14 = vld [vmem:[%s5796_s11 + $0x274] ss:$8 sps:$4 sm:$0xff]  }
 0x111   : > { %3642 = vmatprep.subr.bf16.mxu0 %v4785_v15  ;;  %v4881_v15 = vld [vmem:[%s5796_s11 + $0x674] ss:$8 sps:$4 sm:$0xff]  }
 0x113   : > { %3431 = vmatpush1.bf16.msra.mxu1 %v4780_v16  ;;  %v4876_v16 = vld [vmem:[%s5796_s11 + $0x270] ss:$8 sps:$4 sm:$0xff]  }
 0x114   : > { %3643 = vmatpush1.bf16.msra.mxu0 %v4783_v17  ;;  %3432 = vmatprep.subr.bf16.mxu1 %v4788_v18  ;;  %v4879_v17 = vld [vmem:[%s5796_s11 + $0x670] ss:$8 sps:$4 sm:$0xff]   ;;  %v4884_v18 = vld [vmem:[%s5796_s11 + $0x284] ss:$8 sps:$4 sm:$0xff]  }
 0x115   : > { %3644 = vmatprep.subr.bf16.mxu0 %v4791_v19  ;;  %v4887_v19 = vld [vmem:[%s5796_s11 + $0x684] ss:$8 sps:$4 sm:$0xff]  }
 0x117   : > { %3433 = vmatpush1.bf16.msra.mxu1 %v4786_v20  ;;  %v4882_v20 = vld [vmem:[%s5796_s11 + $0x280] ss:$8 sps:$4 sm:$0xff]  }
 0x118   : > { %3645 = vmatpush1.bf16.msra.mxu0 %v4789_v21  ;;  %3434 = vmatprep.subr.bf16.mxu1 %v4794_v22  ;;  %v4885_v21 = vld [vmem:[%s5796_s11 + $0x680] ss:$8 sps:$4 sm:$0xff]   ;;  %v4890_v22 = vld [vmem:[%s5796_s11 + $0x294] ss:$8 sps:$4 sm:$0xff]  }
 0x119   : > { %3646 = vmatprep.subr.bf16.mxu0 %v4797_v23  ;;  %v4893_v23 = vld [vmem:[%s5796_s11 + $0x694] ss:$8 sps:$4 sm:$0xff]  }
 0x11b   : > { %3435 = vmatpush1.bf16.msra.mxu1 %v4792_v24  ;;  %v4888_v24 = vld [vmem:[%s5796_s11 + $0x290] ss:$8 sps:$4 sm:$0xff]  }
 0x11c   : > { %3647 = vmatpush1.bf16.msra.mxu0 %v4795_v25  ;;  %3436 = vmatprep.subr.bf16.mxu1 %v4800_v26  ;;  %v4891_v25 = vld [vmem:[%s5796_s11 + $0x690] ss:$8 sps:$4 sm:$0xff]   ;;  %v4896_v26 = vld [vmem:[%s5796_s11 + $0x2a4] ss:$8 sps:$4 sm:$0xff]  }
 0x11d   : > { %3648 = vmatprep.subr.bf16.mxu0 %v4803_v27  ;;  %v4899_v27 = vld [vmem:[%s5796_s11 + $0x6a4] ss:$8 sps:$4 sm:$0xff]  }
 0x11f   : > { %3437 = vmatpush1.bf16.msra.mxu1 %v4798_v28  ;;  %v4894_v28 = vld [vmem:[%s5796_s11 + $0x2a0] ss:$8 sps:$4 sm:$0xff]  }
 0x120   : > { %3649 = vmatpush1.bf16.msra.mxu0 %v4801_v29  ;;  %3438 = vmatprep.subr.bf16.mxu1 %v4806_v30  ;;  %v4897_v29 = vld [vmem:[%s5796_s11 + $0x6a0] ss:$8 sps:$4 sm:$0xff]   ;;  %v4902_v30 = vld [vmem:[%s5796_s11 + $0x2b4] ss:$8 sps:$4 sm:$0xff]  }
 0x121   : > { %3650 = vmatprep.subr.bf16.mxu0 %v4809_v31  ;;  %v4905_v31 = vld [vmem:[%s5796_s11 + $0x6b4] ss:$8 sps:$4 sm:$0xff]  }
 0x123   : > { %3439 = vmatpush1.bf16.msra.mxu1 %v4804_v32  ;;  %v4900_v32 = vld [vmem:[%s5796_s11 + $0x2b0] ss:$8 sps:$4 sm:$0xff]  }
 0x124   : > { %3651 = vmatpush1.bf16.msra.mxu0 %v4807_v33  ;;  %3440 = vmatprep.subr.bf16.mxu1 %v4814_v34  ;;  %v4903_v33 = vld [vmem:[%s5796_s11 + $0x6b0] ss:$8 sps:$4 sm:$0xff]   ;;  %v4908_v34 = vld [vmem:[%s5796_s11 + $0x2c4] ss:$8 sps:$4 sm:$0xff]  }
 0x125   : > { %3652 = vmatprep.subr.bf16.mxu0 %v4819_v35  ;;  %v4911_v35 = vld [vmem:[%s5796_s11 + $0x6c4] ss:$8 sps:$4 sm:$0xff]  }
 0x127   : > { %3441 = vmatpush1.bf16.msra.mxu1 %v4812_v36  ;;  %v4906_v36 = vld [vmem:[%s5796_s11 + $0x2c0] ss:$8 sps:$4 sm:$0xff]  }
 0x128   : > { %3653 = vmatpush1.bf16.msra.mxu0 %v4817_v37  ;;  %3442 = vmatprep.subr.bf16.mxu1 %v4824_v38  ;;  %v4909_v37 = vld [vmem:[%s5796_s11 + $0x6c0] ss:$8 sps:$4 sm:$0xff]   ;;  %v4914_v38 = vld [vmem:[%s5796_s11 + $0x2d4] ss:$8 sps:$4 sm:$0xff]  }
 0x129   : > { %3654 = vmatprep.subr.bf16.mxu0 %v4827_v39  ;;  %v4917_v39 = vld [vmem:[%s5796_s11 + $0x6d4] ss:$8 sps:$4 sm:$0xff]  }
 0x12b   : > { %3443 = vmatpush1.bf16.msra.mxu1 %v4822_v40  ;;  %v4912_v40 = vld [vmem:[%s5796_s11 + $0x2d0] ss:$8 sps:$4 sm:$0xff]  }
 0x12c   : > { %3655 = vmatpush1.bf16.msra.mxu0 %v4825_v41  ;;  %3465 = vmatprep.subr.bf16.mxu1 %v4833_v42  ;;  %v4915_v41 = vld [vmem:[%s5796_s11 + $0x6d0] ss:$8 sps:$4 sm:$0xff]   ;;  %v4922_v42 = vld [vmem:[%s5796_s11 + $0x2e4] ss:$8 sps:$4 sm:$0xff]  }
 0x12d   : > { %3677 = vmatprep.subr.bf16.mxu0 %v4839_v44  ;;  %v4920_v44 = vld [vmem:[%s5796_s11 + $0x2e0] ss:$8 sps:$4 sm:$0xff]  }
 0x12e   : > { %3445 = vmatmul.mubr.bf16.vlgmr.msra.gmra.mrb[0].mxu1 %v4828_v43  ;;  %v4927_v43 = vld [vmem:[%s5796_s11 + $0x6e4] ss:$8 sps:$4 sm:$0xff]  }
 0x12f   : > { %3657 = vmatmul.mubr.bf16.vlgmr.msra.gmra.mrb[0].mxu0 %v4834_v46  ;;  %3466 = vmatpush1.bf16.msra.mxu1 %v4831_v45  ;;  %v4925_v45 = vld [vmem:[%s5796_s11 + $0x6e0] ss:$8 sps:$4 sm:$0xff]   ;;  %v4932_v46 = vld [vmem:[%s5796_s11 + $0x2f4] ss:$8 sps:$4 sm:$0xff]  }
 0x130   : > { %3678 = vmatpush1.bf16.msra.mxu0 %v4837_v47  ;;  %3467 = vmatprep.subr.bf16.mxu1 %v4842_v48  ;;  %v4935_v47 = vld [vmem:[%s5796_s11 + $0x6f4] ss:$8 sps:$4 sm:$0xff]   ;;  %v4930_v48 = vld [vmem:[%s5796_s11 + $0x2f0] ss:$8 sps:$4 sm:$0xff]  }
 0x131   : > { %3679 = vmatprep.subr.bf16.mxu0 %v4845_v49  ;;  %3454 = vmatprep.mubr.bf16.mxu1 %v4918_v50  ;;  %v4933_v49 = vld [vmem:[%s5796_s11 + $0x6f0] ss:$8 sps:$4 sm:$0xff]   ;;  %v4941_v50 = vld [vmem:[%s5796_s11 + $0x304] ss:$8 sps:$4 sm:$0xff]  }
 0x132   : > { %3666 = vmatprep.mubr.bf16.mxu0 %v4923_v51  ;;  %v4947_v51 = vld [vmem:[%s5796_s11 + $0x704] ss:$8 sps:$4 sm:$0xff]  }
 0x133   : > { %3468 = vmatpush1.bf16.msra.mxu1 %v4840_v52  ;;  %v4936_v52 = vld [vmem:[%s6269_s0 + $0x10] ss:$72 sps:$4 sm:$0xff]  }
 0x134   : > { %3680 = vmatpush1.bf16.msra.mxu0 %v4843_v53  ;;  %3469 = vmatprep.subr.bf16.mxu1 %v4848_v54  ;;  %v4939_v53 = vld [vmem:[%s5796_s11 + $0x300] ss:$8 sps:$4 sm:$0xff]   ;;  %v4942_v54 = vld [vmem:[%s6269_s0 + $0x30] ss:$72 sps:$4 sm:$0xff]  }
 0x135   : > { %3681 = vmatprep.subr.bf16.mxu0 %v4851_v55  ;;  %v4945_v55 = vld [vmem:[%s5796_s11 + $0x700] ss:$8 sps:$4 sm:$0xff]  }
 0x136   : > { %3455 = vmatmul.mubr.bf16.gmra.mrb[4].mxu1 %v4928_v58  ;;  %v5026_v58 = vld [vmem:[%s6269_s0 + $0xa4] ss:$72 sps:$4 sm:$0xff]  }
 0x137   : > { %3667 = vmatmul.mubr.bf16.gmra.mrb[4].mxu0 %v4929_v59  ;;  %3470 = vmatpush1.bf16.msra.mxu1 %v4846_v56  ;;  %v4950_v56 = vld [vmem:[%s5796_s11 + $0x314] ss:$8 sps:$4 sm:$0xff]   ;;  %v5028_v59 = vld [vmem:[%s6269_s0 + $0xc4] ss:$72 sps:$4 sm:$0xff]  }
 0x138   : > { %3682 = vmatpush1.bf16.msra.mxu0 %v4849_v57  ;;  %3471 = vmatprep.subr.bf16.mxu1 %v4854_v60  ;;  %v4953_v57 = vld [vmem:[%s5796_s11 + $0x714] ss:$8 sps:$4 sm:$0xff]   ;;  %v4948_v60 = vld [vmem:[%s5796_s11 + $0x310] ss:$8 sps:$4 sm:$0xff]  }
 0x139   : > { %3683 = vmatprep.subr.bf16.mxu0 %v4857_v61  ;;  %3497 = vmatprep.mubr.bf16.mxu1 %v4938_v62  ;;  %v4951_v61 = vld [vmem:[%s5796_s11 + $0x710] ss:$8 sps:$4 sm:$0xff]   ;;  %v4956_v62 = vld [vmem:[%s5796_s11 + $0x324] ss:$8 sps:$4 sm:$0xff]  }
 0x13a   : > { %3709 = vmatprep.mubr.bf16.mxu0 %v4944_v63  ;;  %v4959_v63 = vld [vmem:[%s5796_s11 + $0x724] ss:$8 sps:$4 sm:$0xff]  }
 0x13b   : > { %3472 = vmatpush1.bf16.msra.mxu1 %v4852_v0  ;;  %v4954_v0 = vld [vmem:[%s5796_s11 + $0x320] ss:$8 sps:$4 sm:$0xff]  }
 0x13c   : > { %3684 = vmatpush1.bf16.msra.mxu0 %v4855_v1  ;;  %3473 = vmatprep.subr.bf16.mxu1 %v4860_v2  ;;  %v4957_v1 = vld [vmem:[%s5796_s11 + $0x720] ss:$8 sps:$4 sm:$0xff]  }
 0x13d   : > { %3685 = vmatprep.subr.bf16.mxu0 %v4863_v3  ;;  %v5030_v2 = vld [vmem:[%s6269_s0 + $0xa0] ss:$72 sps:$4 sm:$0xff]  }
 0x13e   : > { %v5034_v3 = vld [vmem:[%s6269_s0 + $0xc0] ss:$72 sps:$4 sm:$0xff]  }
 0x13f   : > { %3474 = vmatpush1.bf16.msra.mxu1 %v4858_v4  ;;  %v4962_v4 = vld [vmem:[%s5796_s11 + $0x334] ss:$8 sps:$4 sm:$0xff]  }
 0x140   : > { %3686 = vmatpush1.bf16.msra.mxu0 %v4861_v5  ;;  %3475 = vmatprep.subr.bf16.mxu1 %v4866_v6  ;;  %v4965_v5 = vld [vmem:[%s5796_s11 + $0x734] ss:$8 sps:$4 sm:$0xff]  }
 0x141   : > { %3687 = vmatprep.subr.bf16.mxu0 %v4869_v7  ;;  %v5046_v6 = vld [vmem:[%s6269_s0 + $0x1c] ss:$72 sps:$4 sm:$0xff]  }
 0x142   : > { %v5049_v7 = vld [vmem:[%s6269_s0 + $0x3c] ss:$72 sps:$4 sm:$0xff]  }
 0x143   : > { %3476 = vmatpush1.bf16.msra.mxu1 %v4864_v8  ;;  %v4960_v8 = vld [vmem:[%s5796_s11 + $0x330] ss:$8 sps:$4 sm:$0xff]  }
 0x144   : > { %3688 = vmatpush1.bf16.msra.mxu0 %v4867_v9  ;;  %3477 = vmatprep.subr.bf16.mxu1 %v4872_v10  ;;  %v4963_v9 = vld [vmem:[%s5796_s11 + $0x730] ss:$8 sps:$4 sm:$0xff]   ;;  %v4968_v10 = vld [vmem:[%s5796_s11 + $0x344] ss:$8 sps:$4 sm:$0xff]  }
 0x145   : > { %3689 = vmatprep.subr.bf16.mxu0 %v4875_v11  ;;  %v4971_v11 = vld [vmem:[%s5796_s11 + $0x744] ss:$8 sps:$4 sm:$0xff]  }
 0x147   : > { %3478 = vmatpush1.bf16.msra.mxu1 %v4870_v12  ;;  %v4966_v12 = vld [vmem:[%s5796_s11 + $0x340] ss:$8 sps:$4 sm:$0xff]  }
 0x148   : > { %3690 = vmatpush1.bf16.msra.mxu0 %v4873_v13  ;;  %3479 = vmatprep.subr.bf16.mxu1 %v4878_v14  ;;  %v4969_v13 = vld [vmem:[%s5796_s11 + $0x740] ss:$8 sps:$4 sm:$0xff]   ;;  %v4974_v14 = vld [vmem:[%s5796_s11 + $0x354] ss:$8 sps:$4 sm:$0xff]  }
 0x149   : > { %3691 = vmatprep.subr.bf16.mxu0 %v4881_v15  ;;  %v4977_v15 = vld [vmem:[%s5796_s11 + $0x754] ss:$8 sps:$4 sm:$0xff]  }
 0x14b   : > { %3480 = vmatpush1.bf16.msra.mxu1 %v4876_v16  ;;  %v4972_v16 = vld [vmem:[%s5796_s11 + $0x350] ss:$8 sps:$4 sm:$0xff]  }
 0x14c   : > { %3692 = vmatpush1.bf16.msra.mxu0 %v4879_v17  ;;  %3481 = vmatprep.subr.bf16.mxu1 %v4884_v18  ;;  %v4975_v17 = vld [vmem:[%s5796_s11 + $0x750] ss:$8 sps:$4 sm:$0xff]   ;;  %v4980_v18 = vld [vmem:[%s5796_s11 + $0x364] ss:$8 sps:$4 sm:$0xff]  }
 0x14d   : > { %3693 = vmatprep.subr.bf16.mxu0 %v4887_v19  ;;  %v4983_v19 = vld [vmem:[%s5796_s11 + $0x764] ss:$8 sps:$4 sm:$0xff]  }
 0x14f   : > { %3482 = vmatpush1.bf16.msra.mxu1 %v4882_v20  ;;  %v4978_v20 = vld [vmem:[%s5796_s11 + $0x360] ss:$8 sps:$4 sm:$0xff]  }
 0x150   : > { %3694 = vmatpush1.bf16.msra.mxu0 %v4885_v21  ;;  %3483 = vmatprep.subr.bf16.mxu1 %v4890_v22  ;;  %v4981_v21 = vld [vmem:[%s5796_s11 + $0x760] ss:$8 sps:$4 sm:$0xff]   ;;  %v4986_v22 = vld [vmem:[%s5796_s11 + $0x374] ss:$8 sps:$4 sm:$0xff]  }
 0x151   : > { %3695 = vmatprep.subr.bf16.mxu0 %v4893_v23  ;;  %v4989_v23 = vld [vmem:[%s5796_s11 + $0x774] ss:$8 sps:$4 sm:$0xff]  }
 0x153   : > { %3484 = vmatpush1.bf16.msra.mxu1 %v4888_v24  ;;  %v4984_v24 = vld [vmem:[%s5796_s11 + $0x370] ss:$8 sps:$4 sm:$0xff]  }
 0x154   : > { %3696 = vmatpush1.bf16.msra.mxu0 %v4891_v25  ;;  %3485 = vmatprep.subr.bf16.mxu1 %v4896_v26  ;;  %v4987_v25 = vld [vmem:[%s5796_s11 + $0x770] ss:$8 sps:$4 sm:$0xff]   ;;  %v4992_v26 = vld [vmem:[%s5796_s11 + $0x384] ss:$8 sps:$4 sm:$0xff]  }
 0x155   : > { %3697 = vmatprep.subr.bf16.mxu0 %v4899_v27  ;;  %v4995_v27 = vld [vmem:[%s5796_s11 + $0x784] ss:$8 sps:$4 sm:$0xff]  }
 0x157   : > { %3486 = vmatpush1.bf16.msra.mxu1 %v4894_v28  ;;  %v4990_v28 = vld [vmem:[%s5796_s11 + $0x380] ss:$8 sps:$4 sm:$0xff]  }
 0x158   : > { %3698 = vmatpush1.bf16.msra.mxu0 %v4897_v29  ;;  %3487 = vmatprep.subr.bf16.mxu1 %v4902_v30  ;;  %v4993_v29 = vld [vmem:[%s5796_s11 + $0x780] ss:$8 sps:$4 sm:$0xff]   ;;  %v4998_v30 = vld [vmem:[%s5796_s11 + $0x394] ss:$8 sps:$4 sm:$0xff]  }
 0x159   : > { %3699 = vmatprep.subr.bf16.mxu0 %v4905_v31  ;;  %v5001_v31 = vld [vmem:[%s5796_s11 + $0x794] ss:$8 sps:$4 sm:$0xff]  }
 0x15b   : > { %3488 = vmatpush1.bf16.msra.mxu1 %v4900_v32  ;;  %v4996_v32 = vld [vmem:[%s5796_s11 + $0x390] ss:$8 sps:$4 sm:$0xff]  }
 0x15c   : > { %3700 = vmatpush1.bf16.msra.mxu0 %v4903_v33  ;;  %3489 = vmatprep.subr.bf16.mxu1 %v4908_v34  ;;  %v4999_v33 = vld [vmem:[%s5796_s11 + $0x790] ss:$8 sps:$4 sm:$0xff]   ;;  %v5004_v34 = vld [vmem:[%s5796_s11 + $0x3a4] ss:$8 sps:$4 sm:$0xff]  }
 0x15d   : > { %3701 = vmatprep.subr.bf16.mxu0 %v4911_v35  ;;  %v5007_v35 = vld [vmem:[%s5796_s11 + $0x7a4] ss:$8 sps:$4 sm:$0xff]  }
 0x15f   : > { %3490 = vmatpush1.bf16.msra.mxu1 %v4906_v36  ;;  %v5002_v36 = vld [vmem:[%s5796_s11 + $0x3a0] ss:$8 sps:$4 sm:$0xff]  }
 0x160   : > { %3702 = vmatpush1.bf16.msra.mxu0 %v4909_v37  ;;  %3491 = vmatprep.subr.bf16.mxu1 %v4914_v38  ;;  %v5005_v37 = vld [vmem:[%s5796_s11 + $0x7a0] ss:$8 sps:$4 sm:$0xff]   ;;  %v5010_v38 = vld [vmem:[%s5796_s11 + $0x3b4] ss:$8 sps:$4 sm:$0xff]  }
 0x161   : > { %3703 = vmatprep.subr.bf16.mxu0 %v4917_v39  ;;  %v5013_v39 = vld [vmem:[%s5796_s11 + $0x7b4] ss:$8 sps:$4 sm:$0xff]  }
 0x163   : > { %3492 = vmatpush1.bf16.msra.mxu1 %v4912_v40  ;;  %v5008_v40 = vld [vmem:[%s5796_s11 + $0x3b0] ss:$8 sps:$4 sm:$0xff]  }
 0x164   : > { %3704 = vmatpush1.bf16.msra.mxu0 %v4915_v41  ;;  %3493 = vmatprep.subr.bf16.mxu1 %v4922_v42  ;;  %v5011_v41 = vld [vmem:[%s5796_s11 + $0x7b0] ss:$8 sps:$4 sm:$0xff]   ;;  %v5016_v42 = vld [vmem:[%s5796_s11 + $0x3c4] ss:$8 sps:$4 sm:$0xff]  }
 0x165   : > { %3705 = vmatprep.subr.bf16.mxu0 %v4927_v43  ;;  %v5019_v43 = vld [vmem:[%s5796_s11 + $0x7c4] ss:$8 sps:$4 sm:$0xff]  }
 0x167   : > { %3494 = vmatpush1.bf16.msra.mxu1 %v4920_v44  ;;  %v5014_v44 = vld [vmem:[%s5796_s11 + $0x3c0] ss:$8 sps:$4 sm:$0xff]  }
 0x168   : > { %3706 = vmatpush1.bf16.msra.mxu0 %v4925_v45  ;;  %3495 = vmatprep.subr.bf16.mxu1 %v4932_v46  ;;  %v5017_v45 = vld [vmem:[%s5796_s11 + $0x7c0] ss:$8 sps:$4 sm:$0xff]   ;;  %v5022_v46 = vld [vmem:[%s5796_s11 + $0x3d4] ss:$8 sps:$4 sm:$0xff]  }
 0x169   : > { %3707 = vmatprep.subr.bf16.mxu0 %v4935_v47  ;;  %v5025_v47 = vld [vmem:[%s5796_s11 + $0x7d4] ss:$8 sps:$4 sm:$0xff]  }
 0x16b   : > { %3496 = vmatpush1.bf16.msra.mxu1 %v4930_v48  ;;  %v5020_v48 = vld [vmem:[%s5796_s11 + $0x3d0] ss:$8 sps:$4 sm:$0xff]  }
 0x16c   : > { %3708 = vmatpush1.bf16.msra.mxu0 %v4933_v49  ;;  %3518 = vmatprep.subr.bf16.mxu1 %v4941_v50  ;;  %v5023_v49 = vld [vmem:[%s5796_s11 + $0x7d0] ss:$8 sps:$4 sm:$0xff]   ;;  %v5033_v50 = vld [vmem:[%s5796_s11 + $0x3e4] ss:$8 sps:$4 sm:$0xff]  }
 0x16d   : > { %3730 = vmatprep.subr.bf16.mxu0 %v4947_v51  ;;  %v5037_v51 = vld [vmem:[%s5796_s11 + $0x7e4] ss:$8 sps:$4 sm:$0xff]  }
 0x16e   : > { %3498 = vmatmul.mubr.bf16.vlgmr.msra.gmra.mrb[0].mxu1 %v4936_v52  ;;  %v5031_v52 = vld [vmem:[%s5796_s11 + $0x3e0] ss:$8 sps:$4 sm:$0xff]  }
 0x16f   : > { %3710 = vmatmul.mubr.bf16.vlgmr.msra.gmra.mrb[0].mxu0 %v4942_v54  ;;  %3519 = vmatpush1.bf16.msra.mxu1 %v4939_v53  ;;  %v5035_v53 = vld [vmem:[%s5796_s11 + $0x7e0] ss:$8 sps:$4 sm:$0xff]   ;;  %v5040_v54 = vld [vmem:[%s5796_s11 + $0x3f4] ss:$8 sps:$4 sm:$0xff]  }
 0x170   : > { %3731 = vmatpush1.bf16.msra.mxu0 %v4945_v55  ;;  %3520 = vmatprep.subr.bf16.mxu1 %v4950_v56  ;;  %v5043_v55 = vld [vmem:[%s5796_s11 + $0x7f4] ss:$8 sps:$4 sm:$0xff]   ;;  %v5038_v56 = vld [vmem:[%s5796_s11 + $0x3f0] ss:$8 sps:$4 sm:$0xff]  }
 0x171   : > { %3732 = vmatprep.subr.bf16.mxu0 %v4953_v57  ;;  %3507 = vmatprep.mubr.bf16.mxu1 %v5026_v58  ;;  %v5041_v57 = vld [vmem:[%s5796_s11 + $0x7f0] ss:$8 sps:$4 sm:$0xff]   ;;  %v5052_v58 = vld [vmem:[%s5796_s11 + $0x804] ss:$8 sps:$4 sm:$0xff]  }
 0x172   : > { %3719 = vmatprep.mubr.bf16.mxu0 %v5028_v59  ;;  %v5044_v59 = vld [vmem:[%s6269_s0 + $0x18] ss:$72 sps:$4 sm:$0xff]  }
 0x173   : > { %3521 = vmatpush1.bf16.msra.mxu1 %v4948_v60  ;;  %v5047_v60 = vld [vmem:[%s6269_s0 + $0x38] ss:$72 sps:$4 sm:$0xff]  }
 0x174   : > { %3733 = vmatpush1.bf16.msra.mxu0 %v4951_v61  ;;  %3522 = vmatprep.subr.bf16.mxu1 %v4956_v62  ;;  %v5050_v61 = vld [vmem:[%s5796_s11 + $0x800] ss:$8 sps:$4 sm:$0xff]   ;;  %v5055_v62 = vld [vmem:[%s5796_s11 + $0x814] ss:$8 sps:$4 sm:$0xff]  }
 0x175   : > { %3734 = vmatprep.subr.bf16.mxu0 %v4959_v63  ;;  %v5056_v63 = vld [vmem:[%s6269_s0 + $0xac] ss:$72 sps:$4 sm:$0xff]  }
 0x176   : > { %3508 = vmatmul.mubr.bf16.gmra.mrb[4].mxu1 %v5030_v2  ;;  %v5064_v2 = vld [vmem:[%s5796_s11 + $0x824] ss:$8 sps:$4 sm:$0xff]  }
 0x177   : > { %3720 = vmatmul.mubr.bf16.gmra.mrb[4].mxu0 %v5034_v3  ;;  %3523 = vmatpush1.bf16.msra.mxu1 %v4954_v0  ;;  %v5058_v0 = vld [vmem:[%s6269_s0 + $0xcc] ss:$72 sps:$4 sm:$0xff]   ;;  %v5060_v3 = vld [vmem:[%s6269_s0 + $0xa8] ss:$72 sps:$4 sm:$0xff]  }
 0x178   : > { %3735 = vmatpush1.bf16.msra.mxu0 %v4957_v1  ;;  %3524 = vmatprep.subr.bf16.mxu1 %v4962_v4  ;;  %v5053_v1 = vld [vmem:[%s5796_s11 + $0x810] ss:$8 sps:$4 sm:$0xff]  }
 0x179   : > { %3736 = vmatprep.subr.bf16.mxu0 %v4965_v5  ;;  %3550 = vmatprep.mubr.bf16.mxu1 %v5046_v6  ;;  %v5061_v4 = vld [vmem:[%s6269_s0 + $0xc8] ss:$72 sps:$4 sm:$0xff]   ;;  %v5067_v6 = vld [vmem:[%s5796_s11 + $0x834] ss:$8 sps:$4 sm:$0xff]  }
 0x17a   : > { %3762 = vmatprep.mubr.bf16.mxu0 %v5049_v7  ;;  %v5062_v5 = vld [vmem:[%s5796_s11 + $0x820] ss:$8 sps:$4 sm:$0xff]   ;;  %v5106_v7 = vld [vmem:[%s6269_s0 + $0x44] ss:$72 sps:$4 sm:$0xff]  }
 0x17b   : > { %3525 = vmatpush1.bf16.msra.mxu1 %v4960_v8  ;;  %v5109_v8 = vld [vmem:[%s6269_s0 + $0xd4] ss:$72 sps:$4 sm:$0xff]  }
 0x17c   : > { %3737 = vmatpush1.bf16.msra.mxu0 %v4963_v9  ;;  %3526 = vmatprep.subr.bf16.mxu1 %v4968_v10  ;;  %v5065_v9 = vld [vmem:[%s5796_s11 + $0x830] ss:$8 sps:$4 sm:$0xff]   ;;  %v5070_v10 = vld [vmem:[%s5796_s11 + $0x844] ss:$8 sps:$4 sm:$0xff]  }
 0x17d   : > { %3738 = vmatprep.subr.bf16.mxu0 %v4971_v11  ;;  %v5068_v11 = vld [vmem:[%s5796_s11 + $0x840] ss:$8 sps:$4 sm:$0xff]  }
 0x17f   : > { %3527 = vmatpush1.bf16.msra.mxu1 %v4966_v12  ;;  %v5073_v12 = vld [vmem:[%s5796_s11 + $0x854] ss:$8 sps:$4 sm:$0xff]  }
 0x180   : > { %3739 = vmatpush1.bf16.msra.mxu0 %v4969_v13  ;;  %3528 = vmatprep.subr.bf16.mxu1 %v4974_v14  ;;  %v5071_v13 = vld [vmem:[%s5796_s11 + $0x850] ss:$8 sps:$4 sm:$0xff]   ;;  %v5076_v14 = vld [vmem:[%s5796_s11 + $0x864] ss:$8 sps:$4 sm:$0xff]  }
 0x181   : > { %3740 = vmatprep.subr.bf16.mxu0 %v4977_v15  ;;  %v5074_v15 = vld [vmem:[%s5796_s11 + $0x860] ss:$8 sps:$4 sm:$0xff]  }
 0x183   : > { %3529 = vmatpush1.bf16.msra.mxu1 %v4972_v16  ;;  %v5079_v16 = vld [vmem:[%s5796_s11 + $0x874] ss:$8 sps:$4 sm:$0xff]  }
 0x184   : > { %3741 = vmatpush1.bf16.msra.mxu0 %v4975_v17  ;;  %3530 = vmatprep.subr.bf16.mxu1 %v4980_v18  ;;  %v5077_v17 = vld [vmem:[%s5796_s11 + $0x870] ss:$8 sps:$4 sm:$0xff]   ;;  %v5082_v18 = vld [vmem:[%s5796_s11 + $0x884] ss:$8 sps:$4 sm:$0xff]  }
 0x185   : > { %3742 = vmatprep.subr.bf16.mxu0 %v4983_v19  ;;  %v5080_v19 = vld [vmem:[%s5796_s11 + $0x880] ss:$8 sps:$4 sm:$0xff]  }
 0x187   : > { %3531 = vmatpush1.bf16.msra.mxu1 %v4978_v20  ;;  %v5085_v20 = vld [vmem:[%s5796_s11 + $0x894] ss:$8 sps:$4 sm:$0xff]  }
 0x188   : > { %3743 = vmatpush1.bf16.msra.mxu0 %v4981_v21  ;;  %3532 = vmatprep.subr.bf16.mxu1 %v4986_v22  ;;  %v5083_v21 = vld [vmem:[%s5796_s11 + $0x890] ss:$8 sps:$4 sm:$0xff]   ;;  %v5088_v22 = vld [vmem:[%s5796_s11 + $0x8a4] ss:$8 sps:$4 sm:$0xff]  }
 0x189   : > { %3744 = vmatprep.subr.bf16.mxu0 %v4989_v23  ;;  %v5086_v23 = vld [vmem:[%s5796_s11 + $0x8a0] ss:$8 sps:$4 sm:$0xff]  }
 0x18b   : > { %3533 = vmatpush1.bf16.msra.mxu1 %v4984_v24  ;;  %v5091_v24 = vld [vmem:[%s5796_s11 + $0x8b4] ss:$8 sps:$4 sm:$0xff]  }
 0x18c   : > { %3745 = vmatpush1.bf16.msra.mxu0 %v4987_v25  ;;  %3534 = vmatprep.subr.bf16.mxu1 %v4992_v26  ;;  %v5089_v25 = vld [vmem:[%s5796_s11 + $0x8b0] ss:$8 sps:$4 sm:$0xff]   ;;  %v5094_v26 = vld [vmem:[%s5796_s11 + $0x8c4] ss:$8 sps:$4 sm:$0xff]  }
 0x18d   : > { %3746 = vmatprep.subr.bf16.mxu0 %v4995_v27  ;;  %v5092_v27 = vld [vmem:[%s5796_s11 + $0x8c0] ss:$8 sps:$4 sm:$0xff]  }
 0x18f   : > { %3535 = vmatpush1.bf16.msra.mxu1 %v4990_v28  ;;  %v5097_v28 = vld [vmem:[%s5796_s11 + $0x8d4] ss:$8 sps:$4 sm:$0xff]  }
 0x190   : > { %3747 = vmatpush1.bf16.msra.mxu0 %v4993_v29  ;;  %3536 = vmatprep.subr.bf16.mxu1 %v4998_v30  ;;  %v5095_v29 = vld [vmem:[%s5796_s11 + $0x8d0] ss:$8 sps:$4 sm:$0xff]   ;;  %v5100_v30 = vld [vmem:[%s5796_s11 + $0x8e4] ss:$8 sps:$4 sm:$0xff]  }
 0x191   : > { %3748 = vmatprep.subr.bf16.mxu0 %v5001_v31  ;;  %v5098_v31 = vld [vmem:[%s5796_s11 + $0x8e0] ss:$8 sps:$4 sm:$0xff]  }
 0x193   : > { %3537 = vmatpush1.bf16.msra.mxu1 %v4996_v32  ;;  %v5103_v32 = vld [vmem:[%s5796_s11 + $0x8f4] ss:$8 sps:$4 sm:$0xff]  }
 0x194   : > { %3749 = vmatpush1.bf16.msra.mxu0 %v4999_v33  ;;  %3538 = vmatprep.subr.bf16.mxu1 %v5004_v34  ;;  %v5101_v33 = vld [vmem:[%s5796_s11 + $0x8f0] ss:$8 sps:$4 sm:$0xff]   ;;  %v5104_v34 = vld [vmem:[%s6269_s0 + $0x40] ss:$72 sps:$4 sm:$0xff]   ;;  %s4160_s11 = sshll.u32 %s5180_s18, 1 }
 0x195   : > { %3750 = vmatprep.subr.bf16.mxu0 %v5007_v35  ;;  %v5107_v35 = vld [vmem:[%s6269_s0 + $0xd0] ss:$72 sps:$4 sm:$0xff]   ;;  %p1405_p10 = scmp.lt.s32.totalorder %s4160_s11, 3 }
 0x197   : > { %3539 = vmatpush1.bf16.msra.mxu1 %v5002_v36  ;;  %s6279_s11 = smov (!%p1405_p10, %s4160_s11), 3 }
 0x198   : > { %3751 = vmatpush1.bf16.msra.mxu0 %v5005_v37  ;;  %3540 = vmatprep.subr.bf16.mxu1 %v5010_v38  ;;  %s1407_s9 = scalar_lea.vmem %s6271_s2, %s6279_s11  ;;  %s1412_s13 = scalar_lea.vmem %s6272_s3, %s6279_s11 }
 0x199   : > { %3752 = vmatprep.subr.bf16.mxu0 %v5013_v39 }
 0x19b   : > { %3541 = vmatpush1.bf16.msra.mxu1 %v5008_v40 }
 0x19c   : > { %3753 = vmatpush1.bf16.msra.mxu0 %v5011_v41  ;;  %3542 = vmatprep.subr.bf16.mxu1 %v5016_v42 }
 0x19d   : > { %3754 = vmatprep.subr.bf16.mxu0 %v5019_v43 }
 0x19f   : > { %3543 = vmatpush1.bf16.msra.mxu1 %v5014_v44 }
 0x1a0   : > { %3755 = vmatpush1.bf16.msra.mxu0 %v5017_v45  ;;  %3544 = vmatprep.subr.bf16.mxu1 %v5022_v46 }
 0x1a1   : > { %3756 = vmatprep.subr.bf16.mxu0 %v5025_v47 }
 0x1a3   : > { %3545 = vmatpush1.bf16.msra.mxu1 %v5020_v48 }
 0x1a4   : > { %3757 = vmatpush1.bf16.msra.mxu0 %v5023_v49  ;;  %3546 = vmatprep.subr.bf16.mxu1 %v5033_v50 }
 0x1a5   : > { %3758 = vmatprep.subr.bf16.mxu0 %v5037_v51 }
 0x1a7   : > { %3547 = vmatpush1.bf16.msra.mxu1 %v5031_v52 }
 0x1a8   : > { %3759 = vmatpush1.bf16.msra.mxu0 %v5035_v53  ;;  %3548 = vmatprep.subr.bf16.mxu1 %v5040_v54 }
 0x1a9   : > { %3760 = vmatprep.subr.bf16.mxu0 %v5043_v55 }
 0x1ab   : > { %3549 = vmatpush1.bf16.msra.mxu1 %v5038_v56 }
 0x1ac   : > { %3761 = vmatpush1.bf16.msra.mxu0 %v5041_v57  ;;  %4501 = vmatprep.subr.bf16.mxu1 %v5052_v58 }
 0x1ad   : > { %3783 = vmatprep.subr.bf16.mxu0 %v5052_v58 }
 0x1ae   : > { %3551 = vmatmul.mubr.bf16.vlgmr.msra.gmra.mrb[0].mxu1 %v5044_v59 }
 0x1af   : > { %3763 = vmatmul.mubr.bf16.vlgmr.msra.gmra.mrb[0].mxu0 %v5047_v60  ;;  %4517 = vmatpush1.bf16.msra.mxu1 %v5050_v61 }
 0x1b0   : > { %3784 = vmatpush1.bf16.msra.mxu0 %v5050_v61  ;;  %4502 = vmatprep.subr.bf16.mxu1 %v5055_v62 }
 0x1b1   : > { %3785 = vmatprep.subr.bf16.mxu0 %v5055_v62  ;;  %3560 = vmatprep.mubr.bf16.mxu1 %v5056_v63 }
 0x1b2   : > { %3772 = vmatprep.mubr.bf16.mxu0 %v5058_v0 }
 0x1b3   : > { %4518 = vmatpush1.bf16.msra.mxu1 %v5053_v1 }
 0x1b4   : > { %3786 = vmatpush1.bf16.msra.mxu0 %v5053_v1  ;;  %4503 = vmatprep.subr.bf16.mxu1 %v5064_v2 }
 0x1b5   : > { %3787 = vmatprep.subr.bf16.mxu0 %v5064_v2 }
 0x1b6   : > { %3561 = vmatmul.mubr.bf16.gmra.mrb[4].mxu1 %v5060_v3 }
 0x1b7   : > { %3773 = vmatmul.mubr.bf16.gmra.mrb[4].mxu0 %v5061_v4  ;;  %4519 = vmatpush1.bf16.msra.mxu1 %v5062_v5 }
 0x1b8   : > { %3788 = vmatpush1.bf16.msra.mxu0 %v5062_v5  ;;  %4504 = vmatprep.subr.bf16.mxu1 %v5067_v6 }
 0x1b9   : > { %3789 = vmatprep.subr.bf16.mxu0 %v5067_v6  ;;  %3815 = vmatprep.mubr.bf16.mxu0 %v5106_v7 }
 0x1ba   : > { %3825 = vmatprep.mubr.bf16.mxu1 %v5109_v8 }
 0x1bb   : > { %4520 = vmatpush1.bf16.msra.mxu1 %v5065_v9 }
 0x1bc   : > { %3790 = vmatpush1.bf16.msra.mxu0 %v5065_v9  ;;  %4505 = vmatprep.subr.bf16.mxu1 %v5070_v10 }
 0x1bd   : > { %3791 = vmatprep.subr.bf16.mxu0 %v5070_v10 }
 0x1bf   : > { %4521 = vmatpush1.bf16.msra.mxu1 %v5068_v11 }
 0x1c0   : > { %3792 = vmatpush1.bf16.msra.mxu0 %v5068_v11  ;;  %4506 = vmatprep.subr.bf16.mxu1 %v5073_v12 }
 0x1c1   : > { %3793 = vmatprep.subr.bf16.mxu0 %v5073_v12 }
 0x1c3   : > { %4522 = vmatpush1.bf16.msra.mxu1 %v5071_v13 }
 0x1c4   : > { %3794 = vmatpush1.bf16.msra.mxu0 %v5071_v13  ;;  %4507 = vmatprep.subr.bf16.mxu1 %v5076_v14 }
 0x1c5   : > { %3795 = vmatprep.subr.bf16.mxu0 %v5076_v14 }
 0x1c7   : > { %4523 = vmatpush1.bf16.msra.mxu1 %v5074_v15 }
 0x1c8   : > { %3796 = vmatpush1.bf16.msra.mxu0 %v5074_v15  ;;  %4508 = vmatprep.subr.bf16.mxu1 %v5079_v16 }
 0x1c9   : > { %3797 = vmatprep.subr.bf16.mxu0 %v5079_v16 }
 0x1cb   : > { %4524 = vmatpush1.bf16.msra.mxu1 %v5077_v17 }
 0x1cc   : > { %3798 = vmatpush1.bf16.msra.mxu0 %v5077_v17  ;;  %4509 = vmatprep.subr.bf16.mxu1 %v5082_v18 }
 0x1cd   : > { %3799 = vmatprep.subr.bf16.mxu0 %v5082_v18 }
 0x1cf   : > { %4525 = vmatpush1.bf16.msra.mxu1 %v5080_v19 }
 0x1d0   : > { %3800 = vmatpush1.bf16.msra.mxu0 %v5080_v19  ;;  %4510 = vmatprep.subr.bf16.mxu1 %v5085_v20 }
 0x1d1   : > { %3801 = vmatprep.subr.bf16.mxu0 %v5085_v20 }
 0x1d3   : > { %4526 = vmatpush1.bf16.msra.mxu1 %v5083_v21 }
 0x1d4   : > { %3802 = vmatpush1.bf16.msra.mxu0 %v5083_v21  ;;  %4511 = vmatprep.subr.bf16.mxu1 %v5088_v22 }
 0x1d5   : > { %3803 = vmatprep.subr.bf16.mxu0 %v5088_v22 }
 0x1d7   : > { %4527 = vmatpush1.bf16.msra.mxu1 %v5086_v23 }
 0x1d8   : > { %3804 = vmatpush1.bf16.msra.mxu0 %v5086_v23  ;;  %4512 = vmatprep.subr.bf16.mxu1 %v5091_v24 }
 0x1d9   : > { %3805 = vmatprep.subr.bf16.mxu0 %v5091_v24 }
 0x1db   : > { %4528 = vmatpush1.bf16.msra.mxu1 %v5089_v25 }
 0x1dc   : > { %3806 = vmatpush1.bf16.msra.mxu0 %v5089_v25  ;;  %4513 = vmatprep.subr.bf16.mxu1 %v5094_v26 }
 0x1dd   : > { %3807 = vmatprep.subr.bf16.mxu0 %v5094_v26 }
 0x1df   : > { %4529 = vmatpush1.bf16.msra.mxu1 %v5092_v27 }
 0x1e0   : > { %3808 = vmatpush1.bf16.msra.mxu0 %v5092_v27  ;;  %4514 = vmatprep.subr.bf16.mxu1 %v5097_v28 }
 0x1e1   : > { %3809 = vmatprep.subr.bf16.mxu0 %v5097_v28 }
 0x1e3   : > { %4530 = vmatpush1.bf16.msra.mxu1 %v5095_v29 }
 0x1e4   : > { %3810 = vmatpush1.bf16.msra.mxu0 %v5095_v29  ;;  %4515 = vmatprep.subr.bf16.mxu1 %v5100_v30 }
 0x1e5   : > { %3811 = vmatprep.subr.bf16.mxu0 %v5100_v30 }
 0x1e7   : > { %4531 = vmatpush1.bf16.msra.mxu1 %v5098_v31 }
 0x1e8   : > { %3812 = vmatpush1.bf16.msra.mxu0 %v5098_v31  ;;  %4516 = vmatprep.subr.bf16.mxu1 %v5103_v32 }
 0x1e9   : > { %3813 = vmatprep.subr.bf16.mxu0 %v5103_v32 }
 0x1eb   : > { %4532 = vmatpush1.bf16.msra.mxu1 %v5101_v33 }
 0x1ec   : > { %3814 = vmatpush1.bf16.msra.mxu0 %v5101_v33 }
 0x1ee   : > { %3826 = vmatmul.mubr.bf16.vlgmr.msra.gmra.mrb[8].mxu1 %v5107_v35 }
 0x1ef   : > { %3816 = vmatmul.mubr.bf16.vlgmr.msra.gmra.mrb[0].mxu0 %v5104_v34 }
 0x281   : > { %v3552_v36 = vpop.f32.mrb[0].mxu1 }
 0x282   : > { %v3554_v37 = vpop.f32.mrb[1].mxu1 }
 0x283   : > { %v3556_v38 = vpop.f32.mrb[2].mxu1 }
 0x284   : > { %v3558_v39 = vpop.f32.mrb[3].mxu1 }
 0x289   : > { %v3562_v40 = vpop.f32.mrb[4].mxu1 }
 0x28a   : > { %v3774_v41 = vpop.f32.mrb[4].mxu0  ;;  %v3564_v43 = vpop.f32.mrb[5].mxu1 }
 0x28b   : > { %v4537_v42 = vadd.f32 %v3774_v41, %v3562_v40  ;;  %v3776_v44 = vpop.f32.mrb[5].mxu0  ;;  %v3566_v46 = vpop.f32.mrb[6].mxu1 }
 0x28c   : > { %v4539_v45 = vadd.f32 %v3776_v44, %v3564_v43  ;;  %v3778_v47 = vpop.f32.mrb[6].mxu0  ;;  %v3568_v49 = vpop.f32.mrb[7].mxu1 }
 0x28d   : > { %v4541_v48 = vadd.f32 %v3778_v47, %v3566_v46  ;;  %v3780_v50 = vpop.f32.mrb[7].mxu0 }
 0x28e   : > { %v4543_v51 = vadd.f32 %v3780_v50, %v3568_v49 }
 0x2c1   : > { %v3827_v53 = vpop.f32.mrb[8].mxu1 }
 0x2c2   : > { %v3817_v52 = vpop.f32.mrb[0].mxu0  ;;  %v6190_v55 = vadd.f32 %v4537_v42, %v3827_v53  ;;  %v3829_v57 = vpop.f32.mrb[9].mxu1 }
 0x2c3   : > { %v6188_v54 = vadd.f32 %v3817_v52, %v3552_v36  ;;  %v3819_v56 = vpop.f32.mrb[1].mxu0  ;;  %v6194_v59 = vadd.f32 %v4539_v45, %v3829_v57  ;;  %v3831_v61 = vpop.f32.mrb[10].mxu1 }
 0x2c4   : > { %v6192_v58 = vadd.f32 %v3819_v56, %v3554_v37  ;;  %v3821_v60 = vpop.f32.mrb[2].mxu0  ;;  %v6198_v63 = vadd.f32 %v4541_v48, %v3831_v61  ;;  %v3833_v1 = vpop.f32.mrb[11].mxu1  ;;  %v3860_v10 = vmul.f32 %v6190_v55, %v6190_v55 }
 0x2c5   : > { %v6196_v62 = vadd.f32 %v3821_v60, %v3556_v38  ;;  %v3823_v0 = vpop.f32.mrb[3].mxu0  ;;  %v6202_v3 = vadd.f32 %v4543_v51, %v3833_v1  ;;  %v3856_v4 = vmul.f32 %v6188_v54, %v6188_v54  ;;  %v3861_v13 = vmul.f32 %v6194_v59, %v6194_v59 }
 0x2c6   : > { %v6200_v2 = vadd.f32 %v3823_v0, %v3558_v39  ;;  %v3857_v7 = vmul.f32 %v6192_v58, %v6192_v58  ;;  %v3862_v17 = vmul.f32 %v6198_v63, %v6198_v63  ;;  %v5138_v0 = vmov 1966171168  }
 0x2c7   : > { %v3836_v5 = vadd.f32 %v6196_v62, %v6188_v54  ;;  %v3858_v6 = vmul.f32 %v6196_v62, %v6196_v62  ;;  %v3863_v20 = vmul.f32 %v6202_v3, %v6202_v3  ;;  %v3897_v1 = vunpack.c.l.s4 %v5138_v0 }
 0x2c8   : > { %v3845_v8 = vadd.f32 %v6200_v2, %v6192_v58  ;;  %v3859_v9 = vmul.f32 %v6200_v2, %v6200_v2 }
 0x2c9   : > { %v3864_v11 = vadd.f32 %v3858_v6, %v3856_v4  ;;  %v3837_v12 = vadd.f32 %v6190_v55, %v3836_v5  ;;  %v3899_v4 = vlaneseq  ;;  %v3898_v5 = vunpack.c.0.s8 %v3897_v1 }
 0x2ca   : > { %v3873_v14 = vadd.f32 %v3859_v9, %v3857_v7  ;;  %v3846_v15 = vadd.f32 %v6194_v59, %v3845_v8 }
 0x2cb   : > { %v3838_v16 = vadd.f32 %v6198_v63, %v3837_v12  ;;  %v3865_v18 = vadd.f32 %v3864_v11, %v3860_v10  ;;  %v3900_v6 = vshrl.u32 %v3899_v4, 7  ;;  %v3888_v12 = vld [vmem:[%s1407_s9] sm:$0x3] }
 0x2cc   : > { %v3847_v19 = vadd.f32 %v6202_v3, %v3846_v15  ;;  %v3874_v21 = vadd.f32 %v3873_v14, %v3861_v13 }
 0x2cd   : > { %v3839_v22 = vrot.slane %v3838_v16, 4  ;;  %v3866_v23 = vadd.f32 %v3865_v18, %v3862_v17  ;;  %v3901_v8 = vsub.s32 %v3898_v5, %v3900_v6  ;;  %v3916_v14 = vsub.s32 0, %v3900_v6 }
 0x2ce   : > { %v3848_v24 = vrot.slane %v3847_v19, 4  ;;  %v3875_v25 = vadd.f32 %v3874_v21, %v3863_v20  ;;  %v3920_v15 = vsub.s32 1, %v3900_v6 }
 0x2cf   : > { %v3840_v26 = vadd.f32 %v3839_v22, %v3838_v16  ;;  %v3867_v27 = vrot.slane %v3866_v23, 4 }
 0x2d0   : > { %v3849_v28 = vadd.f32 %v3848_v24, %v3847_v19  ;;  %v3876_v29 = vrot.slane %v3875_v25, 4 }
 0x2d1   : > { %v3841_v30 = vrot.slane %v3840_v26, 2  ;;  %v3868_v31 = vadd.f32 %v3867_v27, %v3866_v23 }
 0x2d2   : > { %v3850_v32 = vrot.slane %v3849_v28, 2  ;;  %v3877_v33 = vadd.f32 %v3876_v29, %v3875_v25 }
 0x2d3   : > { %v3842_v34 = vadd.f32 %v3841_v30, %v3840_v26  ;;  %v3869_v35 = vrot.slane %v3868_v31, 2  ;;  %v3912_v30 = vld [vmem:[%s1412_s13] sm:$0x3] }
 0x2d4   : > { %v3851_v36 = vadd.f32 %v3850_v32, %v3849_v28  ;;  %v3878_v37 = vrot.slane %v3877_v33, 2 }
 0x2d5   : > { %v3843_v38 = vrot.slane %v3842_v34, 1  ;;  %v3870_v39 = vadd.f32 %v3869_v35, %v3868_v31 }
 0x2d6   : > { %v3852_v40 = vrot.slane %v3851_v36, 1  ;;  %v3879_v41 = vadd.f32 %v3878_v37, %v3877_v33 }
 0x2d7   : > { %v3844_v42 = vadd.f32 %v3843_v38, %v3842_v34  ;;  %v3871_v43 = vrot.slane %v3870_v39, 1 }
 0x2d8   : > { %v3853_v44 = vadd.f32 %v3852_v40, %v3851_v36  ;;  %v3880_v45 = vrot.slane %v3879_v41, 1 }
 0x2d9   : > { %v3854_v46 = vmul.f32 0.03125, %v3844_v42  ;;  %v3872_v47 = vadd.f32 %v3871_v43, %v3870_v39 }
 0x2da   : > { %v3855_v48 = vmul.f32 0.03125, %v3853_v44  ;;  %v3881_v49 = vadd.f32 %v3880_v45, %v3879_v41 }
 0x2db   : > { %v3882_v50 = vmul.f32 0.03125, %v3872_v47  ;;  %v3884_v51 = vmul.f32 %v3854_v46, %v3854_v46 }
 0x2dc   : > { %v3883_v52 = vmul.f32 0.03125, %v3881_v49  ;;  %v3885_v53 = vmul.f32 %v3855_v48, %v3855_v48 }
 0x2dd   : > { %v3886_v56 = vsub.f32 %v3882_v50, %v3884_v51 }
 0x2de   : > { %v3887_v57 = vsub.f32 %v3883_v52, %v3885_v53 }
 0x2df   : > { %v3889_v60 = vadd.f32 1e-05, %v3886_v56 }
 0x2e0   : > { %v3890_v61 = vadd.f32 1e-05, %v3887_v57 }
 0x2e1   : > { %5110 = vrsqrt.f32 %v3889_v60 }
 0x2e2   : > { %5112 = vrsqrt.f32 %v3890_v61 }
 0x2eb   : > { %v5111_v7 = vpop.eup %5110 }
 0x2ec   : > { %v5113_v9 = vpop.eup %5112 }
 0x2ed   : > { %v3895_v10 = vcombine.low %v5111_v7, %v5113_v9 }
 0x2ef   : > { %v3902_v11 = vrot.slane %v3895_v10, %v3901_v8 }
 0x2f1   : > { %v3909_v13 = vrot.slane %v3902_v11, %v3901_v8 }
 0x2f3   : > { %v3911_v16 = vmul.f32 %v3909_v13, %v3888_v12 }
 0x2f5   : > { %v3917_v17 = vrot.slane %v3911_v16, %v3916_v14  ;;  %v3921_v18 = vrot.slane %v3911_v16, %v3920_v15 }
 0x2f7   : > { %v3924_v19 = vmul.f32 %v3917_v17, %v3854_v46  ;;  %v3925_v20 = vmul.f32 %v3921_v18, %v3855_v48  ;;  %v3945_v21 = vmul.f32 %v6188_v54, %v3917_v17  ;;  %v3946_v22 = vmul.f32 %v6192_v58, %v3921_v18 }
 0x2f8   : > { %v3947_v23 = vmul.f32 %v6196_v62, %v3917_v17  ;;  %v3948_v24 = vmul.f32 %v6200_v2, %v3921_v18  ;;  %v3949_v25 = vmul.f32 %v6190_v55, %v3917_v17  ;;  %v3950_v26 = vmul.f32 %v6194_v59, %v3921_v18 }
 0x2f9   : > { %v3928_v27 = vcombine.low %v3924_v19, %v3925_v20  ;;  %v3951_v28 = vmul.f32 %v6198_v63, %v3917_v17  ;;  %v3952_v29 = vmul.f32 %v6202_v3, %v3921_v18 }
 0x2fb   : > { %v3935_v54 = vrot.slane %v3928_v27, %v3901_v8 }
 0x2fd   : > { %v3942_v58 = vrot.slane %v3935_v54, %v3901_v8 }
 0x2ff   : > { %v3944_v62 = vsub.f32 %v3912_v30, %v3942_v58 }
 0x301   : > { %v3957_v31 = vrot.slane %v3944_v62, %v3916_v14  ;;  %v3961_v2 = vrot.slane %v3944_v62, %v3920_v15 }
 0x303   : > { %v3964_v32 = vadd.f32 %v3957_v31, %v3945_v21  ;;  %v3965_v55 = vadd.f32 %v3961_v2, %v3946_v22  ;;  %v3966_v33 = vadd.f32 %v3957_v31, %v3947_v23  ;;  %v3967_v59 = vadd.f32 %v3961_v2, %v3948_v24 }
 0x304   : > { %v3968_v34 = vadd.f32 %v3957_v31, %v3949_v25  ;;  %v3969_v35 = vadd.f32 %v3961_v2, %v3950_v26  ;;  %v3970_v36 = vadd.f32 %v3957_v31, %v3951_v28  ;;  %v3971_v37 = vadd.f32 %v3961_v2, %v3952_v29 }
 0x305   : > { %vm3972_vm0 = vcmp.gt.f32.partialorder %v3964_v32, 0.0  ;;  %vm3973_vm1 = vcmp.gt.f32.partialorder %v3965_v55, 0.0  ;;  %vm3974_vm2 = vcmp.gt.f32.partialorder %v3966_v33, 0.0  ;;  %vm3975_vm3 = vcmp.gt.f32.partialorder %v3967_v59, 0.0 }
 0x306   : > { %vm3976_vm4 = vcmp.gt.f32.partialorder %v3968_v34, 0.0  ;;  %vm3977_vm5 = vcmp.gt.f32.partialorder %v3969_v35, 0.0  ;;  %vm3978_vm6 = vcmp.gt.f32.partialorder %v3970_v36, 0.0  ;;  %vm3979_vm7 = vcmp.gt.f32.partialorder %v3971_v37, 0.0 }
 0x307   : > { %v3980_v63 = vmul.f32 0.2, %v3964_v32  ;;  %v3981_v3 = vmul.f32 0.2, %v3965_v55  ;;  %v3982_v38 = vmul.f32 0.2, %v3966_v33 }
 0x308   : > { %v3983_v39 = vmul.f32 0.2, %v3967_v59  ;;  %v3984_v40 = vmul.f32 0.2, %v3968_v34  ;;  %v3985_v41 = vmul.f32 0.2, %v3969_v35 }
 0x309   : > { %v3986_v42 = vmul.f32 0.2, %v3970_v36  ;;  %v3987_v43 = vmul.f32 0.2, %v3971_v37  ;;  %v3988_v44 = vsel %vm3972_vm0, %v3964_v32, %v3980_v63  ;;  %v3989_v45 = vsel %vm3973_vm1, %v3965_v55, %v3981_v3  ;;  %4030 = sbr.rel (!%p5195_p5) target bundleno = 791 (0x317), region = 78 }
 0x30a   : > { %v3990_v46 = vsel %vm3974_vm2, %v3966_v33, %v3982_v38  ;;  %v3991_v47 = vsel %vm3975_vm3, %v3967_v59, %v3983_v39  ;;  %v3992_v48 = vsel %vm3976_vm4, %v3968_v34, %v3984_v40  ;;  %v3993_v49 = vsel %vm3977_vm5, %v3969_v35, %v3985_v41 }
 0x30b   : > { %v3994_v50 = vsel %vm3978_vm6, %v3970_v36, %v3986_v42  ;;  %v3995_v51 = vsel %vm3979_vm7, %v3971_v37, %v3987_v43  ;;  %v4496_v52 = vpack.c.bf16 %v3989_v45, %v3988_v44  ;;  %v4497_v53 = vpack.c.bf16 %v3991_v47, %v3990_v46 }
 0x30c   : > { %v4498_v56 = vpack.c.bf16 %v3993_v49, %v3992_v48  ;;  %v4499_v57 = vpack.c.bf16 %v3995_v51, %v3994_v50 }
 0x30d   : > { %4020 = vst [vmem:[%s1402_s15] sm:$0xff] %v4496_v52  ;;  %4021 = vst [vmem:[%s1402_s15 + $0x8] sm:$0xff] %v4497_v53 }
 0x30e   : > { %4022 = vst [vmem:[%s1402_s15 + $0x10] sm:$0xff] %v4498_v56  ;;  %4023 = vst [vmem:[%s1402_s15 + $0x18] sm:$0xff] %v4499_v57 }
 0x314   : > { %v4067_v60 = vld [vmem:[%s1402_s15] sm:$0xff]  ;;  %v4069_v61 = vld [vmem:[%s1402_s15 + $0x8] sm:$0xff] }
 0x315   : > { %v4071_v0 = vld [vmem:[%s1402_s15 + $0x10] sm:$0xff]  ;;  %v4073_v1 = vld [vmem:[%s1402_s15 + $0x18] sm:$0xff]  ;;  %4068 = vst [vmem:[%s4033_s21] sm:$0xff] %v4067_v60  ;;  %4070 = vst [vmem:[%s4033_s21 + $0x10] sm:$0xff] %v4069_v61 }
 0x316   : > { %4072 = vst [vmem:[%s4033_s21 + $0x20] sm:$0xff] %v4071_v0  ;;  %4074 = vst [vmem:[%s4033_s21 + $0x30] sm:$0xff] %v4073_v1 }
 0x317 PF: > { %p11_p11 = scmp.ge.s32.totalorder %s5183_s19, 4   ;;  %s6275_s15 = smov %s5132_s16 }
 0x318   : > { %s6276_s16 = smov %s5193_s22  ;;  %s6277_s17 = smov %s5183_s19 }
 0x319   :  { %13 = sbr.rel (!%p11_p11) target bundleno = 2 (0x2), region = 153 }

// kernel: discriminator_forward.10
= control target key start
LH: loop header
LB: loop body
LE: loop exit
PB: predicated region body
PF: predicated region fallthrough
CT: control target
= control target key end

     0   :  { %s1667_s15 = smov 0   ;;  %s1669_s16 = smov 0   ;;  %s2016_s0 = inlined_call_operand.vmem [shape: bf16[32,512], index: 0, kind: input, shape index: {}]   ;;  %s2017_s1 = inlined_call_operand.vmem [shape: bf16[512,1024], index: 1, kind: input, shape index: {}]   ;;  %s2018_s2 = inlined_call_operand.vmem [shape: f32[1,1024], index: 2, kind: input, shape index: {}]   ;;  %s2019_s3 = inlined_call_operand.vmem [shape: f32[1,1024], index: 3, kind: input, shape index: {}]   ;;  %s2020_s4 = inlined_call_operand.vmem [shape: bf16[32,1024], index: 4, kind: output, shape index: {}]  }
   0x1   :  { %s1671_s17 = smov 0  }
   0x2 LB: > { %s1683_s18 = sadd.s32 4294967295, %s1639_s17   ;;  %s1686_s19 = sadd.s32 1, %s1639_s17   ;;  %s1639_s17 = sphi %s1671_s17, %s2024_s17   ;;  %s1635_s16 = sphi %s1669_s16, %s2023_s16   ;;  %s1631_s15 = sphi %s1667_s15, %s2022_s15  }
   0x3   : > { %s39_s20 = ssub.s32 %s1639_s17, %s1686_s19  ;;  %s42_s21 = sadd.s32 1, %s1635_s16 }
   0x4   : > { %p40_p0 = scmp.eq.s32.totalorder %s39_s20, 0  ;;  %p49_p1 = scmp.ne.s32.totalorder %s1635_s16, %s1631_s15 }
   0x5   : > { %p50_p2 = scmp.eq.s32.totalorder %s1639_s17, 0  ;;  %p131_p3 = scmp.eq.s32.totalorder %s1683_s18, 3 }
   0x6   : > { %s1696_s22 = scalar_select %p40_p0, %s1635_s16, %s42_s21  }
   0x7   : > { %p51_p4 = por %p50_p2, %p49_p1  ;;  %p1698_p5 = por %p131_p3, %p49_p1 }
   0x8   : > { %p1376_p6 = scmp.ge.s32.totalorder %s1639_s17, 4 }
   0xa   : > { %156 = sbr.rel (%p1376_p6) target bundleno = 85 (0x55), region = 20 }
  0x11   : > { %159 = sbr.rel (!%p51_p4) target bundleno = 85 (0x55), region = 24  ;;  %s161_s24 = sand.u32 (%p51_p4), 1, %s1635_s16  }
  0x12   : > { %s1466_s25 = sshll.u32 (%p51_p4), %s1639_s17, 3  ;;  %s1377_s26 = sshll.u32 (%p51_p4), %s161_s24, 9 }
  0x13   : > { %s1708_s29 = scalar_lea.vmem (%p51_p4), %s2017_s1, %s1466_s25  ;;  %s1713_s30 = scalar_lea.vmem (%p51_p4), [#allocation2], %s1377_s26 }
  0x14   : > { %v320_v0 = vld [vmem:[%s1708_s29] sm:$0xff] (%p51_p4) }
  0x15   : > { %v322_v1 = vld [vmem:[%s1708_s29 + $0x20] sm:$0xff] (%p51_p4)  ;;  %321 = vst [vmem:[%s1713_s30] sm:$0xff] (%p51_p4), %v320_v0 }
  0x16   : > { %v324_v2 = vld [vmem:[%s1708_s29 + $0x40] sm:$0xff] (%p51_p4)  ;;  %323 = vst [vmem:[%s1713_s30 + $0x8] sm:$0xff] (%p51_p4), %v322_v1 }
  0x17   : > { %325 = vst [vmem:[%s1713_s30 + $0x10] sm:$0xff] (%p51_p4), %v324_v2  ;;  %v326_v3 = vld [vmem:[%s1708_s29 + $0x60] sm:$0xff] (%p51_p4) }
  0x18   : > { %v328_v4 = vld [vmem:[%s1708_s29 + $0x80] sm:$0xff]  ;;  %327 = vst [vmem:[%s1713_s30 + $0x18] sm:$0xff] %v326_v3 }
  0x19   : > { %v330_v5 = vld [vmem:[%s1708_s29 + $0xa0] sm:$0xff]  ;;  %329 = vst [vmem:[%s1713_s30 + $0x20] sm:$0xff] %v328_v4 }
  0x1a   : > { %331 = vst [vmem:[%s1713_s30 + $0x28] sm:$0xff] %v330_v5  ;;  %v332_v6 = vld [vmem:[%s1708_s29 + $0xc0] sm:$0xff] }
  0x1b   : > { %v334_v7 = vld [vmem:[%s1708_s29 + $0xe0] sm:$0xff]  ;;  %333 = vst [vmem:[%s1713_s30 + $0x30] sm:$0xff] %v332_v6 }
  0x1c   : > { %v336_v8 = vld [vmem:[%s1708_s29 + $0x100] sm:$0xff]  ;;  %335 = vst [vmem:[%s1713_s30 + $0x38] sm:$0xff] %v334_v7 }
  0x1d   : > { %337 = vst [vmem:[%s1713_s30 + $0x40] sm:$0xff] %v336_v8  ;;  %v338_v9 = vld [vmem:[%s1708_s29 + $0x120] sm:$0xff] }
  0x1e   : > { %v340_v10 = vld [vmem:[%s1708_s29 + $0x140] sm:$0xff]  ;;  %339 = vst [vmem:[%s1713_s30 + $0x48] sm:$0xff] %v338_v9 }
  0x1f   : > { %v342_v11 = vld [vmem:[%s1708_s29 + $0x160] sm:$0xff]  ;;  %341 = vst [vmem:[%s1713_s30 + $0x50] sm:$0xff] %v340_v10 }
  0x20   : > { %343 = vst [vmem:[%s1713_s30 + $0x58] sm:$0xff] %v342_v11  ;;  %v344_v12 = vld [vmem:[%s1708_s29 + $0x180] sm:$0xff] }
  0x21   : > { %v346_v13 = vld [vmem:[%s1708_s29 + $0x1a0] sm:$0xff]  ;;  %345 = vst [vmem:[%s1713_s30 + $0x60] sm:$0xff] %v344_v12 }
  0x22   : > { %v348_v14 = vld [vmem:[%s1708_s29 + $0x1c0] sm:$0xff]  ;;  %347 = vst [vmem:[%s1713_s30 + $0x68] sm:$0xff] %v346_v13 }
  0x23   : > { %349 = vst [vmem:[%s1713_s30 + $0x70] sm:$0xff] %v348_v14  ;;  %v350_v15 = vld [vmem:[%s1708_s29 + $0x1e0] sm:$0xff] }
  0x24   : > { %v352_v16 = vld [vmem:[%s1708_s29 + $0x200] sm:$0xff]  ;;  %351 = vst [vmem:[%s1713_s30 + $0x78] sm:$0xff] %v350_v15 }
  0x25   : > { %v354_v17 = vld [vmem:[%s1708_s29 + $0x220] sm:$0xff]  ;;  %353 = vst [vmem:[%s1713_s30 + $0x80] sm:$0xff] %v352_v16 }
  0x26   : > { %355 = vst [vmem:[%s1713_s30 + $0x88] sm:$0xff] %v354_v17  ;;  %v356_v18 = vld [vmem:[%s1708_s29 + $0x240] sm:$0xff] }
  0x27   : > { %v358_v19 = vld [vmem:[%s1708_s29 + $0x260] sm:$0xff]  ;;  %357 = vst [vmem:[%s1713_s30 + $0x90] sm:$0xff] %v356_v18 }
  0x28   : > { %v360_v20 = vld [vmem:[%s1708_s29 + $0x280] sm:$0xff]  ;;  %359 = vst [vmem:[%s1713_s30 + $0x98] sm:$0xff] %v358_v19 }
  0x29   : > { %361 = vst [vmem:[%s1713_s30 + $0xa0] sm:$0xff] %v360_v20  ;;  %v362_v21 = vld [vmem:[%s1708_s29 + $0x2a0] sm:$0xff] }
  0x2a   : > { %v364_v22 = vld [vmem:[%s1708_s29 + $0x2c0] sm:$0xff]  ;;  %363 = vst [vmem:[%s1713_s30 + $0xa8] sm:$0xff] %v362_v21 }
  0x2b   : > { %v366_v23 = vld [vmem:[%s1708_s29 + $0x2e0] sm:$0xff]  ;;  %365 = vst [vmem:[%s1713_s30 + $0xb0] sm:$0xff] %v364_v22 }
  0x2c   : > { %367 = vst [vmem:[%s1713_s30 + $0xb8] sm:$0xff] %v366_v23  ;;  %v368_v24 = vld [vmem:[%s1708_s29 + $0x300] sm:$0xff] }
  0x2d   : > { %v370_v25 = vld [vmem:[%s1708_s29 + $0x320] sm:$0xff]  ;;  %369 = vst [vmem:[%s1713_s30 + $0xc0] sm:$0xff] %v368_v24 }
  0x2e   : > { %v372_v26 = vld [vmem:[%s1708_s29 + $0x340] sm:$0xff]  ;;  %371 = vst [vmem:[%s1713_s30 + $0xc8] sm:$0xff] %v370_v25 }
  0x2f   : > { %373 = vst [vmem:[%s1713_s30 + $0xd0] sm:$0xff] %v372_v26  ;;  %v374_v27 = vld [vmem:[%s1708_s29 + $0x360] sm:$0xff] }
  0x30   : > { %v376_v28 = vld [vmem:[%s1708_s29 + $0x380] sm:$0xff]  ;;  %375 = vst [vmem:[%s1713_s30 + $0xd8] sm:$0xff] %v374_v27 }
  0x31   : > { %v378_v29 = vld [vmem:[%s1708_s29 + $0x3a0] sm:$0xff]  ;;  %377 = vst [vmem:[%s1713_s30 + $0xe0] sm:$0xff] %v376_v28 }
  0x32   : > { %379 = vst [vmem:[%s1713_s30 + $0xe8] sm:$0xff] %v378_v29  ;;  %v380_v30 = vld [vmem:[%s1708_s29 + $0x3c0] sm:$0xff] }
  0x33   : > { %v382_v31 = vld [vmem:[%s1708_s29 + $0x3e0] sm:$0xff]  ;;  %381 = vst [vmem:[%s1713_s30 + $0xf0] sm:$0xff] %v380_v30 }
  0x34   : > { %v384_v32 = vld [vmem:[%s1708_s29 + $0x400] sm:$0xff]  ;;  %383 = vst [vmem:[%s1713_s30 + $0xf8] sm:$0xff] %v382_v31 }
  0x35   : > { %385 = vst [vmem:[%s1713_s30 + $0x100] sm:$0xff] %v384_v32  ;;  %v386_v33 = vld [vmem:[%s1708_s29 + $0x420] sm:$0xff] }
  0x36   : > { %v388_v34 = vld [vmem:[%s1708_s29 + $0x440] sm:$0xff]  ;;  %387 = vst [vmem:[%s1713_s30 + $0x108] sm:$0xff] %v386_v33 }
  0x37   : > { %v390_v35 = vld [vmem:[%s1708_s29 + $0x460] sm:$0xff]  ;;  %389 = vst [vmem:[%s1713_s30 + $0x110] sm:$0xff] %v388_v34 }
  0x38   : > { %391 = vst [vmem:[%s1713_s30 + $0x118] sm:$0xff] %v390_v35  ;;  %v392_v36 = vld [vmem:[%s1708_s29 + $0x480] sm:$0xff] }
  0x39   : > { %v394_v37 = vld [vmem:[%s1708_s29 + $0x4a0] sm:$0xff]  ;;  %393 = vst [vmem:[%s1713_s30 + $0x120] sm:$0xff] %v392_v36 }
  0x3a   : > { %v396_v38 = vld [vmem:[%s1708_s29 + $0x4c0] sm:$0xff]  ;;  %395 = vst [vmem:[%s1713_s30 + $0x128] sm:$0xff] %v394_v37 }
  0x3b   : > { %397 = vst [vmem:[%s1713_s30 + $0x130] sm:$0xff] %v396_v38  ;;  %v398_v39 = vld [vmem:[%s1708_s29 + $0x4e0] sm:$0xff] }
  0x3c   : > { %v400_v40 = vld [vmem:[%s1708_s29 + $0x500] sm:$0xff]  ;;  %399 = vst [vmem:[%s1713_s30 + $0x138] sm:$0xff] %v398_v39 }
  0x3d   : > { %v402_v41 = vld [vmem:[%s1708_s29 + $0x520] sm:$0xff]  ;;  %401 = vst [vmem:[%s1713_s30 + $0x140] sm:$0xff] %v400_v40 }
  0x3e   : > { %403 = vst [vmem:[%s1713_s30 + $0x148] sm:$0xff] %v402_v41  ;;  %v404_v42 = vld [vmem:[%s1708_s29 + $0x540] sm:$0xff] }
  0x3f   : > { %v406_v43 = vld [vmem:[%s1708_s29 + $0x560] sm:$0xff]  ;;  %405 = vst [vmem:[%s1713_s30 + $0x150] sm:$0xff] %v404_v42 }
  0x40   : > { %v408_v44 = vld [vmem:[%s1708_s29 + $0x580] sm:$0xff]  ;;  %407 = vst [vmem:[%s1713_s30 + $0x158] sm:$0xff] %v406_v43 }
  0x41   : > { %409 = vst [vmem:[%s1713_s30 + $0x160] sm:$0xff] %v408_v44  ;;  %v410_v45 = vld [vmem:[%s1708_s29 + $0x5a0] sm:$0xff] }
  0x42   : > { %v412_v46 = vld [vmem:[%s1708_s29 + $0x5c0] sm:$0xff]  ;;  %411 = vst [vmem:[%s1713_s30 + $0x168] sm:$0xff] %v410_v45 }
  0x43   : > { %v414_v47 = vld [vmem:[%s1708_s29 + $0x5e0] sm:$0xff]  ;;  %413 = vst [vmem:[%s1713_s30 + $0x170] sm:$0xff] %v412_v46 }
  0x44   : > { %415 = vst [vmem:[%s1713_s30 + $0x178] sm:$0xff] %v414_v47  ;;  %v416_v48 = vld [vmem:[%s1708_s29 + $0x600] sm:$0xff] }
  0x45   : > { %v418_v49 = vld [vmem:[%s1708_s29 + $0x620] sm:$0xff]  ;;  %417 = vst [vmem:[%s1713_s30 + $0x180] sm:$0xff] %v416_v48 }
  0x46   : > { %v420_v50 = vld [vmem:[%s1708_s29 + $0x640] sm:$0xff]  ;;  %419 = vst [vmem:[%s1713_s30 + $0x188] sm:$0xff] %v418_v49 }
  0x47   : > { %421 = vst [vmem:[%s1713_s30 + $0x190] sm:$0xff] %v420_v50  ;;  %v422_v51 = vld [vmem:[%s1708_s29 + $0x660] sm:$0xff] }
  0x48   : > { %v424_v52 = vld [vmem:[%s1708_s29 + $0x680] sm:$0xff]  ;;  %423 = vst [vmem:[%s1713_s30 + $0x198] sm:$0xff] %v422_v51 }
  0x49   : > { %v426_v53 = vld [vmem:[%s1708_s29 + $0x6a0] sm:$0xff]  ;;  %425 = vst [vmem:[%s1713_s30 + $0x1a0] sm:$0xff] %v424_v52 }
  0x4a   : > { %427 = vst [vmem:[%s1713_s30 + $0x1a8] sm:$0xff] %v426_v53  ;;  %v428_v54 = vld [vmem:[%s1708_s29 + $0x6c0] sm:$0xff] }
  0x4b   : > { %v430_v55 = vld [vmem:[%s1708_s29 + $0x6e0] sm:$0xff]  ;;  %429 = vst [vmem:[%s1713_s30 + $0x1b0] sm:$0xff] %v428_v54 }
  0x4c   : > { %v432_v56 = vld [vmem:[%s1708_s29 + $0x700] sm:$0xff]  ;;  %431 = vst [vmem:[%s1713_s30 + $0x1b8] sm:$0xff] %v430_v55 }
  0x4d   : > { %433 = vst [vmem:[%s1713_s30 + $0x1c0] sm:$0xff] %v432_v56  ;;  %v434_v57 = vld [vmem:[%s1708_s29 + $0x720] sm:$0xff] }
  0x4e   : > { %v436_v58 = vld [vmem:[%s1708_s29 + $0x740] sm:$0xff]  ;;  %435 = vst [vmem:[%s1713_s30 + $0x1c8] sm:$0xff] %v434_v57 }
  0x4f   : > { %v438_v59 = vld [vmem:[%s1708_s29 + $0x760] sm:$0xff]  ;;  %437 = vst [vmem:[%s1713_s30 + $0x1d0] sm:$0xff] %v436_v58 }
  0x50   : > { %439 = vst [vmem:[%s1713_s30 + $0x1d8] sm:$0xff] %v438_v59  ;;  %v440_v60 = vld [vmem:[%s1708_s29 + $0x780] sm:$0xff] }
  0x51   : > { %v442_v61 = vld [vmem:[%s1708_s29 + $0x7a0] sm:$0xff]  ;;  %441 = vst [vmem:[%s1713_s30 + $0x1e0] sm:$0xff] %v440_v60 }
  0x52   : > { %v444_v62 = vld [vmem:[%s1708_s29 + $0x7c0] sm:$0xff]  ;;  %443 = vst [vmem:[%s1713_s30 + $0x1e8] sm:$0xff] %v442_v61 }
  0x53   : > { %445 = vst [vmem:[%s1713_s30 + $0x1f0] sm:$0xff] %v444_v62  ;;  %v446_v63 = vld [vmem:[%s1708_s29 + $0x7e0] sm:$0xff] }
  0x54   : > { %447 = vst [vmem:[%s1713_s30 + $0x1f8] sm:$0xff] %v446_v63 }
  0x55 PF: > { %p1380_p7 = scmp.ge.s32.totalorder %s1639_s17, 1  ;;  %p468_p8 = scmp.lt.s32.totalorder %s1639_s17, 5 }
  0x57   : > { %p469_p9 = pnand %p1380_p7, %p468_p8 }
  0x58   : > { %s475_s5 = sand.u32 (!%p469_p9), 1, %s1631_s15   ;;  %v1603_v0 = vld [vmem:[%s2016_s0 + $0x4] ss:$16 sps:$4 sm:$0xff] (!%p469_p9)   ;;  %v1606_v1 = vld [vmem:[%s2016_s0 + $0xc] ss:$16 sps:$4 sm:$0xff] (!%p469_p9)   ;;  %s1383_s30 = sshll.u32 (!%p469_p9), %s1683_s18, 1 }
  0x59   : > { %472 = sbr.rel (%p469_p9) target bundleno = 457 (0x1c9), region = 70  ;;  %s1381_s6 = sshll.u32 (!%p469_p9), %s475_s5, 9  ;;  %983 = vmatprep.mubr.bf16.mxu1 (!%p469_p9), %v1603_v0  ;;  %1036 = vmatprep.mubr.bf16.mxu0 (!%p469_p9), %v1606_v1 }
  0x5a   : > { %s1851_s11 = scalar_lea.vmem (!%p469_p9), [#allocation2], %s1381_s6  ;;  %p509_p10 = scmp.lt.s32.totalorder (!%p469_p9), %s1383_s30, 7 }
  0x5b   : > { %v1505_v2 = vld [vmem:[%s1851_s11 + $0x4] ss:$8 sps:$4 sm:$0xff] (!%p469_p9)   ;;  %v1509_v4 = vld [vmem:[%s1851_s11] ss:$8 sps:$4 sm:$0xff] (!%p469_p9)   ;;  %v1511_v6 = vld [vmem:[%s1851_s11 + $0x14] ss:$8 sps:$4 sm:$0xff] (!%p469_p9)  }
  0x5c   : > { %v1507_v3 = vld [vmem:[%s1851_s11 + $0x104] ss:$8 sps:$4 sm:$0xff] (!%p469_p9)   ;;  %951 = vmatprep.subr.bf16.mxu1 (!%p469_p9), %v1505_v2  ;;  %v1510_v5 = vld [vmem:[%s1851_s11 + $0x100] ss:$8 sps:$4 sm:$0xff] (!%p469_p9)   ;;  %v1513_v7 = vld [vmem:[%s1851_s11 + $0x114] ss:$8 sps:$4 sm:$0xff] (!%p469_p9)  }
  0x5d   : > { %1004 = vmatprep.subr.bf16.mxu0 (!%p469_p9), %v1507_v3  ;;  %952 = vmatpush1.bf16.msra.mxu1 (!%p469_p9), %v1509_v4  ;;  %v1515_v8 = vld [vmem:[%s1851_s11 + $0x10] ss:$8 sps:$4 sm:$0xff] (!%p469_p9)   ;;  %v1517_v10 = vld [vmem:[%s1851_s11 + $0x24] ss:$8 sps:$4 sm:$0xff] (!%p469_p9)   ;;  %v1521_v12 = vld [vmem:[%s1851_s11 + $0x20] ss:$8 sps:$4 sm:$0xff] (!%p469_p9)  }
  0x5e   : > { %1005 = vmatpush1.bf16.msra.mxu0 (!%p469_p9), %v1510_v5  ;;  %953 = vmatprep.subr.bf16.mxu1 (!%p469_p9), %v1511_v6  ;;  %v1516_v9 = vld [vmem:[%s1851_s11 + $0x110] ss:$8 sps:$4 sm:$0xff] (!%p469_p9)   ;;  %v1519_v11 = vld [vmem:[%s1851_s11 + $0x124] ss:$8 sps:$4 sm:$0xff] (!%p469_p9)   ;;  %v1522_v13 = vld [vmem:[%s1851_s11 + $0x120] ss:$8 sps:$4 sm:$0xff] (!%p469_p9)  }
  0x5f   : > { %1006 = vmatprep.subr.bf16.mxu0 (!%p469_p9), %v1513_v7  ;;  %v1523_v14 = vld [vmem:[%s1851_s11 + $0x34] ss:$8 sps:$4 sm:$0xff] (!%p469_p9)   ;;  %v1527_v16 = vld [vmem:[%s1851_s11 + $0x30] ss:$8 sps:$4 sm:$0xff] (!%p469_p9)   ;;  %v1529_v18 = vld [vmem:[%s1851_s11 + $0x44] ss:$8 sps:$4 sm:$0xff] (!%p469_p9)  }
  0x60   : > { %v1525_v15 = vld [vmem:[%s1851_s11 + $0x134] ss:$8 sps:$4 sm:$0xff]   ;;  %v1528_v17 = vld [vmem:[%s1851_s11 + $0x130] ss:$8 sps:$4 sm:$0xff]   ;;  %v1531_v19 = vld [vmem:[%s1851_s11 + $0x144] ss:$8 sps:$4 sm:$0xff]  }
  0x61   : > { %954 = vmatpush1.bf16.msra.mxu1 %v1515_v8  ;;  %v1533_v20 = vld [vmem:[%s1851_s11 + $0x40] ss:$8 sps:$4 sm:$0xff]   ;;  %v1535_v22 = vld [vmem:[%s1851_s11 + $0x54] ss:$8 sps:$4 sm:$0xff]   ;;  %v1539_v24 = vld [vmem:[%s1851_s11 + $0x50] ss:$8 sps:$4 sm:$0xff]  }
  0x62   : > { %1007 = vmatpush1.bf16.msra.mxu0 %v1516_v9  ;;  %955 = vmatprep.subr.bf16.mxu1 %v1517_v10  ;;  %v1534_v21 = vld [vmem:[%s1851_s11 + $0x140] ss:$8 sps:$4 sm:$0xff]   ;;  %v1537_v23 = vld [vmem:[%s1851_s11 + $0x154] ss:$8 sps:$4 sm:$0xff]   ;;  %v1540_v25 = vld [vmem:[%s1851_s11 + $0x150] ss:$8 sps:$4 sm:$0xff]  }
  0x63   : > { %1008 = vmatprep.subr.bf16.mxu0 %v1519_v11  ;;  %v1541_v26 = vld [vmem:[%s1851_s11 + $0x64] ss:$8 sps:$4 sm:$0xff]   ;;  %v1545_v28 = vld [vmem:[%s1851_s11 + $0x60] ss:$8 sps:$4 sm:$0xff]   ;;  %v1547_v30 = vld [vmem:[%s1851_s11 + $0x74] ss:$8 sps:$4 sm:$0xff]  }
  0x64   : > { %v1543_v27 = vld [vmem:[%s1851_s11 + $0x164] ss:$8 sps:$4 sm:$0xff]   ;;  %v1546_v29 = vld [vmem:[%s1851_s11 + $0x160] ss:$8 sps:$4 sm:$0xff]   ;;  %v1549_v31 = vld [vmem:[%s1851_s11 + $0x174] ss:$8 sps:$4 sm:$0xff]  }
  0x65   : > { %956 = vmatpush1.bf16.msra.mxu1 %v1521_v12  ;;  %v1551_v32 = vld [vmem:[%s1851_s11 + $0x70] ss:$8 sps:$4 sm:$0xff]   ;;  %v1553_v34 = vld [vmem:[%s1851_s11 + $0x84] ss:$8 sps:$4 sm:$0xff]   ;;  %v1557_v36 = vld [vmem:[%s1851_s11 + $0x80] ss:$8 sps:$4 sm:$0xff]  }
  0x66   : > { %1009 = vmatpush1.bf16.msra.mxu0 %v1522_v13  ;;  %957 = vmatprep.subr.bf16.mxu1 %v1523_v14  ;;  %v1552_v33 = vld [vmem:[%s1851_s11 + $0x170] ss:$8 sps:$4 sm:$0xff]   ;;  %v1555_v35 = vld [vmem:[%s1851_s11 + $0x184] ss:$8 sps:$4 sm:$0xff]   ;;  %v1558_v37 = vld [vmem:[%s1851_s11 + $0x180] ss:$8 sps:$4 sm:$0xff]  }
  0x67   : > { %1010 = vmatprep.subr.bf16.mxu0 %v1525_v15  ;;  %v1559_v38 = vld [vmem:[%s1851_s11 + $0x94] ss:$8 sps:$4 sm:$0xff]   ;;  %v1563_v40 = vld [vmem:[%s1851_s11 + $0x90] ss:$8 sps:$4 sm:$0xff]   ;;  %v1565_v42 = vld [vmem:[%s1851_s11 + $0xa4] ss:$8 sps:$4 sm:$0xff]  }
  0x68   : > { %v1561_v39 = vld [vmem:[%s1851_s11 + $0x194] ss:$8 sps:$4 sm:$0xff]   ;;  %v1564_v41 = vld [vmem:[%s1851_s11 + $0x190] ss:$8 sps:$4 sm:$0xff]   ;;  %v1567_v43 = vld [vmem:[%s1851_s11 + $0x1a4] ss:$8 sps:$4 sm:$0xff]  }
  0x69   : > { %958 = vmatpush1.bf16.msra.mxu1 %v1527_v16  ;;  %v1569_v44 = vld [vmem:[%s1851_s11 + $0xa0] ss:$8 sps:$4 sm:$0xff]   ;;  %v1571_v46 = vld [vmem:[%s1851_s11 + $0xb4] ss:$8 sps:$4 sm:$0xff]   ;;  %v1575_v48 = vld [vmem:[%s1851_s11 + $0xb0] ss:$8 sps:$4 sm:$0xff]  }
  0x6a   : > { %1011 = vmatpush1.bf16.msra.mxu0 %v1528_v17  ;;  %959 = vmatprep.subr.bf16.mxu1 %v1529_v18  ;;  %v1570_v45 = vld [vmem:[%s1851_s11 + $0x1a0] ss:$8 sps:$4 sm:$0xff]   ;;  %v1573_v47 = vld [vmem:[%s1851_s11 + $0x1b4] ss:$8 sps:$4 sm:$0xff]   ;;  %v1576_v49 = vld [vmem:[%s1851_s11 + $0x1b0] ss:$8 sps:$4 sm:$0xff]  }
  0x6b   : > { %1012 = vmatprep.subr.bf16.mxu0 %v1531_v19  ;;  %v1577_v50 = vld [vmem:[%s1851_s11 + $0xc4] ss:$8 sps:$4 sm:$0xff]   ;;  %v1581_v52 = vld [vmem:[%s1851_s11 + $0xc0] ss:$8 sps:$4 sm:$0xff]   ;;  %v1583_v54 = vld [vmem:[%s1851_s11 + $0xd4] ss:$8 sps:$4 sm:$0xff]  }
  0x6c   : > { %v1579_v51 = vld [vmem:[%s1851_s11 + $0x1c4] ss:$8 sps:$4 sm:$0xff]   ;;  %v1582_v53 = vld [vmem:[%s1851_s11 + $0x1c0] ss:$8 sps:$4 sm:$0xff]   ;;  %v1585_v55 = vld [vmem:[%s1851_s11 + $0x1d4] ss:$8 sps:$4 sm:$0xff]  }
  0x6d   : > { %960 = vmatpush1.bf16.msra.mxu1 %v1533_v20  ;;  %v1587_v56 = vld [vmem:[%s1851_s11 + $0xd0] ss:$8 sps:$4 sm:$0xff]   ;;  %v1589_v58 = vld [vmem:[%s1851_s11 + $0xe4] ss:$8 sps:$4 sm:$0xff]   ;;  %v1593_v60 = vld [vmem:[%s1851_s11 + $0xe0] ss:$8 sps:$4 sm:$0xff]  }
  0x6e   : > { %1013 = vmatpush1.bf16.msra.mxu0 %v1534_v21  ;;  %961 = vmatprep.subr.bf16.mxu1 %v1535_v22  ;;  %v1588_v57 = vld [vmem:[%s1851_s11 + $0x1d0] ss:$8 sps:$4 sm:$0xff]   ;;  %v1591_v59 = vld [vmem:[%s1851_s11 + $0x1e4] ss:$8 sps:$4 sm:$0xff]   ;;  %v1594_v61 = vld [vmem:[%s1851_s11 + $0x1e0] ss:$8 sps:$4 sm:$0xff]  }
  0x6f   : > { %1014 = vmatprep.subr.bf16.mxu0 %v1537_v23  ;;  %v1595_v62 = vld [vmem:[%s1851_s11 + $0xf4] ss:$8 sps:$4 sm:$0xff]   ;;  %v1599_v0 = vld [vmem:[%s1851_s11 + $0xf0] ss:$8 sps:$4 sm:$0xff]   ;;  %s2026_s30 = smov (!%p509_p10, %s1383_s30), 7  ;;  %s1382_s12 = sshll.u32 %s475_s5, 5 }
  0x70   : > { %v1597_v63 = vld [vmem:[%s1851_s11 + $0x1f4] ss:$8 sps:$4 sm:$0xff]   ;;  %v1600_v1 = vld [vmem:[%s1851_s11 + $0x1f0] ss:$8 sps:$4 sm:$0xff]   ;;  %s511_s8 = scalar_lea.vmem %s2018_s2, %s2026_s30  ;;  %s516_s11 = scalar_lea.vmem %s2019_s3, %s2026_s30 }
  0x71   : > { %962 = vmatpush1.bf16.msra.mxu1 %v1539_v24  ;;  %v1601_v2 = vld [vmem:[%s2016_s0] ss:$16 sps:$4 sm:$0xff]   ;;  %v1604_v3 = vld [vmem:[%s2016_s0 + $0x8] ss:$16 sps:$4 sm:$0xff]   ;;  %v1607_v4 = vld [vmem:[%s2016_s0 + $0x24] ss:$16 sps:$4 sm:$0xff]  }
  0x72   : > { %1015 = vmatpush1.bf16.msra.mxu0 %v1540_v25  ;;  %963 = vmatprep.subr.bf16.mxu1 %v1541_v26  ;;  %v1609_v5 = vld [vmem:[%s2016_s0 + $0x2c] ss:$16 sps:$4 sm:$0xff]   ;;  %v1611_v6 = vld [vmem:[%s2016_s0 + $0x20] ss:$16 sps:$4 sm:$0xff]   ;;  %v1612_v7 = vld [vmem:[%s2016_s0 + $0x28] ss:$16 sps:$4 sm:$0xff]  }
  0x73   : > { %1016 = vmatprep.subr.bf16.mxu0 %v1543_v27  ;;  %s506_s15 = scalar_lea.vmem [#allocation3], %s1382_s12  ;;  %s1471_s5 = sshll.u32 (%p1698_p5), %s1683_s18, 3 }
  0x74   : > { %s1254_s17 = scalar_lea.vmem (%p1698_p5), %s2020_s4, %s1471_s5 }
  0x75   : > { %964 = vmatpush1.bf16.msra.mxu1 %v1545_v28 }
  0x76   : > { %1017 = vmatpush1.bf16.msra.mxu0 %v1546_v29  ;;  %965 = vmatprep.subr.bf16.mxu1 %v1547_v30 }
  0x77   : > { %1018 = vmatprep.subr.bf16.mxu0 %v1549_v31 }
  0x79   : > { %966 = vmatpush1.bf16.msra.mxu1 %v1551_v32 }
  0x7a   : > { %1019 = vmatpush1.bf16.msra.mxu0 %v1552_v33  ;;  %967 = vmatprep.subr.bf16.mxu1 %v1553_v34 }
  0x7b   : > { %1020 = vmatprep.subr.bf16.mxu0 %v1555_v35 }
  0x7d   : > { %968 = vmatpush1.bf16.msra.mxu1 %v1557_v36 }
  0x7e   : > { %1021 = vmatpush1.bf16.msra.mxu0 %v1558_v37  ;;  %969 = vmatprep.subr.bf16.mxu1 %v1559_v38 }
  0x7f   : > { %1022 = vmatprep.subr.bf16.mxu0 %v1561_v39 }
  0x81   : > { %970 = vmatpush1.bf16.msra.mxu1 %v1563_v40 }
  0x82   : > { %1023 = vmatpush1.bf16.msra.mxu0 %v1564_v41  ;;  %971 = vmatprep.subr.bf16.mxu1 %v1565_v42 }
  0x83   : > { %1024 = vmatprep.subr.bf16.mxu0 %v1567_v43 }
  0x85   : > { %972 = vmatpush1.bf16.msra.mxu1 %v1569_v44 }
  0x86   : > { %1025 = vmatpush1.bf16.msra.mxu0 %v1570_v45  ;;  %973 = vmatprep.subr.bf16.mxu1 %v1571_v46 }
  0x87   : > { %1026 = vmatprep.subr.bf16.mxu0 %v1573_v47 }
  0x89   : > { %974 = vmatpush1.bf16.msra.mxu1 %v1575_v48 }
  0x8a   : > { %1027 = vmatpush1.bf16.msra.mxu0 %v1576_v49  ;;  %975 = vmatprep.subr.bf16.mxu1 %v1577_v50 }
  0x8b   : > { %1028 = vmatprep.subr.bf16.mxu0 %v1579_v51 }
  0x8d   : > { %976 = vmatpush1.bf16.msra.mxu1 %v1581_v52 }
  0x8e   : > { %1029 = vmatpush1.bf16.msra.mxu0 %v1582_v53  ;;  %977 = vmatprep.subr.bf16.mxu1 %v1583_v54 }
  0x8f   : > { %1030 = vmatprep.subr.bf16.mxu0 %v1585_v55 }
  0x91   : > { %978 = vmatpush1.bf16.msra.mxu1 %v1587_v56 }
  0x92   : > { %1031 = vmatpush1.bf16.msra.mxu0 %v1588_v57  ;;  %979 = vmatprep.subr.bf16.mxu1 %v1589_v58 }
  0x93   : > { %1032 = vmatprep.subr.bf16.mxu0 %v1591_v59 }
  0x95   : > { %980 = vmatpush1.bf16.msra.mxu1 %v1593_v60 }
  0x96   : > { %1033 = vmatpush1.bf16.msra.mxu0 %v1594_v61  ;;  %981 = vmatprep.subr.bf16.mxu1 %v1595_v62 }
  0x97   : > { %1034 = vmatprep.subr.bf16.mxu0 %v1597_v63 }
  0x99   : > { %982 = vmatpush1.bf16.msra.mxu1 %v1599_v0 }
  0x9a   : > { %1035 = vmatpush1.bf16.msra.mxu0 %v1600_v1 }
  0x9c   : > { %984 = vmatmul.mubr.bf16.vlgmr.msra.gmra.mrb[0].mxu1 %v1601_v2 }
  0x9d   : > { %1037 = vmatmul.mubr.bf16.vlgmr.msra.gmra.mrb[0].mxu0 %v1604_v3  ;;  %993 = vmatprep.mubr.bf16.mxu1 %v1607_v4 }
  0x9e   : > { %1046 = vmatprep.mubr.bf16.mxu0 %v1609_v5 }
  0xa4   : > { %994 = vmatmul.mubr.bf16.gmra.mrb[4].mxu1 %v1611_v6 }
  0xa5   : > { %1047 = vmatmul.mubr.bf16.gmra.mrb[4].mxu0 %v1612_v7 }
 0x16f   : > { %v985_v8 = vpop.f32.mrb[0].mxu1 }
 0x170   : > { %v1038_v9 = vpop.f32.mrb[0].mxu0  ;;  %v987_v11 = vpop.f32.mrb[1].mxu1 }
 0x171   : > { %v1935_v10 = vadd.f32 %v1038_v9, %v985_v8  ;;  %v1040_v12 = vpop.f32.mrb[1].mxu0  ;;  %v989_v14 = vpop.f32.mrb[2].mxu1 }
 0x172   : > { %v1937_v13 = vadd.f32 %v1040_v12, %v987_v11  ;;  %v1042_v15 = vpop.f32.mrb[2].mxu0  ;;  %v991_v17 = vpop.f32.mrb[3].mxu1 }
 0x173   : > { %v1939_v16 = vadd.f32 %v1042_v15, %v989_v14  ;;  %v1044_v18 = vpop.f32.mrb[3].mxu0  ;;  %v1077_v20 = vmul.f32 %v1935_v10, %v1935_v10 }
 0x174   : > { %v1941_v19 = vadd.f32 %v1044_v18, %v991_v17  ;;  %v1078_v23 = vmul.f32 %v1937_v13, %v1937_v13 }
 0x175   : > { %v1057_v21 = vadd.f32 %v1939_v16, %v1935_v10  ;;  %v1079_v22 = vmul.f32 %v1939_v16, %v1939_v16 }
 0x176   : > { %v1066_v24 = vadd.f32 %v1941_v19, %v1937_v13  ;;  %v1080_v25 = vmul.f32 %v1941_v19, %v1941_v19 }
 0x177   : > { %v1085_v26 = vadd.f32 %v1079_v22, %v1077_v20  ;;  %v995_v28 = vpop.f32.mrb[4].mxu1 }
 0x178   : > { %v1094_v27 = vadd.f32 %v1080_v25, %v1078_v23  ;;  %v1048_v29 = vpop.f32.mrb[4].mxu0  ;;  %v997_v31 = vpop.f32.mrb[5].mxu1 }
 0x179   : > { %v1955_v30 = vadd.f32 %v1048_v29, %v995_v28  ;;  %v1050_v32 = vpop.f32.mrb[5].mxu0  ;;  %v999_v34 = vpop.f32.mrb[6].mxu1  ;;  %v1120_v28 = vlaneseq }
 0x17a   : > { %v1957_v33 = vadd.f32 %v1050_v32, %v997_v31  ;;  %v1052_v35 = vpop.f32.mrb[6].mxu0  ;;  %v1001_v39 = vpop.f32.mrb[7].mxu1 }
 0x17b   : > { %v1058_v36 = vadd.f32 %v1057_v21, %v1955_v30  ;;  %v1081_v37 = vmul.f32 %v1955_v30, %v1955_v30  ;;  %v1962_v38 = vadd.f32 %v1052_v35, %v999_v34  ;;  %v1054_v40 = vpop.f32.mrb[7].mxu0  ;;  %v1121_v31 = vshrl.u32 %v1120_v28, 7 }
 0x17c   : > { %v1067_v41 = vadd.f32 %v1066_v24, %v1957_v33  ;;  %v1082_v42 = vmul.f32 %v1957_v33, %v1957_v33  ;;  %v1967_v43 = vadd.f32 %v1054_v40, %v1001_v39  ;;  %v1109_v39 = vld [vmem:[%s511_s8] sm:$0x3] }
 0x17d   : > { %v1086_v44 = vadd.f32 %v1085_v26, %v1081_v37  ;;  %v1059_v45 = vadd.f32 %v1058_v36, %v1962_v38  ;;  %v1083_v46 = vmul.f32 %v1962_v38, %v1962_v38  ;;  %v1641_v26 = vmov 1966171168  }
 0x17e   : > { %v1095_v47 = vadd.f32 %v1094_v27, %v1082_v42  ;;  %v1068_v48 = vadd.f32 %v1067_v41, %v1967_v43  ;;  %v1084_v49 = vmul.f32 %v1967_v43, %v1967_v43  ;;  %v1118_v27 = vunpack.c.l.s4 %v1641_v26 }
 0x17f   : > { %v1060_v50 = vrot.slane %v1059_v45, 4  ;;  %v1087_v51 = vadd.f32 %v1086_v44, %v1083_v46  ;;  %v1137_v41 = vsub.s32 0, %v1121_v31  ;;  %v1141_v42 = vsub.s32 1, %v1121_v31 }
 0x180   : > { %v1069_v52 = vrot.slane %v1068_v48, 4  ;;  %v1096_v53 = vadd.f32 %v1095_v47, %v1084_v49  ;;  %v1119_v29 = vunpack.c.0.s8 %v1118_v27 }
 0x181   : > { %v1061_v54 = vadd.f32 %v1060_v50, %v1059_v45  ;;  %v1088_v55 = vrot.slane %v1087_v51, 4 }
 0x182   : > { %v1070_v56 = vadd.f32 %v1069_v52, %v1068_v48  ;;  %v1097_v57 = vrot.slane %v1096_v53, 4  ;;  %v1122_v34 = vsub.s32 %v1119_v29, %v1121_v31 }
 0x183   : > { %v1062_v58 = vrot.slane %v1061_v54, 2  ;;  %v1089_v59 = vadd.f32 %v1088_v55, %v1087_v51 }
 0x184   : > { %v1071_v60 = vrot.slane %v1070_v56, 2  ;;  %v1098_v61 = vadd.f32 %v1097_v57, %v1096_v53 }
 0x185   : > { %v1063_v62 = vadd.f32 %v1062_v58, %v1061_v54  ;;  %v1090_v63 = vrot.slane %v1089_v59, 2  ;;  %v1133_v58 = vld [vmem:[%s516_s11] sm:$0x3] }
 0x186   : > { %v1072_v0 = vadd.f32 %v1071_v60, %v1070_v56  ;;  %v1099_v1 = vrot.slane %v1098_v61, 2 }
 0x187   : > { %v1064_v2 = vrot.slane %v1063_v62, 1  ;;  %v1091_v3 = vadd.f32 %v1090_v63, %v1089_v59 }
 0x188   : > { %v1073_v4 = vrot.slane %v1072_v0, 1  ;;  %v1100_v5 = vadd.f32 %v1099_v1, %v1098_v61 }
 0x189   : > { %v1065_v6 = vadd.f32 %v1064_v2, %v1063_v62  ;;  %v1092_v7 = vrot.slane %v1091_v3, 1 }
 0x18a   : > { %v1074_v8 = vadd.f32 %v1073_v4, %v1072_v0  ;;  %v1101_v9 = vrot.slane %v1100_v5, 1 }
 0x18b   : > { %v1075_v11 = vmul.f32 0.03125, %v1065_v6  ;;  %v1093_v12 = vadd.f32 %v1092_v7, %v1091_v3 }
 0x18c   : > { %v1076_v14 = vmul.f32 0.03125, %v1074_v8  ;;  %v1102_v15 = vadd.f32 %v1101_v9, %v1100_v5 }
 0x18d   : > { %v1103_v17 = vmul.f32 0.03125, %v1093_v12  ;;  %v1105_v18 = vmul.f32 %v1075_v11, %v1075_v11 }
 0x18e   : > { %v1104_v20 = vmul.f32 0.03125, %v1102_v15  ;;  %v1106_v21 = vmul.f32 %v1076_v14, %v1076_v14 }
 0x18f   : > { %v1107_v22 = vsub.f32 %v1103_v17, %v1105_v18 }
 0x190   : > { %v1108_v23 = vsub.f32 %v1104_v20, %v1106_v21 }
 0x191   : > { %v1110_v24 = vadd.f32 1e-05, %v1107_v22 }
 0x192   : > { %v1111_v25 = vadd.f32 1e-05, %v1108_v23 }
 0x193   : > { %1613 = vrsqrt.f32 %v1110_v24 }
 0x194   : > { %1615 = vrsqrt.f32 %v1111_v25 }
 0x19d   : > { %v1614_v32 = vpop.eup %1613 }
 0x19e   : > { %v1616_v35 = vpop.eup %1615 }
 0x19f   : > { %v1116_v36 = vcombine.low %v1614_v32, %v1616_v35 }
 0x1a1   : > { %v1123_v37 = vrot.slane %v1116_v36, %v1122_v34 }
 0x1a3   : > { %v1130_v40 = vrot.slane %v1123_v37, %v1122_v34 }
 0x1a5   : > { %v1132_v44 = vmul.f32 %v1130_v40, %v1109_v39 }
 0x1a7   : > { %v1138_v45 = vrot.slane %v1132_v44, %v1137_v41  ;;  %v1142_v46 = vrot.slane %v1132_v44, %v1141_v42 }
 0x1a9   : > { %v1145_v47 = vmul.f32 %v1138_v45, %v1075_v11  ;;  %v1146_v48 = vmul.f32 %v1142_v46, %v1076_v14  ;;  %v1166_v49 = vmul.f32 %v1138_v45, %v1935_v10  ;;  %v1167_v50 = vmul.f32 %v1142_v46, %v1937_v13 }
 0x1aa   : > { %v1168_v51 = vmul.f32 %v1138_v45, %v1939_v16  ;;  %v1169_v52 = vmul.f32 %v1142_v46, %v1941_v19  ;;  %v1170_v53 = vmul.f32 %v1138_v45, %v1955_v30  ;;  %v1171_v54 = vmul.f32 %v1142_v46, %v1957_v33 }
 0x1ab   : > { %v1149_v55 = vcombine.low %v1145_v47, %v1146_v48  ;;  %v1172_v56 = vmul.f32 %v1138_v45, %v1962_v38  ;;  %v1173_v57 = vmul.f32 %v1142_v46, %v1967_v43 }
 0x1ad   : > { %v1156_v10 = vrot.slane %v1149_v55, %v1122_v34 }
 0x1af   : > { %v1163_v13 = vrot.slane %v1156_v10, %v1122_v34 }
 0x1b1   : > { %v1165_v16 = vsub.f32 %v1133_v58, %v1163_v13 }
 0x1b3   : > { %v1178_v59 = vrot.slane %v1165_v16, %v1137_v41  ;;  %v1182_v19 = vrot.slane %v1165_v16, %v1141_v42 }
 0x1b5   : > { %v1185_v60 = vadd.f32 %v1178_v59, %v1166_v49  ;;  %v1186_v30 = vadd.f32 %v1182_v19, %v1167_v50  ;;  %v1187_v61 = vadd.f32 %v1178_v59, %v1168_v51  ;;  %v1188_v33 = vadd.f32 %v1182_v19, %v1169_v52 }
 0x1b6   : > { %v1189_v62 = vadd.f32 %v1178_v59, %v1170_v53  ;;  %v1190_v63 = vadd.f32 %v1182_v19, %v1171_v54  ;;  %v1191_v0 = vadd.f32 %v1178_v59, %v1172_v56  ;;  %v1192_v1 = vadd.f32 %v1182_v19, %v1173_v57 }
 0x1b7   : > { %vm1193_vm0 = vcmp.gt.f32.partialorder %v1185_v60, 0.0  ;;  %vm1194_vm1 = vcmp.gt.f32.partialorder %v1186_v30, 0.0  ;;  %vm1195_vm2 = vcmp.gt.f32.partialorder %v1187_v61, 0.0  ;;  %vm1196_vm3 = vcmp.gt.f32.partialorder %v1188_v33, 0.0 }
 0x1b8   : > { %vm1197_vm4 = vcmp.gt.f32.partialorder %v1189_v62, 0.0  ;;  %vm1198_vm5 = vcmp.gt.f32.partialorder %v1190_v63, 0.0  ;;  %vm1199_vm6 = vcmp.gt.f32.partialorder %v1191_v0, 0.0  ;;  %vm1200_vm7 = vcmp.gt.f32.partialorder %v1192_v1, 0.0 }
 0x1b9   : > { %v1201_v38 = vmul.f32 0.2, %v1185_v60  ;;  %v1202_v43 = vmul.f32 0.2, %v1186_v30  ;;  %v1203_v2 = vmul.f32 0.2, %v1187_v61 }
 0x1ba   : > { %v1204_v3 = vmul.f32 0.2, %v1188_v33  ;;  %v1205_v4 = vmul.f32 0.2, %v1189_v62  ;;  %v1206_v5 = vmul.f32 0.2, %v1190_v63 }
 0x1bb   : > { %v1207_v6 = vmul.f32 0.2, %v1191_v0  ;;  %v1208_v7 = vmul.f32 0.2, %v1192_v1  ;;  %v1209_v8 = vsel %vm1193_vm0, %v1185_v60, %v1201_v38  ;;  %v1210_v9 = vsel %vm1194_vm1, %v1186_v30, %v1202_v43  ;;  %1251 = sbr.rel (!%p1698_p5) target bundleno = 457 (0x1c9), region = 78 }
 0x1bc   : > { %v1211_v11 = vsel %vm1195_vm2, %v1187_v61, %v1203_v2  ;;  %v1212_v12 = vsel %vm1196_vm3, %v1188_v33, %v1204_v3  ;;  %v1213_v14 = vsel %vm1197_vm4, %v1189_v62, %v1205_v4  ;;  %v1214_v15 = vsel %vm1198_vm5, %v1190_v63, %v1206_v5 }
 0x1bd   : > { %v1215_v17 = vsel %vm1199_vm6, %v1191_v0, %v1207_v6  ;;  %v1216_v18 = vsel %vm1200_vm7, %v1192_v1, %v1208_v7  ;;  %v1467_v20 = vpack.c.bf16 %v1210_v9, %v1209_v8  ;;  %v1468_v21 = vpack.c.bf16 %v1212_v12, %v1211_v11 }
 0x1be   : > { %v1469_v22 = vpack.c.bf16 %v1214_v15, %v1213_v14  ;;  %v1470_v23 = vpack.c.bf16 %v1216_v18, %v1215_v17 }
 0x1bf   : > { %1241 = vst [vmem:[%s506_s15] sm:$0xff] %v1467_v20  ;;  %1242 = vst [vmem:[%s506_s15 + $0x8] sm:$0xff] %v1468_v21 }
 0x1c0   : > { %1243 = vst [vmem:[%s506_s15 + $0x10] sm:$0xff] %v1469_v22  ;;  %1244 = vst [vmem:[%s506_s15 + $0x18] sm:$0xff] %v1470_v23 }
 0x1c6   : > { %v1288_v24 = vld [vmem:[%s506_s15] sm:$0xff]  ;;  %v1290_v25 = vld [vmem:[%s506_s15 + $0x8] sm:$0xff] }
 0x1c7   : > { %v1292_v26 = vld [vmem:[%s506_s15 + $0x10] sm:$0xff]  ;;  %v1294_v27 = vld [vmem:[%s506_s15 + $0x18] sm:$0xff]  ;;  %1289 = vst [vmem:[%s1254_s17] sm:$0xff] %v1288_v24  ;;  %1291 = vst [vmem:[%s1254_s17 + $0x20] sm:$0xff] %v1290_v25 }
 0x1c8   : > { %1293 = vst [vmem:[%s1254_s17 + $0x40] sm:$0xff] %v1292_v26  ;;  %1295 = vst [vmem:[%s1254_s17 + $0x60] sm:$0xff] %v1294_v27 }
 0x1c9 PF: > { %p11_p11 = scmp.ge.s32.totalorder %s1686_s19, 6   ;;  %s2022_s15 = smov %s1635_s16 }
 0x1ca   : > { %s2023_s16 = smov %s1696_s22  ;;  %s2024_s17 = smov %s1686_s19 }
 0x1cb   :  { %13 = sbr.rel (!%p11_p11) target bundleno = 2 (0x2), region = 153 }

// kernel: discriminator_forward.11
= control target key start
LH: loop header
LB: loop body
LE: loop exit
PB: predicated region body
PF: predicated region fallthrough
CT: control target
= control target key end

     0   :  { %v475_v2 = vlaneseq  ;;  %vm2153_vm0 = vcmask 7168   ;;  %s3813_s1 = inlined_call_operand.vmem [shape: bf16[1,16384], index: 1, kind: input, shape index: {}]   ;;  %s3814_s0 = inlined_call_operand.vmem [shape: bf16[16,16384], index: 0, kind: input, shape index: {}]   ;;  %s3815_s2 = inlined_call_operand.vmem [shape: f32[16,1], index: 2, kind: output, shape index: {}]  }
   0x1   :  { %v400_v0 = vld [vmem:[%s3813_s1 + $0x28] sm:$0xff]  ;;  %v401_v1 = vld [vmem:[%s3813_s1 + $0x30] sm:$0xff]  ;;  %v402_v3 = vld [vmem:[%s3813_s1 + $0x38] sm:$0xff] }
   0x2   :  { %v403_v4 = vld [vmem:[%s3813_s1 + $0x40] sm:$0xff]  ;;  %v404_v5 = vld [vmem:[%s3813_s1 + $0x48] sm:$0xff]  ;;  %v405_v6 = vld [vmem:[%s3813_s1 + $0x50] sm:$0xff]  ;;  %v2206_v8 = vunpack.c.l.bf16 %v400_v0  ;;  %v2208_v9 = vunpack.c.h.bf16 %v400_v0  ;;  %v2210_v10 = vunpack.c.l.bf16 %v401_v1  ;;  %v2218_v13 = vunpack.c.h.bf16 %v401_v1 }
   0x3   :  { %v406_v7 = vld [vmem:[%s3813_s1 + $0x58] sm:$0xff]  ;;  %v407_v11 = vld [vmem:[%s3813_s1 + $0x60] sm:$0xff]  ;;  %v408_v12 = vld [vmem:[%s3813_s1 + $0x68] sm:$0xff]  ;;  %v2220_v14 = vunpack.c.l.bf16 %v402_v3  ;;  %v2222_v15 = vunpack.c.h.bf16 %v402_v3  ;;  %v476_v16 = vshrl.u32 %v475_v2, 7  ;;  %v2224_v17 = vunpack.c.l.bf16 %v403_v4 }
   0x4   :  { %v2226_v18 = vunpack.c.h.bf16 %v403_v4  ;;  %v2228_v19 = vunpack.c.l.bf16 %v404_v5  ;;  %v2230_v20 = vunpack.c.h.bf16 %v404_v5  ;;  %v409_v21 = vld [vmem:[%s3813_s1 + $0x70] sm:$0xff]  ;;  %v410_v22 = vld [vmem:[%s3813_s1 + $0x78] sm:$0xff]  ;;  %v2238_v23 = vunpack.c.l.bf16 %v405_v6 }
   0x5   :  { %v2240_v24 = vunpack.c.h.bf16 %v405_v6  ;;  %v2242_v25 = vunpack.c.l.bf16 %v406_v7  ;;  %v2244_v26 = vunpack.c.h.bf16 %v406_v7  ;;  %v2246_v27 = vunpack.c.l.bf16 %v407_v11 }
   0x6   :  { %v2248_v28 = vunpack.c.h.bf16 %v407_v11  ;;  %v2250_v29 = vunpack.c.l.bf16 %v408_v12  ;;  %v2252_v30 = vunpack.c.h.bf16 %v408_v12  ;;  %v2254_v31 = vsub.s32 0, %v476_v16 }
   0x7   :  { %v2256_v32 = vsub.s32 2, %v476_v16  ;;  %v2258_v33 = vsub.s32 4, %v476_v16  ;;  %v2260_v34 = vsub.s32 6, %v476_v16  ;;  %v2262_v35 = vunpack.c.l.bf16 %v409_v21  ;;  %v399_v16 = vld [vmem:[%s3813_s1 + $0x20] sm:$0xff] }
   0x8   :  { %v2264_v36 = vunpack.c.h.bf16 %v409_v21  ;;  %v2266_v37 = vunpack.c.l.bf16 %v410_v22  ;;  %v2268_v38 = vunpack.c.h.bf16 %v410_v22  ;;  %v638_v39 = vrot.slane %v2206_v8, %v2254_v31 }
   0x9   :  { %v642_v40 = vrot.slane %v2206_v8, %v2256_v32  ;;  %v646_v41 = vrot.slane %v2206_v8, %v2258_v33  ;;  %v650_v42 = vrot.slane %v2206_v8, %v2260_v34  ;;  %v654_v43 = vrot.slane %v2208_v9, %v2254_v31 }
   0xa   :  { %v658_v44 = vrot.slane %v2208_v9, %v2256_v32  ;;  %v662_v45 = vrot.slane %v2208_v9, %v2258_v33  ;;  %v666_v46 = vrot.slane %v2208_v9, %v2260_v34  ;;  %v670_v47 = vrot.slane %v2210_v10, %v2254_v31 }
   0xb   :  { %v674_v48 = vrot.slane %v2210_v10, %v2256_v32  ;;  %v678_v49 = vrot.slane %v2210_v10, %v2258_v33  ;;  %v682_v50 = vrot.slane %v2210_v10, %v2260_v34  ;;  %v686_v51 = vrot.slane %v2218_v13, %v2254_v31 }
   0xc   :  { %v690_v52 = vrot.slane %v2218_v13, %v2256_v32  ;;  %v694_v53 = vrot.slane %v2218_v13, %v2258_v33  ;;  %v698_v54 = vrot.slane %v2218_v13, %v2260_v34  ;;  %v702_v55 = vrot.slane %v2220_v14, %v2254_v31 }
   0xd   :  { %v706_v56 = vrot.slane %v2220_v14, %v2256_v32  ;;  %v710_v57 = vrot.slane %v2220_v14, %v2258_v33  ;;  %v714_v58 = vrot.slane %v2220_v14, %v2260_v34  ;;  %v718_v59 = vrot.slane %v2222_v15, %v2254_v31 }
   0xe   :  { %v722_v60 = vrot.slane %v2222_v15, %v2256_v32  ;;  %v726_v61 = vrot.slane %v2222_v15, %v2258_v33  ;;  %v730_v62 = vrot.slane %v2222_v15, %v2260_v34  ;;  %v2449_v11 = vunpack.c.l.bf16 %v399_v16 }
   0xf   :  { %v2451_v5 = vunpack.c.h.bf16 %v399_v16  ;;  %v2529_v8 = vrot.slane %v666_v46, %v2254_v31  ;;  %v2553_v9 = vrot.slane %v682_v50, %v2254_v31  ;;  %v2565_v46 = vrot.slane %v690_v52, %v2254_v31 }
  0x10   :  { %v610_v12 = vrot.slane %v2449_v11, %v2256_v32  ;;  %v614_v4 = vrot.slane %v2449_v11, %v2258_v33  ;;  %v618_v21 = vrot.slane %v2449_v11, %v2260_v34  ;;  %v2577_v10 = vrot.slane %v698_v54, %v2254_v31 }
  0x11   :  { %v626_v22 = vrot.slane %v2451_v5, %v2256_v32  ;;  %v630_v6 = vrot.slane %v2451_v5, %v2258_v33  ;;  %v634_v7 = vrot.slane %v2451_v5, %v2260_v34  ;;  %3910 = vst [vmem:[#allocation7_spill] sm:$0xff] %v2529_v8  ;;  %3914 = vst [vmem:[#allocation11_spill] sm:$0xff] %v2553_v9 }
  0x12   :  { %v2466_v16 = vrot.slane %v610_v12, %v2254_v31  ;;  %v2469_v3 = vrot.slane %v614_v4, %v2254_v31  ;;  %v2472_v2 = vrot.slane %v618_v21, %v2254_v31  ;;  %v2487_v12 = vrot.slane %v638_v39, %v2254_v31  ;;  %3916 = vst [vmem:[#allocation13_spill] sm:$0xff] %v2565_v46  ;;  %v21_v46 = vld [vmem:[%s3814_s0 + $0x50] sm:$0xff] }
  0x13   :  { %v2475_v1 = vrot.slane %v626_v22, %v2254_v31  ;;  %v2478_v0 = vrot.slane %v630_v6, %v2254_v31  ;;  %v2481_v63 = vrot.slane %v634_v7, %v2254_v31  ;;  %v2493_v4 = vrot.slane %v642_v40, %v2254_v31  ;;  %3918 = vst [vmem:[#allocation15_spill] sm:$0xff] %v2577_v10 }
  0x14   :  { %v2499_v6 = vrot.slane %v646_v41, %v2254_v31  ;;  %v2505_v7 = vrot.slane %v650_v42, %v2254_v31  ;;  %v2511_v39 = vrot.slane %v654_v43, %v2254_v31  ;;  %v2517_v40 = vrot.slane %v658_v44, %v2254_v31 }
  0x15   :  { %v2523_v41 = vrot.slane %v662_v45, %v2254_v31  ;;  %v2535_v42 = vrot.slane %v670_v47, %v2254_v31  ;;  %v2541_v43 = vrot.slane %v674_v48, %v2254_v31  ;;  %v2547_v44 = vrot.slane %v678_v49, %v2254_v31 }
  0x16   :  { %3905 = vst [vmem:[#allocation2_spill] sm:$0xff] %v2499_v6  ;;  %3906 = vst [vmem:[#allocation3_spill] sm:$0xff] %v2505_v7  ;;  %v2559_v45 = vrot.slane %v686_v51, %v2254_v31  ;;  %v2571_v47 = vrot.slane %v694_v53, %v2254_v31  ;;  %v2583_v48 = vrot.slane %v702_v55, %v2254_v31 }
  0x17   :  { %3907 = vst [vmem:[#allocation4_spill] sm:$0xff] %v2511_v39  ;;  %3908 = vst [vmem:[#allocation5_spill] sm:$0xff] %v2517_v40  ;;  %v2589_v49 = vrot.slane %v706_v56, %v2254_v31  ;;  %v2595_v50 = vrot.slane %v710_v57, %v2254_v31  ;;  %v2601_v13 = vrot.slane %v714_v58, %v2254_v31 }
  0x18   :  { %3909 = vst [vmem:[#allocation6_spill] sm:$0xff] %v2523_v41  ;;  %3911 = vst [vmem:[#allocation8_spill] sm:$0xff] %v2535_v42  ;;  %v2607_v51 = vrot.slane %v718_v59, %v2254_v31  ;;  %v2613_v52 = vrot.slane %v722_v60, %v2254_v31  ;;  %v2619_v53 = vrot.slane %v726_v61, %v2254_v31 }
  0x19   :  { %3912 = vst [vmem:[#allocation9_spill] sm:$0xff] %v2541_v43  ;;  %3913 = vst [vmem:[#allocation10_spill] sm:$0xff] %v2547_v44  ;;  %v2625_v14 = vrot.slane %v730_v62, %v2254_v31  ;;  %v3927_v54 = vrot.slane %v2224_v17, %v2254_v31  ;;  %v3929_v56 = vrot.slane %v2224_v17, %v2256_v32  ;;  %v22_v44 = vld [vmem:[%s3814_s0 + $0x58] sm:$0xff]  ;;  %v75_v43 = vld [vmem:[%s3814_s0 + $0x200] sm:$0xff] }
  0x1a   :  { %3915 = vst [vmem:[#allocation12_spill] sm:$0xff] %v2559_v45  ;;  %3917 = vst [vmem:[#allocation14_spill] sm:$0xff] %v2571_v47  ;;  %v3931_v58 = vrot.slane %v2224_v17, %v2258_v33  ;;  %v3933_v15 = vrot.slane %v2224_v17, %v2260_v34  ;;  %v3935_v61 = vrot.slane %v2226_v18, %v2254_v31  ;;  %v20_v47 = vld [vmem:[%s3814_s0 + $0x48] sm:$0xff]  ;;  %v159_v45 = vunpack.c.l.bf16 %v21_v46 }
  0x1b   :  { %3919 = vst [vmem:[#allocation16_spill] sm:$0xff] %v2583_v48  ;;  %3920 = vst [vmem:[#allocation17_spill] sm:$0xff] %v2589_v49  ;;  %v2631_v55 = vrot.slane %v3927_v54, %v2254_v31  ;;  %v2637_v57 = vrot.slane %v3929_v56, %v2254_v31  ;;  %v3937_v21 = vrot.slane %v2226_v18, %v2256_v32  ;;  %v19_v48 = vld [vmem:[%s3814_s0 + $0x40] sm:$0xff]  ;;  %v161_v42 = vunpack.c.l.bf16 %v22_v44 }
  0x1c   :  { %3921 = vst [vmem:[#allocation18_spill] sm:$0xff] %v2595_v50  ;;  %3922 = vst [vmem:[#allocation19_spill] sm:$0xff] %v2601_v13  ;;  %v2643_v59 = vrot.slane %v3931_v58, %v2254_v31  ;;  %v2649_v60 = vrot.slane %v3933_v15, %v2254_v31  ;;  %v2655_v62 = vrot.slane %v3935_v61, %v2254_v31  ;;  %v18_v50 = vld [vmem:[%s3814_s0 + $0x38] sm:$0xff]  ;;  %v268_v40 = vunpack.c.h.bf16 %v75_v43 }
  0x1d   :  { %3923 = vst [vmem:[#allocation20_spill] sm:$0xff] %v2607_v51  ;;  %3924 = vst [vmem:[#allocation21_spill] sm:$0xff] %v2613_v52  ;;  %v2661_v22 = vrot.slane %v3937_v21, %v2254_v31  ;;  %v3939_v54 = vrot.slane %v2226_v18, %v2258_v33  ;;  %v3941_v17 = vrot.slane %v2226_v18, %v2260_v34  ;;  %v17_v52 = vld [vmem:[%s3814_s0 + $0x30] sm:$0xff]  ;;  %v153_v49 = vunpack.c.l.bf16 %v18_v50 }
  0x1e   :  { %3925 = vst [vmem:[#allocation22_spill] sm:$0xff] %v2619_v53  ;;  %3926 = vst [vmem:[#allocation23_spill] sm:$0xff] %v2625_v14  ;;  %v3943_v15 = vrot.slane %v2228_v19, %v2254_v31  ;;  %v3945_v21 = vrot.slane %v2228_v19, %v2256_v32  ;;  %v3949_v18 = vrot.slane %v2228_v19, %v2260_v34  ;;  %v16_v53 = vld [vmem:[%s3814_s0 + $0x28] sm:$0xff]  ;;  %v151_v51 = vunpack.c.l.bf16 %v17_v52 }
  0x1f   :  { %3928 = vst [vmem:[#allocation24_spill] sm:$0xff] %v2631_v55  ;;  %3930 = vst [vmem:[#allocation25_spill] sm:$0xff] %v2637_v57  ;;  %v2667_v56 = vrot.slane %v3939_v54, %v2254_v31  ;;  %v2673_v58 = vrot.slane %v3941_v17, %v2254_v31  ;;  %v3947_v54 = vrot.slane %v2228_v19, %v2258_v33 }
  0x20   :  { %3932 = vst [vmem:[#allocation26_spill] sm:$0xff] %v2643_v59  ;;  %3934 = vst [vmem:[#allocation27_spill] sm:$0xff] %v2649_v60  ;;  %v2679_v61 = vrot.slane %v3943_v15, %v2254_v31  ;;  %v2697_v17 = vrot.slane %v3949_v18, %v2254_v31  ;;  %v3951_v15 = vrot.slane %v2230_v20, %v2254_v31  ;;  %v15_v59 = vld [vmem:[%s3814_s0 + $0x20] sm:$0xff] }
  0x21   :  { %3936 = vst [vmem:[#allocation28_spill] sm:$0xff] %v2655_v62  ;;  %3938 = vst [vmem:[#allocation29_spill] sm:$0xff] %v2661_v22  ;;  %v2685_v22 = vrot.slane %v3945_v21, %v2254_v31  ;;  %v3953_v21 = vrot.slane %v2230_v20, %v2256_v32  ;;  %v3957_v19 = vrot.slane %v2230_v20, %v2260_v34 }
  0x22   :  { %3940 = vst [vmem:[#allocation30_spill] sm:$0xff] %v2667_v56  ;;  %3942 = vst [vmem:[#allocation31_spill] sm:$0xff] %v2673_v58  ;;  %v2691_v56 = vrot.slane %v3947_v54, %v2254_v31  ;;  %v3955_v54 = vrot.slane %v2230_v20, %v2258_v33  ;;  %v3965_v20 = vrot.slane %v2238_v23, %v2260_v34 }
  0x23   :  { %3944 = vst [vmem:[#allocation32_spill] sm:$0xff] %v2679_v61  ;;  %3946 = vst [vmem:[#allocation33_spill] sm:$0xff] %v2685_v22  ;;  %v2703_v61 = vrot.slane %v3951_v15, %v2254_v31  ;;  %v2709_v22 = vrot.slane %v3953_v21, %v2254_v31  ;;  %v2721_v18 = vrot.slane %v3957_v19, %v2254_v31 }
  0x24   :  { %3948 = vst [vmem:[#allocation34_spill] sm:$0xff] %v2691_v56  ;;  %3950 = vst [vmem:[#allocation35_spill] sm:$0xff] %v2697_v17  ;;  %v2715_v56 = vrot.slane %v3955_v54, %v2254_v31  ;;  %v3959_v15 = vrot.slane %v2238_v23, %v2254_v31  ;;  %v3961_v21 = vrot.slane %v2238_v23, %v2256_v32 }
  0x25   :  { %3952 = vst [vmem:[#allocation36_spill] sm:$0xff] %v2703_v61  ;;  %3954 = vst [vmem:[#allocation37_spill] sm:$0xff] %v2709_v22  ;;  %v3963_v54 = vrot.slane %v2238_v23, %v2258_v33  ;;  %v2745_v19 = vrot.slane %v3965_v20, %v2254_v31  ;;  %v3973_v23 = vrot.slane %v2240_v24, %v2260_v34 }
  0x26   :  { %3956 = vst [vmem:[#allocation38_spill] sm:$0xff] %v2715_v56  ;;  %3958 = vst [vmem:[#allocation39_spill] sm:$0xff] %v2721_v18  ;;  %v2727_v61 = vrot.slane %v3959_v15, %v2254_v31  ;;  %v2733_v22 = vrot.slane %v3961_v21, %v2254_v31  ;;  %v3967_v15 = vrot.slane %v2240_v24, %v2254_v31 }
  0x27   :  { %v2739_v56 = vrot.slane %v3963_v54, %v2254_v31  ;;  %3966 = vst [vmem:[#allocation43_spill] sm:$0xff] %v2745_v19  ;;  %v3969_v21 = vrot.slane %v2240_v24, %v2256_v32  ;;  %v3971_v54 = vrot.slane %v2240_v24, %v2258_v33  ;;  %v2769_v20 = vrot.slane %v3973_v23, %v2254_v31 }
  0x28   :  { %3960 = vst [vmem:[#allocation40_spill] sm:$0xff] %v2727_v61  ;;  %3962 = vst [vmem:[#allocation41_spill] sm:$0xff] %v2733_v22  ;;  %v2751_v61 = vrot.slane %v3967_v15, %v2254_v31  ;;  %v3975_v15 = vrot.slane %v2242_v25, %v2254_v31  ;;  %v3981_v24 = vrot.slane %v2242_v25, %v2260_v34 }
  0x29   :  { %3964 = vst [vmem:[#allocation42_spill] sm:$0xff] %v2739_v56  ;;  %v2757_v22 = vrot.slane %v3969_v21, %v2254_v31  ;;  %v2763_v56 = vrot.slane %v3971_v54, %v2254_v31  ;;  %3974 = vst [vmem:[#allocation47_spill] sm:$0xff] %v2769_v20  ;;  %v3977_v21 = vrot.slane %v2242_v25, %v2256_v32 }
  0x2a   :  { %3968 = vst [vmem:[#allocation44_spill] sm:$0xff] %v2751_v61  ;;  %v2775_v61 = vrot.slane %v3975_v15, %v2254_v31  ;;  %v3979_v54 = vrot.slane %v2242_v25, %v2258_v33  ;;  %v2793_v23 = vrot.slane %v3981_v24, %v2254_v31  ;;  %v3983_v15 = vrot.slane %v2244_v26, %v2254_v31 }
  0x2b   :  { %3970 = vst [vmem:[#allocation45_spill] sm:$0xff] %v2757_v22  ;;  %3972 = vst [vmem:[#allocation46_spill] sm:$0xff] %v2763_v56  ;;  %v2781_v22 = vrot.slane %v3977_v21, %v2254_v31  ;;  %v3985_v21 = vrot.slane %v2244_v26, %v2256_v32  ;;  %v3989_v25 = vrot.slane %v2244_v26, %v2260_v34 }
  0x2c   :  { %3976 = vst [vmem:[#allocation48_spill] sm:$0xff] %v2775_v61  ;;  %v2787_v56 = vrot.slane %v3979_v54, %v2254_v31  ;;  %3982 = vst [vmem:[#allocation51_spill] sm:$0xff] %v2793_v23  ;;  %v2799_v61 = vrot.slane %v3983_v15, %v2254_v31  ;;  %v3987_v54 = vrot.slane %v2244_v26, %v2258_v33 }
  0x2d   :  { %3978 = vst [vmem:[#allocation49_spill] sm:$0xff] %v2781_v22  ;;  %v2805_v22 = vrot.slane %v3985_v21, %v2254_v31  ;;  %v2817_v24 = vrot.slane %v3989_v25, %v2254_v31  ;;  %v3991_v15 = vrot.slane %v2246_v27, %v2254_v31  ;;  %v3993_v21 = vrot.slane %v2246_v27, %v2256_v32 }
  0x2e   :  { %3980 = vst [vmem:[#allocation50_spill] sm:$0xff] %v2787_v56  ;;  %3984 = vst [vmem:[#allocation52_spill] sm:$0xff] %v2799_v61  ;;  %v2811_v56 = vrot.slane %v3987_v54, %v2254_v31  ;;  %v3995_v54 = vrot.slane %v2246_v27, %v2258_v33  ;;  %v3997_v26 = vrot.slane %v2246_v27, %v2260_v34 }
  0x2f   :  { %3986 = vst [vmem:[#allocation53_spill] sm:$0xff] %v2805_v22  ;;  %3990 = vst [vmem:[#allocation55_spill] sm:$0xff] %v2817_v24  ;;  %v2823_v61 = vrot.slane %v3991_v15, %v2254_v31  ;;  %v2829_v22 = vrot.slane %v3993_v21, %v2254_v31  ;;  %v3999_v15 = vrot.slane %v2248_v28, %v2254_v31 }
  0x30   :  { %3988 = vst [vmem:[#allocation54_spill] sm:$0xff] %v2811_v56  ;;  %v2835_v56 = vrot.slane %v3995_v54, %v2254_v31  ;;  %v2841_v25 = vrot.slane %v3997_v26, %v2254_v31  ;;  %v4001_v21 = vrot.slane %v2248_v28, %v2256_v32  ;;  %v4003_v54 = vrot.slane %v2248_v28, %v2258_v33 }
  0x31   :  { %3992 = vst [vmem:[#allocation56_spill] sm:$0xff] %v2823_v61  ;;  %3994 = vst [vmem:[#allocation57_spill] sm:$0xff] %v2829_v22  ;;  %v2847_v61 = vrot.slane %v3999_v15, %v2254_v31  ;;  %v4005_v27 = vrot.slane %v2248_v28, %v2260_v34  ;;  %v4007_v15 = vrot.slane %v2250_v29, %v2254_v31 }
  0x32   :  { %3996 = vst [vmem:[#allocation58_spill] sm:$0xff] %v2835_v56  ;;  %3998 = vst [vmem:[#allocation59_spill] sm:$0xff] %v2841_v25  ;;  %v2853_v22 = vrot.slane %v4001_v21, %v2254_v31  ;;  %v2859_v56 = vrot.slane %v4003_v54, %v2254_v31  ;;  %v4009_v21 = vrot.slane %v2250_v29, %v2256_v32 }
  0x33   :  { %4000 = vst [vmem:[#allocation60_spill] sm:$0xff] %v2847_v61  ;;  %v2865_v26 = vrot.slane %v4005_v27, %v2254_v31  ;;  %v2871_v61 = vrot.slane %v4007_v15, %v2254_v31  ;;  %v4011_v54 = vrot.slane %v2250_v29, %v2258_v33  ;;  %v4013_v28 = vrot.slane %v2250_v29, %v2260_v34 }
  0x34   :  { %4002 = vst [vmem:[#allocation61_spill] sm:$0xff] %v2853_v22  ;;  %4004 = vst [vmem:[#allocation62_spill] sm:$0xff] %v2859_v56  ;;  %v2877_v22 = vrot.slane %v4009_v21, %v2254_v31  ;;  %v4015_v15 = vrot.slane %v2252_v30, %v2254_v31  ;;  %v4017_v21 = vrot.slane %v2252_v30, %v2256_v32 }
  0x35   :  { %4006 = vst [vmem:[#allocation63_spill] sm:$0xff] %v2865_v26  ;;  %4008 = vst [vmem:[#allocation64_spill] sm:$0xff] %v2871_v61  ;;  %v2883_v56 = vrot.slane %v4011_v54, %v2254_v31  ;;  %v2889_v27 = vrot.slane %v4013_v28, %v2254_v31  ;;  %v4019_v54 = vrot.slane %v2252_v30, %v2258_v33 }
  0x36   :  { %4010 = vst [vmem:[#allocation65_spill] sm:$0xff] %v2877_v22  ;;  %v2895_v61 = vrot.slane %v4015_v15, %v2254_v31  ;;  %v2901_v22 = vrot.slane %v4017_v21, %v2254_v31  ;;  %v4021_v29 = vrot.slane %v2252_v30, %v2260_v34  ;;  %v4023_v15 = vrot.slane %v2262_v35, %v2254_v31 }
  0x37   :  { %4012 = vst [vmem:[#allocation66_spill] sm:$0xff] %v2883_v56  ;;  %4014 = vst [vmem:[#allocation67_spill] sm:$0xff] %v2889_v27  ;;  %v2907_v56 = vrot.slane %v4019_v54, %v2254_v31  ;;  %v4025_v21 = vrot.slane %v2262_v35, %v2256_v32  ;;  %v4027_v54 = vrot.slane %v2262_v35, %v2258_v33 }
  0x38   :  { %4016 = vst [vmem:[#allocation68_spill] sm:$0xff] %v2895_v61  ;;  %4018 = vst [vmem:[#allocation69_spill] sm:$0xff] %v2901_v22  ;;  %v2913_v28 = vrot.slane %v4021_v29, %v2254_v31  ;;  %v2919_v61 = vrot.slane %v4023_v15, %v2254_v31  ;;  %v4029_v30 = vrot.slane %v2262_v35, %v2260_v34 }
  0x39   :  { %4020 = vst [vmem:[#allocation70_spill] sm:$0xff] %v2907_v56  ;;  %v2925_v22 = vrot.slane %v4025_v21, %v2254_v31  ;;  %v2931_v56 = vrot.slane %v4027_v54, %v2254_v31  ;;  %v4031_v15 = vrot.slane %v2264_v36, %v2254_v31  ;;  %v4033_v21 = vrot.slane %v2264_v36, %v2256_v32 }
  0x3a   :  { %4022 = vst [vmem:[#allocation71_spill] sm:$0xff] %v2913_v28  ;;  %4024 = vst [vmem:[#allocation72_spill] sm:$0xff] %v2919_v61  ;;  %v2937_v29 = vrot.slane %v4029_v30, %v2254_v31  ;;  %v4035_v54 = vrot.slane %v2264_v36, %v2258_v33  ;;  %v4037_v35 = vrot.slane %v2264_v36, %v2260_v34 }
  0x3b   :  { %4026 = vst [vmem:[#allocation73_spill] sm:$0xff] %v2925_v22  ;;  %4028 = vst [vmem:[#allocation74_spill] sm:$0xff] %v2931_v56  ;;  %v2943_v61 = vrot.slane %v4031_v15, %v2254_v31  ;;  %v2949_v22 = vrot.slane %v4033_v21, %v2254_v31  ;;  %v4039_v15 = vrot.slane %v2266_v37, %v2254_v31 }
  0x3c   :  { %4030 = vst [vmem:[#allocation75_spill] sm:$0xff] %v2937_v29  ;;  %v2955_v56 = vrot.slane %v4035_v54, %v2254_v31  ;;  %v2961_v30 = vrot.slane %v4037_v35, %v2254_v31  ;;  %v4041_v21 = vrot.slane %v2266_v37, %v2256_v32  ;;  %v4043_v54 = vrot.slane %v2266_v37, %v2258_v33 }
  0x3d   :  { %4032 = vst [vmem:[#allocation76_spill] sm:$0xff] %v2943_v61  ;;  %4034 = vst [vmem:[#allocation77_spill] sm:$0xff] %v2949_v22  ;;  %v2967_v61 = vrot.slane %v4039_v15, %v2254_v31  ;;  %v4045_v36 = vrot.slane %v2266_v37, %v2260_v34  ;;  %v4047_v15 = vrot.slane %v2268_v38, %v2254_v31 }
  0x3e   :  { %4036 = vst [vmem:[#allocation78_spill] sm:$0xff] %v2955_v56  ;;  %4038 = vst [vmem:[#allocation79_spill] sm:$0xff] %v2961_v30  ;;  %v2973_v22 = vrot.slane %v4041_v21, %v2254_v31  ;;  %v2979_v56 = vrot.slane %v4043_v54, %v2254_v31  ;;  %v4049_v21 = vrot.slane %v2268_v38, %v2256_v32 }
  0x3f   :  { %4040 = vst [vmem:[#allocation80_spill] sm:$0xff] %v2967_v61  ;;  %v2985_v35 = vrot.slane %v4045_v36, %v2254_v31  ;;  %v2991_v61 = vrot.slane %v4047_v15, %v2254_v31  ;;  %v4051_v54 = vrot.slane %v2268_v38, %v2258_v33  ;;  %v4053_v37 = vrot.slane %v2268_v38, %v2260_v34  ;;  %v395_v15 = vld [vmem:[%s3813_s1] sm:$0xff]  ;;  %v12_v38 = vld [vmem:[%s3814_s0 + $0x8] sm:$0xff] }
  0x40   :  { %4042 = vst [vmem:[#allocation81_spill] sm:$0xff] %v2973_v22  ;;  %4044 = vst [vmem:[#allocation82_spill] sm:$0xff] %v2979_v56  ;;  %v2997_v22 = vrot.slane %v4049_v21, %v2254_v31  ;;  %v11_v21 = vld [vmem:[%s3814_s0] sm:$0xff]  ;;  %v141_v27 = vunpack.c.l.bf16 %v12_v38  ;;  %v142_v24 = vunpack.c.h.bf16 %v12_v38 }
  0x41   :  { %4046 = vst [vmem:[#allocation83_spill] sm:$0xff] %v2985_v35  ;;  %4048 = vst [vmem:[#allocation84_spill] sm:$0xff] %v2991_v61  ;;  %v3003_v56 = vrot.slane %v4051_v54, %v2254_v31  ;;  %v3009_v36 = vrot.slane %v4053_v37, %v2254_v31  ;;  %v411_v61 = vunpack.c.l.bf16 %v395_v15  ;;  %v139_v37 = vunpack.c.l.bf16 %v11_v21 }
  0x42   :  { %4050 = vst [vmem:[#allocation85_spill] sm:$0xff] %v2997_v22 }
  0x43   :  { %4052 = vst [vmem:[#allocation86_spill] sm:$0xff] %v3003_v56  ;;  %4054 = vst [vmem:[#allocation87_spill] sm:$0xff] %v3009_v36  ;;  %v478_v22 = vrot.slane %v411_v61, %v2254_v31  ;;  %v482_v54 = vrot.slane %v411_v61, %v2256_v32  ;;  %v412_v56 = vunpack.c.h.bf16 %v395_v15  ;;  %v486_v35 = vrot.slane %v411_v61, %v2258_v33  ;;  %v13_v15 = vld [vmem:[%s3814_s0 + $0x10] sm:$0xff] }
  0x44   :  { %v140_v36 = vunpack.c.h.bf16 %v11_v21  ;;  %v490_v30 = vrot.slane %v411_v61, %v2260_v34  ;;  %v396_v61 = vld [vmem:[%s3813_s1 + $0x8] sm:$0xff]  ;;  %v143_v20 = vunpack.c.l.bf16 %v13_v15  ;;  %v144_v58 = vunpack.c.h.bf16 %v13_v15 }
  0x45   :  { %v3025_v29 = vrot.slane %v478_v22, %v2254_v31  ;;  %v3028_v28 = vrot.slane %v482_v54, %v2254_v31  ;;  %v494_v26 = vrot.slane %v412_v56, %v2254_v31  ;;  %v3035_v25 = vrot.slane %v486_v35, %v2254_v31  ;;  %v14_v35 = vld [vmem:[%s3814_s0 + $0x18] sm:$0xff] }
  0x46   :  { %v498_v22 = vrot.slane %v412_v56, %v2256_v32  ;;  %v3042_v21 = vrot.slane %v490_v30, %v2254_v31  ;;  %v413_v19 = vunpack.c.l.bf16 %v396_v61  ;;  %v502_v38 = vrot.slane %v412_v56, %v2258_v33 }
  0x47   :  { %v1627_v54 = vmul.f32 %v3025_v29, %v139_v37  ;;  %v1628_v23 = vmul.f32 %v3028_v28, %v140_v36  ;;  %v3051_v18 = vrot.slane %v494_v26, %v2254_v31  ;;  %v1629_v17 = vmul.f32 %v3035_v25, %v141_v27 }
  0x48   :  { %v506_v30 = vrot.slane %v412_v56, %v2260_v34  ;;  %v3056_v37 = vrot.slane %v498_v22, %v2254_v31  ;;  %v1630_v36 = vmul.f32 %v3042_v21, %v142_v24  ;;  %v145_v60 = vunpack.c.l.bf16 %v14_v35 }
  0x49   :  { %v1883_v62 = vadd.f32 %v1628_v23, %v1627_v54  ;;  %v510_v57 = vrot.slane %v413_v19, %v2254_v31  ;;  %v3064_v26 = vrot.slane %v502_v38, %v2254_v31  ;;  %v1631_v27 = vmul.f32 %v3051_v18, %v143_v20 }
  0x4a   :  { %v146_v56 = vunpack.c.h.bf16 %v14_v35  ;;  %v514_v22 = vrot.slane %v413_v19, %v2256_v32  ;;  %v3069_v55 = vrot.slane %v506_v30, %v2254_v31  ;;  %v1632_v23 = vmul.f32 %v3056_v37, %v144_v58 }
  0x4b   :  { %v1884_v15 = vadd.f32 %v1883_v62, %v1629_v17  ;;  %v147_v54 = vunpack.c.l.bf16 %v15_v59  ;;  %v414_v14 = vunpack.c.h.bf16 %v396_v61  ;;  %v518_v38 = vrot.slane %v413_v19, %v2258_v33 }
  0x4c   :  { %v3077_v20 = vrot.slane %v510_v57, %v2254_v31  ;;  %v1633_v62 = vmul.f32 %v3064_v26, %v145_v60  ;;  %v148_v35 = vunpack.c.h.bf16 %v15_v59  ;;  %v522_v30 = vrot.slane %v413_v19, %v2260_v34  ;;  %v397_v57 = vld [vmem:[%s3813_s1 + $0x10] sm:$0xff] }
  0x4d   :  { %v1885_v24 = vadd.f32 %v1884_v15, %v1630_v36  ;;  %v3082_v58 = vrot.slane %v514_v22, %v2254_v31  ;;  %v1634_v61 = vmul.f32 %v3069_v55, %v146_v56  ;;  %v149_v15 = vunpack.c.l.bf16 %v16_v53 }
  0x4e   :  { %v526_v60 = vrot.slane %v414_v14, %v2254_v31  ;;  %v3093_v59 = vrot.slane %v518_v38, %v2254_v31  ;;  %v1635_v19 = vmul.f32 %v3077_v20, %v147_v54  ;;  %v150_v22 = vunpack.c.h.bf16 %v16_v53 }
  0x4f   :  { %v1886_v17 = vadd.f32 %v1885_v24, %v1631_v27  ;;  %v530_v56 = vrot.slane %v414_v14, %v2256_v32  ;;  %v1636_v24 = vmul.f32 %v3082_v58, %v148_v35  ;;  %v415_v13 = vunpack.c.l.bf16 %v397_v57 }
  0x50   :  { %v534_v38 = vrot.slane %v414_v14, %v2258_v33  ;;  %v3106_v54 = vrot.slane %v526_v60, %v2254_v31  ;;  %v1637_v53 = vmul.f32 %v3093_v59, %v149_v15  ;;  %v1756_v6 = vmul.f32 %v3028_v28, %v268_v40 }
  0x51   :  { %v1887_v36 = vadd.f32 %v1886_v17, %v1632_v23  ;;  %v3098_v23 = vrot.slane %v522_v30, %v2254_v31  ;;  %v538_v30 = vrot.slane %v414_v14, %v2260_v34  ;;  %v3111_v35 = vrot.slane %v530_v56, %v2254_v31 }
  0x52   :  { %v542_v60 = vrot.slane %v415_v13, %v2254_v31  ;;  %v3119_v10 = vrot.slane %v534_v38, %v2254_v31  ;;  %v154_v14 = vunpack.c.h.bf16 %v18_v50  ;;  %v550_v38 = vrot.slane %v415_v13, %v2258_v33 }
  0x53   :  { %v1888_v27 = vadd.f32 %v1887_v36, %v1633_v62  ;;  %v152_v36 = vunpack.c.h.bf16 %v17_v52  ;;  %v1639_v52 = vmul.f32 %v3106_v54, %v151_v51  ;;  %v3124_v56 = vrot.slane %v538_v30, %v2254_v31 }
  0x54   :  { %v3132_v51 = vrot.slane %v542_v60, %v2254_v31  ;;  %v1641_v50 = vmul.f32 %v3119_v10, %v153_v49  ;;  %v554_v30 = vrot.slane %v415_v13, %v2260_v34  ;;  %v398_v60 = vld [vmem:[%s3813_s1 + $0x18] sm:$0xff] }
  0x55   :  { %v1889_v17 = vadd.f32 %v1888_v27, %v1634_v61  ;;  %v1638_v61 = vmul.f32 %v3098_v23, %v150_v22  ;;  %v1640_v22 = vmul.f32 %v3111_v35, %v152_v36  ;;  %v417_v9 = vunpack.c.l.bf16 %v398_v60 }
  0x56   :  { %v3188_v39 = vunpack.c.h.bf16 %v398_v60 }
  0x57   :  { %v1890_v62 = vadd.f32 %v1889_v17, %v1635_v19  ;;  %v546_v19 = vrot.slane %v415_v13, %v2256_v32  ;;  %v155_v17 = vunpack.c.l.bf16 %v19_v48  ;;  %v586_v60 = vrot.slane %v417_v9, %v2260_v34 }
  0x58   :  { %v594_v28 = vrot.slane %v3188_v39, %v2256_v32 }
  0x59   :  { %v1891_v27 = vadd.f32 %v1890_v62, %v1636_v24  ;;  %v416_v62 = vunpack.c.h.bf16 %v397_v57  ;;  %v3137_v36 = vrot.slane %v546_v19, %v2254_v31  ;;  %v1642_v57 = vmul.f32 %v3124_v56, %v154_v14 }
  0x5a   :  { %v1643_v13 = vmul.f32 %v3132_v51, %v155_v17  ;;  %v158_v19 = vunpack.c.h.bf16 %v20_v47 }
  0x5b   :  { %v1892_v15 = vadd.f32 %v1891_v27, %v1637_v53  ;;  %v156_v27 = vunpack.c.h.bf16 %v19_v48  ;;  %v558_v49 = vrot.slane %v416_v62, %v2254_v31  ;;  %v3148_v48 = vrot.slane %v550_v38, %v2254_v31 }
  0x5c   :  { %v562_v14 = vrot.slane %v416_v62, %v2256_v32  ;;  %v566_v38 = vrot.slane %v416_v62, %v2258_v33 }
  0x5d   :  { %v1893_v24 = vadd.f32 %v1892_v15, %v1638_v61  ;;  %v157_v15 = vunpack.c.l.bf16 %v20_v47  ;;  %v3161_v17 = vrot.slane %v558_v49, %v2254_v31  ;;  %v23_v49 = vld [vmem:[%s3814_s0 + $0x60] sm:$0xff] }
  0x5f   :  { %v1894_v53 = vadd.f32 %v1893_v24, %v1639_v52  ;;  %v1644_v24 = vmul.f32 %v3137_v36, %v156_v27  ;;  %4055 = vst [vmem:[#allocation88_spill] sm:$0xff] %v3161_v17  ;;  %v1645_v47 = vmul.f32 %v3148_v48, %v157_v15  ;;  %v3166_v27 = vrot.slane %v562_v14, %v2254_v31 }
  0x60   :  { %v574_v15 = vrot.slane %v417_v9, %v2254_v31  ;;  %v162_v14 = vunpack.c.h.bf16 %v22_v44  ;;  %v582_v44 = vrot.slane %v417_v9, %v2258_v33 }
  0x61   :  { %v1895_v61 = vadd.f32 %v1894_v53, %v1640_v22  ;;  %v3153_v22 = vrot.slane %v554_v30, %v2254_v31  ;;  %v570_v30 = vrot.slane %v416_v62, %v2260_v34  ;;  %4056 = vst [vmem:[#allocation89_spill] sm:$0xff] %v3166_v27  ;;  %v1647_v62 = vmul.f32 %v3161_v17, %v159_v45 }
  0x63   :  { %v1896_v52 = vadd.f32 %v1895_v61, %v1641_v50  ;;  %v160_v61 = vunpack.c.h.bf16 %v21_v46  ;;  %v3177_v46 = vrot.slane %v566_v38, %v2254_v31  ;;  %v163_v38 = vunpack.c.l.bf16 %v23_v49 }
  0x65   :  { %v1897_v53 = vadd.f32 %v1896_v52, %v1642_v57  ;;  %v1646_v57 = vmul.f32 %v3153_v22, %v158_v19  ;;  %v76_v19 = vld [vmem:[%s3814_s0 + $0x208] sm:$0xff]  ;;  %v1648_v8 = vmul.f32 %v3166_v27, %v160_v61  ;;  %v164_v61 = vunpack.c.h.bf16 %v23_v49 }
  0x66   :  { %v269_v45 = vunpack.c.l.bf16 %v76_v19  ;;  %v3214_v49 = vrot.slane %v582_v44, %v2254_v31 }
  0x67   :  { %v1898_v50 = vadd.f32 %v1897_v53, %v1643_v13  ;;  %v267_v53 = vunpack.c.l.bf16 %v75_v43  ;;  %v77_v43 = vld [vmem:[%s3814_s0 + $0x210] sm:$0xff] }
  0x68   :  { %v1757_v40 = vmul.f32 %v3035_v25, %v269_v45 }
  0x69   :  { %v1899_v52 = vadd.f32 %v1898_v50, %v1644_v24  ;;  %v578_v24 = vrot.slane %v417_v9, %v2256_v32  ;;  %v3185_v50 = vrot.slane %v570_v30, %v2254_v31  ;;  %v1649_v30 = vmul.f32 %v3177_v46, %v161_v42  ;;  %v25_v9 = vld [vmem:[%s3814_s0 + $0x70] sm:$0xff]  ;;  %v26_v32 = vld [vmem:[%s3814_s0 + $0x78] sm:$0xff] }
  0x6b   :  { %v1900_v13 = vadd.f32 %v1899_v52, %v1645_v47  ;;  %v24_v47 = vld [vmem:[%s3814_s0 + $0x68] sm:$0xff]  ;;  %v3195_v52 = vrot.slane %v574_v15, %v2254_v31  ;;  %v1650_v27 = vmul.f32 %v3185_v50, %v162_v14  ;;  %v1755_v15 = vmul.f32 %v3025_v29, %v267_v53 }
  0x6c   :  { %v165_v42 = vunpack.c.l.bf16 %v24_v47  ;;  %v3224_v29 = vrot.slane %v586_v60, %v2254_v31  ;;  %v3244_v60 = vrot.slane %v594_v28, %v2254_v31 }
  0x6d   :  { %v1901_v41 = vadd.f32 %v1900_v13, %v1646_v57  ;;  %4057 = vst [vmem:[#allocation90_spill] sm:$0xff] %v3195_v52  ;;  %v3203_v57 = vrot.slane %v578_v24, %v2254_v31  ;;  %v270_v13 = vunpack.c.h.bf16 %v76_v19  ;;  %v1651_v19 = vmul.f32 %v3195_v52, %v163_v38 }
  0x6e   :  { %v272_v24 = vunpack.c.h.bf16 %v77_v43  ;;  %v598_v52 = vrot.slane %v3188_v39, %v2258_v33  ;;  %v602_v33 = vrot.slane %v3188_v39, %v2260_v34  ;;  %v27_v34 = vld [vmem:[%s3814_s0 + $0x80] sm:$0xff] }
  0x6f   :  { %v1902_v7 = vadd.f32 %v1901_v41, %v1647_v62  ;;  %v590_v41 = vrot.slane %v3188_v39, %v2254_v31  ;;  %v271_v62 = vunpack.c.l.bf16 %v77_v43  ;;  %v1652_v53 = vmul.f32 %v3203_v57, %v164_v61 }
  0x70   :  { %v1758_v38 = vmul.f32 %v3042_v21, %v270_v13  ;;  %v79_v21 = vld [vmem:[%s3814_s0 + $0x220] sm:$0xff]  ;;  %v168_v61 = vunpack.c.h.bf16 %v25_v9 }
  0x71   :  { %v1903_v17 = vadd.f32 %v1902_v7, %v1648_v8  ;;  %v78_v7 = vld [vmem:[%s3814_s0 + $0x218] sm:$0xff]  ;;  %v166_v8 = vunpack.c.h.bf16 %v24_v47  ;;  %v3231_v25 = vrot.slane %v590_v41, %v2254_v31  ;;  %v1653_v47 = vmul.f32 %v3214_v49, %v165_v42 }
  0x72   :  { %v273_v45 = vunpack.c.l.bf16 %v78_v7  ;;  %v274_v13 = vunpack.c.h.bf16 %v78_v7  ;;  %v1760_v42 = vmul.f32 %v3056_v37, %v272_v24  ;;  %v80_v37 = vld [vmem:[%s3814_s0 + $0x228] sm:$0xff]  ;;  %v1656_v28 = vmul.f32 %v3244_v60, %v168_v61 }
  0x73   :  { %v1904_v14 = vadd.f32 %v1903_v17, %v1649_v30  ;;  %v2012_v17 = vadd.f32 %v1756_v6, %v1755_v15  ;;  %v167_v30 = vunpack.c.l.bf16 %v25_v9  ;;  %v1759_v6 = vmul.f32 %v3051_v18, %v271_v62 }
  0x74   :  { %v1654_v15 = vmul.f32 %v3224_v29, %v166_v8  ;;  %v3251_v18 = vrot.slane %v598_v52, %v2254_v31  ;;  %v275_v62 = vunpack.c.l.bf16 %v79_v21  ;;  %v1761_v7 = vmul.f32 %v3064_v26, %v273_v45  ;;  %v28_v26 = vld [vmem:[%s3814_s0 + $0x88] sm:$0xff] }
  0x75   :  { %v1905_v44 = vadd.f32 %v1904_v14, %v1650_v27  ;;  %v2013_v27 = vadd.f32 %v2012_v17, %v1757_v40  ;;  %v169_v14 = vunpack.c.l.bf16 %v26_v32  ;;  %v1655_v39 = vmul.f32 %v3231_v25, %v167_v30 }
  0x76   :  { %v170_v8 = vunpack.c.h.bf16 %v26_v32  ;;  %v276_v52 = vunpack.c.h.bf16 %v79_v21  ;;  %v171_v17 = vunpack.c.l.bf16 %v27_v34 }
  0x77   :  { %v1906_v43 = vadd.f32 %v1905_v44, %v1651_v19  ;;  %v2014_v19 = vadd.f32 %v2013_v27, %v1758_v38  ;;  %v606_v44 = vrot.slane %v2449_v11, %v2254_v31  ;;  %v3262_v11 = vrot.slane %v602_v33, %v2254_v31 }
  0x78   :  { %v1657_v45 = vmul.f32 %v3251_v18, %v169_v14  ;;  %v278_v33 = vunpack.c.h.bf16 %v80_v37 }
  0x79   :  { %v1907_v41 = vadd.f32 %v1906_v43, %v1652_v53  ;;  %v2015_v40 = vadd.f32 %v2014_v19, %v1759_v6  ;;  %v1762_v53 = vmul.f32 %v3069_v55, %v274_v13  ;;  %v3267_v30 = vrot.slane %v606_v44, %v2254_v31  ;;  %v81_v55 = vld [vmem:[%s3814_s0 + $0x230] sm:$0xff] }
  0x7a   :  { %v1763_v43 = vmul.f32 %v3077_v20, %v275_v62  ;;  %v172_v6 = vunpack.c.h.bf16 %v27_v34  ;;  %v1658_v27 = vmul.f32 %v3262_v11, %v170_v8  ;;  %v1764_v13 = vmul.f32 %v3082_v58, %v276_v52  ;;  %v29_v20 = vld [vmem:[%s3814_s0 + $0x90] sm:$0xff]  ;;  %v82_v58 = vld [vmem:[%s3814_s0 + $0x238] sm:$0xff] }
  0x7b   :  { %v1908_v9 = vadd.f32 %v1907_v41, %v1653_v47  ;;  %v2016_v38 = vadd.f32 %v2015_v40, %v1760_v42  ;;  %v277_v47 = vunpack.c.l.bf16 %v80_v37  ;;  %v173_v41 = vunpack.c.l.bf16 %v28_v26 }
  0x7c   :  { %v622_v42 = vrot.slane %v2451_v5, %v2254_v31  ;;  %v1659_v19 = vmul.f32 %v3267_v30, %v171_v17  ;;  %v279_v44 = vunpack.c.l.bf16 %v81_v55  ;;  %v280_v5 = vunpack.c.h.bf16 %v81_v55 }
  0x7d   :  { %v1909_v24 = vadd.f32 %v1908_v9, %v1654_v15  ;;  %v2017_v21 = vadd.f32 %v2016_v38, %v1761_v7  ;;  %v1765_v62 = vmul.f32 %v3093_v59, %v277_v47  ;;  %v1660_v9 = vmul.f32 %v2466_v16, %v172_v6  ;;  %v30_v59 = vld [vmem:[%s3814_s0 + $0x98] sm:$0xff] }
  0x7e   :  { %v1766_v7 = vmul.f32 %v3098_v23, %v278_v33  ;;  %v175_v8 = vunpack.c.l.bf16 %v29_v20  ;;  %v3292_v52 = vrot.slane %v622_v42, %v2254_v31  ;;  %v1767_v38 = vmul.f32 %v3106_v54, %v279_v44  ;;  %v83_v23 = vld [vmem:[%s3814_s0 + $0x240] sm:$0xff] }
  0x7f   :  { %v1910_v32 = vadd.f32 %v1909_v24, %v1655_v39  ;;  %v2018_v15 = vadd.f32 %v2017_v21, %v1762_v53  ;;  %v174_v39 = vunpack.c.h.bf16 %v28_v26  ;;  %v281_v53 = vunpack.c.l.bf16 %v82_v58  ;;  %v31_v54 = vld [vmem:[%s3814_s0 + $0xa0] sm:$0xff] }
  0x80   :  { %v176_v47 = vunpack.c.h.bf16 %v29_v20  ;;  %v177_v21 = vunpack.c.l.bf16 %v30_v59  ;;  %v1663_v6 = vmul.f32 %v3292_v52, %v175_v8  ;;  %v283_v55 = vunpack.c.l.bf16 %v83_v23 }
  0x81   :  { %v1911_v61 = vadd.f32 %v1910_v32, %v1656_v28  ;;  %v2019_v34 = vadd.f32 %v2018_v15, %v1763_v43  ;;  %v1661_v28 = vmul.f32 %v2469_v3, %v173_v41  ;;  %v1662_v26 = vmul.f32 %v2472_v2, %v174_v39 }
  0x82   :  { %v1768_v32 = vmul.f32 %v3111_v35, %v280_v5  ;;  %v1664_v15 = vmul.f32 %v2475_v1, %v176_v47  ;;  %v84_v35 = vld [vmem:[%s3814_s0 + $0x248] sm:$0xff]  ;;  %v284_v42 = vunpack.c.h.bf16 %v83_v23  ;;  %v1665_v44 = vmul.f32 %v2478_v0, %v177_v21  ;;  %v4058_v21 = vld [vmem:[#allocation2_spill] sm:$0xff] }
  0x83   :  { %v1912_v14 = vadd.f32 %v1911_v61, %v1657_v45  ;;  %v2020_v40 = vadd.f32 %v2019_v34, %v1764_v13  ;;  %v282_v45 = vunpack.c.h.bf16 %v82_v58  ;;  %v1769_v61 = vmul.f32 %v3119_v10, %v281_v53  ;;  %v32_v10 = vld [vmem:[%s3814_s0 + $0xa8] sm:$0xff] }
  0x84   :  { %v178_v13 = vunpack.c.h.bf16 %v30_v59  ;;  %v285_v34 = vunpack.c.l.bf16 %v84_v35  ;;  %v1771_v39 = vmul.f32 %v3132_v51, %v283_v55  ;;  %v180_v58 = vunpack.c.h.bf16 %v31_v54  ;;  %v33_v51 = vld [vmem:[%s3814_s0 + $0xb0] sm:$0xff] }
  0x85   :  { %v1913_v37 = vadd.f32 %v1912_v14, %v1658_v27  ;;  %v2021_v17 = vadd.f32 %v2020_v40, %v1765_v62  ;;  %v179_v14 = vunpack.c.l.bf16 %v31_v54  ;;  %v1772_v40 = vmul.f32 %v3137_v36, %v284_v42  ;;  %v86_v36 = vld [vmem:[%s3814_s0 + $0x258] sm:$0xff]  ;;  %v4059_v55 = vld [vmem:[#allocation88_spill] sm:$0xff] }
  0x86   :  { %v182_v47 = vunpack.c.h.bf16 %v32_v10  ;;  %v290_v42 = vunpack.c.h.bf16 %v86_v36 }
  0x87   :  { %v1914_v24 = vadd.f32 %v1913_v37, %v1659_v19  ;;  %v2022_v43 = vadd.f32 %v2021_v17, %v1766_v7  ;;  %v1770_v19 = vmul.f32 %v3124_v56, %v282_v45  ;;  %v1666_v37 = vmul.f32 %v2481_v63, %v178_v13  ;;  %v85_v56 = vld [vmem:[%s3814_s0 + $0x250] sm:$0xff] }
  0x88   :  { %v286_v7 = vunpack.c.h.bf16 %v84_v35  ;;  %v1667_v59 = vmul.f32 %v2487_v12, %v179_v14  ;;  %v287_v53 = vunpack.c.l.bf16 %v85_v56  ;;  %v184_v13 = vunpack.c.h.bf16 %v33_v51 }
  0x89   :  { %v1915_v31 = vadd.f32 %v1914_v24, %v1660_v9  ;;  %v2023_v33 = vadd.f32 %v2022_v43, %v1767_v38  ;;  %v1773_v38 = vmul.f32 %v3148_v48, %v285_v34  ;;  %v183_v43 = vunpack.c.l.bf16 %v33_v51  ;;  %v34_v48 = vld [vmem:[%s3814_s0 + $0xb8] sm:$0xff]  ;;  %v35_v34 = vld [vmem:[%s3814_s0 + $0xc0] sm:$0xff] }
  0x8a   :  { %v1774_v45 = vmul.f32 %v3153_v22, %v286_v7  ;;  %v87_v22 = vld [vmem:[%s3814_s0 + $0x260] sm:$0xff] }
  0x8b   :  { %v1916_v27 = vadd.f32 %v1915_v31, %v1661_v28  ;;  %v2024_v20 = vadd.f32 %v2023_v33, %v1768_v32  ;;  %v181_v28 = vunpack.c.l.bf16 %v32_v10  ;;  %v288_v31 = vunpack.c.h.bf16 %v85_v56  ;;  %v4062_v10 = vld [vmem:[#allocation4_spill] sm:$0xff] }
  0x8c   :  { %v186_v56 = vunpack.c.h.bf16 %v34_v48 }
  0x8d   :  { %v1917_v41 = vadd.f32 %v1916_v27, %v1662_v26  ;;  %v2025_v9 = vadd.f32 %v2024_v20, %v1769_v61  ;;  %v1668_v26 = vmul.f32 %v2493_v4, %v180_v58  ;;  %v289_v27 = vunpack.c.l.bf16 %v86_v36 }
  0x8e   :  { %v1775_v61 = vmul.f32 %v4059_v55, %v287_v53  ;;  %v4064_v53 = vld [vmem:[#allocation6_spill] sm:$0xff]  ;;  %v4067_v55 = vld [vmem:[#allocation8_spill] sm:$0xff] }
  0x8f   :  { %v1918_v62 = vadd.f32 %v1917_v41, %v1663_v6  ;;  %v2026_v8 = vadd.f32 %v2025_v9, %v1770_v19  ;;  %v1669_v6 = vmul.f32 %v4058_v21, %v181_v28  ;;  %v4061_v19 = vld [vmem:[#allocation89_spill] sm:$0xff]  ;;  %v291_v9 = vunpack.c.l.bf16 %v87_v22 }
  0x90   :  { %v1776_v20 = vmul.f32 %v4061_v19, %v288_v31  ;;  %v1777_v58 = vmul.f32 %v3177_v46, %v289_v27  ;;  %v292_v28 = vunpack.c.h.bf16 %v87_v22  ;;  %v36_v46 = vld [vmem:[%s3814_s0 + $0xc8] sm:$0xff]  ;;  %v188_v31 = vunpack.c.h.bf16 %v35_v34  ;;  %v4068_v19 = vld [vmem:[#allocation9_spill] sm:$0xff] }
  0x91   :  { %v1919_v5 = vadd.f32 %v1918_v62, %v1664_v15  ;;  %v2027_v17 = vadd.f32 %v2026_v8, %v1771_v39  ;;  %v4060_v15 = vld [vmem:[#allocation3_spill] sm:$0xff]  ;;  %v1671_v62 = vmul.f32 %v4062_v10, %v183_v43  ;;  %v189_v27 = vunpack.c.l.bf16 %v36_v46 }
  0x92   :  { %v1670_v35 = vmul.f32 %v4060_v15, %v182_v47 }
  0x93   :  { %v1920_v24 = vadd.f32 %v1919_v5, %v1665_v44  ;;  %v2028_v32 = vadd.f32 %v2027_v17, %v1772_v40  ;;  %v185_v44 = vunpack.c.l.bf16 %v34_v48  ;;  %v4063_v5 = vld [vmem:[#allocation5_spill] sm:$0xff]  ;;  %v88_v40 = vld [vmem:[%s3814_s0 + $0x268] sm:$0xff]  ;;  %v1780_v48 = vmul.f32 %v3203_v57, %v292_v28 }
  0x94   :  { %v1672_v7 = vmul.f32 %v4063_v5, %v184_v13  ;;  %v293_v47 = vunpack.c.l.bf16 %v88_v40  ;;  %v90_v57 = vld [vmem:[%s3814_s0 + $0x278] sm:$0xff]  ;;  %v4070_v28 = vld [vmem:[#allocation11_spill] sm:$0xff] }
  0x95   :  { %v1921_v23 = vadd.f32 %v1920_v24, %v1666_v37  ;;  %v2029_v33 = vadd.f32 %v2028_v32, %v1773_v38  ;;  %v187_v24 = vunpack.c.l.bf16 %v35_v34  ;;  %v1673_v38 = vmul.f32 %v4064_v53, %v185_v44 }
  0x96   :  { %v1781_v22 = vmul.f32 %v3214_v49, %v293_v47  ;;  %v38_v49 = vld [vmem:[%s3814_s0 + $0xd8] sm:$0xff]  ;;  %v4071_v47 = vld [vmem:[#allocation12_spill] sm:$0xff] }
  0x97   :  { %v1922_v54 = vadd.f32 %v1921_v23, %v1667_v59  ;;  %v2030_v14 = vadd.f32 %v2029_v33, %v1774_v45  ;;  %v1778_v59 = vmul.f32 %v3185_v50, %v290_v42  ;;  %v4066_v45 = vld [vmem:[#allocation7_spill] sm:$0xff]  ;;  %v89_v50 = vld [vmem:[%s3814_s0 + $0x270] sm:$0xff]  ;;  %v190_v42 = vunpack.c.h.bf16 %v36_v46 }
  0x98   :  { %v1674_v32 = vmul.f32 %v4066_v45, %v186_v56  ;;  %v37_v33 = vld [vmem:[%s3814_s0 + $0xd0] sm:$0xff]  ;;  %v296_v44 = vunpack.c.h.bf16 %v89_v50  ;;  %v297_v56 = vunpack.c.l.bf16 %v90_v57 }
  0x99   :  { %v1923_v41 = vadd.f32 %v1922_v54, %v1668_v26  ;;  %v2031_v37 = vadd.f32 %v2030_v14, %v1775_v61  ;;  %v4065_v26 = vld [vmem:[#allocation90_spill] sm:$0xff]  ;;  %v1675_v61 = vmul.f32 %v4067_v55, %v187_v24  ;;  %v298_v24 = vunpack.c.h.bf16 %v90_v57 }
  0x9a   :  { %v1779_v36 = vmul.f32 %v4065_v26, %v291_v9  ;;  %v4069_v9 = vld [vmem:[#allocation10_spill] sm:$0xff] }
  0x9b   :  { %v1924_v39 = vadd.f32 %v1923_v41, %v1669_v6  ;;  %v2032_v51 = vadd.f32 %v2031_v37, %v1776_v20  ;;  %v294_v6 = vunpack.c.h.bf16 %v88_v40  ;;  %v1676_v20 = vmul.f32 %v4068_v19, %v188_v31 }
  0x9c   :  { %v1785_v31 = vmul.f32 %v3251_v18, %v297_v56  ;;  %v40_v18 = vld [vmem:[%s3814_s0 + $0xe8] sm:$0xff] }
  0x9d   :  { %v1925_v8 = vadd.f32 %v1924_v39, %v1670_v35  ;;  %v2033_v23 = vadd.f32 %v2032_v51, %v1777_v58  ;;  %v295_v35 = vunpack.c.l.bf16 %v89_v50  ;;  %v191_v39 = vunpack.c.l.bf16 %v37_v33 }
  0x9e   :  { %v1677_v58 = vmul.f32 %v4069_v9, %v189_v27  ;;  %v194_v50 = vunpack.c.h.bf16 %v38_v49  ;;  %v1786_v27 = vmul.f32 %v3262_v11, %v298_v24  ;;  %v93_v11 = vld [vmem:[%s3814_s0 + $0x290] sm:$0xff] }
  0x9f   :  { %v1926_v17 = vadd.f32 %v1925_v8, %v1671_v62  ;;  %v2034_v54 = vadd.f32 %v2033_v23, %v1778_v59  ;;  %v1782_v62 = vmul.f32 %v3224_v29, %v294_v6  ;;  %v192_v8 = vunpack.c.h.bf16 %v37_v33  ;;  %v91_v29 = vld [vmem:[%s3814_s0 + $0x280] sm:$0xff] }
  0xa0   :  { %v1678_v59 = vmul.f32 %v4070_v28, %v190_v42  ;;  %v1679_v26 = vmul.f32 %v4071_v47, %v191_v39  ;;  %v299_v23 = vunpack.c.l.bf16 %v91_v29 }
  0xa1   :  { %v1927_v43 = vadd.f32 %v1926_v17, %v1672_v7  ;;  %v2035_v41 = vadd.f32 %v2034_v54, %v1779_v36  ;;  %v1783_v7 = vmul.f32 %v3231_v25, %v295_v35  ;;  %v193_v17 = vunpack.c.l.bf16 %v38_v49  ;;  %v39_v25 = vld [vmem:[%s3814_s0 + $0xe0] sm:$0xff] }
  0xa2   :  { %v300_v54 = vunpack.c.h.bf16 %v91_v29  ;;  %v195_v33 = vunpack.c.l.bf16 %v39_v25  ;;  %v1787_v42 = vmul.f32 %v3267_v30, %v299_v23  ;;  %v196_v57 = vunpack.c.h.bf16 %v39_v25  ;;  %v41_v30 = vld [vmem:[%s3814_s0 + $0xf0] sm:$0xff] }
  0xa3   :  { %v1928_v13 = vadd.f32 %v1927_v43, %v1673_v38  ;;  %v2036_v34 = vadd.f32 %v2035_v41, %v1780_v48  ;;  %v1784_v38 = vmul.f32 %v3244_v60, %v296_v44  ;;  %v4072_v43 = vld [vmem:[#allocation13_spill] sm:$0xff]  ;;  %v92_v60 = vld [vmem:[%s3814_s0 + $0x288] sm:$0xff]  ;;  %v197_v49 = vunpack.c.l.bf16 %v40_v18 }
  0xa4   :  { %v1680_v6 = vmul.f32 %v4072_v43, %v192_v8  ;;  %v301_v41 = vunpack.c.l.bf16 %v92_v60  ;;  %v1788_v39 = vmul.f32 %v2466_v16, %v300_v54  ;;  %v198_v29 = vunpack.c.h.bf16 %v40_v18  ;;  %v94_v16 = vld [vmem:[%s3814_s0 + $0x298] sm:$0xff] }
  0xa5   :  { %v1929_v14 = vadd.f32 %v1928_v13, %v1674_v32  ;;  %v2037_v40 = vadd.f32 %v2036_v34, %v1781_v22  ;;  %v4073_v13 = vld [vmem:[#allocation14_spill] sm:$0xff]  ;;  %v302_v34 = vunpack.c.h.bf16 %v92_v60  ;;  %v199_v25 = vunpack.c.l.bf16 %v41_v30 }
  0xa6   :  { %v1681_v35 = vmul.f32 %v4073_v13, %v193_v17  ;;  %v1789_v8 = vmul.f32 %v2469_v3, %v301_v41  ;;  %v42_v3 = vld [vmem:[%s3814_s0 + $0xf8] sm:$0xff]  ;;  %v200_v60 = vunpack.c.h.bf16 %v41_v30  ;;  %v96_v30 = vld [vmem:[%s3814_s0 + $0x2a8] sm:$0xff] }
  0xa7   :  { %v1930_v37 = vadd.f32 %v1929_v14, %v1675_v61  ;;  %v2038_v46 = vadd.f32 %v2037_v40, %v1782_v62  ;;  %v4074_v14 = vld [vmem:[#allocation15_spill] sm:$0xff]  ;;  %v303_v40 = vunpack.c.l.bf16 %v93_v11  ;;  %v1790_v17 = vmul.f32 %v2472_v2, %v302_v34  ;;  %v95_v2 = vld [vmem:[%s3814_s0 + $0x2a0] sm:$0xff] }
  0xa8   :  { %v1682_v44 = vmul.f32 %v4074_v14, %v194_v50  ;;  %v201_v18 = vunpack.c.l.bf16 %v42_v3 }
  0xa9   :  { %v1931_v51 = vadd.f32 %v1930_v37, %v1676_v20  ;;  %v2039_v32 = vadd.f32 %v2038_v46, %v1783_v7  ;;  %v4075_v37 = vld [vmem:[#allocation16_spill] sm:$0xff]  ;;  %v304_v46 = vunpack.c.h.bf16 %v93_v11  ;;  %v1791_v50 = vmul.f32 %v3292_v52, %v303_v40  ;;  %v43_v52 = vld [vmem:[%s3814_s0 + $0x100] sm:$0xff] }
  0xaa   :  { %v1683_v56 = vmul.f32 %v4075_v37, %v195_v33  ;;  %v202_v11 = vunpack.c.h.bf16 %v42_v3  ;;  %v4081_v40 = vld [vmem:[#allocation22_spill] sm:$0xff]  ;;  %v45_v3 = vld [vmem:[%s3814_s0 + $0x110] sm:$0xff] }
  0xab   :  { %v1932_v36 = vadd.f32 %v1931_v51, %v1677_v58  ;;  %v2040_v61 = vadd.f32 %v2039_v32, %v1784_v38  ;;  %v4076_v51 = vld [vmem:[#allocation17_spill] sm:$0xff]  ;;  %v305_v32 = vunpack.c.l.bf16 %v94_v16  ;;  %v1792_v33 = vmul.f32 %v2475_v1, %v304_v46 }
  0xac   :  { %v1684_v24 = vmul.f32 %v4076_v51, %v196_v57  ;;  %v309_v46 = vunpack.c.l.bf16 %v96_v30 }
  0xad   :  { %v1933_v48 = vadd.f32 %v1932_v36, %v1678_v59  ;;  %v2041_v20 = vadd.f32 %v2040_v61, %v1785_v31  ;;  %v4077_v36 = vld [vmem:[#allocation18_spill] sm:$0xff]  ;;  %v306_v61 = vunpack.c.h.bf16 %v94_v16  ;;  %v1793_v57 = vmul.f32 %v2478_v0, %v305_v32  ;;  %v4082_v16 = vld [vmem:[#allocation23_spill] sm:$0xff] }
  0xae   :  { %v1685_v23 = vmul.f32 %v4077_v36, %v197_v49  ;;  %v1689_v0 = vmul.f32 %v4081_v40, %v201_v18  ;;  %v98_v18 = vld [vmem:[%s3814_s0 + $0x2b8] sm:$0xff] }
  0xaf   :  { %v1934_v22 = vadd.f32 %v1933_v48, %v1679_v26  ;;  %v2042_v58 = vadd.f32 %v2041_v20, %v1786_v27  ;;  %v4078_v48 = vld [vmem:[#allocation19_spill] sm:$0xff]  ;;  %v307_v20 = vunpack.c.l.bf16 %v95_v2  ;;  %v1794_v1 = vmul.f32 %v2481_v63, %v306_v61 }
  0xb0   :  { %v1686_v54 = vmul.f32 %v4078_v48, %v198_v29  ;;  %v1797_v61 = vmul.f32 %v4058_v21, %v309_v46 }
  0xb1   :  { %v1935_v62 = vadd.f32 %v1934_v22, %v1680_v6  ;;  %v2043_v59 = vadd.f32 %v2042_v58, %v1787_v42  ;;  %v4079_v22 = vld [vmem:[#allocation20_spill] sm:$0xff]  ;;  %v308_v58 = vunpack.c.h.bf16 %v95_v2 }
  0xb2   :  { %v1687_v41 = vmul.f32 %v4079_v22, %v199_v25 }
  0xb3   :  { %v1936_v7 = vadd.f32 %v1935_v62, %v1681_v35  ;;  %v2044_v26 = vadd.f32 %v2043_v59, %v1788_v39  ;;  %v4080_v62 = vld [vmem:[#allocation21_spill] sm:$0xff]  ;;  %v1795_v59 = vmul.f32 %v2487_v12, %v307_v20 }
  0xb4   :  { %v1688_v34 = vmul.f32 %v4080_v62, %v200_v60 }
  0xb5   :  { %v1937_v38 = vadd.f32 %v1936_v7, %v1682_v44  ;;  %v2045_v6 = vadd.f32 %v2044_v26, %v1789_v8  ;;  %v44_v7 = vld [vmem:[%s3814_s0 + $0x108] sm:$0xff] }
  0xb6   :  { %v205_v25 = vunpack.c.l.bf16 %v44_v7  ;;  %v206_v60 = vunpack.c.h.bf16 %v44_v7 }
  0xb7   :  { %v1938_v31 = vadd.f32 %v1937_v38, %v1683_v56  ;;  %v2046_v35 = vadd.f32 %v2045_v6, %v1790_v17  ;;  %v203_v56 = vunpack.c.l.bf16 %v43_v52  ;;  %v1690_v38 = vmul.f32 %v4082_v16, %v202_v11 }
  0xb8   :  { %v1796_v17 = vmul.f32 %v2493_v4, %v308_v58  ;;  %v208_v11 = vunpack.c.h.bf16 %v45_v3  ;;  %v313_v58 = vunpack.c.l.bf16 %v98_v18 }
  0xb9   :  { %v1939_v27 = vadd.f32 %v1938_v31, %v1684_v24  ;;  %v2047_v44 = vadd.f32 %v2046_v35, %v1791_v50  ;;  %v204_v24 = vunpack.c.h.bf16 %v43_v52  ;;  %v4083_v31 = vld [vmem:[#allocation24_spill] sm:$0xff]  ;;  %v310_v50 = vunpack.c.h.bf16 %v96_v30  ;;  %v4085_v52 = vld [vmem:[#allocation26_spill] sm:$0xff] }
  0xba   :  { %v1691_v12 = vmul.f32 %v4083_v31, %v203_v56  ;;  %v207_v35 = vunpack.c.l.bf16 %v45_v3  ;;  %v4087_v30 = vld [vmem:[#allocation28_spill] sm:$0xff]  ;;  %v4089_v3 = vld [vmem:[#allocation30_spill] sm:$0xff] }
  0xbb   :  { %v1940_v42 = vadd.f32 %v1939_v27, %v1685_v23  ;;  %v2048_v49 = vadd.f32 %v2047_v44, %v1792_v33  ;;  %v97_v23 = vld [vmem:[%s3814_s0 + $0x2b0] sm:$0xff]  ;;  %v1798_v44 = vmul.f32 %v4060_v15, %v310_v50 }
  0xbc   :  { %v311_v4 = vunpack.c.l.bf16 %v97_v23  ;;  %v1695_v7 = vmul.f32 %v4087_v30, %v207_v35 }
  0xbd   :  { %v1941_v39 = vadd.f32 %v1940_v42, %v1686_v54  ;;  %v2049_v29 = vadd.f32 %v2048_v49, %v1793_v57  ;;  %v4084_v54 = vld [vmem:[#allocation25_spill] sm:$0xff]  ;;  %v1693_v42 = vmul.f32 %v4085_v52, %v205_v25  ;;  %v312_v57 = vunpack.c.h.bf16 %v97_v23 }
  0xbe   :  { %v1692_v2 = vmul.f32 %v4084_v54, %v204_v24 }
  0xbf   :  { %v1942_v8 = vadd.f32 %v1941_v39, %v1687_v41  ;;  %v2050_v26 = vadd.f32 %v2049_v29, %v1794_v1  ;;  %v46_v41 = vld [vmem:[%s3814_s0 + $0x118] sm:$0xff]  ;;  %v1799_v1 = vmul.f32 %v4062_v10, %v311_v4  ;;  %v1800_v29 = vmul.f32 %v4063_v5, %v312_v57  ;;  %v48_v5 = vld [vmem:[%s3814_s0 + $0x128] sm:$0xff]  ;;  %v101_v57 = vld [vmem:[%s3814_s0 + $0x2d0] sm:$0xff] }
  0xc0   :  { %v209_v56 = vunpack.c.l.bf16 %v46_v41  ;;  %v4090_v4 = vld [vmem:[#allocation31_spill] sm:$0xff] }
  0xc1   :  { %v1943_v63 = vadd.f32 %v1942_v8, %v1688_v34  ;;  %v2051_v6 = vadd.f32 %v2050_v26, %v1795_v59  ;;  %v4086_v34 = vld [vmem:[#allocation27_spill] sm:$0xff]  ;;  %v47_v8 = vld [vmem:[%s3814_s0 + $0x120] sm:$0xff]  ;;  %v314_v59 = vunpack.c.h.bf16 %v98_v18  ;;  %v1801_v26 = vmul.f32 %v4064_v53, %v313_v58 }
  0xc2   :  { %v1694_v39 = vmul.f32 %v4086_v34, %v206_v60  ;;  %v211_v23 = vunpack.c.l.bf16 %v47_v8  ;;  %v214_v58 = vunpack.c.h.bf16 %v48_v5 }
  0xc3   :  { %v1944_v32 = vadd.f32 %v1943_v63, %v1689_v0  ;;  %v2052_v33 = vadd.f32 %v2051_v6, %v1796_v17  ;;  %v99_v0 = vld [vmem:[%s3814_s0 + $0x2c0] sm:$0xff]  ;;  %v4088_v63 = vld [vmem:[#allocation29_spill] sm:$0xff]  ;;  %v1802_v60 = vmul.f32 %v4066_v45, %v314_v59  ;;  %v49_v45 = vld [vmem:[%s3814_s0 + $0x130] sm:$0xff] }
  0xc4   :  { %v1696_v10 = vmul.f32 %v4088_v63, %v208_v11  ;;  %v315_v17 = vunpack.c.l.bf16 %v99_v0  ;;  %v316_v6 = vunpack.c.h.bf16 %v99_v0 }
  0xc5   :  { %v1945_v27 = vadd.f32 %v1944_v32, %v1690_v38  ;;  %v2053_v49 = vadd.f32 %v2052_v33, %v1797_v61  ;;  %v210_v38 = vunpack.c.h.bf16 %v46_v41  ;;  %v100_v32 = vld [vmem:[%s3814_s0 + $0x2c8] sm:$0xff]  ;;  %v213_v41 = vunpack.c.l.bf16 %v48_v5 }
  0xc6   :  { %v317_v33 = vunpack.c.l.bf16 %v100_v32  ;;  %v1803_v35 = vmul.f32 %v4067_v55, %v315_v17  ;;  %v318_v11 = vunpack.c.h.bf16 %v100_v32  ;;  %v216_v17 = vunpack.c.h.bf16 %v49_v45 }
  0xc7   :  { %v1946_v20 = vadd.f32 %v1945_v27, %v1691_v12  ;;  %v2054_v24 = vadd.f32 %v2053_v49, %v1798_v44  ;;  %v1697_v12 = vmul.f32 %v4089_v3, %v209_v56  ;;  %v212_v27 = vunpack.c.h.bf16 %v47_v8 }
  0xc8   :  { %v1698_v53 = vmul.f32 %v4090_v4, %v210_v38  ;;  %v319_v56 = vunpack.c.l.bf16 %v101_v57  ;;  %v215_v8 = vunpack.c.l.bf16 %v49_v45  ;;  %v320_v38 = vunpack.c.h.bf16 %v101_v57 }
  0xc9   :  { %v1947_v21 = vadd.f32 %v1946_v20, %v1692_v2  ;;  %v2055_v25 = vadd.f32 %v2054_v24, %v1799_v1  ;;  %v4092_v1 = vld [vmem:[#allocation33_spill] sm:$0xff] }
  0xca   :  { %v1700_v55 = vmul.f32 %v4092_v1, %v212_v27 }
  0xcb   :  { %v1948_v15 = vadd.f32 %v1947_v21, %v1693_v42  ;;  %v2056_v2 = vadd.f32 %v2055_v25, %v1800_v29  ;;  %v4091_v42 = vld [vmem:[#allocation32_spill] sm:$0xff]  ;;  %v102_v29 = vld [vmem:[%s3814_s0 + $0x2d8] sm:$0xff] }
  0xcc   :  { %v1699_v20 = vmul.f32 %v4091_v42, %v211_v23  ;;  %v321_v23 = vunpack.c.l.bf16 %v102_v29  ;;  %v322_v27 = vunpack.c.h.bf16 %v102_v29 }
  0xcd   :  { %v1949_v46 = vadd.f32 %v1948_v15, %v1694_v39  ;;  %v2057_v18 = vadd.f32 %v2056_v2, %v1801_v26  ;;  %v1804_v39 = vmul.f32 %v4068_v19, %v316_v6  ;;  %v4093_v15 = vld [vmem:[#allocation34_spill] sm:$0xff]  ;;  %v50_v19 = vld [vmem:[%s3814_s0 + $0x138] sm:$0xff]  ;;  %v4094_v26 = vld [vmem:[#allocation35_spill] sm:$0xff] }
  0xce   :  { %v1701_v59 = vmul.f32 %v4093_v15, %v213_v41  ;;  %v217_v5 = vunpack.c.l.bf16 %v50_v19 }
  0xcf   :  { %v1950_v50 = vadd.f32 %v1949_v46, %v1695_v7  ;;  %v2058_v21 = vadd.f32 %v2057_v18, %v1802_v60  ;;  %v1805_v7 = vmul.f32 %v4069_v9, %v317_v33  ;;  %v1702_v9 = vmul.f32 %v4094_v26, %v214_v58  ;;  %v103_v60 = vld [vmem:[%s3814_s0 + $0x2e0] sm:$0xff] }
  0xd0   :  { %v218_v33 = vunpack.c.h.bf16 %v50_v19  ;;  %v323_v41 = vunpack.c.l.bf16 %v103_v60  ;;  %v324_v58 = vunpack.c.h.bf16 %v103_v60 }
  0xd1   :  { %v1951_v61 = vadd.f32 %v1950_v50, %v1696_v10  ;;  %v2059_v0 = vadd.f32 %v2058_v21, %v1803_v35  ;;  %v1806_v10 = vmul.f32 %v4070_v28, %v318_v11  ;;  %v4095_v50 = vld [vmem:[#allocation36_spill] sm:$0xff]  ;;  %v51_v28 = vld [vmem:[%s3814_s0 + $0x140] sm:$0xff]  ;;  %v4096_v35 = vld [vmem:[#allocation37_spill] sm:$0xff] }
  0xd2   :  { %v1703_v6 = vmul.f32 %v4095_v50, %v215_v8  ;;  %v219_v45 = vunpack.c.l.bf16 %v51_v28 }
  0xd3   :  { %v1952_v44 = vadd.f32 %v1951_v61, %v1697_v12  ;;  %v2060_v46 = vadd.f32 %v2059_v0, %v1804_v39  ;;  %v1807_v12 = vmul.f32 %v4071_v47, %v319_v56  ;;  %v1704_v47 = vmul.f32 %v4096_v35, %v216_v17  ;;  %v104_v39 = vld [vmem:[%s3814_s0 + $0x2e8] sm:$0xff] }
  0xd4   :  { %v220_v56 = vunpack.c.h.bf16 %v51_v28  ;;  %v325_v8 = vunpack.c.l.bf16 %v104_v39  ;;  %v326_v17 = vunpack.c.h.bf16 %v104_v39 }
  0xd5   :  { %v1953_v49 = vadd.f32 %v1952_v44, %v1698_v53  ;;  %v2061_v32 = vadd.f32 %v2060_v46, %v1805_v7  ;;  %v1808_v53 = vmul.f32 %v4072_v43, %v320_v38  ;;  %v4097_v44 = vld [vmem:[#allocation38_spill] sm:$0xff]  ;;  %v52_v43 = vld [vmem:[%s3814_s0 + $0x148] sm:$0xff] }
  0xd6   :  { %v1705_v11 = vmul.f32 %v4097_v44, %v217_v5  ;;  %v4098_v7 = vld [vmem:[#allocation39_spill] sm:$0xff]  ;;  %v221_v19 = vunpack.c.l.bf16 %v52_v43 }
  0xd7   :  { %v1954_v24 = vadd.f32 %v1953_v49, %v1699_v20  ;;  %v2062_v61 = vadd.f32 %v2061_v32, %v1806_v10  ;;  %v1809_v20 = vmul.f32 %v4073_v13, %v321_v23  ;;  %v1706_v13 = vmul.f32 %v4098_v7, %v218_v33  ;;  %v105_v10 = vld [vmem:[%s3814_s0 + $0x2f0] sm:$0xff] }
  0xd8   :  { %v222_v23 = vunpack.c.h.bf16 %v52_v43  ;;  %v327_v5 = vunpack.c.l.bf16 %v105_v10  ;;  %v328_v33 = vunpack.c.h.bf16 %v105_v10 }
  0xd9   :  { %v1955_v25 = vadd.f32 %v1954_v24, %v1700_v55  ;;  %v2063_v57 = vadd.f32 %v2062_v61, %v1807_v12  ;;  %v1810_v55 = vmul.f32 %v4074_v14, %v322_v27  ;;  %v4099_v24 = vld [vmem:[#allocation40_spill] sm:$0xff]  ;;  %v4100_v12 = vld [vmem:[#allocation41_spill] sm:$0xff] }
  0xda   :  { %v1707_v38 = vmul.f32 %v4099_v24, %v219_v45  ;;  %v53_v14 = vld [vmem:[%s3814_s0 + $0x150] sm:$0xff] }
  0xdb   :  { %v1956_v2 = vadd.f32 %v1955_v25, %v1701_v59  ;;  %v2064_v49 = vadd.f32 %v2063_v57, %v1808_v53  ;;  %v1811_v59 = vmul.f32 %v4075_v37, %v323_v41  ;;  %v1708_v37 = vmul.f32 %v4100_v12, %v220_v56  ;;  %v106_v53 = vld [vmem:[%s3814_s0 + $0x2f8] sm:$0xff] }
  0xdc   :  { %v223_v28 = vunpack.c.l.bf16 %v53_v14  ;;  %v224_v41 = vunpack.c.h.bf16 %v53_v14  ;;  %v329_v45 = vunpack.c.l.bf16 %v106_v53  ;;  %v330_v56 = vunpack.c.h.bf16 %v106_v53 }
  0xdd   :  { %v1957_v18 = vadd.f32 %v1956_v2, %v1702_v9  ;;  %v2065_v29 = vadd.f32 %v2064_v49, %v1809_v20  ;;  %v1812_v9 = vmul.f32 %v4076_v51, %v324_v58  ;;  %v4101_v2 = vld [vmem:[#allocation42_spill] sm:$0xff]  ;;  %v54_v51 = vld [vmem:[%s3814_s0 + $0x158] sm:$0xff]  ;;  %v4102_v20 = vld [vmem:[#allocation43_spill] sm:$0xff] }
  0xde   :  { %v1709_v27 = vmul.f32 %v4101_v2, %v221_v19  ;;  %v225_v43 = vunpack.c.l.bf16 %v54_v51 }
  0xdf   :  { %v1958_v21 = vadd.f32 %v1957_v18, %v1703_v6  ;;  %v2066_v25 = vadd.f32 %v2065_v29, %v1810_v55  ;;  %v1813_v6 = vmul.f32 %v4077_v36, %v325_v8  ;;  %v1710_v36 = vmul.f32 %v4102_v20, %v222_v23  ;;  %v107_v55 = vld [vmem:[%s3814_s0 + $0x300] sm:$0xff] }
  0xe0   :  { %v226_v8 = vunpack.c.h.bf16 %v54_v51  ;;  %v331_v19 = vunpack.c.l.bf16 %v107_v55  ;;  %v332_v23 = vunpack.c.h.bf16 %v107_v55 }
  0xe1   :  { %v1959_v0 = vadd.f32 %v1958_v21, %v1704_v47  ;;  %v2067_v60 = vadd.f32 %v2066_v25, %v1811_v59  ;;  %v1814_v47 = vmul.f32 %v4078_v48, %v326_v17  ;;  %v4103_v21 = vld [vmem:[#allocation44_spill] sm:$0xff]  ;;  %v55_v48 = vld [vmem:[%s3814_s0 + $0x160] sm:$0xff]  ;;  %v4104_v59 = vld [vmem:[#allocation45_spill] sm:$0xff] }
  0xe2   :  { %v1711_v58 = vmul.f32 %v4103_v21, %v223_v28  ;;  %v227_v14 = vunpack.c.l.bf16 %v55_v48 }
  0xe3   :  { %v1960_v46 = vadd.f32 %v1959_v0, %v1705_v11  ;;  %v2068_v18 = vadd.f32 %v2067_v60, %v1812_v9  ;;  %v1815_v11 = vmul.f32 %v4079_v22, %v327_v5  ;;  %v1712_v22 = vmul.f32 %v4104_v59, %v224_v41  ;;  %v108_v9 = vld [vmem:[%s3814_s0 + $0x308] sm:$0xff] }
  0xe4   :  { %v228_v5 = vunpack.c.h.bf16 %v55_v48  ;;  %v333_v28 = vunpack.c.l.bf16 %v108_v9  ;;  %v334_v41 = vunpack.c.h.bf16 %v108_v9 }
  0xe5   :  { %v1961_v32 = vadd.f32 %v1960_v46, %v1706_v13  ;;  %v2069_v39 = vadd.f32 %v2068_v18, %v1813_v6  ;;  %v1816_v13 = vmul.f32 %v4080_v62, %v328_v33  ;;  %v4105_v46 = vld [vmem:[#allocation46_spill] sm:$0xff]  ;;  %v56_v62 = vld [vmem:[%s3814_s0 + $0x168] sm:$0xff] }
  0xe6   :  { %v1713_v17 = vmul.f32 %v4105_v46, %v225_v43  ;;  %v4106_v6 = vld [vmem:[#allocation47_spill] sm:$0xff]  ;;  %v229_v51 = vunpack.c.l.bf16 %v56_v62 }
  0xe7   :  { %v1962_v61 = vadd.f32 %v1961_v32, %v1707_v38  ;;  %v2070_v0 = vadd.f32 %v2069_v39, %v1814_v47  ;;  %v1817_v38 = vmul.f32 %v4081_v40, %v329_v45  ;;  %v1714_v40 = vmul.f32 %v4106_v6, %v226_v8  ;;  %v109_v47 = vld [vmem:[%s3814_s0 + $0x310] sm:$0xff] }
  0xe8   :  { %v230_v45 = vunpack.c.h.bf16 %v56_v62  ;;  %v335_v43 = vunpack.c.l.bf16 %v109_v47  ;;  %v336_v8 = vunpack.c.h.bf16 %v109_v47 }
  0xe9   :  { %v1963_v57 = vadd.f32 %v1962_v61, %v1708_v37  ;;  %v2071_v10 = vadd.f32 %v2070_v0, %v1815_v11  ;;  %v1818_v37 = vmul.f32 %v4082_v16, %v330_v56  ;;  %v4107_v61 = vld [vmem:[#allocation48_spill] sm:$0xff]  ;;  %v4108_v11 = vld [vmem:[#allocation49_spill] sm:$0xff] }
  0xea   :  { %v1715_v33 = vmul.f32 %v4107_v61, %v227_v14  ;;  %v57_v16 = vld [vmem:[%s3814_s0 + $0x170] sm:$0xff] }
  0xeb   :  { %v1964_v49 = vadd.f32 %v1963_v57, %v1709_v27  ;;  %v2072_v32 = vadd.f32 %v2071_v10, %v1816_v13  ;;  %v1819_v27 = vmul.f32 %v4083_v31, %v331_v19  ;;  %v1716_v31 = vmul.f32 %v4108_v11, %v228_v5  ;;  %v110_v13 = vld [vmem:[%s3814_s0 + $0x318] sm:$0xff] }
  0xec   :  { %v231_v48 = vunpack.c.l.bf16 %v57_v16  ;;  %v232_v19 = vunpack.c.h.bf16 %v57_v16  ;;  %v337_v14 = vunpack.c.l.bf16 %v110_v13  ;;  %v338_v5 = vunpack.c.h.bf16 %v110_v13 }
  0xed   :  { %v1965_v29 = vadd.f32 %v1964_v49, %v1710_v36  ;;  %v2073_v53 = vadd.f32 %v2072_v32, %v1817_v38  ;;  %v1820_v36 = vmul.f32 %v4084_v54, %v332_v23  ;;  %v4109_v49 = vld [vmem:[#allocation50_spill] sm:$0xff]  ;;  %v58_v54 = vld [vmem:[%s3814_s0 + $0x178] sm:$0xff]  ;;  %v4110_v38 = vld [vmem:[#allocation51_spill] sm:$0xff] }
  0xee   :  { %v1717_v56 = vmul.f32 %v4109_v49, %v229_v51  ;;  %v233_v62 = vunpack.c.l.bf16 %v58_v54 }
  0xef   :  { %v1966_v25 = vadd.f32 %v1965_v29, %v1711_v58  ;;  %v2074_v57 = vadd.f32 %v2073_v53, %v1818_v37  ;;  %v1821_v58 = vmul.f32 %v4085_v52, %v333_v28  ;;  %v1718_v52 = vmul.f32 %v4110_v38, %v230_v45  ;;  %v111_v37 = vld [vmem:[%s3814_s0 + $0x320] sm:$0xff] }
  0xf0   :  { %v234_v28 = vunpack.c.h.bf16 %v58_v54  ;;  %v339_v51 = vunpack.c.l.bf16 %v111_v37  ;;  %v340_v45 = vunpack.c.h.bf16 %v111_v37 }
  0xf1   :  { %v1967_v60 = vadd.f32 %v1966_v25, %v1712_v22  ;;  %v2075_v55 = vadd.f32 %v2074_v57, %v1819_v27  ;;  %v1822_v22 = vmul.f32 %v4086_v34, %v334_v41  ;;  %v4111_v25 = vld [vmem:[#allocation52_spill] sm:$0xff]  ;;  %v59_v34 = vld [vmem:[%s3814_s0 + $0x180] sm:$0xff]  ;;  %v4112_v27 = vld [vmem:[#allocation53_spill] sm:$0xff] }
  0xf2   :  { %v1719_v23 = vmul.f32 %v4111_v25, %v231_v48  ;;  %v235_v16 = vunpack.c.l.bf16 %v59_v34 }
  0xf3   :  { %v1968_v18 = vadd.f32 %v1967_v60, %v1713_v17  ;;  %v2076_v29 = vadd.f32 %v2075_v55, %v1820_v36  ;;  %v1823_v17 = vmul.f32 %v4087_v30, %v335_v43  ;;  %v1720_v30 = vmul.f32 %v4112_v27, %v232_v19  ;;  %v112_v36 = vld [vmem:[%s3814_s0 + $0x328] sm:$0xff] }
  0xf4   :  { %v236_v43 = vunpack.c.h.bf16 %v59_v34  ;;  %v341_v48 = vunpack.c.l.bf16 %v112_v36  ;;  %v342_v19 = vunpack.c.h.bf16 %v112_v36 }
  0xf5   :  { %v1969_v39 = vadd.f32 %v1968_v18, %v1714_v40  ;;  %v2077_v9 = vadd.f32 %v2076_v29, %v1821_v58  ;;  %v1824_v40 = vmul.f32 %v4088_v63, %v336_v8  ;;  %v4113_v18 = vld [vmem:[#allocation54_spill] sm:$0xff]  ;;  %v60_v63 = vld [vmem:[%s3814_s0 + $0x188] sm:$0xff] }
  0xf6   :  { %v1721_v41 = vmul.f32 %v4113_v18, %v233_v62  ;;  %v4114_v58 = vld [vmem:[#allocation55_spill] sm:$0xff]  ;;  %v237_v54 = vunpack.c.l.bf16 %v60_v63 }
  0xf7   :  { %v1970_v0 = vadd.f32 %v1969_v39, %v1715_v33  ;;  %v2078_v60 = vadd.f32 %v2077_v9, %v1822_v22  ;;  %v1825_v33 = vmul.f32 %v4089_v3, %v337_v14  ;;  %v1722_v3 = vmul.f32 %v4114_v58, %v234_v28  ;;  %v113_v22 = vld [vmem:[%s3814_s0 + $0x330] sm:$0xff] }
  0xf8   :  { %v238_v14 = vunpack.c.h.bf16 %v60_v63  ;;  %v343_v62 = vunpack.c.l.bf16 %v113_v22  ;;  %v344_v28 = vunpack.c.h.bf16 %v113_v22 }
  0xf9   :  { %v1971_v10 = vadd.f32 %v1970_v0, %v1716_v31  ;;  %v2079_v47 = vadd.f32 %v2078_v60, %v1823_v17  ;;  %v1826_v31 = vmul.f32 %v4090_v4, %v338_v5  ;;  %v4115_v0 = vld [vmem:[#allocation56_spill] sm:$0xff]  ;;  %v4116_v17 = vld [vmem:[#allocation57_spill] sm:$0xff] }
  0xfa   :  { %v1723_v8 = vmul.f32 %v4115_v0, %v235_v16  ;;  %v61_v4 = vld [vmem:[%s3814_s0 + $0x190] sm:$0xff] }
  0xfb   :  { %v1972_v32 = vadd.f32 %v1971_v10, %v1717_v56  ;;  %v2080_v39 = vadd.f32 %v2079_v47, %v1824_v40  ;;  %v1827_v56 = vmul.f32 %v4091_v42, %v339_v51  ;;  %v1724_v42 = vmul.f32 %v4116_v17, %v236_v43  ;;  %v114_v40 = vld [vmem:[%s3814_s0 + $0x338] sm:$0xff] }
  0xfc   :  { %v239_v34 = vunpack.c.l.bf16 %v61_v4  ;;  %v240_v51 = vunpack.c.h.bf16 %v61_v4  ;;  %v345_v16 = vunpack.c.l.bf16 %v114_v40  ;;  %v346_v43 = vunpack.c.h.bf16 %v114_v40 }
  0xfd   :  { %v1973_v53 = vadd.f32 %v1972_v32, %v1718_v52  ;;  %v2081_v13 = vadd.f32 %v2080_v39, %v1825_v33  ;;  %v1828_v52 = vmul.f32 %v4092_v1, %v340_v45  ;;  %v4117_v32 = vld [vmem:[#allocation58_spill] sm:$0xff]  ;;  %v62_v1 = vld [vmem:[%s3814_s0 + $0x198] sm:$0xff]  ;;  %v4118_v33 = vld [vmem:[#allocation59_spill] sm:$0xff] }
  0xfe   :  { %v1725_v5 = vmul.f32 %v4117_v32, %v237_v54  ;;  %v241_v63 = vunpack.c.l.bf16 %v62_v1 }
  0xff   :  { %v1974_v57 = vadd.f32 %v1973_v53, %v1719_v23  ;;  %v2082_v10 = vadd.f32 %v2081_v13, %v1826_v31  ;;  %v1829_v23 = vmul.f32 %v4093_v15, %v341_v48  ;;  %v1726_v15 = vmul.f32 %v4118_v33, %v238_v14  ;;  %v115_v31 = vld [vmem:[%s3814_s0 + $0x340] sm:$0xff] }
 0x100   :  { %v242_v48 = vunpack.c.h.bf16 %v62_v1  ;;  %v347_v54 = vunpack.c.l.bf16 %v115_v31  ;;  %v348_v14 = vunpack.c.h.bf16 %v115_v31 }
 0x101   :  { %v1975_v55 = vadd.f32 %v1974_v57, %v1720_v30  ;;  %v2083_v37 = vadd.f32 %v2082_v10, %v1827_v56  ;;  %v1830_v30 = vmul.f32 %v4094_v26, %v342_v19  ;;  %v4119_v57 = vld [vmem:[#allocation60_spill] sm:$0xff]  ;;  %v63_v26 = vld [vmem:[%s3814_s0 + $0x1a0] sm:$0xff]  ;;  %v4120_v56 = vld [vmem:[#allocation61_spill] sm:$0xff] }
 0x102   :  { %v1727_v45 = vmul.f32 %v4119_v57, %v239_v34  ;;  %v243_v4 = vunpack.c.l.bf16 %v63_v26 }
 0x103   :  { %v1976_v29 = vadd.f32 %v1975_v55, %v1721_v41  ;;  %v2084_v53 = vadd.f32 %v2083_v37, %v1828_v52  ;;  %v1831_v41 = vmul.f32 %v4095_v50, %v343_v62  ;;  %v1728_v50 = vmul.f32 %v4120_v56, %v240_v51  ;;  %v116_v52 = vld [vmem:[%s3814_s0 + $0x348] sm:$0xff] }
 0x104   :  { %v244_v62 = vunpack.c.h.bf16 %v63_v26  ;;  %v349_v34 = vunpack.c.l.bf16 %v116_v52  ;;  %v350_v51 = vunpack.c.h.bf16 %v116_v52 }
 0x105   :  { %v1977_v9 = vadd.f32 %v1976_v29, %v1722_v3  ;;  %v2085_v36 = vadd.f32 %v2084_v53, %v1829_v23  ;;  %v1832_v3 = vmul.f32 %v4096_v35, %v344_v28  ;;  %v4121_v29 = vld [vmem:[#allocation62_spill] sm:$0xff]  ;;  %v64_v35 = vld [vmem:[%s3814_s0 + $0x1a8] sm:$0xff] }
 0x106   :  { %v1729_v19 = vmul.f32 %v4121_v29, %v241_v63  ;;  %v4122_v23 = vld [vmem:[#allocation63_spill] sm:$0xff]  ;;  %v245_v1 = vunpack.c.l.bf16 %v64_v35 }
 0x107   :  { %v1978_v60 = vadd.f32 %v1977_v9, %v1723_v8  ;;  %v2086_v55 = vadd.f32 %v2085_v36, %v1830_v30  ;;  %v1833_v8 = vmul.f32 %v4097_v44, %v345_v16  ;;  %v1730_v44 = vmul.f32 %v4122_v23, %v242_v48  ;;  %v117_v30 = vld [vmem:[%s3814_s0 + $0x350] sm:$0xff] }
 0x108   :  { %v246_v16 = vunpack.c.h.bf16 %v64_v35  ;;  %v351_v63 = vunpack.c.l.bf16 %v117_v30  ;;  %v352_v48 = vunpack.c.h.bf16 %v117_v30 }
 0x109   :  { %v1979_v47 = vadd.f32 %v1978_v60, %v1724_v42  ;;  %v2087_v22 = vadd.f32 %v2086_v55, %v1831_v41  ;;  %v1834_v42 = vmul.f32 %v4098_v7, %v346_v43  ;;  %v4123_v60 = vld [vmem:[#allocation64_spill] sm:$0xff]  ;;  %v4124_v41 = vld [vmem:[#allocation65_spill] sm:$0xff] }
 0x10a   :  { %v1731_v28 = vmul.f32 %v4123_v60, %v243_v4  ;;  %v65_v7 = vld [vmem:[%s3814_s0 + $0x1b0] sm:$0xff] }
 0x10b   :  { %v1980_v39 = vadd.f32 %v1979_v47, %v1725_v5  ;;  %v2088_v9 = vadd.f32 %v2087_v22, %v1832_v3  ;;  %v1835_v5 = vmul.f32 %v4099_v24, %v347_v54  ;;  %v1732_v24 = vmul.f32 %v4124_v41, %v244_v62  ;;  %v118_v3 = vld [vmem:[%s3814_s0 + $0x358] sm:$0xff] }
 0x10c   :  { %v247_v26 = vunpack.c.l.bf16 %v65_v7  ;;  %v248_v54 = vunpack.c.h.bf16 %v65_v7  ;;  %v353_v4 = vunpack.c.l.bf16 %v118_v3  ;;  %v354_v62 = vunpack.c.h.bf16 %v118_v3 }
 0x10d   :  { %v1981_v13 = vadd.f32 %v1980_v39, %v1726_v15  ;;  %v2089_v40 = vadd.f32 %v2088_v9, %v1833_v8  ;;  %v1836_v15 = vmul.f32 %v4100_v12, %v348_v14  ;;  %v4125_v39 = vld [vmem:[#allocation66_spill] sm:$0xff]  ;;  %v66_v12 = vld [vmem:[%s3814_s0 + $0x1b8] sm:$0xff]  ;;  %v4126_v8 = vld [vmem:[#allocation67_spill] sm:$0xff] }
 0x10e   :  { %v1733_v43 = vmul.f32 %v4125_v39, %v245_v1  ;;  %v249_v35 = vunpack.c.l.bf16 %v66_v12 }
 0x10f   :  { %v1982_v10 = vadd.f32 %v1981_v13, %v1727_v45  ;;  %v2090_v47 = vadd.f32 %v2089_v40, %v1834_v42  ;;  %v1837_v45 = vmul.f32 %v4101_v2, %v349_v34  ;;  %v1734_v2 = vmul.f32 %v4126_v8, %v246_v16  ;;  %v119_v42 = vld [vmem:[%s3814_s0 + $0x360] sm:$0xff] }
 0x110   :  { %v250_v34 = vunpack.c.h.bf16 %v66_v12  ;;  %v355_v1 = vunpack.c.l.bf16 %v119_v42  ;;  %v356_v16 = vunpack.c.h.bf16 %v119_v42 }
 0x111   :  { %v1983_v37 = vadd.f32 %v1982_v10, %v1728_v50  ;;  %v2091_v31 = vadd.f32 %v2090_v47, %v1835_v5  ;;  %v1838_v50 = vmul.f32 %v4102_v20, %v350_v51  ;;  %v4127_v10 = vld [vmem:[#allocation68_spill] sm:$0xff]  ;;  %v67_v20 = vld [vmem:[%s3814_s0 + $0x1c0] sm:$0xff]  ;;  %v4128_v5 = vld [vmem:[#allocation69_spill] sm:$0xff] }
 0x112   :  { %v1735_v14 = vmul.f32 %v4127_v10, %v247_v26  ;;  %v251_v7 = vunpack.c.l.bf16 %v67_v20 }
 0x113   :  { %v1984_v53 = vadd.f32 %v1983_v37, %v1729_v19  ;;  %v2092_v13 = vadd.f32 %v2091_v31, %v1836_v15  ;;  %v1839_v19 = vmul.f32 %v4103_v21, %v351_v63  ;;  %v1736_v21 = vmul.f32 %v4128_v5, %v248_v54  ;;  %v120_v15 = vld [vmem:[%s3814_s0 + $0x368] sm:$0xff] }
 0x114   :  { %v252_v63 = vunpack.c.h.bf16 %v67_v20  ;;  %v357_v26 = vunpack.c.l.bf16 %v120_v15  ;;  %v358_v54 = vunpack.c.h.bf16 %v120_v15 }
 0x115   :  { %v1985_v36 = vadd.f32 %v1984_v53, %v1730_v44  ;;  %v2093_v52 = vadd.f32 %v2092_v13, %v1837_v45  ;;  %v1840_v44 = vmul.f32 %v4104_v59, %v352_v48  ;;  %v4129_v53 = vld [vmem:[#allocation70_spill] sm:$0xff]  ;;  %v68_v59 = vld [vmem:[%s3814_s0 + $0x1c8] sm:$0xff] }
 0x116   :  { %v1737_v51 = vmul.f32 %v4129_v53, %v249_v35  ;;  %v4130_v45 = vld [vmem:[#allocation71_spill] sm:$0xff]  ;;  %v253_v12 = vunpack.c.l.bf16 %v68_v59 }
 0x117   :  { %v1986_v55 = vadd.f32 %v1985_v36, %v1731_v28  ;;  %v2094_v37 = vadd.f32 %v2093_v52, %v1838_v50  ;;  %v1841_v28 = vmul.f32 %v4105_v46, %v353_v4  ;;  %v1738_v46 = vmul.f32 %v4130_v45, %v250_v34  ;;  %v121_v50 = vld [vmem:[%s3814_s0 + $0x370] sm:$0xff] }
 0x118   :  { %v254_v4 = vunpack.c.h.bf16 %v68_v59  ;;  %v359_v35 = vunpack.c.l.bf16 %v121_v50  ;;  %v360_v34 = vunpack.c.h.bf16 %v121_v50 }
 0x119   :  { %v1987_v22 = vadd.f32 %v1986_v55, %v1732_v24  ;;  %v2095_v30 = vadd.f32 %v2094_v37, %v1839_v19  ;;  %v1842_v24 = vmul.f32 %v4106_v6, %v354_v62  ;;  %v4131_v55 = vld [vmem:[#allocation72_spill] sm:$0xff]  ;;  %v4132_v19 = vld [vmem:[#allocation73_spill] sm:$0xff] }
 0x11a   :  { %v1739_v48 = vmul.f32 %v4131_v55, %v251_v7  ;;  %v69_v6 = vld [vmem:[%s3814_s0 + $0x1d0] sm:$0xff] }
 0x11b   :  { %v1988_v9 = vadd.f32 %v1987_v22, %v1733_v43  ;;  %v2096_v36 = vadd.f32 %v2095_v30, %v1840_v44  ;;  %v1843_v43 = vmul.f32 %v4107_v61, %v355_v1  ;;  %v1740_v61 = vmul.f32 %v4132_v19, %v252_v63  ;;  %v122_v44 = vld [vmem:[%s3814_s0 + $0x378] sm:$0xff] }
 0x11c   :  { %v255_v20 = vunpack.c.l.bf16 %v69_v6  ;;  %v256_v1 = vunpack.c.h.bf16 %v69_v6  ;;  %v361_v7 = vunpack.c.l.bf16 %v122_v44  ;;  %v362_v63 = vunpack.c.h.bf16 %v122_v44 }
 0x11d   :  { %v1989_v40 = vadd.f32 %v1988_v9, %v1734_v2  ;;  %v2097_v3 = vadd.f32 %v2096_v36, %v1841_v28  ;;  %v1844_v2 = vmul.f32 %v4108_v11, %v356_v16  ;;  %v4133_v9 = vld [vmem:[#allocation74_spill] sm:$0xff]  ;;  %v70_v11 = vld [vmem:[%s3814_s0 + $0x1d8] sm:$0xff]  ;;  %v4134_v28 = vld [vmem:[#allocation75_spill] sm:$0xff] }
 0x11e   :  { %v1741_v62 = vmul.f32 %v4133_v9, %v253_v12  ;;  %v257_v59 = vunpack.c.l.bf16 %v70_v11 }
 0x11f   :  { %v1990_v47 = vadd.f32 %v1989_v40, %v1735_v14  ;;  %v2098_v22 = vadd.f32 %v2097_v3, %v1842_v24  ;;  %v1845_v14 = vmul.f32 %v4109_v49, %v357_v26  ;;  %v1742_v49 = vmul.f32 %v4134_v28, %v254_v4  ;;  %v123_v24 = vld [vmem:[%s3814_s0 + $0x380] sm:$0xff] }
 0x120   :  { %v258_v26 = vunpack.c.h.bf16 %v70_v11  ;;  %v363_v12 = vunpack.c.l.bf16 %v123_v24  ;;  %v364_v4 = vunpack.c.h.bf16 %v123_v24 }
 0x121   :  { %v1991_v31 = vadd.f32 %v1990_v47, %v1736_v21  ;;  %v2099_v42 = vadd.f32 %v2098_v22, %v1843_v43  ;;  %v1846_v21 = vmul.f32 %v4110_v38, %v358_v54  ;;  %v4135_v47 = vld [vmem:[#allocation76_spill] sm:$0xff]  ;;  %v71_v38 = vld [vmem:[%s3814_s0 + $0x1e0] sm:$0xff]  ;;  %v4136_v43 = vld [vmem:[#allocation77_spill] sm:$0xff] }
 0x122   :  { %v1743_v16 = vmul.f32 %v4135_v47, %v255_v20  ;;  %v259_v6 = vunpack.c.l.bf16 %v71_v38 }
 0x123   :  { %v1992_v13 = vadd.f32 %v1991_v31, %v1737_v51  ;;  %v2100_v40 = vadd.f32 %v2099_v42, %v1844_v2  ;;  %v1847_v51 = vmul.f32 %v4111_v25, %v359_v35  ;;  %v1744_v25 = vmul.f32 %v4136_v43, %v256_v1  ;;  %v124_v2 = vld [vmem:[%s3814_s0 + $0x388] sm:$0xff] }
 0x124   :  { %v260_v35 = vunpack.c.h.bf16 %v71_v38  ;;  %v365_v20 = vunpack.c.l.bf16 %v124_v2  ;;  %v366_v1 = vunpack.c.h.bf16 %v124_v2 }
 0x125   :  { %v1993_v52 = vadd.f32 %v1992_v13, %v1738_v46  ;;  %v2101_v15 = vadd.f32 %v2100_v40, %v1845_v14  ;;  %v1848_v46 = vmul.f32 %v4112_v27, %v360_v34  ;;  %v4137_v13 = vld [vmem:[#allocation78_spill] sm:$0xff]  ;;  %v72_v27 = vld [vmem:[%s3814_s0 + $0x1e8] sm:$0xff] }
 0x126   :  { %v1745_v54 = vmul.f32 %v4137_v13, %v257_v59  ;;  %v4138_v14 = vld [vmem:[#allocation79_spill] sm:$0xff]  ;;  %v261_v11 = vunpack.c.l.bf16 %v72_v27 }
 0x127   :  { %v1994_v37 = vadd.f32 %v1993_v52, %v1739_v48  ;;  %v2102_v31 = vadd.f32 %v2101_v15, %v1846_v21  ;;  %v1849_v48 = vmul.f32 %v4113_v18, %v361_v7  ;;  %v1746_v18 = vmul.f32 %v4138_v14, %v258_v26  ;;  %v125_v21 = vld [vmem:[%s3814_s0 + $0x390] sm:$0xff] }
 0x128   :  { %v262_v7 = vunpack.c.h.bf16 %v72_v27  ;;  %v367_v59 = vunpack.c.l.bf16 %v125_v21  ;;  %v368_v26 = vunpack.c.h.bf16 %v125_v21  ;;  %v4145_v21 = vld [vmem:[#allocation86_spill] sm:$0xff] }
 0x129   :  { %v1995_v30 = vadd.f32 %v1994_v37, %v1740_v61  ;;  %v2103_v50 = vadd.f32 %v2102_v31, %v1847_v51  ;;  %v1850_v61 = vmul.f32 %v4114_v58, %v362_v63  ;;  %v4139_v37 = vld [vmem:[#allocation80_spill] sm:$0xff]  ;;  %v4140_v51 = vld [vmem:[#allocation81_spill] sm:$0xff] }
 0x12a   :  { %v1747_v34 = vmul.f32 %v4139_v37, %v259_v6  ;;  %v73_v58 = vld [vmem:[%s3814_s0 + $0x1f0] sm:$0xff] }
 0x12b   :  { %v1996_v36 = vadd.f32 %v1995_v30, %v1741_v62  ;;  %v2104_v52 = vadd.f32 %v2103_v50, %v1848_v46  ;;  %v1851_v62 = vmul.f32 %v4115_v0, %v363_v12  ;;  %v1748_v0 = vmul.f32 %v4140_v51, %v260_v35  ;;  %v126_v46 = vld [vmem:[%s3814_s0 + $0x398] sm:$0xff] }
 0x12c   :  { %v263_v38 = vunpack.c.l.bf16 %v73_v58  ;;  %v264_v12 = vunpack.c.h.bf16 %v73_v58  ;;  %v369_v6 = vunpack.c.l.bf16 %v126_v46  ;;  %v370_v35 = vunpack.c.h.bf16 %v126_v46 }
 0x12d   :  { %v1997_v3 = vadd.f32 %v1996_v36, %v1742_v49  ;;  %v2105_v44 = vadd.f32 %v2104_v52, %v1849_v48  ;;  %v1852_v49 = vmul.f32 %v4116_v17, %v364_v4  ;;  %v4141_v36 = vld [vmem:[#allocation82_spill] sm:$0xff]  ;;  %v74_v17 = vld [vmem:[%s3814_s0 + $0x1f8] sm:$0xff]  ;;  %v4142_v48 = vld [vmem:[#allocation83_spill] sm:$0xff] }
 0x12e   :  { %v1749_v63 = vmul.f32 %v4141_v36, %v261_v11  ;;  %v265_v27 = vunpack.c.l.bf16 %v74_v17 }
 0x12f   :  { %v1998_v22 = vadd.f32 %v1997_v3, %v1743_v16  ;;  %v2106_v30 = vadd.f32 %v2105_v44, %v1850_v61  ;;  %v1853_v16 = vmul.f32 %v4117_v32, %v365_v20  ;;  %v1750_v32 = vmul.f32 %v4142_v48, %v262_v7  ;;  %v127_v61 = vld [vmem:[%s3814_s0 + $0x3a0] sm:$0xff]  ;;  %v4144_v20 = vld [vmem:[#allocation85_spill] sm:$0xff]  ;;  %v4146_v7 = vld [vmem:[#allocation87_spill] sm:$0xff] }
 0x130   :  { %v371_v11 = vunpack.c.l.bf16 %v127_v61  ;;  %v1753_v58 = vmul.f32 %v4145_v21, %v265_v27 }
 0x131   :  { %v1999_v42 = vadd.f32 %v1998_v22, %v1744_v25  ;;  %v2107_v24 = vadd.f32 %v2106_v30, %v1851_v62  ;;  %v1854_v25 = vmul.f32 %v4118_v33, %v366_v1  ;;  %v4143_v22 = vld [vmem:[#allocation84_spill] sm:$0xff]  ;;  %v1856_v33 = vmul.f32 %v4120_v56, %v368_v26 }
 0x132   :  { %v1751_v4 = vmul.f32 %v4143_v22, %v263_v38  ;;  %v1752_v62 = vmul.f32 %v4144_v20, %v264_v12  ;;  %v1858_v30 = vmul.f32 %v4122_v23, %v370_v35 }
 0x133   :  { %v2000_v40 = vadd.f32 %v1999_v42, %v1745_v54  ;;  %v2108_v3 = vadd.f32 %v2107_v24, %v1852_v49  ;;  %v1855_v54 = vmul.f32 %v4119_v57, %v367_v59  ;;  %v266_v42 = vunpack.c.h.bf16 %v74_v17 }
 0x134   :  { %v1857_v57 = vmul.f32 %v4121_v29, %v369_v6  ;;  %v372_v49 = vunpack.c.h.bf16 %v127_v61  ;;  %v129_v29 = vld [vmem:[%s3814_s0 + $0x3b0] sm:$0xff] }
 0x135   :  { %v2001_v15 = vadd.f32 %v2000_v40, %v1746_v18  ;;  %v2109_v2 = vadd.f32 %v2108_v3, %v1853_v16  ;;  %v128_v40 = vld [vmem:[%s3814_s0 + $0x3a8] sm:$0xff]  ;;  %v1859_v16 = vmul.f32 %v4123_v60, %v371_v11  ;;  %v375_v26 = vunpack.c.l.bf16 %v129_v29  ;;  %v130_v3 = vld [vmem:[%s3814_s0 + $0x3b8] sm:$0xff] }
 0x136   :  { %v373_v59 = vunpack.c.l.bf16 %v128_v40  ;;  %v1860_v46 = vmul.f32 %v4124_v41, %v372_v49  ;;  %v376_v60 = vunpack.c.h.bf16 %v129_v29  ;;  %v131_v41 = vld [vmem:[%s3814_s0 + $0x3c0] sm:$0xff] }
 0x137   :  { %v2002_v31 = vadd.f32 %v2001_v15, %v1747_v34  ;;  %v2110_v18 = vadd.f32 %v2109_v2, %v1854_v25  ;;  %v1863_v6 = vmul.f32 %v4127_v10, %v375_v26  ;;  %v378_v2 = vunpack.c.h.bf16 %v130_v3 }
 0x138   :  { %v1861_v23 = vmul.f32 %v4125_v39, %v373_v59  ;;  %v1864_v39 = vmul.f32 %v4128_v5, %v376_v60  ;;  %v380_v35 = vunpack.c.h.bf16 %v131_v41  ;;  %v133_v5 = vld [vmem:[%s3814_s0 + $0x3d0] sm:$0xff] }
 0x139   :  { %v2003_v50 = vadd.f32 %v2002_v31, %v1748_v0  ;;  %v2111_v34 = vadd.f32 %v2110_v18, %v1855_v54  ;;  %v1754_v0 = vmul.f32 %v4146_v7, %v266_v42  ;;  %v1866_v10 = vmul.f32 %v4130_v45, %v378_v2  ;;  %v134_v45 = vld [vmem:[%s3814_s0 + $0x3d8] sm:$0xff] }
 0x13a   :  { %v385_v49 = vunpack.c.l.bf16 %v134_v45 }
 0x13b   :  { %v2004_v52 = vadd.f32 %v2003_v50, %v1749_v63  ;;  %v2112_v56 = vadd.f32 %v2111_v34, %v1856_v33  ;;  %v374_v63 = vunpack.c.h.bf16 %v128_v40  ;;  %v377_v50 = vunpack.c.l.bf16 %v130_v3 }
 0x13c   :  { %v384_v40 = vunpack.c.h.bf16 %v133_v5 }
 0x13d   :  { %v2005_v44 = vadd.f32 %v2004_v52, %v1750_v32  ;;  %v2113_v24 = vadd.f32 %v2112_v56, %v1857_v57  ;;  %v1862_v12 = vmul.f32 %v4126_v8, %v374_v63  ;;  %v1865_v61 = vmul.f32 %v4129_v53, %v377_v50  ;;  %v132_v8 = vld [vmem:[%s3814_s0 + $0x3c8] sm:$0xff] }
 0x13e   :  { %v381_v18 = vunpack.c.l.bf16 %v132_v8  ;;  %v1868_v53 = vmul.f32 %v4132_v19, %v380_v35  ;;  %v383_v57 = vunpack.c.l.bf16 %v133_v5  ;;  %v135_v19 = vld [vmem:[%s3814_s0 + $0x3e0] sm:$0xff] }
 0x13f   :  { %v2006_v1 = vadd.f32 %v2005_v44, %v1751_v4  ;;  %v2114_v17 = vadd.f32 %v2113_v24, %v1858_v30  ;;  %v379_v4 = vunpack.c.l.bf16 %v131_v41  ;;  %v382_v44 = vunpack.c.h.bf16 %v132_v8 }
 0x140   :  { %v1869_v34 = vmul.f32 %v4133_v9, %v381_v18  ;;  %v1871_v30 = vmul.f32 %v4135_v47, %v383_v57  ;;  %v1872_v9 = vmul.f32 %v4136_v43, %v384_v40  ;;  %v387_v59 = vunpack.c.l.bf16 %v135_v19  ;;  %v137_v43 = vld [vmem:[%s3814_s0 + $0x3f0] sm:$0xff] }
 0x141   :  { %v2007_v15 = vadd.f32 %v2006_v1, %v1752_v62  ;;  %v2115_v25 = vadd.f32 %v2114_v17, %v1859_v16  ;;  %v1867_v42 = vmul.f32 %v4131_v55, %v379_v4  ;;  %v1870_v55 = vmul.f32 %v4134_v28, %v382_v44  ;;  %v136_v28 = vld [vmem:[%s3814_s0 + $0x3e8] sm:$0xff] }
 0x142   :  { %v1873_v16 = vmul.f32 %v4137_v13, %v385_v49  ;;  %v388_v29 = vunpack.c.h.bf16 %v135_v19  ;;  %v389_v63 = vunpack.c.l.bf16 %v136_v28  ;;  %v392_v60 = vunpack.c.h.bf16 %v137_v43 }
 0x143   :  { %v2008_v38 = vadd.f32 %v2007_v15, %v1753_v58  ;;  %v2116_v32 = vadd.f32 %v2115_v25, %v1860_v46  ;;  %v1875_v46 = vmul.f32 %v4139_v37, %v387_v59 }
 0x144   :  { %v1876_v13 = vmul.f32 %v4140_v51, %v388_v29  ;;  %v1877_v25 = vmul.f32 %v4141_v36, %v389_v63  ;;  %v1880_v51 = vmul.f32 %v4144_v20, %v392_v60 }
 0x145   :  { %v2009_v31 = vadd.f32 %v2008_v38, %v1754_v0  ;;  %v2117_v54 = vadd.f32 %v2116_v32, %v1861_v23  ;;  %v386_v0 = vunpack.c.h.bf16 %v134_v45  ;;  %v391_v23 = vunpack.c.l.bf16 %v137_v43 }
 0x147   :  { %2010 = vadd.xlane.f32.xlu0 %v2009_v31  ;;  %v2118_v27 = vadd.f32 %v2117_v54, %v1862_v12  ;;  %v1874_v47 = vmul.f32 %v4138_v14, %v386_v0  ;;  %v390_v31 = vunpack.c.h.bf16 %v136_v28  ;;  %v138_v14 = vld [vmem:[%s3814_s0 + $0x3f8] sm:$0xff]  ;;  %v1879_v50 = vmul.f32 %v4143_v22, %v391_v23 }
 0x148   :  { %v393_v32 = vunpack.c.l.bf16 %v138_v14  ;;  %v394_v54 = vunpack.c.h.bf16 %v138_v14 }
 0x149   :  { %v2119_v52 = vadd.f32 %v2118_v27, %v1863_v6  ;;  %v1878_v37 = vmul.f32 %v4142_v48, %v390_v31 }
 0x14a   :  { %v1881_v2 = vmul.f32 %v4145_v21, %v393_v32 }
 0x14b   :  { %v2120_v33 = vadd.f32 %v2119_v52, %v1864_v39  ;;  %v1882_v39 = vmul.f32 %v4146_v7, %v394_v54 }
 0x14d   :  { %v2121_v62 = vadd.f32 %v2120_v33, %v1865_v61 }
 0x14f   :  { %v2122_v11 = vadd.f32 %v2121_v62, %v1866_v10 }
 0x151   :  { %v2123_v58 = vadd.f32 %v2122_v11, %v1867_v42 }
 0x153   :  { %v2124_v1 = vadd.f32 %v2123_v58, %v1868_v53 }
 0x155   :  { %v2125_v56 = vadd.f32 %v2124_v1, %v1869_v34 }
 0x157   :  { %v2126_v15 = vadd.f32 %v2125_v56, %v1870_v55 }
 0x159   :  { %v2127_v24 = vadd.f32 %v2126_v15, %v1871_v30 }
 0x15b   :  { %v2128_v38 = vadd.f32 %v2127_v24, %v1872_v9 }
 0x15d   :  { %v2129_v17 = vadd.f32 %v2128_v38, %v1873_v16 }
 0x15f   :  { %v2130_v26 = vadd.f32 %v2129_v17, %v1874_v47 }
 0x161   :  { %v2131_v3 = vadd.f32 %v2130_v26, %v1875_v46 }
 0x163   :  { %v2132_v12 = vadd.f32 %v2131_v3, %v1876_v13 }
 0x165   :  { %v2133_v6 = vadd.f32 %v2132_v12, %v1877_v25 }
 0x167   :  { %v2134_v41 = vadd.f32 %v2133_v6, %v1878_v37 }
 0x169   :  { %v2135_v36 = vadd.f32 %v2134_v41, %v1879_v50 }
 0x16b   :  { %v2136_v27 = vadd.f32 %v2135_v36, %v1880_v51 }
 0x16d   :  { %v2137_v4 = vadd.f32 %v2136_v27, %v1881_v2 }
 0x16f   :  { %v2138_v61 = vadd.f32 %v2137_v4, %v1882_v39 }
 0x171   :  { %2139 = vadd.xlane.f32.xlu0 %v2138_v61 }
 0x1d4   :  { %v2011_v52 = vpop.xlane.xlu0 %2010 }
 0x1d5   :  { %v2160_v48 = vmul.f32 -1.442695, %v2011_v52 }
 0x1d7   :  { %2162 = vpow2.f32 %v2160_v48 }
 0x1e1   :  { %v2163_v8 = vpop.eup %2162 }
 0x1e2   :  { %v2147_v35 = vadd.f32 1.0, %v2163_v8 }
 0x1e4   :  { %2164 = vrcp.f32 %v2147_v35 }
 0x1ee   :  { %v2165_v22 = vpop.eup %2164 }
 0x1ef   :  { %2154 = vst.msk [vmem:[%s3815_s2] sm:$0xff] %vm2153_vm0, %v2165_v22 }
 0x1fe   :  { %v2140_v20 = vpop.xlane.xlu0 %2139 }
 0x1ff   :  { %v2161_v21 = vmul.f32 -1.442695, %v2140_v20 }
 0x201   :  { %2166 = vpow2.f32 %v2161_v21 }
 0x20b   :  { %v2167_v7 = vpop.eup %2166 }
 0x20c   :  { %v2148_v10 = vadd.f32 1.0, %v2167_v7 }
 0x20e   :  { %2168 = vrcp.f32 %v2148_v10 }
 0x218   :  { %v2169_v33 = vpop.eup %2168 }
 0x219   :  { %2155 = vst.msk [vmem:[%s3815_s2 + $0x8] sm:$0xff] %vm2153_vm0, %v2169_v33 }

</bundles_post_ra>
